<compile_context>
chip_gen: v7x
topology: tpu7x:2x2x1
jax: 0.10.0
libtpu: 0.0.40
codegen_flags: <defaults>
</compile_context>

<pallas_src>
import jax
import jax.numpy as jnp
from jax.experimental import pallas as pl
from jax.experimental.pallas import tpu as pltpu

LATENT_DIM = 100
IMAGE_DIM = 28 * 28          # 784
HIDDEN = (256, 512, 1024)

LATENT_PAD = 128             # pad K of the first matmul to a lane multiple
IMAGE_PAD = 896              # 7 * 128 -> lane-dense, unmasked output stores

# Flipped to False at runtime if this jax build rejects pipeline_mode=pl.Buffered(1).
_USE_SINGLE_BUFFER = [True]


def _round_up(n, m):
    return (n + m - 1) // m * m


def _leaky_relu(x, slope=0.2):
    return jnp.where(x > 0, x, slope * x)


def _generator_kernel(x_ref,
                      w1_ref, b1_ref, w2_ref, b2_ref,
                      w3_ref, b3_ref, w4_ref, b4_ref,
                      o_ref):
    """One batch tile of the fused 4-layer MLP; weights stay VMEM-resident."""

    def linear(h, w_ref, b_ref):
        w = w_ref[...]
        # Match MXU operand dtypes (bf16 or f32 weights); accumulate in f32.
        acc = jnp.dot(h.astype(w.dtype), w, preferred_element_type=jnp.float32)
        return acc + b_ref[...].astype(jnp.float32)

    h = x_ref[...].astype(jnp.float32)
    h = _leaky_relu(linear(h, w1_ref, b1_ref))
    h = _leaky_relu(linear(h, w2_ref, b2_ref))
    h = _leaky_relu(linear(h, w3_ref, b3_ref))
    h = linear(h, w4_ref, b4_ref)
    o_ref[...] = jnp.tanh(h).astype(o_ref.dtype)


def _choose_tile(B, block_b):
    """Batch tile: sublane-aligned; >= 2 grid steps whenever B allows it so
    v7x's second TensorCore gets work (no effect on v5e/v6e single-TC chips)."""
    if B <= 8:
        return 8
    if B <= 2 * block_b:
        return _round_up(-(-B // 2), 8)      # ceil(B/2), rounded to sublane multiple
    return block_b


def generator_forward(x, params, *, block_b=256, out_dtype=jnp.float32, unpad=True):
    """Fused generator forward.

    x:      (B, LATENT_DIM) float array.
    params: output of prepare_params() -- pre-padded [(W, b)] with W (in, out),
            b (1, out); bf16 (default, fast) or f32 (exact).
    """
    B = x.shape[0]
    (w1, b1), (w2, b2), (w3, b3), (w4, b4) = params
    assert w1.shape == (LATENT_PAD, HIDDEN[0]) and w4.shape[1] == IMAGE_PAD, (
        "pass params through prepare_params() once; do not pad per call")

    # Pad latent K (100 -> 128) and the batch to a whole number of tiles.
    tb = _choose_tile(B, block_b)
    b_pad = _round_up(B, tb)
    x_p = jnp.pad(x.astype(jnp.float32),
                  ((0, b_pad - B), (0, LATENT_PAD - LATENT_DIM)))

    weights = (w1, b1, w2, b2, w3, b3, w4, b4)
    grid = (b_pad // tb,)

    def build(single_buffer):
        def pinned(arr):
            # Full-array block with a constant index map: DMA'd once, reused every
            # grid step (Pallas skips the copy when the block index is unchanged).
            if single_buffer:
                return pl.BlockSpec(arr.shape, lambda i: (0, 0),
                                    pipeline_mode=pl.Buffered(1))
            return pl.BlockSpec(arr.shape, lambda i: (0, 0))

        return pl.pallas_call(
            _generator_kernel,
            out_shape=jax.ShapeDtypeStruct((b_pad, IMAGE_PAD), out_dtype),
            grid=grid,
            in_specs=[pl.BlockSpec((tb, LATENT_PAD), lambda i: (i, 0))]
                     + [pinned(a) for a in weights],
            out_specs=pl.BlockSpec((tb, IMAGE_PAD), lambda i: (i, 0)),
            compiler_params=pltpu.CompilerParams(
                dimension_semantics=("parallel",),   # batch tiles across TCs (v7x)
                vmem_limit_bytes=32 * 1024 * 1024,   # fits v7x's 64 MiB physical VMEM
            ),
        )

    if _USE_SINGLE_BUFFER[0]:
        try:
            out = build(True)(x_p, *weights)
        except Exception:
            # This jax build rejects single-buffered pinned blocks; fall back.
            _USE_SINGLE_BUFFER[0] = False
            out = build(False)(x_p, *weights)
    else:
        out = build(False)(x_p, *weights)

    if unpad:
        return out[:B, :IMAGE_DIM]
    return out   # padded (b_pad, IMAGE_PAD); avoids the extra slice read+write


def init_params(key):
    """Deterministic PyTorch-nn.Linear-style init (uniform +/- 1/sqrt(fan_in)), f32."""
    dims = (LATENT_DIM,) + HIDDEN + (IMAGE_DIM,)
    params = []
    for i in range(len(dims) - 1):
        fan_in, fan_out = dims[i], dims[i + 1]
        key, kw, kb = jax.random.split(key, 3)
        bound = 1.0 / jnp.sqrt(jnp.float32(fan_in))
        w = jax.random.uniform(kw, (fan_in, fan_out), jnp.float32, -bound, bound)
        b = jax.random.uniform(kb, (1, fan_out), jnp.float32, -bound, bound)
        params.append((w, b))
    return params


def prepare_params(params, dtype=jnp.bfloat16):
    """One-time pad (w1 K 100->128, w4/b4 N 784->896, zeros) + cast.

    Call once at parameter-load time; generator_forward never pads weights per call.
    bf16 (default) halves weight HBM/VMEM footprint and hits the fast MXU path;
    use dtype=jnp.float32 for a numerically exact forward.
    """
    (w1, b1), (w2, b2), (w3, b3), (w4, b4) = params
    w1p = jnp.pad(w1, ((0, LATENT_PAD - LATENT_DIM), (0, 0)))
    w4p = jnp.pad(w4, ((0, 0), (0, IMAGE_PAD - IMAGE_DIM)))
    b4p = jnp.pad(b4, ((0, 0), (0, IMAGE_PAD - IMAGE_DIM)))
    prepped = [(w1p, b1), (w2, b2), (w3, b3), (w4p, b4p)]
    return [(w.astype(dtype), b.astype(dtype)) for w, b in prepped]


def generator_ref(x, params):
    """Pure-JAX reference (unpadded f32 params) for correctness checks."""
    h = x
    for i, (w, b) in enumerate(params):
        h = h @ w.astype(jnp.float32) + b.astype(jnp.float32)
        if i < len(params) - 1:
            h = jnp.where(h > 0, h, 0.2 * h)
        else:
            h = jnp.tanh(h)
    return h


if __name__ == "__main__":
    key = jax.random.PRNGKey(0)
    key, kx = jax.random.split(key)

    raw_params = init_params(key)                        # f32, unpadded (PyTorch-style)
    params_bf16 = prepare_params(raw_params)             # default fast path (bf16, padded)
    params_f32 = prepare_params(raw_params, jnp.float32) # exact path (f32, padded)

    # Small smoke test (single batch tile).
    batch = 8
    x = jax.random.normal(kx, (batch, LATENT_DIM), jnp.float32)
    ref = generator_ref(x, raw_params)

    # bf16 weights: matmul operands rounded to bf16 (f32 accumulate); tanh-bounded
    # output, so a loose absolute tolerance is appropriate.
    out = jax.block_until_ready(generator_forward(x, params_bf16))
    assert out.shape == (batch, IMAGE_DIM), out.shape
    assert jnp.allclose(out, ref, atol=5e-2), float(jnp.max(jnp.abs(out - ref)))

    # f32 weights: tight agreement with the pure-JAX reference.
    out32 = jax.block_until_ready(generator_forward(x, params_f32))
    assert jnp.allclose(out32, ref, atol=1e-5, rtol=1e-5), \
        float(jnp.max(jnp.abs(out32 - ref)))

    # Multi-tile path: B=200 -> 2 grid steps of 104 rows (>= 2 steps so v7x's
    # second TensorCore participates); exercises batch padding too.
    key, kx2 = jax.random.split(key)
    x2 = jax.random.normal(kx2, (200, LATENT_DIM), jnp.float32)
    out2 = jax.block_until_ready(generator_forward(x2, params_bf16))
    ref2 = generator_ref(x2, raw_params)
    assert out2.shape == (200, IMAGE_DIM), out2.shape
    assert jnp.allclose(out2, ref2, atol=5e-2), float(jnp.max(jnp.abs(out2 - ref2)))

    # bf16 output stores (halves store-side HBM traffic).
    out_bf = jax.block_until_ready(
        generator_forward(x, params_bf16, out_dtype=jnp.bfloat16))
    assert out_bf.dtype == jnp.bfloat16
    assert jnp.allclose(out_bf.astype(jnp.float32), ref, atol=6e-2), \
        float(jnp.max(jnp.abs(out_bf.astype(jnp.float32) - ref)))

    print("KERNEL_OK")
</pallas_src>

<mosaic_0001>
module attributes {stable_mosaic.version = 11 : i64} {
  func.func @_generator_kernel(%arg0: i32, %arg1: memref<8x128xf32, #tpu.memory_space<vmem>>, %arg2: memref<128x256xbf16, #tpu.memory_space<vmem>>, %arg3: memref<1x256xbf16, #tpu.memory_space<vmem>>, %arg4: memref<256x512xbf16, #tpu.memory_space<vmem>>, %arg5: memref<1x512xbf16, #tpu.memory_space<vmem>>, %arg6: memref<512x1024xbf16, #tpu.memory_space<vmem>>, %arg7: memref<1x1024xbf16, #tpu.memory_space<vmem>>, %arg8: memref<1024x896xbf16, #tpu.memory_space<vmem>>, %arg9: memref<1x896xbf16, #tpu.memory_space<vmem>>, %arg10: memref<8x896xf32, #tpu.memory_space<vmem>>) attributes {dimension_semantics = [#tpu.dimension_semantics<parallel>], iteration_bounds = array<i64: 1>, scalar_prefetch = 0 : i64, scratch_operands = 0 : i64, tpu.core_type = #tpu.core_type<tc>, window_params = [{transform_indices = @transform_0, window_bounds = array<i64: 8, 128>}, {pipeline_mode = #tpu.pipeline_mode<synchronous>, transform_indices = @transform_1, window_bounds = array<i64: 128, 256>}, {pipeline_mode = #tpu.pipeline_mode<synchronous>, transform_indices = @transform_2, window_bounds = array<i64: 1, 256>}, {pipeline_mode = #tpu.pipeline_mode<synchronous>, transform_indices = @transform_3, window_bounds = array<i64: 256, 512>}, {pipeline_mode = #tpu.pipeline_mode<synchronous>, transform_indices = @transform_4, window_bounds = array<i64: 1, 512>}, {pipeline_mode = #tpu.pipeline_mode<synchronous>, transform_indices = @transform_5, window_bounds = array<i64: 512, 1024>}, {pipeline_mode = #tpu.pipeline_mode<synchronous>, transform_indices = @transform_6, window_bounds = array<i64: 1, 1024>}, {pipeline_mode = #tpu.pipeline_mode<synchronous>, transform_indices = @transform_7, window_bounds = array<i64: 1024, 896>}, {pipeline_mode = #tpu.pipeline_mode<synchronous>, transform_indices = @transform_8, window_bounds = array<i64: 1, 896>}, {transform_indices = @transform_9, window_bounds = array<i64: 8, 896>}]} {
    %c0 = arith.constant 0 : index
    %c0_0 = arith.constant 0 : index
    %0 = vector.load %arg1[%c0, %c0_0] : memref<8x128xf32, #tpu.memory_space<vmem>>, vector<8x128xf32>
    %c0_1 = arith.constant 0 : index
    %c0_2 = arith.constant 0 : index
    %1 = vector.load %arg2[%c0_1, %c0_2] : memref<128x256xbf16, #tpu.memory_space<vmem>>, vector<128x256xbf16>
    %2 = arith.truncf %0 : vector<8x128xf32> to vector<8x128xbf16>
    %cst = arith.constant dense<0.000000e+00> : vector<8x256xf32>
    %3 = tpu.matmul %2, %1, %cst {dimension_numbers = #tpu.dot_dimension_numbers<[1], [0], [0], [1], [0, 0, 1, 1], [], []>} : vector<8x128xbf16>, vector<128x256xbf16>, vector<8x256xf32> -> vector<8x256xf32>
    %c0_3 = arith.constant 0 : index
    %c0_4 = arith.constant 0 : index
    %4 = vector.load %arg3[%c0_3, %c0_4] : memref<1x256xbf16, #tpu.memory_space<vmem>>, vector<1x256xbf16>
    %5 = arith.extf %4 : vector<1x256xbf16> to vector<1x256xf32>
    %6 = vector.broadcast %5 : vector<1x256xf32> to vector<8x256xf32>
    %7 = arith.addf %3, %6 : vector<8x256xf32>
    %cst_5 = arith.constant 0.000000e+00 : f32
    %8 = vector.broadcast %cst_5 : f32 to vector<8x256xf32>
    %9 = arith.cmpf ogt, %7, %8 : vector<8x256xf32>
    %cst_6 = arith.constant 2.000000e-01 : f32
    %10 = vector.broadcast %cst_6 : f32 to vector<8x256xf32>
    %11 = arith.mulf %10, %7 : vector<8x256xf32>
    %12 = arith.select %9, %7, %11 : vector<8x256xi1>, vector<8x256xf32>
    %c0_7 = arith.constant 0 : index
    %c0_8 = arith.constant 0 : index
    %13 = vector.load %arg4[%c0_7, %c0_8] : memref<256x512xbf16, #tpu.memory_space<vmem>>, vector<256x512xbf16>
    %14 = arith.truncf %12 : vector<8x256xf32> to vector<8x256xbf16>
    %cst_9 = arith.constant dense<0.000000e+00> : vector<8x512xf32>
    %15 = tpu.matmul %14, %13, %cst_9 {dimension_numbers = #tpu.dot_dimension_numbers<[1], [0], [0], [1], [0, 0, 1, 1], [], []>} : vector<8x256xbf16>, vector<256x512xbf16>, vector<8x512xf32> -> vector<8x512xf32>
    %c0_10 = arith.constant 0 : index
    %c0_11 = arith.constant 0 : index
    %16 = vector.load %arg5[%c0_10, %c0_11] : memref<1x512xbf16, #tpu.memory_space<vmem>>, vector<1x512xbf16>
    %17 = arith.extf %16 : vector<1x512xbf16> to vector<1x512xf32>
    %18 = vector.broadcast %17 : vector<1x512xf32> to vector<8x512xf32>
    %19 = arith.addf %15, %18 : vector<8x512xf32>
    %cst_12 = arith.constant 0.000000e+00 : f32
    %20 = vector.broadcast %cst_12 : f32 to vector<8x512xf32>
    %21 = arith.cmpf ogt, %19, %20 : vector<8x512xf32>
    %cst_13 = arith.constant 2.000000e-01 : f32
    %22 = vector.broadcast %cst_13 : f32 to vector<8x512xf32>
    %23 = arith.mulf %22, %19 : vector<8x512xf32>
    %24 = arith.select %21, %19, %23 : vector<8x512xi1>, vector<8x512xf32>
    %c0_14 = arith.constant 0 : index
    %c0_15 = arith.constant 0 : index
    %25 = vector.load %arg6[%c0_14, %c0_15] : memref<512x1024xbf16, #tpu.memory_space<vmem>>, vector<512x1024xbf16>
    %26 = arith.truncf %24 : vector<8x512xf32> to vector<8x512xbf16>
    %cst_16 = arith.constant dense<0.000000e+00> : vector<8x1024xf32>
    %27 = tpu.matmul %26, %25, %cst_16 {dimension_numbers = #tpu.dot_dimension_numbers<[1], [0], [0], [1], [0, 0, 1, 1], [], []>} : vector<8x512xbf16>, vector<512x1024xbf16>, vector<8x1024xf32> -> vector<8x1024xf32>
    %c0_17 = arith.constant 0 : index
    %c0_18 = arith.constant 0 : index
    %28 = vector.load %arg7[%c0_17, %c0_18] : memref<1x1024xbf16, #tpu.memory_space<vmem>>, vector<1x1024xbf16>
    %29 = arith.extf %28 : vector<1x1024xbf16> to vector<1x1024xf32>
    %30 = vector.broadcast %29 : vector<1x1024xf32> to vector<8x1024xf32>
    %31 = arith.addf %27, %30 : vector<8x1024xf32>
    %cst_19 = arith.constant 0.000000e+00 : f32
    %32 = vector.broadcast %cst_19 : f32 to vector<8x1024xf32>
    %33 = arith.cmpf ogt, %31, %32 : vector<8x1024xf32>
    %cst_20 = arith.constant 2.000000e-01 : f32
    %34 = vector.broadcast %cst_20 : f32 to vector<8x1024xf32>
    %35 = arith.mulf %34, %31 : vector<8x1024xf32>
    %36 = arith.select %33, %31, %35 : vector<8x1024xi1>, vector<8x1024xf32>
    %c0_21 = arith.constant 0 : index
    %c0_22 = arith.constant 0 : index
    %37 = vector.load %arg8[%c0_21, %c0_22] : memref<1024x896xbf16, #tpu.memory_space<vmem>>, vector<1024x896xbf16>
    %38 = arith.truncf %36 : vector<8x1024xf32> to vector<8x1024xbf16>
    %cst_23 = arith.constant dense<0.000000e+00> : vector<8x896xf32>
    %39 = tpu.matmul %38, %37, %cst_23 {dimension_numbers = #tpu.dot_dimension_numbers<[1], [0], [0], [1], [0, 0, 1, 1], [], []>} : vector<8x1024xbf16>, vector<1024x896xbf16>, vector<8x896xf32> -> vector<8x896xf32>
    %c0_24 = arith.constant 0 : index
    %c0_25 = arith.constant 0 : index
    %40 = vector.load %arg9[%c0_24, %c0_25] : memref<1x896xbf16, #tpu.memory_space<vmem>>, vector<1x896xbf16>
    %41 = arith.extf %40 : vector<1x896xbf16> to vector<1x896xf32>
    %42 = vector.broadcast %41 : vector<1x896xf32> to vector<8x896xf32>
    %43 = arith.addf %39, %42 : vector<8x896xf32>
    %44 = math.tanh %43 : vector<8x896xf32>
    %c0_26 = arith.constant 0 : index
    %c0_27 = arith.constant 0 : index
    %45 = vector.load %arg10[%c0_26, %c0_27] : memref<8x896xf32, #tpu.memory_space<vmem>>, vector<8x896xf32>
    tpu.vector_store %arg10[%c0_26, %c0_27], %44 {strides = array<i32>} : memref<8x896xf32, #tpu.memory_space<vmem>>, vector<8x896xf32>,
    return
  }
  func.func @transform_0(%arg0: i32) -> (i32, i32) {
    %c0_i32 = arith.constant 0 : i32
    %c0_i32_0 = arith.constant 0 : i32
    return %arg0, %c0_i32 : i32, i32
  }
  func.func @transform_1(%arg0: i32) -> (i32, i32) {
    %c0_i32 = arith.constant 0 : i32
    %c0_i32_0 = arith.constant 0 : i32
    %c0_i32_1 = arith.constant 0 : i32
    return %c0_i32, %c0_i32_0 : i32, i32
  }
  func.func @transform_2(%arg0: i32) -> (i32, i32) {
    %c0_i32 = arith.constant 0 : i32
    %c0_i32_0 = arith.constant 0 : i32
    %c0_i32_1 = arith.constant 0 : i32
    return %c0_i32, %c0_i32_0 : i32, i32
  }
  func.func @transform_3(%arg0: i32) -> (i32, i32) {
    %c0_i32 = arith.constant 0 : i32
    %c0_i32_0 = arith.constant 0 : i32
    %c0_i32_1 = arith.constant 0 : i32
    return %c0_i32, %c0_i32_0 : i32, i32
  }
  func.func @transform_4(%arg0: i32) -> (i32, i32) {
    %c0_i32 = arith.constant 0 : i32
    %c0_i32_0 = arith.constant 0 : i32
    %c0_i32_1 = arith.constant 0 : i32
    return %c0_i32, %c0_i32_0 : i32, i32
  }
  func.func @transform_5(%arg0: i32) -> (i32, i32) {
    %c0_i32 = arith.constant 0 : i32
    %c0_i32_0 = arith.constant 0 : i32
    %c0_i32_1 = arith.constant 0 : i32
    return %c0_i32, %c0_i32_0 : i32, i32
  }
  func.func @transform_6(%arg0: i32) -> (i32, i32) {
    %c0_i32 = arith.constant 0 : i32
    %c0_i32_0 = arith.constant 0 : i32
    %c0_i32_1 = arith.constant 0 : i32
    return %c0_i32, %c0_i32_0 : i32, i32
  }
  func.func @transform_7(%arg0: i32) -> (i32, i32) {
    %c0_i32 = arith.constant 0 : i32
    %c0_i32_0 = arith.constant 0 : i32
    %c0_i32_1 = arith.constant 0 : i32
    return %c0_i32, %c0_i32_0 : i32, i32
  }
  func.func @transform_8(%arg0: i32) -> (i32, i32) {
    %c0_i32 = arith.constant 0 : i32
    %c0_i32_0 = arith.constant 0 : i32
    %c0_i32_1 = arith.constant 0 : i32
    return %c0_i32, %c0_i32_0 : i32, i32
  }
  func.func @transform_9(%arg0: i32) -> (i32, i32) {
    %c0_i32 = arith.constant 0 : i32
    %c0_i32_0 = arith.constant 0 : i32
    return %arg0, %c0_i32 : i32, i32
  }
}

module attributes {stable_mosaic.version = 11 : i64} {
  func.func @_generator_kernel(%arg0: i32, %arg1: memref<8x128xf32, #tpu.memory_space<vmem>>, %arg2: memref<128x256xbf16, #tpu.memory_space<vmem>>, %arg3: memref<1x256xbf16, #tpu.memory_space<vmem>>, %arg4: memref<256x512xbf16, #tpu.memory_space<vmem>>, %arg5: memref<1x512xbf16, #tpu.memory_space<vmem>>, %arg6: memref<512x1024xbf16, #tpu.memory_space<vmem>>, %arg7: memref<1x1024xbf16, #tpu.memory_space<vmem>>, %arg8: memref<1024x896xbf16, #tpu.memory_space<vmem>>, %arg9: memref<1x896xbf16, #tpu.memory_space<vmem>>, %arg10: memref<8x896xf32, #tpu.memory_space<vmem>>) attributes {dimension_semantics = [#tpu.dimension_semantics<parallel>], iteration_bounds = array<i64: 1>, scalar_prefetch = 0 : i64, scratch_operands = 0 : i64, tpu.core_type = #tpu.core_type<tc>, window_params = [{transform_indices = @transform_0, window_bounds = array<i64: 8, 128>}, {pipeline_mode = #tpu.pipeline_mode<synchronous>, transform_indices = @transform_1, window_bounds = array<i64: 128, 256>}, {pipeline_mode = #tpu.pipeline_mode<synchronous>, transform_indices = @transform_2, window_bounds = array<i64: 1, 256>}, {pipeline_mode = #tpu.pipeline_mode<synchronous>, transform_indices = @transform_3, window_bounds = array<i64: 256, 512>}, {pipeline_mode = #tpu.pipeline_mode<synchronous>, transform_indices = @transform_4, window_bounds = array<i64: 1, 512>}, {pipeline_mode = #tpu.pipeline_mode<synchronous>, transform_indices = @transform_5, window_bounds = array<i64: 512, 1024>}, {pipeline_mode = #tpu.pipeline_mode<synchronous>, transform_indices = @transform_6, window_bounds = array<i64: 1, 1024>}, {pipeline_mode = #tpu.pipeline_mode<synchronous>, transform_indices = @transform_7, window_bounds = array<i64: 1024, 896>}, {pipeline_mode = #tpu.pipeline_mode<synchronous>, transform_indices = @transform_8, window_bounds = array<i64: 1, 896>}, {transform_indices = @transform_9, window_bounds = array<i64: 8, 896>}]} {
    %c0 = arith.constant 0 : index
    %c0_0 = arith.constant 0 : index
    %0 = vector.load %arg1[%c0, %c0_0] : memref<8x128xf32, #tpu.memory_space<vmem>>, vector<8x128xf32>
    %c0_1 = arith.constant 0 : index
    %c0_2 = arith.constant 0 : index
    %1 = vector.load %arg2[%c0_1, %c0_2] : memref<128x256xbf16, #tpu.memory_space<vmem>>, vector<128x256xbf16>
    %2 = arith.truncf %0 : vector<8x128xf32> to vector<8x128xbf16>
    %cst = arith.constant dense<0.000000e+00> : vector<8x256xf32>
    %3 = tpu.matmul %2, %1, %cst {dimension_numbers = #tpu.dot_dimension_numbers<[1], [0], [0], [1], [0, 0, 1, 1], [], []>} : vector<8x128xbf16>, vector<128x256xbf16>, vector<8x256xf32> -> vector<8x256xf32>
    %c0_3 = arith.constant 0 : index
    %c0_4 = arith.constant 0 : index
    %4 = vector.load %arg3[%c0_3, %c0_4] : memref<1x256xbf16, #tpu.memory_space<vmem>>, vector<1x256xbf16>
    %5 = arith.extf %4 : vector<1x256xbf16> to vector<1x256xf32>
    %6 = vector.broadcast %5 : vector<1x256xf32> to vector<8x256xf32>
    %7 = arith.addf %3, %6 : vector<8x256xf32>
    %cst_5 = arith.constant 0.000000e+00 : f32
    %8 = vector.broadcast %cst_5 : f32 to vector<8x256xf32>
    %9 = arith.cmpf ogt, %7, %8 : vector<8x256xf32>
    %cst_6 = arith.constant 2.000000e-01 : f32
    %10 = vector.broadcast %cst_6 : f32 to vector<8x256xf32>
    %11 = arith.mulf %10, %7 : vector<8x256xf32>
    %12 = arith.select %9, %7, %11 : vector<8x256xi1>, vector<8x256xf32>
    %c0_7 = arith.constant 0 : index
    %c0_8 = arith.constant 0 : index
    %13 = vector.load %arg4[%c0_7, %c0_8] : memref<256x512xbf16, #tpu.memory_space<vmem>>, vector<256x512xbf16>
    %14 = arith.truncf %12 : vector<8x256xf32> to vector<8x256xbf16>
    %cst_9 = arith.constant dense<0.000000e+00> : vector<8x512xf32>
    %15 = tpu.matmul %14, %13, %cst_9 {dimension_numbers = #tpu.dot_dimension_numbers<[1], [0], [0], [1], [0, 0, 1, 1], [], []>} : vector<8x256xbf16>, vector<256x512xbf16>, vector<8x512xf32> -> vector<8x512xf32>
    %c0_10 = arith.constant 0 : index
    %c0_11 = arith.constant 0 : index
    %16 = vector.load %arg5[%c0_10, %c0_11] : memref<1x512xbf16, #tpu.memory_space<vmem>>, vector<1x512xbf16>
    %17 = arith.extf %16 : vector<1x512xbf16> to vector<1x512xf32>
    %18 = vector.broadcast %17 : vector<1x512xf32> to vector<8x512xf32>
    %19 = arith.addf %15, %18 : vector<8x512xf32>
    %cst_12 = arith.constant 0.000000e+00 : f32
    %20 = vector.broadcast %cst_12 : f32 to vector<8x512xf32>
    %21 = arith.cmpf ogt, %19, %20 : vector<8x512xf32>
    %cst_13 = arith.constant 2.000000e-01 : f32
    %22 = vector.broadcast %cst_13 : f32 to vector<8x512xf32>
    %23 = arith.mulf %22, %19 : vector<8x512xf32>
    %24 = arith.select %21, %19, %23 : vector<8x512xi1>, vector<8x512xf32>
    %c0_14 = arith.constant 0 : index
    %c0_15 = arith.constant 0 : index
    %25 = vector.load %arg6[%c0_14, %c0_15] : memref<512x1024xbf16, #tpu.memory_space<vmem>>, vector<512x1024xbf16>
    %26 = arith.truncf %24 : vector<8x512xf32> to vector<8x512xbf16>
    %cst_16 = arith.constant dense<0.000000e+00> : vector<8x1024xf32>
    %27 = tpu.matmul %26, %25, %cst_16 {dimension_numbers = #tpu.dot_dimension_numbers<[1], [0], [0], [1], [0, 0, 1, 1], [], []>} : vector<8x512xbf16>, vector<512x1024xbf16>, vector<8x1024xf32> -> vector<8x1024xf32>
    %c0_17 = arith.constant 0 : index
    %c0_18 = arith.constant 0 : index
    %28 = vector.load %arg7[%c0_17, %c0_18] : memref<1x1024xbf16, #tpu.memory_space<vmem>>, vector<1x1024xbf16>
    %29 = arith.extf %28 : vector<1x1024xbf16> to vector<1x1024xf32>
    %30 = vector.broadcast %29 : vector<1x1024xf32> to vector<8x1024xf32>
    %31 = arith.addf %27, %30 : vector<8x1024xf32>
    %cst_19 = arith.constant 0.000000e+00 : f32
    %32 = vector.broadcast %cst_19 : f32 to vector<8x1024xf32>
    %33 = arith.cmpf ogt, %31, %32 : vector<8x1024xf32>
    %cst_20 = arith.constant 2.000000e-01 : f32
    %34 = vector.broadcast %cst_20 : f32 to vector<8x1024xf32>
    %35 = arith.mulf %34, %31 : vector<8x1024xf32>
    %36 = arith.select %33, %31, %35 : vector<8x1024xi1>, vector<8x1024xf32>
    %c0_21 = arith.constant 0 : index
    %c0_22 = arith.constant 0 : index
    %37 = vector.load %arg8[%c0_21, %c0_22] : memref<1024x896xbf16, #tpu.memory_space<vmem>>, vector<1024x896xbf16>
    %38 = arith.truncf %36 : vector<8x1024xf32> to vector<8x1024xbf16>
    %cst_23 = arith.constant dense<0.000000e+00> : vector<8x896xf32>
    %39 = tpu.matmul %38, %37, %cst_23 {dimension_numbers = #tpu.dot_dimension_numbers<[1], [0], [0], [1], [0, 0, 1, 1], [], []>} : vector<8x1024xbf16>, vector<1024x896xbf16>, vector<8x896xf32> -> vector<8x896xf32>
    %c0_24 = arith.constant 0 : index
    %c0_25 = arith.constant 0 : index
    %40 = vector.load %arg9[%c0_24, %c0_25] : memref<1x896xbf16, #tpu.memory_space<vmem>>, vector<1x896xbf16>
    %41 = arith.extf %40 : vector<1x896xbf16> to vector<1x896xf32>
    %42 = vector.broadcast %41 : vector<1x896xf32> to vector<8x896xf32>
    %43 = arith.addf %39, %42 : vector<8x896xf32>
    %44 = math.tanh %43 : vector<8x896xf32>
    %c0_26 = arith.constant 0 : index
    %c0_27 = arith.constant 0 : index
    %45 = vector.load %arg10[%c0_26, %c0_27] : memref<8x896xf32, #tpu.memory_space<vmem>>, vector<8x896xf32>
    tpu.vector_store %arg10[%c0_26, %c0_27], %44 {strides = array<i32>} : memref<8x896xf32, #tpu.memory_space<vmem>>, vector<8x896xf32>,
    return
  }
  func.func @transform_0(%arg0: i32) -> (i32, i32) {
    %c0_i32 = arith.constant 0 : i32
    %c0_i32_0 = arith.constant 0 : i32
    return %arg0, %c0_i32 : i32, i32
  }
  func.func @transform_1(%arg0: i32) -> (i32, i32) {
    %c0_i32 = arith.constant 0 : i32
    %c0_i32_0 = arith.constant 0 : i32
    %c0_i32_1 = arith.constant 0 : i32
    return %c0_i32, %c0_i32_0 : i32, i32
  }
  func.func @transform_2(%arg0: i32) -> (i32, i32) {
    %c0_i32 = arith.constant 0 : i32
    %c0_i32_0 = arith.constant 0 : i32
    %c0_i32_1 = arith.constant 0 : i32
    return %c0_i32, %c0_i32_0 : i32, i32
  }
  func.func @transform_3(%arg0: i32) -> (i32, i32) {
    %c0_i32 = arith.constant 0 : i32
    %c0_i32_0 = arith.constant 0 : i32
    %c0_i32_1 = arith.constant 0 : i32
    return %c0_i32, %c0_i32_0 : i32, i32
  }
  func.func @transform_4(%arg0: i32) -> (i32, i32) {
    %c0_i32 = arith.constant 0 : i32
    %c0_i32_0 = arith.constant 0 : i32
    %c0_i32_1 = arith.constant 0 : i32
    return %c0_i32, %c0_i32_0 : i32, i32
  }
  func.func @transform_5(%arg0: i32) -> (i32, i32) {
    %c0_i32 = arith.constant 0 : i32
    %c0_i32_0 = arith.constant 0 : i32
    %c0_i32_1 = arith.constant 0 : i32
    return %c0_i32, %c0_i32_0 : i32, i32
  }
  func.func @transform_6(%arg0: i32) -> (i32, i32) {
    %c0_i32 = arith.constant 0 : i32
    %c0_i32_0 = arith.constant 0 : i32
    %c0_i32_1 = arith.constant 0 : i32
    return %c0_i32, %c0_i32_0 : i32, i32
  }
  func.func @transform_7(%arg0: i32) -> (i32, i32) {
    %c0_i32 = arith.constant 0 : i32
    %c0_i32_0 = arith.constant 0 : i32
    %c0_i32_1 = arith.constant 0 : i32
    return %c0_i32, %c0_i32_0 : i32, i32
  }
  func.func @transform_8(%arg0: i32) -> (i32, i32) {
    %c0_i32 = arith.constant 0 : i32
    %c0_i32_0 = arith.constant 0 : i32
    %c0_i32_1 = arith.constant 0 : i32
    return %c0_i32, %c0_i32_0 : i32, i32
  }
  func.func @transform_9(%arg0: i32) -> (i32, i32) {
    %c0_i32 = arith.constant 0 : i32
    %c0_i32_0 = arith.constant 0 : i32
    return %arg0, %c0_i32 : i32, i32
  }
}

</mosaic_0001>

<bundles_post_ra>
// kernel: tpu_custom_call.1
= control target key start
LH: loop header
LB: loop body
LE: loop exit
PB: predicated region body
PF: predicated region fallthrough
CT: control target
= control target key end

     0   :  { %14 = vsyncpa [#allocation3], 0  ;;  %s8707_s0 = inlined_call_operand.hbm [shape: f32[8,128], index: 0, kind: input, shape index: {}]   ;;  %s8708_s1 = inlined_call_operand.hbm [shape: bf16[128,256], index: 1, kind: input, shape index: {}]   ;;  %s8709_s2 = inlined_call_operand.hbm [shape: bf16[1,256], index: 2, kind: input, shape index: {}]   ;;  %s8710_s3 = inlined_call_operand.hbm [shape: bf16[256,512], index: 3, kind: input, shape index: {}]   ;;  %s8711_s4 = inlined_call_operand.hbm [shape: bf16[1,512], index: 4, kind: input, shape index: {}]   ;;  %s8712_s5 = inlined_call_operand.hbm [shape: bf16[512,1024], index: 5, kind: input, shape index: {}]   ;;  %s8713_s6 = inlined_call_operand.hbm [shape: bf16[1,1024], index: 6, kind: input, shape index: {}]   ;;  %s8714_s7 = inlined_call_operand.hbm [shape: bf16[1024,896], index: 7, kind: input, shape index: {}]   ;;  %s8715_s8 = inlined_call_operand.hbm [shape: bf16[1,896], index: 8, kind: input, shape index: {}]   ;;  %s8716_s9 = inlined_call_operand.hbm [shape: f32[8,896], index: 9, kind: output, shape index: {}]  }
   0x1   :  { %15 = vsyncpa [#allocation6], 0 }
   0x2   :  { %16 = vsyncpa [#allocation9], 0 }
   0x3   :  { %17 = vsyncpa [#allocation12], 0 }
   0x4   :  { %18 = vsyncpa [#allocation15], 0 }
   0x5   :  { %19 = vsyncpa [#allocation4], 0  ;;  %s8340_s30 = smov [#allocation5]   ;;  %s8108_s13 = scalar_lea.hbm %s8708_s1, 2048 }
   0x6   :  { %s35_s10 = sshll.u32 %s8340_s30, 4  ;;  %p8109_p0 = scmp.ne.s32.totalorder %s8708_s1, %s8108_s13  ;;  %s36_s10 = int_to_ptr.vmem [resolvable:$true] %s35_s10 }
   0x7   :  { %p8112_p1 = scmp.lt.u32.totalorder %s8108_s13, %s8708_s1 }
   0x9   :  { %p8114_p2 = pnand %p8112_p1, %p8109_p0 }
   0xb   :  { %8117 = shalt.err (!%p8114_p2)
}
   0xc   :  { %s8118_s18 = scalar_lea.vmem %s36_s10, 2048  ;;  %p8123_p4 = scmp.lt.s32.totalorder %s36_s10, %s36_s10 }
   0xd   :  { %p8119_p3 = scmp.ne.s32.totalorder %s36_s10, %s8118_s18  ;;  %p8124_p5 = scmp.lt.s32.totalorder %s8118_s18, %s8118_s18 }
   0xf   :  { %p8125_p6 = por %p8124_p5, %p8123_p4 }
  0x11   :  { %p8126_p7 = pnand %p8125_p6, %p8119_p3 }
  0x13   :  { %8129 = shalt.err (!%p8126_p7)
}
  0x14   :  { %s8341_s19 = smov 128   ;;  %s8342_s20 = smov 8  }
  0x15   :  { %41 = dma.hbm_to_vmem [thread:$0]  %s8708_s1, 2048, %s36_s10, [#allocation6], %s8341_s19, %s8341_s19, %s8342_s20  }
  0x16   :  { %s8343_s23 = smov [#allocation8]   ;;  %s8130_s27 = scalar_lea.hbm %s8710_s3, 8192 }
  0x17   :  { %s57_s24 = sshll.u32 %s8343_s23, 4  ;;  %p8131_p8 = scmp.ne.s32.totalorder %s8710_s3, %s8130_s27  ;;  %s58_s24 = int_to_ptr.vmem [resolvable:$true] %s57_s24 }
  0x18   :  { %p8134_p9 = scmp.lt.u32.totalorder %s8130_s27, %s8710_s3 }
  0x1a   :  { %p8136_p10 = pnand %p8134_p9, %p8131_p8 }
  0x1c   :  { %8139 = shalt.err (!%p8136_p10)
}
  0x1d   :  { %s8140_s12 = scalar_lea.vmem %s58_s24, 8192  ;;  %p8145_p12 = scmp.lt.s32.totalorder %s58_s24, %s58_s24 }
  0x1e   :  { %p8141_p11 = scmp.ne.s32.totalorder %s58_s24, %s8140_s12  ;;  %p8146_p13 = scmp.lt.s32.totalorder %s8140_s12, %s8140_s12 }
  0x20   :  { %p8147_p0 = por %p8146_p13, %p8145_p12 }
  0x22   :  { %p8148_p1 = pnand %p8147_p0, %p8141_p11 }
  0x24   :  { %8151 = shalt.err (!%p8148_p1)
}
  0x25   :  { %s8344_s1 = smov 256   ;;  %s8345_s10 = smov 16  }
  0x26   :  { %63 = dma.hbm_to_vmem [thread:$0]  %s8710_s3, 8192, %s58_s24, [#allocation9], %s8344_s1, %s8344_s1, %s8345_s10  }
  0x27   :  { %s8346_s15 = smov [#allocation11]   ;;  %s8152_s19 = scalar_lea.hbm %s8712_s5, 32768 }
  0x28   :  { %s79_s16 = sshll.u32 %s8346_s15, 4  ;;  %p8153_p2 = scmp.ne.s32.totalorder %s8712_s5, %s8152_s19  ;;  %s80_s16 = int_to_ptr.vmem [resolvable:$true] %s79_s16 }
  0x29   :  { %p8156_p3 = scmp.lt.u32.totalorder %s8152_s19, %s8712_s5 }
  0x2b   :  { %p8158_p4 = pnand %p8156_p3, %p8153_p2 }
  0x2d   :  { %8161 = shalt.err (!%p8158_p4)
}
  0x2e   :  { %s8162_s25 = scalar_lea.vmem %s80_s16, 32768  ;;  %p8167_p6 = scmp.lt.s32.totalorder %s80_s16, %s80_s16 }
  0x2f   :  { %p8163_p5 = scmp.ne.s32.totalorder %s80_s16, %s8162_s25  ;;  %p8168_p7 = scmp.lt.s32.totalorder %s8162_s25, %s8162_s25 }
  0x31   :  { %p8169_p8 = por %p8168_p7, %p8167_p6 }
  0x33   :  { %p8170_p9 = pnand %p8169_p8, %p8163_p5 }
  0x35   :  { %8173 = shalt.err (!%p8170_p9)
}
  0x36   :  { %s8347_s3 = smov 512   ;;  %s8348_s24 = smov 32  }
  0x37   :  { %85 = dma.hbm_to_vmem [thread:$0]  %s8712_s5, 32768, %s80_s16, [#allocation12], %s8347_s3, %s8347_s3, %s8348_s24  }
  0x38   :  { %s8349_s28 = smov [#allocation14]   ;;  %s8174_s12 = scalar_lea.hbm %s8714_s7, 57344 }
  0x39   :  { %s101_s29 = sshll.u32 %s8349_s28, 4  ;;  %p8175_p10 = scmp.ne.s32.totalorder %s8714_s7, %s8174_s12  ;;  %s102_s29 = int_to_ptr.vmem [resolvable:$true] %s101_s29 }
  0x3a   :  { %p8178_p11 = scmp.lt.u32.totalorder %s8174_s12, %s8714_s7 }
  0x3c   :  { %p8180_p12 = pnand %p8178_p11, %p8175_p10 }
  0x3e   :  { %8183 = shalt.err (!%p8180_p12)
}
  0x3f   :  { %s8184_s15 = scalar_lea.vmem %s102_s29, 57344  ;;  %p8189_p0 = scmp.lt.s32.totalorder %s102_s29, %s102_s29 }
  0x40   :  { %p8185_p13 = scmp.ne.s32.totalorder %s102_s29, %s8184_s15  ;;  %p8190_p1 = scmp.lt.s32.totalorder %s8184_s15, %s8184_s15 }
  0x42   :  { %p8191_p2 = por %p8190_p1, %p8189_p0 }
  0x44   :  { %p8192_p3 = pnand %p8191_p2, %p8185_p13 }
  0x46   :  { %8195 = shalt.err (!%p8192_p3)
}
  0x47   :  { %s8350_s5 = smov 448   ;;  %s8351_s16 = smov 28  }
  0x48   :  { %107 = dma.hbm_to_vmem [thread:$0]  %s8714_s7, 57344, %s102_s29, [#allocation15], %s8350_s5, %s8350_s5, %s8351_s16  }
  0x49   :  { %s8352_s19 = smov [#allocation2]   ;;  %s8353_s21 = smov [#allocation7]  }
  0x4a   :  { %s26_s20 = sshll.u32 %s8352_s19, 4  ;;  %s48_s22 = sshll.u32 %s8353_s21, 4  ;;  %s27_s20 = int_to_ptr.vmem [resolvable:$true] %s26_s20  ;;  %s49_s22 = int_to_ptr.vmem [resolvable:$true] %s48_s22 }
  0x4b   :  { %s8196_s3 = scalar_lea.hbm %s8707_s0, 128 }
  0x4c   :  { %p8197_p4 = scmp.ne.s32.totalorder %s8707_s0, %s8196_s3  ;;  %p8200_p5 = scmp.lt.u32.totalorder %s8196_s3, %s8707_s0 }
  0x4e   :  { %p8202_p6 = pnand %p8200_p5, %p8197_p4 }
  0x50   :  { %8205 = shalt.err (!%p8202_p6)
}
  0x51   :  { %s8206_s7 = scalar_lea.vmem %s27_s20, 128  ;;  %p8211_p8 = scmp.lt.s32.totalorder %s27_s20, %s27_s20 }
  0x52   :  { %p8207_p7 = scmp.ne.s32.totalorder %s27_s20, %s8206_s7  ;;  %p8212_p9 = scmp.lt.s32.totalorder %s8206_s7, %s8206_s7 }
  0x54   :  { %p8213_p10 = por %p8212_p9, %p8211_p8 }
  0x56   :  { %p8214_p11 = pnand %p8213_p10, %p8207_p7 }
  0x58   :  { %8217 = shalt.err (!%p8214_p11)
}
  0x59   :  { %29 = dma.hbm_to_vmem [thread:$0]  %s8707_s0, 128, %s27_s20, [#allocation3]  }
  0x5a   :  { %s8218_s1 = scalar_lea.hbm %s8709_s2, 32 }
  0x5b   :  { %p8219_p12 = scmp.ne.s32.totalorder %s8709_s2, %s8218_s1  ;;  %p8222_p13 = scmp.lt.u32.totalorder %s8218_s1, %s8709_s2 }
  0x5d   :  { %p8224_p0 = pnand %p8222_p13, %p8219_p12 }
  0x5f   :  { %8227 = shalt.err (!%p8224_p0)
}
  0x60   :  { %s8228_s5 = scalar_lea.vmem %s49_s22, 32  ;;  %p8233_p2 = scmp.lt.s32.totalorder %s49_s22, %s49_s22 }
  0x61   :  { %p8229_p1 = scmp.ne.s32.totalorder %s49_s22, %s8228_s5  ;;  %p8234_p3 = scmp.lt.s32.totalorder %s8228_s5, %s8228_s5 }
  0x63   :  { %p8235_p4 = por %p8234_p3, %p8233_p2 }
  0x65   :  { %p8236_p5 = pnand %p8235_p4, %p8229_p1 }
  0x67   :  { %8239 = shalt.err (!%p8236_p5)
}
  0x68   :  { %51 = dma.hbm_to_vmem [thread:$0]  %s8709_s2, 32, %s49_s22, [#allocation6]  }
  0x69   :  { %s8354_s17 = smov [#allocation10]   ;;  %s8355_s19 = smov [#allocation13]  }
  0x6a   :  { %s70_s18 = sshll.u32 %s8354_s17, 4  ;;  %s92_s20 = sshll.u32 %s8355_s19, 4  ;;  %s71_s18 = int_to_ptr.vmem [resolvable:$true] %s70_s18  ;;  %s93_s20 = int_to_ptr.vmem [resolvable:$true] %s92_s20 }
  0x6b   :  { %s8240_s25 = scalar_lea.hbm %s8711_s4, 64 }
  0x6c   :  { %p8241_p6 = scmp.ne.s32.totalorder %s8711_s4, %s8240_s25  ;;  %p8244_p7 = scmp.lt.u32.totalorder %s8240_s25, %s8711_s4 }
  0x6e   :  { %p8246_p8 = pnand %p8244_p7, %p8241_p6 }
  0x70   :  { %8249 = shalt.err (!%p8246_p8)
}
  0x71   :  { %s8250_s2 = scalar_lea.vmem %s71_s18, 64  ;;  %p8255_p10 = scmp.lt.s32.totalorder %s71_s18, %s71_s18 }
  0x72   :  { %p8251_p9 = scmp.ne.s32.totalorder %s71_s18, %s8250_s2  ;;  %p8256_p11 = scmp.lt.s32.totalorder %s8250_s2, %s8250_s2 }
  0x74   :  { %p8257_p12 = por %p8256_p11, %p8255_p10 }
  0x76   :  { %p8258_p13 = pnand %p8257_p12, %p8251_p9 }
  0x78   :  { %8261 = shalt.err (!%p8258_p13)
}
  0x79   :  { %73 = dma.hbm_to_vmem [thread:$0]  %s8711_s4, 64, %s71_s18, [#allocation9]  }
  0x7a   :  { %s8262_s30 = scalar_lea.hbm %s8713_s6, 128 }
  0x7b   :  { %p8263_p0 = scmp.ne.s32.totalorder %s8713_s6, %s8262_s30  ;;  %p8266_p1 = scmp.lt.u32.totalorder %s8262_s30, %s8713_s6 }
  0x7d   :  { %p8268_p2 = pnand %p8266_p1, %p8263_p0 }
  0x7f   :  { %8271 = shalt.err (!%p8268_p2)
}
  0x80   :  { %s8272_s13 = scalar_lea.vmem %s93_s20, 128  ;;  %p8277_p4 = scmp.lt.s32.totalorder %s93_s20, %s93_s20 }
  0x81   :  { %p8273_p3 = scmp.ne.s32.totalorder %s93_s20, %s8272_s13  ;;  %p8278_p5 = scmp.lt.s32.totalorder %s8272_s13, %s8272_s13 }
  0x83   :  { %p8279_p6 = por %p8278_p5, %p8277_p4 }
  0x85   :  { %p8280_p7 = pnand %p8279_p6, %p8273_p3 }
  0x87   :  { %8283 = shalt.err (!%p8280_p7)
}
  0x88   :  { %95 = dma.hbm_to_vmem [thread:$0]  %s8713_s6, 128, %s93_s20, [#allocation12]  }
  0x89   :  { %s8356_s15 = smov [#allocation16]   ;;  %s8284_s17 = scalar_lea.hbm %s8715_s8, 112 }
  0x8a   :  { %s114_s5 = sshll.u32 %s8356_s15, 4  ;;  %p8285_p8 = scmp.ne.s32.totalorder %s8715_s8, %s8284_s17  ;;  %s115_s5 = int_to_ptr.vmem [resolvable:$true] %s114_s5 }
  0x8b   :  { %p8288_p9 = scmp.lt.u32.totalorder %s8284_s17, %s8715_s8 }
  0x8d   :  { %p8290_p10 = pnand %p8288_p9, %p8285_p8 }
  0x8f   :  { %8293 = shalt.err (!%p8290_p10)
}
  0x90   :  { %s8294_s25 = scalar_lea.vmem %s115_s5, 112  ;;  %s8298_s6 = scalar_lea.vmem %s115_s5, 128 }
  0x91   :  { %p8295_p11 = scmp.ne.s32.totalorder %s115_s5, %s8294_s25  ;;  %p8299_p12 = scmp.lt.s32.totalorder %s115_s5, %s115_s5 }
  0x92   :  { %p8300_p13 = scmp.lt.s32.totalorder %s8298_s6, %s8294_s25 }
  0x94   :  { %p8301_p0 = por %p8300_p13, %p8299_p12 }
  0x96   :  { %p8302_p1 = pnand %p8301_p0, %p8295_p11 }
  0x98   :  { %8305 = shalt.err (!%p8302_p1)
}
  0x99   :  { %117 = dma.hbm_to_vmem [thread:$0]  %s8715_s8, 112, %s115_s5, [#allocation15]  }
  0x9a   :  { %8328 = dma.done.wait [#allocation3], 128  }
  0x9b   :  { %8329 = vsyncadd [#allocation3], 4294967168 }
  0x9c   :  { %8330 = dma.done.wait [#allocation6], 2080  }
  0x9d   :  { %8331 = vsyncadd [#allocation6], 4294965216 }
  0x9e   :  { %8332 = dma.done.wait [#allocation9], 8256  }
  0x9f   :  { %8333 = vsyncadd [#allocation9], 4294959040 }
  0xa0   :  { %8334 = dma.done.wait [#allocation12], 32896  }
  0xa1   :  { %8335 = vsyncadd [#allocation12], 4294934400 }
  0xa2   :  { %8336 = dma.done.wait [#allocation15], 57456  }
  0xa3   :  { %8337 = vsyncadd [#allocation15], 4294909840  ;;  %v8357_v0 = vmov 0   ;;  %v7334_v1 = vld [vmem:[#allocation5 + $0x4] ss:$8 sps:$4 sm:$0xff]   ;;  %v146_v17 = vld [vmem:[#allocation2] sm:$0xff] }
  0xa4   :  { %297 = vmatprep.mubr.bf16.mxu0 %v8357_v0  ;;  %v7336_v2 = vld [vmem:[#allocation5] ss:$8 sps:$4 sm:$0xff]   ;;  %265 = vmatprep.subr.bf16.mxu0 %v7334_v1  ;;  %v7337_v3 = vld [vmem:[#allocation5 + $0x14] ss:$8 sps:$4 sm:$0xff]   ;;  %v7339_v4 = vld [vmem:[#allocation5 + $0x10] ss:$8 sps:$4 sm:$0xff]   ;;  %v163_v20 = vpack.c.bf16 %v146_v17, %v146_v17 }
  0xa5   :  { %266 = vmatpush1.bf16.msra.mxu0 %v7336_v2  ;;  %v7340_v5 = vld [vmem:[#allocation5 + $0x24] ss:$8 sps:$4 sm:$0xff]   ;;  %v7342_v6 = vld [vmem:[#allocation5 + $0x20] ss:$8 sps:$4 sm:$0xff]   ;;  %v7343_v7 = vld [vmem:[#allocation5 + $0x34] ss:$8 sps:$4 sm:$0xff]  }
  0xa6   :  { %267 = vmatprep.subr.bf16.mxu0 %v7337_v3  ;;  %v7345_v8 = vld [vmem:[#allocation5 + $0x30] ss:$8 sps:$4 sm:$0xff]   ;;  %v7346_v9 = vld [vmem:[#allocation5 + $0x44] ss:$8 sps:$4 sm:$0xff]   ;;  %v7348_v10 = vld [vmem:[#allocation5 + $0x40] ss:$8 sps:$4 sm:$0xff]  }
  0xa7   :  { %v7349_v11 = vld [vmem:[#allocation5 + $0x54] ss:$8 sps:$4 sm:$0xff]   ;;  %v7351_v12 = vld [vmem:[#allocation5 + $0x50] ss:$8 sps:$4 sm:$0xff]   ;;  %v7352_v13 = vld [vmem:[#allocation5 + $0x64] ss:$8 sps:$4 sm:$0xff]  }
  0xa8   :  { %v7354_v14 = vld [vmem:[#allocation5 + $0x60] ss:$8 sps:$4 sm:$0xff]   ;;  %v7355_v15 = vld [vmem:[#allocation5 + $0x74] ss:$8 sps:$4 sm:$0xff]   ;;  %v7357_v16 = vld [vmem:[#allocation5 + $0x70] ss:$8 sps:$4 sm:$0xff]  }
  0xa9   :  { %268 = vmatpush1.bf16.msra.mxu0 %v7339_v4  ;;  %v7360_v18 = vld [vmem:[#allocation8 + $0x4] ss:$16 sps:$4 sm:$0xff]   ;;  %v7358_v19 = vld [vmem:[#allocation8] ss:$16 sps:$4 sm:$0xff]   ;;  %v7408_v51 = vld [vmem:[#allocation8 + $0xc] ss:$16 sps:$4 sm:$0xff]  }
  0xaa   :  { %269 = vmatprep.subr.bf16.mxu0 %v7340_v5  ;;  %v7363_v21 = vld [vmem:[#allocation8 + $0x24] ss:$16 sps:$4 sm:$0xff]   ;;  %v7361_v22 = vld [vmem:[#allocation8 + $0x20] ss:$16 sps:$4 sm:$0xff]   ;;  %s8358_s8 = smov [#allocation17]  }
  0xab   :  { %v7366_v23 = vld [vmem:[#allocation8 + $0x44] ss:$16 sps:$4 sm:$0xff]   ;;  %v7364_v24 = vld [vmem:[#allocation8 + $0x40] ss:$16 sps:$4 sm:$0xff]   ;;  %s6364_s24 = sshll.u32 %s8358_s8, 4  ;;  %s6365_s24 = int_to_ptr.vmem [resolvable:$true] %s6364_s24 }
  0xac   :  { %v7369_v25 = vld [vmem:[#allocation8 + $0x64] ss:$16 sps:$4 sm:$0xff]   ;;  %v7367_v26 = vld [vmem:[#allocation8 + $0x60] ss:$16 sps:$4 sm:$0xff]   ;;  %s8306_s26 = scalar_lea.vmem %s6365_s24, 896  ;;  %p8311_p3 = scmp.lt.s32.totalorder %s6365_s24, %s6365_s24 }
  0xad   :  { %270 = vmatpush1.bf16.msra.mxu0 %v7342_v6  ;;  %v7372_v27 = vld [vmem:[#allocation8 + $0x84] ss:$16 sps:$4 sm:$0xff]   ;;  %v7370_v28 = vld [vmem:[#allocation8 + $0x80] ss:$16 sps:$4 sm:$0xff]   ;;  %p8307_p2 = scmp.ne.s32.totalorder %s6365_s24, %s8306_s26  ;;  %p8312_p4 = scmp.lt.s32.totalorder %s8306_s26, %s8306_s26 }
  0xae   :  { %271 = vmatprep.subr.bf16.mxu0 %v7343_v7  ;;  %v7375_v29 = vld [vmem:[#allocation8 + $0xa4] ss:$16 sps:$4 sm:$0xff]   ;;  %v7373_v30 = vld [vmem:[#allocation8 + $0xa0] ss:$16 sps:$4 sm:$0xff]  }
  0xaf   :  { %v7378_v31 = vld [vmem:[#allocation8 + $0xc4] ss:$16 sps:$4 sm:$0xff]   ;;  %v7376_v32 = vld [vmem:[#allocation8 + $0xc0] ss:$16 sps:$4 sm:$0xff]   ;;  %p8313_p5 = por %p8312_p4, %p8311_p3 }
  0xb0   :  { %v7381_v33 = vld [vmem:[#allocation8 + $0xe4] ss:$16 sps:$4 sm:$0xff]   ;;  %v7379_v34 = vld [vmem:[#allocation8 + $0xe0] ss:$16 sps:$4 sm:$0xff]  }
  0xb1   :  { %272 = vmatpush1.bf16.msra.mxu0 %v7345_v8  ;;  %v7384_v35 = vld [vmem:[#allocation8 + $0x104] ss:$16 sps:$4 sm:$0xff]   ;;  %v7382_v36 = vld [vmem:[#allocation8 + $0x100] ss:$16 sps:$4 sm:$0xff]   ;;  %p8314_p6 = pnand %p8313_p5, %p8307_p2 }
  0xb2   :  { %273 = vmatprep.subr.bf16.mxu0 %v7346_v9  ;;  %v7387_v37 = vld [vmem:[#allocation8 + $0x124] ss:$16 sps:$4 sm:$0xff]   ;;  %v7385_v38 = vld [vmem:[#allocation8 + $0x120] ss:$16 sps:$4 sm:$0xff]  }
  0xb3   :  { %v7390_v39 = vld [vmem:[#allocation8 + $0x144] ss:$16 sps:$4 sm:$0xff]   ;;  %v7388_v40 = vld [vmem:[#allocation8 + $0x140] ss:$16 sps:$4 sm:$0xff]  }
  0xb4   :  { %v7393_v41 = vld [vmem:[#allocation8 + $0x164] ss:$16 sps:$4 sm:$0xff]   ;;  %v7391_v42 = vld [vmem:[#allocation8 + $0x160] ss:$16 sps:$4 sm:$0xff]  }
  0xb5   :  { %274 = vmatpush1.bf16.msra.mxu0 %v7348_v10  ;;  %v7396_v43 = vld [vmem:[#allocation8 + $0x184] ss:$16 sps:$4 sm:$0xff]   ;;  %v7394_v44 = vld [vmem:[#allocation8 + $0x180] ss:$16 sps:$4 sm:$0xff]  }
  0xb6   :  { %275 = vmatprep.subr.bf16.mxu0 %v7349_v11  ;;  %v7399_v45 = vld [vmem:[#allocation8 + $0x1a4] ss:$16 sps:$4 sm:$0xff]   ;;  %v7397_v46 = vld [vmem:[#allocation8 + $0x1a0] ss:$16 sps:$4 sm:$0xff]  }
  0xb7   :  { %v7402_v47 = vld [vmem:[#allocation8 + $0x1c4] ss:$16 sps:$4 sm:$0xff]   ;;  %v7400_v48 = vld [vmem:[#allocation8 + $0x1c0] ss:$16 sps:$4 sm:$0xff]  }
  0xb8   :  { %v7405_v49 = vld [vmem:[#allocation8 + $0x1e4] ss:$16 sps:$4 sm:$0xff]   ;;  %v7403_v50 = vld [vmem:[#allocation8 + $0x1e0] ss:$16 sps:$4 sm:$0xff]  }
  0xb9   :  { %276 = vmatpush1.bf16.msra.mxu0 %v7351_v12  ;;  %v831_v52 = vld [vmem:[#allocation11] sm:$0xff] }
  0xba   :  { %277 = vmatprep.subr.bf16.mxu0 %v7352_v13  ;;  %v835_v53 = vld [vmem:[#allocation11 + $0x20] sm:$0xff] }
  0xbb   :  { %v6458_v54 = vcombine.high %v831_v52, %v835_v53  ;;  %v6457_v55 = vcombine.low %v831_v52, %v835_v53  ;;  %v839_v56 = vld [vmem:[#allocation11 + $0x40] sm:$0xff] }
  0xbc   :  { %v843_v57 = vld [vmem:[#allocation11 + $0x60] sm:$0xff] }
  0xbd   :  { %278 = vmatpush1.bf16.msra.mxu0 %v7354_v14  ;;  %v6466_v58 = vcombine.high %v839_v56, %v843_v57  ;;  %2448 = vmatprep.subr.bf16.mxu1 %v6458_v54  ;;  %v6465_v59 = vcombine.low %v839_v56, %v843_v57  ;;  %v847_v60 = vld [vmem:[#allocation11 + $0x80] sm:$0xff] }
  0xbe   :  { %279 = vmatprep.subr.bf16.mxu0 %v7355_v15  ;;  %2449 = vmatpush1.bf16.msra.mxu1 %v6457_v55  ;;  %v851_v61 = vld [vmem:[#allocation11 + $0xa0] sm:$0xff] }
  0xbf   :  { %2450 = vmatprep.subr.bf16.mxu1 %v6466_v58  ;;  %v6474_v62 = vcombine.high %v847_v60, %v851_v61  ;;  %v6473_v63 = vcombine.low %v847_v60, %v851_v61  ;;  %v855_v0 = vld [vmem:[#allocation11 + $0xc0] sm:$0xff] }
  0xc0   :  { %v859_v1 = vld [vmem:[#allocation11 + $0xe0] sm:$0xff] }
  0xc1   :  { %280 = vmatpush1.bf16.msra.mxu0 %v7357_v16  ;;  %v6482_v2 = vcombine.high %v855_v0, %v859_v1  ;;  %v6481_v3 = vcombine.low %v855_v0, %v859_v1  ;;  %v863_v4 = vld [vmem:[#allocation11 + $0x100] sm:$0xff] }
  0xc2   :  { %737 = vmatprep.subr.bf16.mxu0 %v7360_v18  ;;  %2451 = vmatpush1.bf16.msra.mxu1 %v6465_v59  ;;  %v867_v5 = vld [vmem:[#allocation11 + $0x120] sm:$0xff] }
  0xc3   :  { %2452 = vmatprep.subr.bf16.mxu1 %v6474_v62  ;;  %v6490_v6 = vcombine.high %v863_v4, %v867_v5  ;;  %v6489_v7 = vcombine.low %v863_v4, %v867_v5  ;;  %v871_v8 = vld [vmem:[#allocation11 + $0x140] sm:$0xff]  ;;  %v7414_v5 = vld [vmem:[#allocation8 + $0x4c] ss:$16 sps:$4 sm:$0xff]  }
  0xc4   :  { %298 = vmatmul.mubr.bf16.vlgmr.msra.gmra.mrb[0].mxu0 %v163_v20  ;;  %v875_v9 = vld [vmem:[#allocation11 + $0x160] sm:$0xff] }
  0xc5   :  { %738 = vmatpush1.bf16.msra.mxu0 %v7358_v19  ;;  %v6498_v10 = vcombine.high %v871_v8, %v875_v9  ;;  %v6497_v11 = vcombine.low %v871_v8, %v875_v9  ;;  %v879_v12 = vld [vmem:[#allocation11 + $0x180] sm:$0xff]  ;;  %v7420_v9 = vld [vmem:[#allocation8 + $0x8c] ss:$16 sps:$4 sm:$0xff]  }
  0xc6   :  { %739 = vmatprep.subr.bf16.mxu0 %v7363_v21  ;;  %2453 = vmatpush1.bf16.msra.mxu1 %v6473_v63  ;;  %v883_v13 = vld [vmem:[#allocation11 + $0x1a0] sm:$0xff] }
  0xc7   :  { %2454 = vmatprep.subr.bf16.mxu1 %v6482_v2  ;;  %v6506_v14 = vcombine.high %v879_v12, %v883_v13  ;;  %v6505_v15 = vcombine.low %v879_v12, %v883_v13  ;;  %v887_v16 = vld [vmem:[#allocation11 + $0x1c0] sm:$0xff]  ;;  %v7426_v13 = vld [vmem:[#allocation8 + $0xcc] ss:$16 sps:$4 sm:$0xff]  }
  0xc8   :  { %v891_v17 = vld [vmem:[#allocation11 + $0x1e0] sm:$0xff] }
  0xc9   :  { %740 = vmatpush1.bf16.msra.mxu0 %v7361_v22  ;;  %v6514_v18 = vcombine.high %v887_v16, %v891_v17  ;;  %v6513_v19 = vcombine.low %v887_v16, %v891_v17  ;;  %v895_v20 = vld [vmem:[#allocation11 + $0x200] sm:$0xff]  ;;  %v7432_v17 = vld [vmem:[#allocation8 + $0x10c] ss:$16 sps:$4 sm:$0xff]  }
  0xca   :  { %741 = vmatprep.subr.bf16.mxu0 %v7366_v23  ;;  %2455 = vmatpush1.bf16.msra.mxu1 %v6481_v3  ;;  %v899_v21 = vld [vmem:[#allocation11 + $0x220] sm:$0xff]  ;;  %v7411_v3 = vld [vmem:[#allocation8 + $0x2c] ss:$16 sps:$4 sm:$0xff]  }
  0xcb   :  { %2456 = vmatprep.subr.bf16.mxu1 %v6490_v6  ;;  %v6522_v22 = vcombine.high %v895_v20, %v899_v21  ;;  %v6521_v23 = vcombine.low %v895_v20, %v899_v21  ;;  %v7406_v1 = vld [vmem:[#allocation8 + $0x8] ss:$16 sps:$4 sm:$0xff]   ;;  %v7438_v21 = vld [vmem:[#allocation8 + $0x14c] ss:$16 sps:$4 sm:$0xff]  }
  0xcc   :  { %v7409_v4 = vld [vmem:[#allocation8 + $0x28] ss:$16 sps:$4 sm:$0xff]  }
  0xcd   :  { %742 = vmatpush1.bf16.msra.mxu0 %v7364_v24  ;;  %v903_v24 = vld [vmem:[#allocation11 + $0x240] sm:$0xff] }
  0xce   :  { %743 = vmatprep.subr.bf16.mxu0 %v7369_v25  ;;  %2457 = vmatpush1.bf16.msra.mxu1 %v6489_v7  ;;  %v907_v25 = vld [vmem:[#allocation11 + $0x260] sm:$0xff]  ;;  %v7417_v7 = vld [vmem:[#allocation8 + $0x6c] ss:$16 sps:$4 sm:$0xff]  }
  0xcf   :  { %2458 = vmatprep.subr.bf16.mxu1 %v6498_v10  ;;  %v7412_v6 = vld [vmem:[#allocation8 + $0x48] ss:$16 sps:$4 sm:$0xff]  }
  0xd0   :  { %v7415_v8 = vld [vmem:[#allocation8 + $0x68] ss:$16 sps:$4 sm:$0xff]  }
  0xd1   :  { %744 = vmatpush1.bf16.msra.mxu0 %v7367_v26  ;;  %v6530_v26 = vcombine.high %v903_v24, %v907_v25  ;;  %v7418_v10 = vld [vmem:[#allocation8 + $0x88] ss:$16 sps:$4 sm:$0xff]  }
  0xd2   :  { %745 = vmatprep.subr.bf16.mxu0 %v7372_v27  ;;  %2459 = vmatpush1.bf16.msra.mxu1 %v6497_v11  ;;  %v167_v27 = vlaneseq  ;;  %v7423_v11 = vld [vmem:[#allocation8 + $0xac] ss:$16 sps:$4 sm:$0xff]   ;;  %v7421_v12 = vld [vmem:[#allocation8 + $0xa8] ss:$16 sps:$4 sm:$0xff]  }
  0xd3   :  { %2460 = vmatprep.subr.bf16.mxu1 %v6506_v14  ;;  %v7424_v14 = vld [vmem:[#allocation8 + $0xc8] ss:$16 sps:$4 sm:$0xff]  }
  0xd4   :  { %v7427_v16 = vld [vmem:[#allocation8 + $0xe8] ss:$16 sps:$4 sm:$0xff]  }
  0xd5   :  { %746 = vmatpush1.bf16.msra.mxu0 %v7370_v28  ;;  %v6529_v28 = vcombine.low %v903_v24, %v907_v25  ;;  %v7433_v20 = vld [vmem:[#allocation8 + $0x128] ss:$16 sps:$4 sm:$0xff]   ;;  %v7444_v25 = vld [vmem:[#allocation8 + $0x18c] ss:$16 sps:$4 sm:$0xff]  }
  0xd6   :  { %747 = vmatprep.subr.bf16.mxu0 %v7375_v29  ;;  %2461 = vmatpush1.bf16.msra.mxu1 %v6505_v15  ;;  %v911_v29 = vld [vmem:[#allocation11 + $0x280] sm:$0xff]  ;;  %v7429_v15 = vld [vmem:[#allocation8 + $0xec] ss:$16 sps:$4 sm:$0xff]  }
  0xd7   :  { %2462 = vmatprep.subr.bf16.mxu1 %v6514_v18  ;;  %v7430_v18 = vld [vmem:[#allocation8 + $0x108] ss:$16 sps:$4 sm:$0xff]  }
  0xd8   :  { %v7439_v24 = vld [vmem:[#allocation8 + $0x168] ss:$16 sps:$4 sm:$0xff]  }
  0xd9   :  { %748 = vmatpush1.bf16.msra.mxu0 %v7373_v30  ;;  %v915_v30 = vld [vmem:[#allocation11 + $0x2a0] sm:$0xff] }
  0xda   :  { %749 = vmatprep.subr.bf16.mxu0 %v7378_v31  ;;  %2463 = vmatpush1.bf16.msra.mxu1 %v6513_v19  ;;  %v164_v31 = vld [vmem:[#allocation7] sm:$0x3] }
  0xdb   :  { %2464 = vmatprep.subr.bf16.mxu1 %v6522_v22  ;;  %v7435_v19 = vld [vmem:[#allocation8 + $0x12c] ss:$16 sps:$4 sm:$0xff]   ;;  %v7436_v22 = vld [vmem:[#allocation8 + $0x148] ss:$16 sps:$4 sm:$0xff]  }
  0xdd   :  { %750 = vmatpush1.bf16.msra.mxu0 %v7376_v32  ;;  %v6538_v32 = vcombine.high %v911_v29, %v915_v30 }
  0xde   :  { %751 = vmatprep.subr.bf16.mxu0 %v7381_v33  ;;  %2465 = vmatpush1.bf16.msra.mxu1 %v6521_v23  ;;  %v8517_v33 = vshrl.u32 %v167_v27, 7  ;;  %v7441_v23 = vld [vmem:[#allocation8 + $0x16c] ss:$16 sps:$4 sm:$0xff]  }
  0xdf   :  { %2466 = vmatprep.subr.bf16.mxu1 %v6530_v26  ;;  %v7442_v26 = vld [vmem:[#allocation8 + $0x188] ss:$16 sps:$4 sm:$0xff]   ;;  %v7447_v27 = vld [vmem:[#allocation8 + $0x1ac] ss:$16 sps:$4 sm:$0xff]  }
  0xe1   :  { %752 = vmatpush1.bf16.msra.mxu0 %v7379_v34  ;;  %v6537_v34 = vcombine.low %v911_v29, %v915_v30  ;;  %v7450_v29 = vld [vmem:[#allocation8 + $0x1cc] ss:$16 sps:$4 sm:$0xff]   ;;  %v7448_v30 = vld [vmem:[#allocation8 + $0x1c8] ss:$16 sps:$4 sm:$0xff]  }
  0xe2   :  { %753 = vmatprep.subr.bf16.mxu0 %v7384_v35  ;;  %2467 = vmatpush1.bf16.msra.mxu1 %v6529_v28  ;;  %v919_v35 = vld [vmem:[#allocation11 + $0x2c0] sm:$0xff] }
  0xe3   :  { %2468 = vmatprep.subr.bf16.mxu1 %v6538_v32  ;;  %v7445_v28 = vld [vmem:[#allocation8 + $0x1a8] ss:$16 sps:$4 sm:$0xff]   ;;  %v832_v32 = vld [vmem:[#allocation11 + $0x8] sm:$0xff] }
  0xe5   :  { %754 = vmatpush1.bf16.msra.mxu0 %v7382_v36  ;;  %v923_v36 = vld [vmem:[#allocation11 + $0x2e0] sm:$0xff] }
  0xe6   :  { %755 = vmatprep.subr.bf16.mxu0 %v7387_v37  ;;  %v6546_v37 = vcombine.high %v919_v35, %v923_v36  ;;  %2469 = vmatpush1.bf16.msra.mxu1 %v6537_v34  ;;  %v836_v34 = vld [vmem:[#allocation11 + $0x28] sm:$0xff] }
  0xe8   :  { %2470 = vmatprep.subr.bf16.mxu1 %v6546_v37  ;;  %v840_v37 = vld [vmem:[#allocation11 + $0x48] sm:$0xff] }
  0xe9   :  { %756 = vmatpush1.bf16.msra.mxu0 %v7385_v38  ;;  %v165_v38 = vunpack.c.l.bf16 %v164_v31  ;;  %v7453_v31 = vld [vmem:[#allocation8 + $0x1ec] ss:$16 sps:$4 sm:$0xff]  }
  0xea   :  { %757 = vmatprep.subr.bf16.mxu0 %v7390_v39  ;;  %v8520_v39 = vsub.s32 0, %v8517_v33 }
  0xed   :  { %758 = vmatpush1.bf16.msra.mxu0 %v7388_v40  ;;  %v8523_v40 = vsub.s32 2, %v8517_v33 }
  0xee   :  { %759 = vmatprep.subr.bf16.mxu0 %v7393_v41  ;;  %v6545_v41 = vcombine.low %v919_v35, %v923_v36  ;;  %v7451_v35 = vld [vmem:[#allocation8 + $0x1e8] ss:$16 sps:$4 sm:$0xff]   ;;  %v6460_v36 = vcombine.high %v832_v32, %v836_v34 }
  0xf0   :  { %2471 = vmatpush1.bf16.msra.mxu1 %v6545_v41  ;;  %v6459_v41 = vcombine.low %v832_v32, %v836_v34 }
  0xf1   :  { %760 = vmatpush1.bf16.msra.mxu0 %v7391_v42  ;;  %v927_v42 = vld [vmem:[#allocation11 + $0x300] sm:$0xff] }
  0xf2   :  { %761 = vmatprep.subr.bf16.mxu0 %v7396_v43  ;;  %v931_v43 = vld [vmem:[#allocation11 + $0x320] sm:$0xff] }
  0xf5   :  { %762 = vmatpush1.bf16.msra.mxu0 %v7394_v44  ;;  %v6554_v44 = vcombine.high %v927_v42, %v931_v43 }
  0xf6   :  { %763 = vmatprep.subr.bf16.mxu0 %v7399_v45  ;;  %v170_v45 = vrot.slane %v165_v38, %v8520_v39 }
  0xf7   :  { %2472 = vmatprep.subr.bf16.mxu1 %v6554_v44  ;;  %v852_v44 = vld [vmem:[#allocation11 + $0xa8] sm:$0xff] }
  0xf9   :  { %764 = vmatpush1.bf16.msra.mxu0 %v7397_v46  ;;  %v174_v46 = vrot.slane %v165_v38, %v8523_v40  ;;  %v844_v38 = vld [vmem:[#allocation11 + $0x68] sm:$0xff] }
  0xfa   :  { %765 = vmatprep.subr.bf16.mxu0 %v7402_v47  ;;  %v6553_v47 = vcombine.low %v927_v42, %v931_v43  ;;  %v6468_v42 = vcombine.high %v840_v37, %v844_v38  ;;  %v848_v43 = vld [vmem:[#allocation11 + $0x88] sm:$0xff] }
  0xfb   :  { %v184_v52 = vrot.slane %v174_v46, %v8520_v39  ;;  %v6476_v46 = vcombine.high %v848_v43, %v852_v44 }
  0xfc   :  { %2473 = vmatpush1.bf16.msra.mxu1 %v6553_v47  ;;  %v856_v47 = vld [vmem:[#allocation11 + $0xc8] sm:$0xff] }
  0xfd   :  { %766 = vmatpush1.bf16.msra.mxu0 %v7400_v48  ;;  %v935_v48 = vld [vmem:[#allocation11 + $0x340] sm:$0xff] }
  0xfe   :  { %767 = vmatprep.subr.bf16.mxu0 %v7405_v49  ;;  %v939_v49 = vld [vmem:[#allocation11 + $0x360] sm:$0xff] }
  0xff   :  { %v6561_v53 = vcombine.low %v935_v48, %v939_v49 }
 0x101   :  { %768 = vmatpush1.bf16.msra.mxu0 %v7403_v50  ;;  %v6562_v50 = vcombine.high %v935_v48, %v939_v49  ;;  %v860_v48 = vld [vmem:[#allocation11 + $0xe8] sm:$0xff]  ;;  %v6475_v49 = vcombine.low %v848_v43, %v852_v44 }
 0x102   :  { %778 = vmatprep.subr.bf16.mxu0 %v7408_v51  ;;  %v180_v51 = vrot.slane %v170_v45, %v8520_v39  ;;  %v6467_v45 = vcombine.low %v840_v37, %v844_v38 }
 0x103   :  { %2474 = vmatprep.subr.bf16.mxu1 %v6562_v50  ;;  %v6484_v50 = vcombine.high %v856_v47, %v860_v48 }
 0x104   :  { %2475 = vmatpush1.bf16.msra.mxu1 %v6561_v53  ;;  %v6483_v53 = vcombine.low %v856_v47, %v860_v48 }
 0x197   :  { %v299_v54 = vpop.f32.mrb[0].mxu0 }
 0x198   :  { %v300_v55 = vadd.f32 %v299_v54, %v180_v51  ;;  %v301_v56 = vpop.f32.mrb[1].mxu0  ;;  %v864_v51 = vld [vmem:[#allocation11 + $0x108] sm:$0xff] }
 0x199   :  { %v302_v57 = vadd.f32 %v301_v56, %v184_v52  ;;  %v303_v58 = vpop.f32.mrb[2].mxu0  ;;  %v868_v52 = vld [vmem:[#allocation11 + $0x128] sm:$0xff] }
 0x19a   :  { %vm306_vm0 = vcmp.gt.f32.partialorder %v300_v55, 0.0  ;;  %v308_v59 = vmul.f32 0.2, %v300_v55  ;;  %v304_v60 = vpop.f32.mrb[3].mxu0  ;;  %v6492_v54 = vcombine.high %v864_v51, %v868_v52  ;;  %v876_v56 = vld [vmem:[#allocation11 + $0x168] sm:$0xff] }
 0x19b   :  { %vm307_vm1 = vcmp.gt.f32.partialorder %v302_v57, 0.0  ;;  %v309_v61 = vmul.f32 0.2, %v302_v57  ;;  %v884_v60 = vld [vmem:[#allocation11 + $0x1a8] sm:$0xff] }
 0x19c   :  { %v310_v62 = vsel %vm306_vm0, %v300_v55, %v308_v59  ;;  %v872_v55 = vld [vmem:[#allocation11 + $0x148] sm:$0xff] }
 0x19d   :  { %v311_v63 = vsel %vm307_vm1, %v302_v57, %v309_v61  ;;  %v8529_v2 = vpack.c.bf16 %v310_v62, %v310_v62  ;;  %v6491_v57 = vcombine.low %v864_v51, %v868_v52  ;;  %v6500_v58 = vcombine.high %v872_v55, %v876_v56  ;;  %v880_v59 = vld [vmem:[#allocation11 + $0x188] sm:$0xff] }
 0x19e   :  { %v377_v0 = vpack.c.bf16 %v311_v63, %v311_v63  ;;  %v6499_v61 = vcombine.low %v872_v55, %v876_v56  ;;  %v6508_v62 = vcombine.high %v880_v59, %v884_v60  ;;  %v943_v63 = vld [vmem:[#allocation11 + $0x380] sm:$0xff]  ;;  %v378_v55 = vld [vmem:[#allocation10] sm:$0xf] }
 0x19f   :  { %v8549_v56 = vunpack.c.l.bf16 %v378_v55 }
 0x1a0   :  { %769 = vmatprep.mubr.bf16.mxu0 %v377_v0 }
 0x1a1   :  { %770 = vmatmul.mubr.bf16.vlgmr.msra.gmra.mrb[4].mxu0 %v8529_v2 }
 0x1a2   :  { %779 = vmatpush1.bf16.msra.mxu0 %v7406_v1  ;;  %810 = vmatprep.mubr.bf16.mxu0 %v377_v0  ;;  %v947_v0 = vld [vmem:[#allocation11 + $0x3a0] sm:$0xff]  ;;  %v888_v1 = vld [vmem:[#allocation11 + $0x1c8] sm:$0xff] }
 0x1a3   :  { %780 = vmatprep.subr.bf16.mxu0 %v7411_v3  ;;  %v6570_v3 = vcombine.high %v943_v63, %v947_v0 }
 0x1a5   :  { %2476 = vmatprep.subr.bf16.mxu1 %v6570_v3 }
 0x1a6   :  { %781 = vmatpush1.bf16.msra.mxu0 %v7409_v4  ;;  %v6569_v4 = vcombine.low %v943_v63, %v947_v0 }
 0x1a7   :  { %782 = vmatprep.subr.bf16.mxu0 %v7414_v5  ;;  %v6507_v5 = vcombine.low %v880_v59, %v884_v60 }
 0x1a8   :  { %2477 = vmatpush1.bf16.msra.mxu1 %v6569_v4 }
 0x1aa   :  { %783 = vmatpush1.bf16.msra.mxu0 %v7412_v6 }
 0x1ab   :  { %784 = vmatprep.subr.bf16.mxu0 %v7417_v7  ;;  %v951_v7 = vld [vmem:[#allocation11 + $0x3c0] sm:$0xff] }
 0x1ae   :  { %785 = vmatpush1.bf16.msra.mxu0 %v7415_v8  ;;  %v955_v8 = vld [vmem:[#allocation11 + $0x3e0] sm:$0xff] }
 0x1af   :  { %786 = vmatprep.subr.bf16.mxu0 %v7420_v9  ;;  %v896_v9 = vld [vmem:[#allocation11 + $0x208] sm:$0xff] }
 0x1b2   :  { %787 = vmatpush1.bf16.msra.mxu0 %v7418_v10  ;;  %v900_v10 = vld [vmem:[#allocation11 + $0x228] sm:$0xff] }
 0x1b3   :  { %788 = vmatprep.subr.bf16.mxu0 %v7423_v11  ;;  %v6578_v11 = vcombine.high %v951_v7, %v955_v8 }
 0x1b5   :  { %2478 = vmatprep.subr.bf16.mxu1 %v6578_v11 }
 0x1b6   :  { %789 = vmatpush1.bf16.msra.mxu0 %v7421_v12  ;;  %v6577_v12 = vcombine.low %v951_v7, %v955_v8  ;;  %v971_v7 = vld [vmem:[#allocation11 + $0x460] sm:$0xff]  ;;  %v968_v8 = vld [vmem:[#allocation11 + $0x448] sm:$0xff] }
 0x1b7   :  { %790 = vmatprep.subr.bf16.mxu0 %v7426_v13 }
 0x1b8   :  { %2479 = vmatpush1.bf16.msra.mxu1 %v6577_v12 }
 0x1ba   :  { %791 = vmatpush1.bf16.msra.mxu0 %v7424_v14  ;;  %v6524_v14 = vcombine.high %v896_v9, %v900_v10 }
 0x1bb   :  { %792 = vmatprep.subr.bf16.mxu0 %v7429_v15  ;;  %v8533_v15 = vld [vmem:[#allocation11 + $0x400] sm:$0xff] }
 0x1be   :  { %793 = vmatpush1.bf16.msra.mxu0 %v7427_v16  ;;  %v8535_v16 = vld [vmem:[#allocation11 + $0x420] sm:$0xff] }
 0x1bf   :  { %794 = vmatprep.subr.bf16.mxu0 %v7432_v17  ;;  %v8537_v17 = vld [vmem:[#allocation11 + $0x408] sm:$0xff] }
 0x1c2   :  { %795 = vmatpush1.bf16.msra.mxu0 %v7430_v18  ;;  %v904_v18 = vld [vmem:[#allocation11 + $0x248] sm:$0xff] }
 0x1c3   :  { %796 = vmatprep.subr.bf16.mxu0 %v7435_v19  ;;  %v908_v19 = vld [vmem:[#allocation11 + $0x268] sm:$0xff] }
 0x1c6   :  { %797 = vmatpush1.bf16.msra.mxu0 %v7433_v20  ;;  %v6586_v20 = vcombine.high %v8533_v15, %v8535_v16 }
 0x1c7   :  { %798 = vmatprep.subr.bf16.mxu0 %v7438_v21  ;;  %v8541_v21 = vld [vmem:[#allocation11 + $0x428] sm:$0xff] }
 0x1c8   :  { %2489 = vmatprep.subr.bf16.mxu1 %v6586_v20  ;;  %v976_v20 = vld [vmem:[#allocation11 + $0x488] sm:$0xff] }
 0x1ca   :  { %799 = vmatpush1.bf16.msra.mxu0 %v7436_v22  ;;  %v6585_v22 = vcombine.low %v8533_v15, %v8535_v16 }
 0x1cb   :  { %800 = vmatprep.subr.bf16.mxu0 %v7441_v23  ;;  %v6587_v23 = vcombine.low %v8537_v17, %v8541_v21 }
 0x1ce   :  { %801 = vmatpush1.bf16.msra.mxu0 %v7439_v24  ;;  %v6523_v24 = vcombine.low %v896_v9, %v900_v10  ;;  %v972_v9 = vld [vmem:[#allocation11 + $0x468] sm:$0xff] }
 0x1cf   :  { %802 = vmatprep.subr.bf16.mxu0 %v7444_v25  ;;  %v6532_v25 = vcombine.high %v904_v18, %v908_v19 }
 0x1d2   :  { %803 = vmatpush1.bf16.msra.mxu0 %v7442_v26  ;;  %v912_v26 = vld [vmem:[#allocation11 + $0x288] sm:$0xff] }
 0x1d3   :  { %804 = vmatprep.subr.bf16.mxu0 %v7447_v27  ;;  %v916_v27 = vld [vmem:[#allocation11 + $0x2a8] sm:$0xff] }
 0x1d4   :  { %v6539_v32 = vcombine.low %v912_v26, %v916_v27 }
 0x1d6   :  { %805 = vmatpush1.bf16.msra.mxu0 %v7445_v28  ;;  %v6531_v28 = vcombine.low %v904_v18, %v908_v19  ;;  %v975_v18 = vld [vmem:[#allocation11 + $0x480] sm:$0xff] }
 0x1d7   :  { %806 = vmatprep.subr.bf16.mxu0 %v7450_v29  ;;  %v6540_v29 = vcombine.high %v912_v26, %v916_v27  ;;  %v979_v19 = vld [vmem:[#allocation11 + $0x4a0] sm:$0xff]  ;;  %v6595_v26 = vcombine.low %v968_v8, %v972_v9 }
 0x1d8   :  { %v6602_v27 = vcombine.high %v975_v18, %v979_v19 }
 0x1da   :  { %807 = vmatpush1.bf16.msra.mxu0 %v7448_v30  ;;  %v920_v30 = vld [vmem:[#allocation11 + $0x2c8] sm:$0xff] }
 0x1db   :  { %808 = vmatprep.subr.bf16.mxu0 %v7453_v31  ;;  %v924_v31 = vld [vmem:[#allocation11 + $0x2e8] sm:$0xff] }
 0x1dc   :  { %v6548_v34 = vcombine.high %v920_v30, %v924_v31  ;;  %v6547_v37 = vcombine.low %v920_v30, %v924_v31  ;;  %v987_v30 = vld [vmem:[#allocation11 + $0x4e0] sm:$0xff]  ;;  %v984_v31 = vld [vmem:[#allocation11 + $0x4c8] sm:$0xff] }
 0x1de   :  { %809 = vmatpush1.bf16.msra.mxu0 %v7451_v35  ;;  %v928_v35 = vld [vmem:[#allocation11 + $0x308] sm:$0xff] }
 0x1df   :  { %2530 = vmatprep.subr.bf16.mxu0 %v6460_v36  ;;  %v932_v36 = vld [vmem:[#allocation11 + $0x328] sm:$0xff] }
 0x1e0   :  { %v6556_v38 = vcombine.high %v928_v35, %v932_v36  ;;  %v6555_v43 = vcombine.low %v928_v35, %v932_v36 }
 0x1e1   :  { %811 = vmatmul.mubr.bf16.vlgmr.msra.gmra.mrb[8].mxu0 %v8529_v2  ;;  %v892_v2 = vld [vmem:[#allocation11 + $0x1e8] sm:$0xff] }
 0x1e2   :  { %2531 = vmatpush1.bf16.msra.mxu0 %v6459_v41  ;;  %v6516_v6 = vcombine.high %v888_v1, %v892_v2  ;;  %v6515_v13 = vcombine.low %v888_v1, %v892_v2  ;;  %v936_v41 = vld [vmem:[#allocation11 + $0x348] sm:$0xff] }
 0x1e3   :  { %2532 = vmatprep.subr.bf16.mxu0 %v6468_v42  ;;  %v940_v42 = vld [vmem:[#allocation11 + $0x368] sm:$0xff] }
 0x1e4   :  { %v6564_v44 = vcombine.high %v936_v41, %v940_v42  ;;  %v6563_v47 = vcombine.low %v936_v41, %v940_v42  ;;  %v999_v42 = vld [vmem:[#allocation11 + $0x540] sm:$0xff] }
 0x1e6   :  { %2533 = vmatpush1.bf16.msra.mxu0 %v6467_v45  ;;  %v944_v45 = vld [vmem:[#allocation11 + $0x388] sm:$0xff] }
 0x1e7   :  { %2534 = vmatprep.subr.bf16.mxu0 %v6476_v46  ;;  %v948_v46 = vld [vmem:[#allocation11 + $0x3a8] sm:$0xff] }
 0x1e8   :  { %v6572_v48 = vcombine.high %v944_v45, %v948_v46  ;;  %v6571_v51 = vcombine.low %v944_v45, %v948_v46  ;;  %v1004_v45 = vld [vmem:[#allocation11 + $0x568] sm:$0xff] }
 0x1ea   :  { %2535 = vmatpush1.bf16.msra.mxu0 %v6475_v49  ;;  %v952_v49 = vld [vmem:[#allocation11 + $0x3c8] sm:$0xff] }
 0x1eb   :  { %2536 = vmatprep.subr.bf16.mxu0 %v6484_v50  ;;  %v956_v50 = vld [vmem:[#allocation11 + $0x3e8] sm:$0xff] }
 0x1ec   :  { %v6580_v52 = vcombine.high %v952_v49, %v956_v50 }
 0x1ee   :  { %2537 = vmatpush1.bf16.msra.mxu0 %v6483_v53  ;;  %v6579_v53 = vcombine.low %v952_v49, %v956_v50  ;;  %v1007_v50 = vld [vmem:[#allocation11 + $0x580] sm:$0xff] }
 0x1ef   :  { %2538 = vmatprep.subr.bf16.mxu0 %v6492_v54  ;;  %v6588_v54 = vcombine.high %v8537_v17, %v8541_v21  ;;  %v991_v17 = vld [vmem:[#allocation11 + $0x500] sm:$0xff] }
 0x1f0   :  { %v995_v21 = vld [vmem:[#allocation11 + $0x520] sm:$0xff] }
 0x1f1   :  { %v6617_v46 = vcombine.low %v991_v17, %v995_v21 }
 0x1f2   :  { %2539 = vmatpush1.bf16.msra.mxu0 %v6491_v57  ;;  %v384_v57 = vrot.slane %v8549_v56, %v8520_v39 }
 0x1f3   :  { %2540 = vmatprep.subr.bf16.mxu0 %v6500_v58  ;;  %v388_v58 = vrot.slane %v8549_v56, %v8523_v40 }
 0x1f4   :  { %v404_v59 = vrot.slane %v384_v57, %v8520_v39 }
 0x1f5   :  { %v408_v60 = vrot.slane %v388_v58, %v8520_v39 }
 0x1f6   :  { %2541 = vmatpush1.bf16.msra.mxu0 %v6499_v61 }
 0x1f7   :  { %2542 = vmatprep.subr.bf16.mxu0 %v6508_v62 }
 0x1fa   :  { %2543 = vmatpush1.bf16.msra.mxu0 %v6507_v5  ;;  %v967_v5 = vld [vmem:[#allocation11 + $0x440] sm:$0xff] }
 0x1fb   :  { %2544 = vmatprep.subr.bf16.mxu0 %v6516_v6 }
 0x1fe   :  { %2545 = vmatpush1.bf16.msra.mxu0 %v6515_v13  ;;  %v6594_v13 = vcombine.high %v967_v5, %v971_v7 }
 0x1ff   :  { %2546 = vmatprep.subr.bf16.mxu0 %v6524_v14  ;;  %v6596_v14 = vcombine.high %v968_v8, %v972_v9 }
 0x202   :  { %2547 = vmatpush1.bf16.msra.mxu0 %v6523_v24  ;;  %v980_v24 = vld [vmem:[#allocation11 + $0x4a8] sm:$0xff] }
 0x203   :  { %2548 = vmatprep.subr.bf16.mxu0 %v6532_v25  ;;  %v6593_v25 = vcombine.low %v967_v5, %v971_v7  ;;  %v6603_v35 = vcombine.low %v976_v20, %v980_v24  ;;  %v1024_v5 = vld [vmem:[#allocation11 + $0x608] sm:$0xff] }
 0x206   :  { %2549 = vmatpush1.bf16.msra.mxu0 %v6531_v28  ;;  %v6604_v28 = vcombine.high %v976_v20, %v980_v24 }
 0x207   :  { %2550 = vmatprep.subr.bf16.mxu0 %v6540_v29  ;;  %v983_v29 = vld [vmem:[#allocation11 + $0x4c0] sm:$0xff] }
 0x208   :  { %v6610_v15 = vcombine.high %v983_v29, %v987_v30  ;;  %v6609_v36 = vcombine.low %v983_v29, %v987_v30  ;;  %v1040_v29 = vld [vmem:[#allocation11 + $0x688] sm:$0xff] }
 0x209   :  { %v1044_v30 = vld [vmem:[#allocation11 + $0x6a8] sm:$0xff] }
 0x20a   :  { %2551 = vmatpush1.bf16.msra.mxu0 %v6539_v32  ;;  %v988_v32 = vld [vmem:[#allocation11 + $0x4e8] sm:$0xff] }
 0x20b   :  { %2552 = vmatprep.subr.bf16.mxu0 %v6548_v34  ;;  %v6601_v34 = vcombine.low %v975_v18, %v979_v19  ;;  %v6612_v16 = vcombine.high %v984_v31, %v988_v32  ;;  %v1032_v18 = vld [vmem:[#allocation11 + $0x648] sm:$0xff] }
 0x20c   :  { %v1036_v19 = vld [vmem:[#allocation11 + $0x668] sm:$0xff] }
 0x20e   :  { %2553 = vmatpush1.bf16.msra.mxu0 %v6547_v37  ;;  %v6611_v37 = vcombine.low %v984_v31, %v988_v32  ;;  %v6659_v32 = vcombine.low %v1032_v18, %v1036_v19 }
 0x20f   :  { %2554 = vmatprep.subr.bf16.mxu0 %v6556_v38  ;;  %v6618_v38 = vcombine.high %v991_v17, %v995_v21  ;;  %v1048_v17 = vld [vmem:[#allocation11 + $0x6c8] sm:$0xff] }
 0x210   :  { %v1052_v21 = vld [vmem:[#allocation11 + $0x6e8] sm:$0xff] }
 0x212   :  { %2555 = vmatpush1.bf16.msra.mxu0 %v6555_v43  ;;  %v1003_v43 = vld [vmem:[#allocation11 + $0x560] sm:$0xff] }
 0x213   :  { %2556 = vmatprep.subr.bf16.mxu0 %v6564_v44  ;;  %v1000_v44 = vld [vmem:[#allocation11 + $0x548] sm:$0xff] }
 0x214   :  { %v6628_v49 = vcombine.high %v1000_v44, %v1004_v45  ;;  %v6627_v55 = vcombine.low %v1000_v44, %v1004_v45  ;;  %v6675_v45 = vcombine.low %v1048_v17, %v1052_v21 }
 0x216   :  { %2557 = vmatpush1.bf16.msra.mxu0 %v6563_v47 }
 0x217   :  { %2558 = vmatprep.subr.bf16.mxu0 %v6572_v48  ;;  %v6626_v48 = vcombine.high %v999_v42, %v1003_v43 }
 0x21a   :  { %2559 = vmatpush1.bf16.msra.mxu0 %v6571_v51  ;;  %v1011_v51 = vld [vmem:[#allocation11 + $0x5a0] sm:$0xff] }
 0x21b   :  { %2560 = vmatprep.subr.bf16.mxu0 %v6580_v52  ;;  %v1008_v52 = vld [vmem:[#allocation11 + $0x588] sm:$0xff]  ;;  %v6634_v57 = vcombine.high %v1007_v50, %v1011_v51 }
 0x21e   :  { %2561 = vmatpush1.bf16.msra.mxu0 %v6579_v53  ;;  %v1012_v53 = vld [vmem:[#allocation11 + $0x5a8] sm:$0xff] }
 0x21f   :  { %2571 = vmatprep.subr.bf16.mxu0 %v6588_v54  ;;  %v6625_v54 = vcombine.low %v999_v42, %v1003_v43  ;;  %v6636_v58 = vcombine.high %v1008_v52, %v1012_v53  ;;  %v1056_v42 = vld [vmem:[#allocation11 + $0x708] sm:$0xff] }
 0x220   :  { %v1060_v43 = vld [vmem:[#allocation11 + $0x728] sm:$0xff] }
 0x274   :  { %v771_v61 = vpop.f32.mrb[4].mxu0 }
 0x275   :  { %v772_v62 = vadd.f32 %v771_v61, %v404_v59  ;;  %v773_v63 = vpop.f32.mrb[5].mxu0  ;;  %v1015_v59 = vld [vmem:[#allocation11 + $0x5c0] sm:$0xff]  ;;  %v1016_v61 = vld [vmem:[#allocation11 + $0x5c8] sm:$0xff] }
 0x276   :  { %v774_v0 = vadd.f32 %v773_v63, %v408_v60  ;;  %v775_v1 = vpop.f32.mrb[6].mxu0  ;;  %v1019_v60 = vld [vmem:[#allocation11 + $0x5e0] sm:$0xff]  ;;  %v6633_v63 = vcombine.low %v1007_v50, %v1011_v51  ;;  %v1064_v50 = vld [vmem:[#allocation11 + $0x748] sm:$0xff] }
 0x277   :  { %vm819_vm2 = vcmp.gt.f32.partialorder %v772_v62, 0.0  ;;  %v823_v2 = vmul.f32 0.2, %v772_v62  ;;  %v776_v3 = vpop.f32.mrb[7].mxu0  ;;  %v6642_v1 = vcombine.high %v1015_v59, %v1019_v60  ;;  %v6641_v7 = vcombine.low %v1015_v59, %v1019_v60  ;;  %v1068_v51 = vld [vmem:[#allocation11 + $0x768] sm:$0xff]  ;;  %v1071_v59 = vld [vmem:[#allocation11 + $0x780] sm:$0xff] }
 0x278   :  { %vm820_vm3 = vcmp.gt.f32.partialorder %v774_v0, 0.0  ;;  %v824_v4 = vmul.f32 0.2, %v774_v0  ;;  %v1023_v3 = vld [vmem:[#allocation11 + $0x600] sm:$0xff] }
 0x279   :  { %v827_v6 = vsel %vm819_vm2, %v772_v62, %v823_v2  ;;  %v1020_v62 = vld [vmem:[#allocation11 + $0x5e8] sm:$0xff] }
 0x27a   :  { %v828_v10 = vsel %vm820_vm3, %v774_v0, %v824_v4  ;;  %v8559_v12 = vpack.c.bf16 %v827_v6, %v827_v6  ;;  %v6635_v0 = vcombine.low %v1008_v52, %v1012_v53  ;;  %v6644_v2 = vcombine.high %v1016_v61, %v1020_v62  ;;  %v1027_v4 = vld [vmem:[#allocation11 + $0x620] sm:$0xff]  ;;  %v1028_v6 = vld [vmem:[#allocation11 + $0x628] sm:$0xff] }
 0x27b   :  { %v8557_v11 = vpack.c.bf16 %v828_v10, %v828_v10  ;;  %v6643_v8 = vcombine.low %v1016_v61, %v1020_v62  ;;  %v6650_v9 = vcombine.high %v1023_v3, %v1027_v4  ;;  %v6652_v10 = vcombine.high %v1024_v5, %v1028_v6  ;;  %v1075_v61 = vld [vmem:[#allocation11 + $0x7a0] sm:$0xff]  ;;  %v1072_v62 = vld [vmem:[#allocation11 + $0x788] sm:$0xff] }
 0x27c   :  { %v6649_v20 = vcombine.low %v1023_v3, %v1027_v4  ;;  %v6651_v24 = vcombine.low %v1024_v5, %v1028_v6  ;;  %v8572_v52 = vsub.s32 4, %v8517_v33  ;;  %v8575_v53 = vsub.s32 6, %v8517_v33  ;;  %v1079_v4 = vld [vmem:[#allocation11 + $0x7c0] sm:$0xff] }
 0x27d   :  { %2480 = vmatprep.mubr.bf16.mxu1 %v8557_v11  ;;  %2562 = vmatprep.mubr.bf16.mxu0 %v8557_v11  ;;  %v1083_v6 = vld [vmem:[#allocation11 + $0x7e0] sm:$0xff] }
 0x27e   :  { %2481 = vmatmul.mubr.bf16.vlgmr.msra.gmra.mrb[0].mxu1 %v8559_v12  ;;  %2563 = vmatmul.mubr.bf16.vlgmr.msra.gmra.mrb[12].mxu0 %v8559_v12  ;;  %v392_v60 = vrot.slane %v8549_v56, %v8572_v52 }
 0x27f   :  { %2490 = vmatpush1.bf16.msra.mxu1 %v6585_v22  ;;  %2572 = vmatpush1.bf16.msra.mxu0 %v6587_v23  ;;  %v992_v22 = vld [vmem:[#allocation11 + $0x508] sm:$0xff] }
 0x280   :  { %2491 = vmatprep.subr.bf16.mxu1 %v6594_v13  ;;  %2573 = vmatprep.subr.bf16.mxu0 %v6596_v14  ;;  %v996_v23 = vld [vmem:[#allocation11 + $0x528] sm:$0xff]  ;;  %v1031_v13 = vld [vmem:[#allocation11 + $0x640] sm:$0xff]  ;;  %v412_v5 = vrot.slane %v392_v60, %v8520_v39  ;;  %v862_v60 = vld [vmem:[#allocation11 + $0xf8] sm:$0xff] }
 0x281   :  { %v6620_v41 = vcombine.high %v992_v22, %v996_v23  ;;  %v6619_v47 = vcombine.low %v992_v22, %v996_v23  ;;  %v1035_v14 = vld [vmem:[#allocation11 + $0x660] sm:$0xff]  ;;  %v6667_v23 = vcombine.low %v1040_v29, %v1044_v30 }
 0x282   :  { %v6657_v31 = vcombine.low %v1031_v13, %v1035_v14 }
 0x283   :  { %2492 = vmatpush1.bf16.msra.mxu1 %v6593_v25  ;;  %2574 = vmatpush1.bf16.msra.mxu0 %v6595_v26  ;;  %v6658_v25 = vcombine.high %v1031_v13, %v1035_v14  ;;  %v6660_v26 = vcombine.high %v1032_v18, %v1036_v19  ;;  %v6706_v14 = vcombine.high %v1079_v4, %v1083_v6  ;;  %v833_v19 = vld [vmem:[#allocation11 + $0x10] sm:$0xff] }
 0x284   :  { %2493 = vmatprep.subr.bf16.mxu1 %v6602_v27  ;;  %2575 = vmatprep.subr.bf16.mxu0 %v6604_v28  ;;  %v1039_v27 = vld [vmem:[#allocation11 + $0x680] sm:$0xff] }
 0x285   :  { %v1043_v28 = vld [vmem:[#allocation11 + $0x6a0] sm:$0xff] }
 0x286   :  { %v6665_v22 = vcombine.low %v1039_v27, %v1043_v28 }
 0x287   :  { %2494 = vmatpush1.bf16.msra.mxu1 %v6601_v34  ;;  %2576 = vmatpush1.bf16.msra.mxu0 %v6603_v35  ;;  %v6666_v34 = vcombine.high %v1039_v27, %v1043_v28  ;;  %v6668_v35 = vcombine.high %v1040_v29, %v1044_v30  ;;  %v838_v27 = vld [vmem:[#allocation11 + $0x38] sm:$0xff] }
 0x288   :  { %2495 = vmatprep.subr.bf16.mxu1 %v6610_v15  ;;  %2577 = vmatprep.subr.bf16.mxu0 %v6612_v16  ;;  %v1047_v15 = vld [vmem:[#allocation11 + $0x6c0] sm:$0xff] }
 0x289   :  { %v1051_v16 = vld [vmem:[#allocation11 + $0x6e0] sm:$0xff] }
 0x28a   :  { %v6673_v44 = vcombine.low %v1047_v15, %v1051_v16 }
 0x28b   :  { %2496 = vmatpush1.bf16.msra.mxu1 %v6609_v36  ;;  %2578 = vmatpush1.bf16.msra.mxu0 %v6611_v37  ;;  %v6674_v36 = vcombine.high %v1047_v15, %v1051_v16  ;;  %v6676_v37 = vcombine.high %v1048_v17, %v1052_v21  ;;  %v841_v21 = vld [vmem:[#allocation11 + $0x50] sm:$0xff] }
 0x28c   :  { %2497 = vmatprep.subr.bf16.mxu1 %v6618_v38  ;;  %2579 = vmatprep.subr.bf16.mxu0 %v6620_v41  ;;  %v1055_v38 = vld [vmem:[#allocation11 + $0x700] sm:$0xff] }
 0x28d   :  { %v1059_v41 = vld [vmem:[#allocation11 + $0x720] sm:$0xff] }
 0x28f   :  { %2498 = vmatpush1.bf16.msra.mxu1 %v6617_v46  ;;  %2580 = vmatpush1.bf16.msra.mxu0 %v6619_v47  ;;  %v6682_v46 = vcombine.high %v1055_v38, %v1059_v41  ;;  %v6684_v47 = vcombine.high %v1056_v42, %v1060_v43 }
 0x290   :  { %2499 = vmatprep.subr.bf16.mxu1 %v6626_v48  ;;  %2581 = vmatprep.subr.bf16.mxu0 %v6628_v49  ;;  %v1063_v48 = vld [vmem:[#allocation11 + $0x740] sm:$0xff] }
 0x291   :  { %v1067_v49 = vld [vmem:[#allocation11 + $0x760] sm:$0xff] }
 0x292   :  { %v6689_v33 = vcombine.low %v1063_v48, %v1067_v49 }
 0x293   :  { %2500 = vmatpush1.bf16.msra.mxu1 %v6625_v54  ;;  %2582 = vmatpush1.bf16.msra.mxu0 %v6627_v55  ;;  %v6681_v54 = vcombine.low %v1055_v38, %v1059_v41  ;;  %v6683_v55 = vcombine.low %v1056_v42, %v1060_v43 }
 0x294   :  { %2501 = vmatprep.subr.bf16.mxu1 %v6634_v57  ;;  %2583 = vmatprep.subr.bf16.mxu0 %v6636_v58  ;;  %v6690_v57 = vcombine.high %v1063_v48, %v1067_v49  ;;  %v6692_v58 = vcombine.high %v1064_v50, %v1068_v51  ;;  %v850_v48 = vld [vmem:[#allocation11 + $0x98] sm:$0xff] }
 0x295   :  { %v854_v49 = vld [vmem:[#allocation11 + $0xb8] sm:$0xff] }
 0x297   :  { %2502 = vmatpush1.bf16.msra.mxu1 %v6633_v63  ;;  %2584 = vmatpush1.bf16.msra.mxu0 %v6635_v0  ;;  %v1076_v63 = vld [vmem:[#allocation11 + $0x7a8] sm:$0xff]  ;;  %v396_v0 = vrot.slane %v8549_v56, %v8575_v53 }
 0x298   :  { %2503 = vmatprep.subr.bf16.mxu1 %v6642_v1  ;;  %2585 = vmatprep.subr.bf16.mxu0 %v6644_v2  ;;  %v6691_v1 = vcombine.low %v1064_v50, %v1068_v51  ;;  %v6698_v2 = vcombine.high %v1071_v59, %v1075_v61  ;;  %v6700_v3 = vcombine.high %v1072_v62, %v1076_v63 }
 0x299   :  { %v6699_v56 = vcombine.low %v1072_v62, %v1076_v63  ;;  %v6479_v62 = vcombine.low %v850_v48, %v854_v49 }
 0x29b   :  { %2504 = vmatpush1.bf16.msra.mxu1 %v6641_v7  ;;  %2586 = vmatpush1.bf16.msra.mxu0 %v6643_v8  ;;  %v1080_v7 = vld [vmem:[#allocation11 + $0x7c8] sm:$0xff] }
 0x29c   :  { %2505 = vmatprep.subr.bf16.mxu1 %v6650_v9  ;;  %2587 = vmatprep.subr.bf16.mxu0 %v6652_v10  ;;  %v1084_v8 = vld [vmem:[#allocation11 + $0x7e8] sm:$0xff]  ;;  %v416_v9 = vrot.slane %v396_v0, %v8520_v39  ;;  %v6697_v10 = vcombine.low %v1071_v59, %v1075_v61  ;;  %v858_v59 = vld [vmem:[#allocation11 + $0xd8] sm:$0xff] }
 0x29d   :  { %v6708_v18 = vcombine.high %v1080_v7, %v1084_v8  ;;  %v6488_v0 = vcombine.high %v858_v59, %v862_v60 }
 0x29f   :  { %2506 = vmatpush1.bf16.msra.mxu1 %v6649_v20  ;;  %2588 = vmatpush1.bf16.msra.mxu0 %v6651_v24 }
 0x2a0   :  { %2507 = vmatprep.subr.bf16.mxu1 %v6658_v25  ;;  %2589 = vmatprep.subr.bf16.mxu0 %v6660_v26  ;;  %v837_v25 = vld [vmem:[#allocation11 + $0x30] sm:$0xff]  ;;  %v834_v26 = vld [vmem:[#allocation11 + $0x18] sm:$0xff] }
 0x2a1   :  { %v6462_v15 = vcombine.high %v833_v19, %v837_v25  ;;  %v6464_v16 = vcombine.high %v834_v26, %v838_v27  ;;  %v6461_v41 = vcombine.low %v833_v19, %v837_v25  ;;  %v6463_v43 = vcombine.low %v834_v26, %v838_v27  ;;  %v881_v19 = vld [vmem:[#allocation11 + $0x190] sm:$0xff]  ;;  %v886_v25 = vld [vmem:[#allocation11 + $0x1b8] sm:$0xff] }
 0x2a3   :  { %2508 = vmatpush1.bf16.msra.mxu1 %v6657_v31  ;;  %2590 = vmatpush1.bf16.msra.mxu0 %v6659_v32  ;;  %v6705_v32 = vcombine.low %v1079_v4, %v1083_v6  ;;  %v6487_v4 = vcombine.low %v858_v59, %v862_v60  ;;  %v918_v59 = vld [vmem:[#allocation11 + $0x2b8] sm:$0xff] }
 0x2a4   :  { %2509 = vmatprep.subr.bf16.mxu1 %v6666_v34  ;;  %2591 = vmatprep.subr.bf16.mxu0 %v6668_v35  ;;  %v6707_v34 = vcombine.low %v1080_v7, %v1084_v8  ;;  %v873_v7 = vld [vmem:[#allocation11 + $0x150] sm:$0xff] }
 0x2a5   :  { %v877_v8 = vld [vmem:[#allocation11 + $0x170] sm:$0xff] }
 0x2a6   :  { %v6501_v26 = vcombine.low %v873_v7, %v877_v8 }
 0x2a7   :  { %2510 = vmatpush1.bf16.msra.mxu1 %v6665_v22  ;;  %2592 = vmatpush1.bf16.msra.mxu0 %v6667_v23  ;;  %v845_v23 = vld [vmem:[#allocation11 + $0x70] sm:$0xff] }
 0x2a8   :  { %2511 = vmatprep.subr.bf16.mxu1 %v6674_v36  ;;  %2593 = vmatprep.subr.bf16.mxu0 %v6676_v37  ;;  %v842_v36 = vld [vmem:[#allocation11 + $0x58] sm:$0xff]  ;;  %v6469_v50 = vcombine.low %v841_v21, %v845_v23 }
 0x2a9   :  { %v846_v37 = vld [vmem:[#allocation11 + $0x78] sm:$0xff] }
 0x2aa   :  { %v6471_v51 = vcombine.low %v842_v36, %v846_v37 }
 0x2ab   :  { %2512 = vmatpush1.bf16.msra.mxu1 %v6673_v44  ;;  %2594 = vmatpush1.bf16.msra.mxu0 %v6675_v45  ;;  %v6470_v44 = vcombine.high %v841_v21, %v845_v23  ;;  %v6472_v45 = vcombine.high %v842_v36, %v846_v37  ;;  %v897_v21 = vld [vmem:[#allocation11 + $0x210] sm:$0xff]  ;;  %v898_v23 = vld [vmem:[#allocation11 + $0x218] sm:$0xff] }
 0x2ac   :  { %2513 = vmatprep.subr.bf16.mxu1 %v6682_v46  ;;  %2595 = vmatprep.subr.bf16.mxu0 %v6684_v47  ;;  %v849_v46 = vld [vmem:[#allocation11 + $0x90] sm:$0xff]  ;;  %v902_v36 = vld [vmem:[#allocation11 + $0x238] sm:$0xff] }
 0x2ad   :  { %v853_v47 = vld [vmem:[#allocation11 + $0xb0] sm:$0xff] }
 0x2ae   :  { %v6477_v61 = vcombine.low %v849_v46, %v853_v47 }
 0x2af   :  { %2514 = vmatpush1.bf16.msra.mxu1 %v6681_v54  ;;  %2596 = vmatpush1.bf16.msra.mxu0 %v6683_v55  ;;  %v6478_v54 = vcombine.high %v849_v46, %v853_v47  ;;  %v6480_v55 = vcombine.high %v850_v48, %v854_v49  ;;  %v909_v46 = vld [vmem:[#allocation11 + $0x270] sm:$0xff]  ;;  %v906_v47 = vld [vmem:[#allocation11 + $0x258] sm:$0xff] }
 0x2b0   :  { %2515 = vmatprep.subr.bf16.mxu1 %v6690_v57  ;;  %2597 = vmatprep.subr.bf16.mxu0 %v6692_v58  ;;  %v857_v57 = vld [vmem:[#allocation11 + $0xd0] sm:$0xff]  ;;  %v910_v48 = vld [vmem:[#allocation11 + $0x278] sm:$0xff] }
 0x2b1   :  { %v861_v58 = vld [vmem:[#allocation11 + $0xf0] sm:$0xff] }
 0x2b2   :  { %v6486_v63 = vcombine.high %v857_v57, %v861_v58 }
 0x2b3   :  { %2516 = vmatpush1.bf16.msra.mxu1 %v6689_v33  ;;  %2598 = vmatpush1.bf16.msra.mxu0 %v6691_v1  ;;  %v865_v33 = vld [vmem:[#allocation11 + $0x110] sm:$0xff] }
 0x2b4   :  { %v812_v13 = vpop.f32.mrb[8].mxu0  ;;  %2517 = vmatprep.subr.bf16.mxu1 %v6698_v2  ;;  %2599 = vmatprep.subr.bf16.mxu0 %v6700_v3  ;;  %v869_v1 = vld [vmem:[#allocation11 + $0x130] sm:$0xff]  ;;  %v870_v2 = vld [vmem:[#allocation11 + $0x138] sm:$0xff]  ;;  %v6485_v3 = vcombine.low %v857_v57, %v861_v58 }
 0x2b5   :  { %v813_v20 = vadd.f32 %v812_v13, %v412_v5  ;;  %v814_v24 = vpop.f32.mrb[9].mxu0  ;;  %v6494_v5 = vcombine.high %v865_v33, %v869_v1  ;;  %v917_v57 = vld [vmem:[#allocation11 + $0x2b0] sm:$0xff]  ;;  %v914_v58 = vld [vmem:[#allocation11 + $0x298] sm:$0xff] }
 0x2b6   :  { %v815_v28 = vadd.f32 %v814_v24, %v416_v9  ;;  %v816_v29 = vpop.f32.mrb[10].mxu0  ;;  %v874_v9 = vld [vmem:[#allocation11 + $0x158] sm:$0xff] }
 0x2b7   :  { %vm821_vm4 = vcmp.gt.f32.partialorder %v813_v20, 0.0  ;;  %v825_v30 = vmul.f32 0.2, %v813_v20  ;;  %v817_v31 = vpop.f32.mrb[11].mxu0  ;;  %2518 = vmatpush1.bf16.msra.mxu1 %v6697_v10  ;;  %2600 = vmatpush1.bf16.msra.mxu0 %v6699_v56  ;;  %v878_v10 = vld [vmem:[#allocation11 + $0x178] sm:$0xff]  ;;  %v6493_v56 = vcombine.low %v865_v33, %v869_v1  ;;  %v925_v33 = vld [vmem:[#allocation11 + $0x2f0] sm:$0xff] }
 0x2b8   :  { %vm822_vm5 = vcmp.gt.f32.partialorder %v815_v28, 0.0  ;;  %v826_v35 = vmul.f32 0.2, %v815_v28  ;;  %2519 = vmatprep.subr.bf16.mxu1 %v6706_v14  ;;  %2601 = vmatprep.subr.bf16.mxu0 %v6708_v18  ;;  %v6502_v14 = vcombine.high %v873_v7, %v877_v8  ;;  %v6504_v18 = vcombine.high %v874_v9, %v878_v10  ;;  %v882_v24 = vld [vmem:[#allocation11 + $0x198] sm:$0xff]  ;;  %v893_v31 = vld [vmem:[#allocation11 + $0x1f0] sm:$0xff] }
 0x2b9   :  { %v829_v17 = vsel %vm821_vm4, %v813_v20, %v825_v30  ;;  %v885_v20 = vld [vmem:[#allocation11 + $0x1b0] sm:$0xff]  ;;  %v6503_v27 = vcombine.low %v874_v9, %v878_v10  ;;  %v6512_v29 = vcombine.high %v882_v24, %v886_v25  ;;  %v922_v1 = vld [vmem:[#allocation11 + $0x2d8] sm:$0xff] }
 0x2ba   :  { %v830_v22 = vsel %vm822_vm5, %v815_v28, %v826_v35  ;;  %v8585_v42 = vpack.c.bf16 %v829_v17, %v829_v17  ;;  %v6510_v28 = vcombine.high %v881_v19, %v885_v20  ;;  %v889_v30 = vld [vmem:[#allocation11 + $0x1d0] sm:$0xff]  ;;  %v6509_v35 = vcombine.low %v881_v19, %v885_v20  ;;  %v930_v8 = vld [vmem:[#allocation11 + $0x318] sm:$0xff] }
 0x2bb   :  { %v8583_v38 = vpack.c.bf16 %v830_v22, %v830_v22  ;;  %2520 = vmatpush1.bf16.msra.mxu1 %v6705_v32  ;;  %2602 = vmatpush1.bf16.msra.mxu0 %v6707_v34  ;;  %v890_v32 = vld [vmem:[#allocation11 + $0x1d8] sm:$0xff]  ;;  %v901_v22 = vld [vmem:[#allocation11 + $0x230] sm:$0xff]  ;;  %v6517_v37 = vcombine.low %v889_v30, %v893_v31 }
 0x2bc   :  { %2612 = vmatprep.subr.bf16.mxu1 %v6462_v15  ;;  %2694 = vmatprep.subr.bf16.mxu0 %v6464_v16  ;;  %v894_v34 = vld [vmem:[#allocation11 + $0x1f8] sm:$0xff]  ;;  %v6511_v15 = vcombine.low %v882_v24, %v886_v25  ;;  %v6518_v16 = vcombine.high %v889_v30, %v893_v31  ;;  %v6525_v49 = vcombine.low %v897_v21, %v901_v22  ;;  %v933_v7 = vld [vmem:[#allocation11 + $0x330] sm:$0xff] }
 0x2bd   :  { %2521 = vmatprep.mubr.bf16.mxu1 %v8583_v38  ;;  %2603 = vmatprep.mubr.bf16.mxu0 %v8583_v38  ;;  %v6520_v17 = vcombine.high %v890_v32, %v894_v34  ;;  %v934_v9 = vld [vmem:[#allocation11 + $0x338] sm:$0xff]  ;;  %v941_v19 = vld [vmem:[#allocation11 + $0x370] sm:$0xff] }
 0x2be   :  { %2522 = vmatmul.mubr.bf16.vlgmr.msra.gmra.mrb[0].mxu1 %v8585_v42  ;;  %2604 = vmatmul.mubr.bf16.vlgmr.msra.gmra.mrb[12].mxu0 %v8585_v42  ;;  %v938_v20 = vld [vmem:[#allocation11 + $0x358] sm:$0xff]  ;;  %v949_v30 = vld [vmem:[#allocation11 + $0x3b0] sm:$0xff] }
 0x2bf   :  { %2613 = vmatpush1.bf16.msra.mxu1 %v6461_v41  ;;  %2644 = vmatprep.mubr.bf16.mxu1 %v8557_v11  ;;  %v6519_v41 = vcombine.low %v890_v32, %v894_v34  ;;  %v942_v24 = vld [vmem:[#allocation11 + $0x378] sm:$0xff] }
 0x2c0   :  { %2695 = vmatpush1.bf16.msra.mxu0 %v6463_v43  ;;  %2726 = vmatprep.mubr.bf16.mxu0 %v8557_v11  ;;  %v866_v11 = vld [vmem:[#allocation11 + $0x118] sm:$0xff]  ;;  %v6526_v43 = vcombine.high %v897_v21, %v901_v22  ;;  %v957_v21 = vld [vmem:[#allocation11 + $0x3f0] sm:$0xff] }
 0x2c1   :  { %2614 = vmatprep.subr.bf16.mxu1 %v6470_v44  ;;  %2696 = vmatprep.subr.bf16.mxu0 %v6472_v45  ;;  %v6496_v6 = vcombine.high %v866_v11, %v870_v2  ;;  %v6495_v13 = vcombine.low %v866_v11, %v870_v2  ;;  %v6528_v44 = vcombine.high %v898_v23, %v902_v36  ;;  %v905_v45 = vld [vmem:[#allocation11 + $0x250] sm:$0xff]  ;;  %v926_v11 = vld [vmem:[#allocation11 + $0x2f8] sm:$0xff] }
 0x2c2   :  { %v6533_v60 = vcombine.low %v905_v45, %v909_v46  ;;  %v946_v31 = vld [vmem:[#allocation11 + $0x398] sm:$0xff] }
 0x2c3   :  { %2615 = vmatpush1.bf16.msra.mxu1 %v6469_v50  ;;  %v6527_v50 = vcombine.low %v898_v23, %v902_v36  ;;  %v950_v32 = vld [vmem:[#allocation11 + $0x3b8] sm:$0xff] }
 0x2c4   :  { %2697 = vmatpush1.bf16.msra.mxu0 %v6471_v51  ;;  %2616 = vmatprep.subr.bf16.mxu1 %v6478_v54  ;;  %v6534_v51 = vcombine.high %v905_v45, %v909_v46  ;;  %v6536_v54 = vcombine.high %v906_v47, %v910_v48  ;;  %v954_v22 = vld [vmem:[#allocation11 + $0x3d8] sm:$0xff]  ;;  %v965_v45 = vld [vmem:[#allocation11 + $0x430] sm:$0xff] }
 0x2c5   :  { %2698 = vmatprep.subr.bf16.mxu0 %v6480_v55  ;;  %v913_v55 = vld [vmem:[#allocation11 + $0x290] sm:$0xff]  ;;  %v958_v23 = vld [vmem:[#allocation11 + $0x3f8] sm:$0xff] }
 0x2c6   :  { %v6541_v2 = vcombine.low %v913_v55, %v917_v57  ;;  %v962_v46 = vld [vmem:[#allocation11 + $0x418] sm:$0xff] }
 0x2c7   :  { %2617 = vmatpush1.bf16.msra.mxu1 %v6477_v61  ;;  %v6535_v61 = vcombine.low %v906_v47, %v910_v48  ;;  %v966_v47 = vld [vmem:[#allocation11 + $0x438] sm:$0xff] }
 0x2c8   :  { %2699 = vmatpush1.bf16.msra.mxu0 %v6479_v62  ;;  %2618 = vmatprep.subr.bf16.mxu1 %v6486_v63  ;;  %v6542_v62 = vcombine.high %v913_v55, %v917_v57  ;;  %v6544_v63 = vcombine.high %v914_v58, %v918_v59  ;;  %v973_v55 = vld [vmem:[#allocation11 + $0x470] sm:$0xff] }
 0x2c9   :  { %2700 = vmatprep.subr.bf16.mxu0 %v6488_v0  ;;  %v921_v0 = vld [vmem:[#allocation11 + $0x2d0] sm:$0xff] }
 0x2ca   :  { %v6549_v10 = vcombine.low %v921_v0, %v925_v33 }
 0x2cb   :  { %2619 = vmatpush1.bf16.msra.mxu1 %v6485_v3  ;;  %v6543_v3 = vcombine.low %v914_v58, %v918_v59  ;;  %v970_v58 = vld [vmem:[#allocation11 + $0x458] sm:$0xff] }
 0x2cc   :  { %2701 = vmatpush1.bf16.msra.mxu0 %v6487_v4  ;;  %2620 = vmatprep.subr.bf16.mxu1 %v6494_v5  ;;  %v6550_v4 = vcombine.high %v921_v0, %v925_v33  ;;  %v6552_v5 = vcombine.high %v922_v1, %v926_v11  ;;  %v974_v59 = vld [vmem:[#allocation11 + $0x478] sm:$0xff] }
 0x2cd   :  { %2702 = vmatprep.subr.bf16.mxu0 %v6496_v6  ;;  %v929_v6 = vld [vmem:[#allocation11 + $0x310] sm:$0xff]  ;;  %v6600_v0 = vcombine.high %v970_v58, %v974_v59  ;;  %v978_v33 = vld [vmem:[#allocation11 + $0x498] sm:$0xff] }
 0x2ce   :  { %v6557_v25 = vcombine.low %v929_v6, %v933_v7 }
 0x2cf   :  { %2621 = vmatpush1.bf16.msra.mxu1 %v6493_v56  ;;  %v6551_v56 = vcombine.low %v922_v1, %v926_v11  ;;  %v982_v1 = vld [vmem:[#allocation11 + $0x4b8] sm:$0xff] }
 0x2d0   :  { %2703 = vmatpush1.bf16.msra.mxu0 %v6495_v13  ;;  %2622 = vmatprep.subr.bf16.mxu1 %v6502_v14  ;;  %v6558_v13 = vcombine.high %v929_v6, %v933_v7  ;;  %v6560_v14 = vcombine.high %v930_v8, %v934_v9  ;;  %v989_v6 = vld [vmem:[#allocation11 + $0x4f0] sm:$0xff]  ;;  %v986_v7 = vld [vmem:[#allocation11 + $0x4d8] sm:$0xff] }
 0x2d1   :  { %2704 = vmatprep.subr.bf16.mxu0 %v6504_v18  ;;  %v937_v18 = vld [vmem:[#allocation11 + $0x350] sm:$0xff] }
 0x2d2   :  { %v6565_v34 = vcombine.low %v937_v18, %v941_v19 }
 0x2d3   :  { %2623 = vmatpush1.bf16.msra.mxu1 %v6501_v26  ;;  %v6559_v26 = vcombine.low %v930_v8, %v934_v9  ;;  %v990_v8 = vld [vmem:[#allocation11 + $0x4f8] sm:$0xff] }
 0x2d4   :  { %2705 = vmatpush1.bf16.msra.mxu0 %v6503_v27  ;;  %2624 = vmatprep.subr.bf16.mxu1 %v6510_v28  ;;  %v6566_v27 = vcombine.high %v937_v18, %v941_v19  ;;  %v6568_v28 = vcombine.high %v938_v20, %v942_v24  ;;  %v994_v18 = vld [vmem:[#allocation11 + $0x518] sm:$0xff] }
 0x2d5   :  { %2706 = vmatprep.subr.bf16.mxu0 %v6512_v29  ;;  %v945_v29 = vld [vmem:[#allocation11 + $0x390] sm:$0xff]  ;;  %v998_v19 = vld [vmem:[#allocation11 + $0x538] sm:$0xff] }
 0x2d6   :  { %v6573_v36 = vcombine.low %v945_v29, %v949_v30 }
 0x2d7   :  { %2625 = vmatpush1.bf16.msra.mxu1 %v6509_v35  ;;  %v6567_v35 = vcombine.low %v938_v20, %v942_v24  ;;  %v6615_v20 = vcombine.low %v986_v7, %v990_v8 }
 0x2d8   :  { %2707 = vmatpush1.bf16.msra.mxu0 %v6511_v15  ;;  %2626 = vmatprep.subr.bf16.mxu1 %v6518_v16  ;;  %v6574_v15 = vcombine.high %v945_v29, %v949_v30  ;;  %v6576_v16 = vcombine.high %v946_v31, %v950_v32  ;;  %v1006_v29 = vld [vmem:[#allocation11 + $0x578] sm:$0xff] }
 0x2d9   :  { %2708 = vmatprep.subr.bf16.mxu0 %v6520_v17  ;;  %v953_v17 = vld [vmem:[#allocation11 + $0x3d0] sm:$0xff] }
 0x2da   :  { %v6581_v48 = vcombine.low %v953_v17, %v957_v21 }
 0x2db   :  { %2627 = vmatpush1.bf16.msra.mxu1 %v6517_v37  ;;  %v6575_v37 = vcombine.low %v946_v31, %v950_v32  ;;  %v6623_v31 = vcombine.low %v994_v18, %v998_v19 }
 0x2dc   :  { %2709 = vmatpush1.bf16.msra.mxu0 %v6519_v41  ;;  %2628 = vmatprep.subr.bf16.mxu1 %v6526_v43  ;;  %v6582_v41 = vcombine.high %v953_v17, %v957_v21  ;;  %v6584_v43 = vcombine.high %v954_v22, %v958_v23  ;;  %v1014_v17 = vld [vmem:[#allocation11 + $0x5b8] sm:$0xff] }
 0x2dd   :  { %2710 = vmatprep.subr.bf16.mxu0 %v6528_v44  ;;  %v961_v44 = vld [vmem:[#allocation11 + $0x410] sm:$0xff] }
 0x2de   :  { %v6589_v57 = vcombine.low %v961_v44, %v965_v45 }
 0x2df   :  { %2629 = vmatpush1.bf16.msra.mxu1 %v6525_v49  ;;  %v6583_v49 = vcombine.low %v954_v22, %v958_v23 }
 0x2e0   :  { %2711 = vmatpush1.bf16.msra.mxu0 %v6527_v50  ;;  %2630 = vmatprep.subr.bf16.mxu1 %v6534_v51  ;;  %v6590_v50 = vcombine.high %v961_v44, %v965_v45  ;;  %v6592_v51 = vcombine.high %v962_v46, %v966_v47  ;;  %v1022_v44 = vld [vmem:[#allocation11 + $0x5f8] sm:$0xff] }
 0x2e1   :  { %2712 = vmatprep.subr.bf16.mxu0 %v6536_v54  ;;  %v969_v54 = vld [vmem:[#allocation11 + $0x450] sm:$0xff] }
 0x2e2   :  { %v6597_v11 = vcombine.low %v969_v54, %v973_v55 }
 0x2e3   :  { %2631 = vmatpush1.bf16.msra.mxu1 %v6533_v60  ;;  %v6591_v60 = vcombine.low %v962_v46, %v966_v47 }
 0x2e4   :  { %2713 = vmatpush1.bf16.msra.mxu0 %v6535_v61  ;;  %2632 = vmatprep.subr.bf16.mxu1 %v6542_v62  ;;  %v6598_v61 = vcombine.high %v969_v54, %v973_v55  ;;  %v977_v62 = vld [vmem:[#allocation11 + $0x490] sm:$0xff]  ;;  %v1030_v54 = vld [vmem:[#allocation11 + $0x638] sm:$0xff] }
 0x2e5   :  { %2714 = vmatprep.subr.bf16.mxu0 %v6544_v63  ;;  %v981_v63 = vld [vmem:[#allocation11 + $0x4b0] sm:$0xff] }
 0x2e6   :  { %v6605_v9 = vcombine.low %v977_v62, %v981_v63 }
 0x2e7   :  { %2633 = vmatpush1.bf16.msra.mxu1 %v6541_v2  ;;  %v6599_v2 = vcombine.low %v970_v58, %v974_v59 }
 0x2e8   :  { %2715 = vmatpush1.bf16.msra.mxu0 %v6543_v3  ;;  %2634 = vmatprep.subr.bf16.mxu1 %v6550_v4  ;;  %v6606_v3 = vcombine.high %v977_v62, %v981_v63  ;;  %v6608_v4 = vcombine.high %v978_v33, %v982_v1  ;;  %v1034_v62 = vld [vmem:[#allocation11 + $0x658] sm:$0xff] }
 0x2e9   :  { %2716 = vmatprep.subr.bf16.mxu0 %v6552_v5  ;;  %v985_v5 = vld [vmem:[#allocation11 + $0x4d0] sm:$0xff]  ;;  %v1038_v63 = vld [vmem:[#allocation11 + $0x678] sm:$0xff] }
 0x2eb   :  { %2635 = vmatpush1.bf16.msra.mxu1 %v6549_v10  ;;  %v6614_v10 = vcombine.high %v985_v5, %v989_v6 }
 0x2ec   :  { %2717 = vmatpush1.bf16.msra.mxu0 %v6551_v56  ;;  %2636 = vmatprep.subr.bf16.mxu1 %v6558_v13  ;;  %v6616_v56 = vcombine.high %v986_v7, %v990_v8  ;;  %v993_v13 = vld [vmem:[#allocation11 + $0x510] sm:$0xff]  ;;  %v6663_v7 = vcombine.low %v1034_v62, %v1038_v63 }
 0x2ed   :  { %2718 = vmatprep.subr.bf16.mxu0 %v6560_v14  ;;  %v997_v14 = vld [vmem:[#allocation11 + $0x530] sm:$0xff] }
 0x2ee   :  { %v6622_v24 = vcombine.high %v993_v13, %v997_v14  ;;  %v6621_v30 = vcombine.low %v993_v13, %v997_v14  ;;  %v1054_v13 = vld [vmem:[#allocation11 + $0x6f8] sm:$0xff] }
 0x2ef   :  { %2637 = vmatpush1.bf16.msra.mxu1 %v6557_v25  ;;  %v6624_v25 = vcombine.high %v994_v18, %v998_v19 }
 0x2f0   :  { %2719 = vmatpush1.bf16.msra.mxu0 %v6559_v26  ;;  %2638 = vmatprep.subr.bf16.mxu1 %v6566_v27  ;;  %v1001_v26 = vld [vmem:[#allocation11 + $0x550] sm:$0xff] }
 0x2f1   :  { %2720 = vmatprep.subr.bf16.mxu0 %v6568_v28  ;;  %v1005_v27 = vld [vmem:[#allocation11 + $0x570] sm:$0xff]  ;;  %v1002_v28 = vld [vmem:[#allocation11 + $0x558] sm:$0xff] }
 0x2f2   :  { %v6630_v32 = vcombine.high %v1001_v26, %v1005_v27  ;;  %v6629_v21 = vcombine.low %v1001_v26, %v1005_v27  ;;  %v6631_v22 = vcombine.low %v1002_v28, %v1006_v29  ;;  %v1062_v26 = vld [vmem:[#allocation11 + $0x738] sm:$0xff] }
 0x2f3   :  { %2639 = vmatpush1.bf16.msra.mxu1 %v6565_v34  ;;  %v6632_v34 = vcombine.high %v1002_v28, %v1006_v29 }
 0x2f4   :  { %2721 = vmatpush1.bf16.msra.mxu0 %v6567_v35  ;;  %2640 = vmatprep.subr.bf16.mxu1 %v6574_v15  ;;  %v1009_v35 = vld [vmem:[#allocation11 + $0x590] sm:$0xff] }
 0x2f5   :  { %2722 = vmatprep.subr.bf16.mxu0 %v6576_v16  ;;  %v1013_v15 = vld [vmem:[#allocation11 + $0x5b0] sm:$0xff]  ;;  %v1010_v16 = vld [vmem:[#allocation11 + $0x598] sm:$0xff] }
 0x2f6   :  { %v6638_v23 = vcombine.high %v1009_v35, %v1013_v15  ;;  %v6637_v45 = vcombine.low %v1009_v35, %v1013_v15  ;;  %v6639_v46 = vcombine.low %v1010_v16, %v1014_v17  ;;  %v1070_v35 = vld [vmem:[#allocation11 + $0x778] sm:$0xff] }
 0x2f7   :  { %2641 = vmatpush1.bf16.msra.mxu1 %v6573_v36  ;;  %v6640_v36 = vcombine.high %v1010_v16, %v1014_v17 }
 0x2f8   :  { %2723 = vmatpush1.bf16.msra.mxu0 %v6575_v37  ;;  %2642 = vmatprep.subr.bf16.mxu1 %v6582_v41  ;;  %v1017_v37 = vld [vmem:[#allocation11 + $0x5d0] sm:$0xff] }
 0x2f9   :  { %2724 = vmatprep.subr.bf16.mxu0 %v6584_v43  ;;  %v1021_v41 = vld [vmem:[#allocation11 + $0x5f0] sm:$0xff]  ;;  %v1018_v43 = vld [vmem:[#allocation11 + $0x5d8] sm:$0xff] }
 0x2fa   :  { %v6646_v47 = vcombine.high %v1017_v37, %v1021_v41  ;;  %v6645_v55 = vcombine.low %v1017_v37, %v1021_v41  ;;  %v1078_v37 = vld [vmem:[#allocation11 + $0x7b8] sm:$0xff] }
 0x2fb   :  { %2643 = vmatpush1.bf16.msra.mxu1 %v6581_v48  ;;  %v6648_v48 = vcombine.high %v1018_v43, %v1022_v44 }
 0x2fc   :  { %2725 = vmatpush1.bf16.msra.mxu0 %v6583_v49  ;;  %2653 = vmatprep.subr.bf16.mxu1 %v6590_v50  ;;  %v1025_v49 = vld [vmem:[#allocation11 + $0x610] sm:$0xff] }
 0x2fd   :  { %2735 = vmatprep.subr.bf16.mxu0 %v6592_v51  ;;  %v1029_v50 = vld [vmem:[#allocation11 + $0x630] sm:$0xff]  ;;  %v1026_v51 = vld [vmem:[#allocation11 + $0x618] sm:$0xff] }
 0x2fe   :  { %2645 = vmatmul.mubr.bf16.vlgmr.msra.gmra.mrb[4].mxu1 %v8559_v12  ;;  %v6654_v58 = vcombine.high %v1025_v49, %v1029_v50  ;;  %v6656_v59 = vcombine.high %v1026_v51, %v1030_v54 }
 0x2ff   :  { %2727 = vmatmul.mubr.bf16.vlgmr.msra.gmra.mrb[16].mxu0 %v8559_v12  ;;  %2654 = vmatpush1.bf16.msra.mxu1 %v6589_v57  ;;  %v6607_v12 = vcombine.low %v978_v33, %v982_v1  ;;  %v6647_v57 = vcombine.low %v1018_v43, %v1022_v44  ;;  %v6655_v33 = vcombine.low %v1026_v51, %v1030_v54 }
 0x300   :  { %2685 = vmatprep.mubr.bf16.mxu1 %v8583_v38  ;;  %2736 = vmatpush1.bf16.msra.mxu0 %v6591_v60  ;;  %v1033_v60 = vld [vmem:[#allocation11 + $0x650] sm:$0xff] }
 0x301   :  { %2767 = vmatprep.mubr.bf16.mxu0 %v8583_v38  ;;  %2655 = vmatprep.subr.bf16.mxu1 %v6598_v61  ;;  %v6613_v38 = vcombine.low %v985_v5, %v989_v6  ;;  %v1037_v61 = vld [vmem:[#allocation11 + $0x670] sm:$0xff]  ;;  %v1046_v5 = vld [vmem:[#allocation11 + $0x6b8] sm:$0xff] }
 0x302   :  { %2737 = vmatprep.subr.bf16.mxu0 %v6600_v0  ;;  %v6653_v0 = vcombine.low %v1025_v49, %v1029_v50  ;;  %v6662_v1 = vcombine.high %v1033_v60, %v1037_v61  ;;  %v6661_v6 = vcombine.low %v1033_v60, %v1037_v61  ;;  %v1086_v49 = vld [vmem:[#allocation11 + $0x7f8] sm:$0xff]  ;;  %v7459_v60 = vld [vmem:[#allocation14 + $0xc] ss:$28 sps:$4 sm:$0xff]   ;;  %v7454_v61 = vld [vmem:[#allocation14] ss:$28 sps:$4 sm:$0xff]  }
 0x303   :  { %2656 = vmatpush1.bf16.msra.mxu1 %v6597_v11  ;;  %v6664_v11 = vcombine.high %v1034_v62, %v1038_v63  ;;  %v7457_v62 = vld [vmem:[#allocation14 + $0x8] ss:$28 sps:$4 sm:$0xff]   ;;  %v7462_v63 = vld [vmem:[#allocation14 + $0x3c] ss:$28 sps:$4 sm:$0xff]  }
 0x304   :  { %2738 = vmatpush1.bf16.msra.mxu0 %v6599_v2  ;;  %2657 = vmatprep.subr.bf16.mxu1 %v6606_v3  ;;  %v1041_v2 = vld [vmem:[#allocation11 + $0x690] sm:$0xff] }
 0x305   :  { %2739 = vmatprep.subr.bf16.mxu0 %v6608_v4  ;;  %v1045_v3 = vld [vmem:[#allocation11 + $0x6b0] sm:$0xff]  ;;  %v1042_v4 = vld [vmem:[#allocation11 + $0x698] sm:$0xff] }
 0x306   :  { %v6670_v8 = vcombine.high %v1041_v2, %v1045_v3  ;;  %v6669_v14 = vcombine.low %v1041_v2, %v1045_v3  ;;  %v6671_v18 = vcombine.low %v1042_v4, %v1046_v5  ;;  %v7471_v2 = vld [vmem:[#allocation14 + $0x7c] ss:$28 sps:$4 sm:$0xff]   ;;  %v7466_v3 = vld [vmem:[#allocation14 + $0x70] ss:$28 sps:$4 sm:$0xff]  }
 0x307   :  { %2658 = vmatpush1.bf16.msra.mxu1 %v6605_v9  ;;  %v6672_v9 = vcombine.high %v1042_v4, %v1046_v5  ;;  %v7469_v4 = vld [vmem:[#allocation14 + $0x78] ss:$28 sps:$4 sm:$0xff]   ;;  %v7474_v5 = vld [vmem:[#allocation14 + $0xac] ss:$28 sps:$4 sm:$0xff]  }
 0x308   :  { %2740 = vmatpush1.bf16.msra.mxu0 %v6607_v12  ;;  %2659 = vmatprep.subr.bf16.mxu1 %v6614_v10  ;;  %v1049_v12 = vld [vmem:[#allocation11 + $0x6d0] sm:$0xff] }
 0x309   :  { %2741 = vmatprep.subr.bf16.mxu0 %v6616_v56  ;;  %v1053_v10 = vld [vmem:[#allocation11 + $0x6f0] sm:$0xff]  ;;  %v1050_v56 = vld [vmem:[#allocation11 + $0x6d8] sm:$0xff] }
 0x30a   :  { %v6678_v19 = vcombine.high %v1049_v12, %v1053_v10  ;;  %v6677_v27 = vcombine.low %v1049_v12, %v1053_v10  ;;  %v6679_v28 = vcombine.low %v1050_v56, %v1054_v13  ;;  %v7478_v12 = vld [vmem:[#allocation14 + $0xe0] ss:$28 sps:$4 sm:$0xff]   ;;  %v7481_v10 = vld [vmem:[#allocation14 + $0xe8] ss:$28 sps:$4 sm:$0xff]  }
 0x30b   :  { %2660 = vmatpush1.bf16.msra.mxu1 %v6613_v38  ;;  %v6680_v38 = vcombine.high %v1050_v56, %v1054_v13  ;;  %v7486_v56 = vld [vmem:[#allocation14 + $0x11c] ss:$28 sps:$4 sm:$0xff]   ;;  %v7489_v13 = vld [vmem:[#allocation14 + $0x124] ss:$28 sps:$4 sm:$0xff]  }
 0x30c   :  { %2742 = vmatpush1.bf16.msra.mxu0 %v6615_v20  ;;  %2661 = vmatprep.subr.bf16.mxu1 %v6622_v24  ;;  %v1057_v20 = vld [vmem:[#allocation11 + $0x710] sm:$0xff] }
 0x30d   :  { %2743 = vmatprep.subr.bf16.mxu0 %v6624_v25  ;;  %v1061_v24 = vld [vmem:[#allocation11 + $0x730] sm:$0xff]  ;;  %v1058_v25 = vld [vmem:[#allocation11 + $0x718] sm:$0xff] }
 0x30e   :  { %v6686_v29 = vcombine.high %v1057_v20, %v1061_v24  ;;  %v6685_v15 = vcombine.low %v1057_v20, %v1061_v24  ;;  %v6687_v16 = vcombine.low %v1058_v25, %v1062_v26  ;;  %v7490_v20 = vld [vmem:[#allocation14 + $0x150] ss:$28 sps:$4 sm:$0xff]   ;;  %v7493_v24 = vld [vmem:[#allocation14 + $0x158] ss:$28 sps:$4 sm:$0xff]  }
 0x30f   :  { %2662 = vmatpush1.bf16.msra.mxu1 %v6621_v30  ;;  %v6688_v30 = vcombine.high %v1058_v25, %v1062_v26  ;;  %v7498_v25 = vld [vmem:[#allocation14 + $0x18c] ss:$28 sps:$4 sm:$0xff]   ;;  %v7501_v26 = vld [vmem:[#allocation14 + $0x194] ss:$28 sps:$4 sm:$0xff]  }
 0x310   :  { %2744 = vmatpush1.bf16.msra.mxu0 %v6623_v31  ;;  %2663 = vmatprep.subr.bf16.mxu1 %v6630_v32  ;;  %v1065_v31 = vld [vmem:[#allocation11 + $0x750] sm:$0xff] }
 0x311   :  { %2745 = vmatprep.subr.bf16.mxu0 %v6632_v34  ;;  %v1069_v32 = vld [vmem:[#allocation11 + $0x770] sm:$0xff]  ;;  %v1066_v34 = vld [vmem:[#allocation11 + $0x758] sm:$0xff] }
 0x312   :  { %v6694_v17 = vcombine.high %v1065_v31, %v1069_v32  ;;  %v6693_v41 = vcombine.low %v1065_v31, %v1069_v32  ;;  %v6695_v43 = vcombine.low %v1066_v34, %v1070_v35  ;;  %v7502_v31 = vld [vmem:[#allocation14 + $0x1c0] ss:$28 sps:$4 sm:$0xff]   ;;  %v7505_v32 = vld [vmem:[#allocation14 + $0x1c8] ss:$28 sps:$4 sm:$0xff]  }
 0x313   :  { %2664 = vmatpush1.bf16.msra.mxu1 %v6629_v21  ;;  %v6696_v21 = vcombine.high %v1066_v34, %v1070_v35  ;;  %v7510_v34 = vld [vmem:[#allocation14 + $0x1fc] ss:$28 sps:$4 sm:$0xff]   ;;  %v7513_v35 = vld [vmem:[#allocation14 + $0x204] ss:$28 sps:$4 sm:$0xff]  }
 0x314   :  { %2746 = vmatpush1.bf16.msra.mxu0 %v6631_v22  ;;  %2665 = vmatprep.subr.bf16.mxu1 %v6638_v23  ;;  %v1073_v22 = vld [vmem:[#allocation11 + $0x790] sm:$0xff] }
 0x315   :  { %2747 = vmatprep.subr.bf16.mxu0 %v6640_v36  ;;  %v1077_v23 = vld [vmem:[#allocation11 + $0x7b0] sm:$0xff]  ;;  %v1074_v36 = vld [vmem:[#allocation11 + $0x798] sm:$0xff] }
 0x316   :  { %v6702_v44 = vcombine.high %v1073_v22, %v1077_v23  ;;  %v6701_v50 = vcombine.low %v1073_v22, %v1077_v23  ;;  %v6703_v51 = vcombine.low %v1074_v36, %v1078_v37  ;;  %v7514_v22 = vld [vmem:[#allocation14 + $0x230] ss:$28 sps:$4 sm:$0xff]   ;;  %v7517_v23 = vld [vmem:[#allocation14 + $0x238] ss:$28 sps:$4 sm:$0xff]  }
 0x317   :  { %2666 = vmatpush1.bf16.msra.mxu1 %v6637_v45  ;;  %v6704_v45 = vcombine.high %v1074_v36, %v1078_v37  ;;  %v7522_v36 = vld [vmem:[#allocation14 + $0x26c] ss:$28 sps:$4 sm:$0xff]   ;;  %v7525_v37 = vld [vmem:[#allocation14 + $0x274] ss:$28 sps:$4 sm:$0xff]  }
 0x318   :  { %2748 = vmatpush1.bf16.msra.mxu0 %v6639_v46  ;;  %2667 = vmatprep.subr.bf16.mxu1 %v6646_v47  ;;  %v1081_v46 = vld [vmem:[#allocation11 + $0x7d0] sm:$0xff] }
 0x319   :  { %2749 = vmatprep.subr.bf16.mxu0 %v6648_v48  ;;  %v1085_v47 = vld [vmem:[#allocation11 + $0x7f0] sm:$0xff]  ;;  %v1082_v48 = vld [vmem:[#allocation11 + $0x7d8] sm:$0xff] }
 0x31a   :  { %v6710_v54 = vcombine.high %v1081_v46, %v1085_v47 }
 0x31b   :  { %2668 = vmatpush1.bf16.msra.mxu1 %v6645_v55  ;;  %v6712_v55 = vcombine.high %v1082_v48, %v1086_v49 }
 0x31c   :  { %2750 = vmatpush1.bf16.msra.mxu0 %v6647_v57  ;;  %2669 = vmatprep.subr.bf16.mxu1 %v6654_v58  ;;  %v6709_v57 = vcombine.low %v1081_v46, %v1085_v47  ;;  %v6711_v58 = vcombine.low %v1082_v48, %v1086_v49  ;;  %v7526_v46 = vld [vmem:[#allocation14 + $0x2a0] ss:$28 sps:$4 sm:$0xff]   ;;  %v7529_v47 = vld [vmem:[#allocation14 + $0x2a8] ss:$28 sps:$4 sm:$0xff]  }
 0x31d   :  { %2751 = vmatprep.subr.bf16.mxu0 %v6656_v59  ;;  %v7456_v59 = vld [vmem:[#allocation14 + $0x4] ss:$28 sps:$4 sm:$0xff]   ;;  %v7534_v48 = vld [vmem:[#allocation14 + $0x2dc] ss:$28 sps:$4 sm:$0xff]  }
 0x31e   :  { %v7537_v49 = vld [vmem:[#allocation14 + $0x2e4] ss:$28 sps:$4 sm:$0xff]  }
 0x31f   :  { %2670 = vmatpush1.bf16.msra.mxu1 %v6653_v0  ;;  %v7465_v0 = vld [vmem:[#allocation14 + $0x44] ss:$28 sps:$4 sm:$0xff]  }
 0x320   :  { %2752 = vmatpush1.bf16.msra.mxu0 %v6655_v33  ;;  %2671 = vmatprep.subr.bf16.mxu1 %v6662_v1  ;;  %v7460_v33 = vld [vmem:[#allocation14 + $0x38] ss:$28 sps:$4 sm:$0xff]   ;;  %v7463_v1 = vld [vmem:[#allocation14 + $0x40] ss:$28 sps:$4 sm:$0xff]  }
 0x321   :  { %2753 = vmatprep.subr.bf16.mxu0 %v6664_v11  ;;  %v7468_v11 = vld [vmem:[#allocation14 + $0x74] ss:$28 sps:$4 sm:$0xff]  }
 0x323   :  { %2672 = vmatpush1.bf16.msra.mxu1 %v6661_v6  ;;  %v7477_v6 = vld [vmem:[#allocation14 + $0xb4] ss:$28 sps:$4 sm:$0xff]  }
 0x324   :  { %2754 = vmatpush1.bf16.msra.mxu0 %v6663_v7  ;;  %2673 = vmatprep.subr.bf16.mxu1 %v6670_v8  ;;  %v7472_v7 = vld [vmem:[#allocation14 + $0xa8] ss:$28 sps:$4 sm:$0xff]  }
 0x325   :  { %2755 = vmatprep.subr.bf16.mxu0 %v6672_v9  ;;  %v7480_v8 = vld [vmem:[#allocation14 + $0xe4] ss:$28 sps:$4 sm:$0xff]   ;;  %v7483_v9 = vld [vmem:[#allocation14 + $0xec] ss:$28 sps:$4 sm:$0xff]  }
 0x327   :  { %2674 = vmatpush1.bf16.msra.mxu1 %v6669_v14  ;;  %v7484_v14 = vld [vmem:[#allocation14 + $0x118] ss:$28 sps:$4 sm:$0xff]  }
 0x328   :  { %2756 = vmatpush1.bf16.msra.mxu0 %v6671_v18  ;;  %2675 = vmatprep.subr.bf16.mxu1 %v6678_v19  ;;  %v7487_v18 = vld [vmem:[#allocation14 + $0x120] ss:$28 sps:$4 sm:$0xff]   ;;  %v7492_v19 = vld [vmem:[#allocation14 + $0x154] ss:$28 sps:$4 sm:$0xff]  }
 0x329   :  { %2757 = vmatprep.subr.bf16.mxu0 %v6680_v38  ;;  %v7495_v38 = vld [vmem:[#allocation14 + $0x15c] ss:$28 sps:$4 sm:$0xff]  }
 0x32b   :  { %2676 = vmatpush1.bf16.msra.mxu1 %v6677_v27  ;;  %v7496_v27 = vld [vmem:[#allocation14 + $0x188] ss:$28 sps:$4 sm:$0xff]  }
 0x32c   :  { %2758 = vmatpush1.bf16.msra.mxu0 %v6679_v28  ;;  %2677 = vmatprep.subr.bf16.mxu1 %v6686_v29  ;;  %v7499_v28 = vld [vmem:[#allocation14 + $0x190] ss:$28 sps:$4 sm:$0xff]   ;;  %v7504_v29 = vld [vmem:[#allocation14 + $0x1c4] ss:$28 sps:$4 sm:$0xff]  }
 0x32d   :  { %2759 = vmatprep.subr.bf16.mxu0 %v6688_v30  ;;  %v7507_v30 = vld [vmem:[#allocation14 + $0x1cc] ss:$28 sps:$4 sm:$0xff]  }
 0x32f   :  { %2678 = vmatpush1.bf16.msra.mxu1 %v6685_v15  ;;  %v7508_v15 = vld [vmem:[#allocation14 + $0x1f8] ss:$28 sps:$4 sm:$0xff]  }
 0x330   :  { %2760 = vmatpush1.bf16.msra.mxu0 %v6687_v16  ;;  %2679 = vmatprep.subr.bf16.mxu1 %v6694_v17  ;;  %v7511_v16 = vld [vmem:[#allocation14 + $0x200] ss:$28 sps:$4 sm:$0xff]   ;;  %v7516_v17 = vld [vmem:[#allocation14 + $0x234] ss:$28 sps:$4 sm:$0xff]  }
 0x331   :  { %2761 = vmatprep.subr.bf16.mxu0 %v6696_v21  ;;  %v7519_v21 = vld [vmem:[#allocation14 + $0x23c] ss:$28 sps:$4 sm:$0xff]  }
 0x333   :  { %2680 = vmatpush1.bf16.msra.mxu1 %v6693_v41  ;;  %v7520_v41 = vld [vmem:[#allocation14 + $0x268] ss:$28 sps:$4 sm:$0xff]  }
 0x334   :  { %2762 = vmatpush1.bf16.msra.mxu0 %v6695_v43  ;;  %2681 = vmatprep.subr.bf16.mxu1 %v6702_v44  ;;  %v7523_v43 = vld [vmem:[#allocation14 + $0x270] ss:$28 sps:$4 sm:$0xff]   ;;  %v7528_v44 = vld [vmem:[#allocation14 + $0x2a4] ss:$28 sps:$4 sm:$0xff]  }
 0x335   :  { %2763 = vmatprep.subr.bf16.mxu0 %v6704_v45  ;;  %v7531_v45 = vld [vmem:[#allocation14 + $0x2ac] ss:$28 sps:$4 sm:$0xff]  }
 0x337   :  { %2682 = vmatpush1.bf16.msra.mxu1 %v6701_v50  ;;  %v7532_v50 = vld [vmem:[#allocation14 + $0x2d8] ss:$28 sps:$4 sm:$0xff]  }
 0x338   :  { %2764 = vmatpush1.bf16.msra.mxu0 %v6703_v51  ;;  %2683 = vmatprep.subr.bf16.mxu1 %v6710_v54  ;;  %v7535_v51 = vld [vmem:[#allocation14 + $0x2e0] ss:$28 sps:$4 sm:$0xff]   ;;  %v7540_v54 = vld [vmem:[#allocation14 + $0x314] ss:$28 sps:$4 sm:$0xff]  }
 0x339   :  { %2765 = vmatprep.subr.bf16.mxu0 %v6712_v55  ;;  %v7543_v55 = vld [vmem:[#allocation14 + $0x31c] ss:$28 sps:$4 sm:$0xff]  }
 0x33b   :  { %2684 = vmatpush1.bf16.msra.mxu1 %v6709_v57  ;;  %v7538_v57 = vld [vmem:[#allocation14 + $0x310] ss:$28 sps:$4 sm:$0xff]  }
 0x33c   :  { %2766 = vmatpush1.bf16.msra.mxu0 %v6711_v58  ;;  %5692 = vmatprep.subr.bf16.mxu1 %v7456_v59  ;;  %v7541_v58 = vld [vmem:[#allocation14 + $0x318] ss:$28 sps:$4 sm:$0xff]   ;;  %v7546_v59 = vld [vmem:[#allocation14 + $0x34c] ss:$28 sps:$4 sm:$0xff]  }
 0x33d   :  { %5856 = vmatprep.subr.bf16.mxu0 %v7459_v60  ;;  %v7549_v60 = vld [vmem:[#allocation14 + $0x354] ss:$28 sps:$4 sm:$0xff]  }
 0x33e   :  { %2686 = vmatmul.mubr.bf16.vlgmr.msra.gmra.mrb[4].mxu1 %v8585_v42 }
 0x33f   :  { %2768 = vmatmul.mubr.bf16.vlgmr.msra.gmra.mrb[16].mxu0 %v8585_v42  ;;  %5693 = vmatpush1.bf16.msra.mxu1 %v7454_v61  ;;  %v7475_v42 = vld [vmem:[#allocation14 + $0xb0] ss:$28 sps:$4 sm:$0xff]   ;;  %v7544_v61 = vld [vmem:[#allocation14 + $0x348] ss:$28 sps:$4 sm:$0xff]  }
 0x340   :  { %5857 = vmatpush1.bf16.msra.mxu0 %v7457_v62  ;;  %5694 = vmatprep.subr.bf16.mxu1 %v7462_v63  ;;  %v7547_v62 = vld [vmem:[#allocation14 + $0x350] ss:$28 sps:$4 sm:$0xff]   ;;  %v7552_v63 = vld [vmem:[#allocation14 + $0x384] ss:$28 sps:$4 sm:$0xff]  }
 0x341   :  { %5858 = vmatprep.subr.bf16.mxu0 %v7465_v0  ;;  %v7555_v0 = vld [vmem:[#allocation14 + $0x38c] ss:$28 sps:$4 sm:$0xff]  }
 0x343   :  { %5695 = vmatpush1.bf16.msra.mxu1 %v7460_v33  ;;  %v8599_v33 = vld [vmem:[#allocation13] sm:$0xff] }
 0x344   :  { %5859 = vmatpush1.bf16.msra.mxu0 %v7463_v1  ;;  %5696 = vmatprep.subr.bf16.mxu1 %v7468_v11  ;;  %v1092_v1 = vunpack.c.l.bf16 %v8599_v33 }
 0x345   :  { %5860 = vmatprep.subr.bf16.mxu0 %v7471_v2 }
 0x346   :  { %v1099_v11 = vrot.slane %v1092_v1, %v8520_v39  ;;  %v1107_v2 = vrot.slane %v1092_v1, %v8572_v52 }
 0x347   :  { %5697 = vmatpush1.bf16.msra.mxu1 %v7466_v3  ;;  %v1103_v3 = vrot.slane %v1092_v1, %v8523_v40 }
 0x348   :  { %5861 = vmatpush1.bf16.msra.mxu0 %v7469_v4  ;;  %5698 = vmatprep.subr.bf16.mxu1 %v7474_v5  ;;  %v1111_v4 = vrot.slane %v1092_v1, %v8575_v53  ;;  %v1139_v5 = vrot.slane %v1099_v11, %v8520_v39  ;;  %v7595_v1 = vld [vmem:[#allocation14 + $0x510] ss:$28 sps:$4 sm:$0xff]   ;;  %v7600_v11 = vld [vmem:[#allocation14 + $0x544] ss:$28 sps:$4 sm:$0xff]  }
 0x349   :  { %5862 = vmatprep.subr.bf16.mxu0 %v7477_v6  ;;  %v1147_v6 = vrot.slane %v1107_v2, %v8520_v39  ;;  %v7603_v2 = vld [vmem:[#allocation14 + $0x54c] ss:$28 sps:$4 sm:$0xff]  }
 0x34b   :  { %5699 = vmatpush1.bf16.msra.mxu1 %v7472_v7  ;;  %v1143_v7 = vrot.slane %v1103_v3, %v8520_v39  ;;  %v7598_v3 = vld [vmem:[#allocation14 + $0x540] ss:$28 sps:$4 sm:$0xff]  }
 0x34c   :  { %5863 = vmatpush1.bf16.msra.mxu0 %v7475_v42  ;;  %5700 = vmatprep.subr.bf16.mxu1 %v7480_v8  ;;  %v1151_v42 = vrot.slane %v1111_v4, %v8520_v39  ;;  %v7601_v4 = vld [vmem:[#allocation14 + $0x548] ss:$28 sps:$4 sm:$0xff]  }
 0x34d   :  { %5864 = vmatprep.subr.bf16.mxu0 %v7483_v9 }
 0x34f   :  { %5701 = vmatpush1.bf16.msra.mxu1 %v7478_v12 }
 0x350   :  { %5865 = vmatpush1.bf16.msra.mxu0 %v7481_v10  ;;  %5702 = vmatprep.subr.bf16.mxu1 %v7486_v56 }
 0x351   :  { %5866 = vmatprep.subr.bf16.mxu0 %v7489_v13 }
 0x353   :  { %5703 = vmatpush1.bf16.msra.mxu1 %v7484_v14 }
 0x354   :  { %5867 = vmatpush1.bf16.msra.mxu0 %v7487_v18  ;;  %5704 = vmatprep.subr.bf16.mxu1 %v7492_v19 }
 0x355   :  { %5868 = vmatprep.subr.bf16.mxu0 %v7495_v38 }
 0x357   :  { %5705 = vmatpush1.bf16.msra.mxu1 %v7490_v20 }
 0x358   :  { %5869 = vmatpush1.bf16.msra.mxu0 %v7493_v24  ;;  %5706 = vmatprep.subr.bf16.mxu1 %v7498_v25 }
 0x359   :  { %5870 = vmatprep.subr.bf16.mxu0 %v7501_v26 }
 0x35b   :  { %5707 = vmatpush1.bf16.msra.mxu1 %v7496_v27 }
 0x35c   :  { %5871 = vmatpush1.bf16.msra.mxu0 %v7499_v28  ;;  %5708 = vmatprep.subr.bf16.mxu1 %v7504_v29 }
 0x35d   :  { %5872 = vmatprep.subr.bf16.mxu0 %v7507_v30 }
 0x35f   :  { %5709 = vmatpush1.bf16.msra.mxu1 %v7502_v31 }
 0x360   :  { %5873 = vmatpush1.bf16.msra.mxu0 %v7505_v32  ;;  %5710 = vmatprep.subr.bf16.mxu1 %v7510_v34  ;;  %v7550_v32 = vld [vmem:[#allocation14 + $0x380] ss:$28 sps:$4 sm:$0xff]   ;;  %v7553_v34 = vld [vmem:[#allocation14 + $0x388] ss:$28 sps:$4 sm:$0xff]  }
 0x361   :  { %5874 = vmatprep.subr.bf16.mxu0 %v7513_v35 }
 0x363   :  { %5711 = vmatpush1.bf16.msra.mxu1 %v7508_v15  ;;  %v7558_v15 = vld [vmem:[#allocation14 + $0x3bc] ss:$28 sps:$4 sm:$0xff]  }
 0x364   :  { %5875 = vmatpush1.bf16.msra.mxu0 %v7511_v16  ;;  %5712 = vmatprep.subr.bf16.mxu1 %v7516_v17  ;;  %v7561_v16 = vld [vmem:[#allocation14 + $0x3c4] ss:$28 sps:$4 sm:$0xff]  }
 0x365   :  { %5876 = vmatprep.subr.bf16.mxu0 %v7519_v21  ;;  %v7556_v21 = vld [vmem:[#allocation14 + $0x3b8] ss:$28 sps:$4 sm:$0xff]  }
 0x367   :  { %5713 = vmatpush1.bf16.msra.mxu1 %v7514_v22  ;;  %v7559_v22 = vld [vmem:[#allocation14 + $0x3c0] ss:$28 sps:$4 sm:$0xff]  }
 0x368   :  { %5877 = vmatpush1.bf16.msra.mxu0 %v7517_v23  ;;  %5714 = vmatprep.subr.bf16.mxu1 %v7522_v36  ;;  %v7564_v23 = vld [vmem:[#allocation14 + $0x3f4] ss:$28 sps:$4 sm:$0xff]   ;;  %v7567_v36 = vld [vmem:[#allocation14 + $0x3fc] ss:$28 sps:$4 sm:$0xff]  }
 0x369   :  { %5878 = vmatprep.subr.bf16.mxu0 %v7525_v37  ;;  %v7562_v37 = vld [vmem:[#allocation14 + $0x3f0] ss:$28 sps:$4 sm:$0xff]  }
 0x36b   :  { %5715 = vmatpush1.bf16.msra.mxu1 %v7520_v41  ;;  %v7565_v41 = vld [vmem:[#allocation14 + $0x3f8] ss:$28 sps:$4 sm:$0xff]  }
 0x36c   :  { %5879 = vmatpush1.bf16.msra.mxu0 %v7523_v43  ;;  %5716 = vmatprep.subr.bf16.mxu1 %v7528_v44  ;;  %v7570_v43 = vld [vmem:[#allocation14 + $0x42c] ss:$28 sps:$4 sm:$0xff]   ;;  %v7573_v44 = vld [vmem:[#allocation14 + $0x434] ss:$28 sps:$4 sm:$0xff]  }
 0x36d   :  { %5880 = vmatprep.subr.bf16.mxu0 %v7531_v45  ;;  %v7568_v45 = vld [vmem:[#allocation14 + $0x428] ss:$28 sps:$4 sm:$0xff]  }
 0x36f   :  { %5717 = vmatpush1.bf16.msra.mxu1 %v7526_v46  ;;  %v7571_v46 = vld [vmem:[#allocation14 + $0x430] ss:$28 sps:$4 sm:$0xff]  }
 0x370   :  { %5881 = vmatpush1.bf16.msra.mxu0 %v7529_v47  ;;  %5718 = vmatprep.subr.bf16.mxu1 %v7534_v48  ;;  %v7576_v47 = vld [vmem:[#allocation14 + $0x464] ss:$28 sps:$4 sm:$0xff]   ;;  %v7579_v48 = vld [vmem:[#allocation14 + $0x46c] ss:$28 sps:$4 sm:$0xff]  }
 0x371   :  { %5882 = vmatprep.subr.bf16.mxu0 %v7537_v49  ;;  %v7574_v49 = vld [vmem:[#allocation14 + $0x460] ss:$28 sps:$4 sm:$0xff]  }
 0x373   :  { %5719 = vmatpush1.bf16.msra.mxu1 %v7532_v50  ;;  %v7577_v50 = vld [vmem:[#allocation14 + $0x468] ss:$28 sps:$4 sm:$0xff]  }
 0x374   :  { %5883 = vmatpush1.bf16.msra.mxu0 %v7535_v51  ;;  %5720 = vmatprep.subr.bf16.mxu1 %v7540_v54  ;;  %v7582_v51 = vld [vmem:[#allocation14 + $0x49c] ss:$28 sps:$4 sm:$0xff]   ;;  %v7585_v54 = vld [vmem:[#allocation14 + $0x4a4] ss:$28 sps:$4 sm:$0xff]  }
 0x375   :  { %5884 = vmatprep.subr.bf16.mxu0 %v7543_v55  ;;  %v7580_v55 = vld [vmem:[#allocation14 + $0x498] ss:$28 sps:$4 sm:$0xff]  }
 0x377   :  { %5721 = vmatpush1.bf16.msra.mxu1 %v7538_v57  ;;  %v7583_v57 = vld [vmem:[#allocation14 + $0x4a0] ss:$28 sps:$4 sm:$0xff]  }
 0x378   :  { %5885 = vmatpush1.bf16.msra.mxu0 %v7541_v58  ;;  %5722 = vmatprep.subr.bf16.mxu1 %v7546_v59  ;;  %v7588_v58 = vld [vmem:[#allocation14 + $0x4d4] ss:$28 sps:$4 sm:$0xff]   ;;  %v7591_v59 = vld [vmem:[#allocation14 + $0x4dc] ss:$28 sps:$4 sm:$0xff]  }
 0x379   :  { %5886 = vmatprep.subr.bf16.mxu0 %v7549_v60  ;;  %v7586_v60 = vld [vmem:[#allocation14 + $0x4d0] ss:$28 sps:$4 sm:$0xff]  }
 0x37b   :  { %5723 = vmatpush1.bf16.msra.mxu1 %v7544_v61  ;;  %v7589_v61 = vld [vmem:[#allocation14 + $0x4d8] ss:$28 sps:$4 sm:$0xff]  }
 0x37c   :  { %5887 = vmatpush1.bf16.msra.mxu0 %v7547_v62  ;;  %5733 = vmatprep.subr.bf16.mxu1 %v7552_v63  ;;  %v7594_v62 = vld [vmem:[#allocation14 + $0x50c] ss:$28 sps:$4 sm:$0xff]   ;;  %v7597_v63 = vld [vmem:[#allocation14 + $0x514] ss:$28 sps:$4 sm:$0xff]  }
 0x37d   :  { %5897 = vmatprep.subr.bf16.mxu0 %v7555_v0  ;;  %v7592_v0 = vld [vmem:[#allocation14 + $0x508] ss:$28 sps:$4 sm:$0xff]  }
 0x391   :  { %v2523_v8 = vpop.f32.mrb[0].mxu1  ;;  %v2605_v9 = vpop.f32.mrb[12].mxu0 }
 0x392   :  { %v7249_v12 = vadd.f32 %v2523_v8, %v1139_v5  ;;  %v8610_v10 = vadd.f32 %v2605_v9, %v1147_v6  ;;  %v2525_v56 = vpop.f32.mrb[1].mxu1  ;;  %v2607_v13 = vpop.f32.mrb[13].mxu0  ;;  %v7606_v5 = vld [vmem:[#allocation14 + $0x57c] ss:$28 sps:$4 sm:$0xff]   ;;  %v7609_v6 = vld [vmem:[#allocation14 + $0x584] ss:$28 sps:$4 sm:$0xff]  }
 0x393   :  { %v7250_v14 = vadd.f32 %v2525_v56, %v1143_v7  ;;  %v7252_v18 = vadd.f32 %v2607_v13, %v1151_v42  ;;  %v2527_v19 = vpop.f32.mrb[2].mxu1  ;;  %v2609_v38 = vpop.f32.mrb[14].mxu0  ;;  %v7604_v7 = vld [vmem:[#allocation14 + $0x578] ss:$28 sps:$4 sm:$0xff]   ;;  %v7607_v42 = vld [vmem:[#allocation14 + $0x580] ss:$28 sps:$4 sm:$0xff]  }
 0x394   :  { %vm2776_vm6 = vcmp.gt.f32.partialorder %v7249_v12, 0.0  ;;  %v2784_v20 = vmul.f32 0.2, %v7249_v12  ;;  %v2528_v27 = vpop.f32.mrb[3].mxu1  ;;  %v2610_v28 = vpop.f32.mrb[15].mxu0  ;;  %vm2778_vm9 = vcmp.gt.f32.partialorder %v8610_v10, 0.0 }
 0x395   :  { %vm2777_vm7 = vcmp.gt.f32.partialorder %v7250_v14, 0.0  ;;  %v2785_v24 = vmul.f32 0.2, %v7250_v14  ;;  %vm2779_vm8 = vcmp.gt.f32.partialorder %v7252_v18, 0.0  ;;  %v2787_v25 = vmul.f32 0.2, %v7252_v18 }
 0x396   :  { %v2792_v26 = vsel %vm2776_vm6, %v7249_v12, %v2784_v20  ;;  %v7612_v8 = vld [vmem:[#allocation14 + $0x5b4] ss:$28 sps:$4 sm:$0xff]   ;;  %v7615_v9 = vld [vmem:[#allocation14 + $0x5bc] ss:$28 sps:$4 sm:$0xff]   ;;  %v7618_v13 = vld [vmem:[#allocation14 + $0x5ec] ss:$28 sps:$4 sm:$0xff]  }
 0x397   :  { %v2793_v29 = vsel %vm2777_vm7, %v7250_v14, %v2785_v24  ;;  %v2795_v31 = vsel %vm2779_vm8, %v7252_v18, %v2787_v25  ;;  %v8614_v35 = vpack.c.bf16 %v2792_v26, %v2792_v26  ;;  %v7610_v12 = vld [vmem:[#allocation14 + $0x5b0] ss:$28 sps:$4 sm:$0xff]   ;;  %v7613_v56 = vld [vmem:[#allocation14 + $0x5b8] ss:$28 sps:$4 sm:$0xff]   ;;  %v7616_v18 = vld [vmem:[#allocation14 + $0x5e8] ss:$28 sps:$4 sm:$0xff]  }
 0x398   :  { %v8612_v30 = vpack.c.bf16 %v2793_v29, %v2793_v29  ;;  %v8618_v17 = vpack.c.bf16 %v2795_v31, %v2795_v31  ;;  %v7621_v14 = vld [vmem:[#allocation14 + $0x5f4] ss:$28 sps:$4 sm:$0xff]   ;;  %v7624_v38 = vld [vmem:[#allocation14 + $0x624] ss:$28 sps:$4 sm:$0xff]   ;;  %v7627_v20 = vld [vmem:[#allocation14 + $0x62c] ss:$28 sps:$4 sm:$0xff]  }
 0x399   :  { %v7619_v19 = vld [vmem:[#allocation14 + $0x5f0] ss:$28 sps:$4 sm:$0xff]   ;;  %v7622_v24 = vld [vmem:[#allocation14 + $0x620] ss:$28 sps:$4 sm:$0xff]   ;;  %v7625_v25 = vld [vmem:[#allocation14 + $0x628] ss:$28 sps:$4 sm:$0xff]  }
 0x39a   :  { %5724 = vmatprep.mubr.bf16.mxu1 %v8612_v30  ;;  %5888 = vmatprep.mubr.bf16.mxu0 %v8612_v30  ;;  %v7630_v26 = vld [vmem:[#allocation14 + $0x65c] ss:$28 sps:$4 sm:$0xff]   ;;  %v7633_v27 = vld [vmem:[#allocation14 + $0x664] ss:$28 sps:$4 sm:$0xff]   ;;  %v7636_v31 = vld [vmem:[#allocation14 + $0x694] ss:$28 sps:$4 sm:$0xff]  }
 0x39b   :  { %5725 = vmatmul.mubr.bf16.vlgmr.msra.gmra.mrb[8].mxu1 %v8614_v35  ;;  %5889 = vmatmul.mubr.bf16.vlgmr.msra.gmra.mrb[20].mxu0 %v8614_v35  ;;  %v7628_v28 = vld [vmem:[#allocation14 + $0x658] ss:$28 sps:$4 sm:$0xff]   ;;  %v7631_v29 = vld [vmem:[#allocation14 + $0x660] ss:$28 sps:$4 sm:$0xff]  }
 0x39c   :  { %5734 = vmatpush1.bf16.msra.mxu1 %v7550_v32  ;;  %5898 = vmatpush1.bf16.msra.mxu0 %v7553_v34  ;;  %v7639_v32 = vld [vmem:[#allocation14 + $0x69c] ss:$28 sps:$4 sm:$0xff]   ;;  %v7634_v34 = vld [vmem:[#allocation14 + $0x690] ss:$28 sps:$4 sm:$0xff]  }
 0x39d   :  { %5765 = vmatprep.mubr.bf16.mxu1 %v8618_v17  ;;  %5929 = vmatprep.mubr.bf16.mxu0 %v8618_v17 }
 0x39e   :  { %5735 = vmatprep.subr.bf16.mxu1 %v7558_v15  ;;  %5899 = vmatprep.subr.bf16.mxu0 %v7561_v16  ;;  %v7637_v15 = vld [vmem:[#allocation14 + $0x698] ss:$28 sps:$4 sm:$0xff]   ;;  %v7642_v16 = vld [vmem:[#allocation14 + $0x6cc] ss:$28 sps:$4 sm:$0xff]  }
 0x3a0   :  { %5736 = vmatpush1.bf16.msra.mxu1 %v7556_v21  ;;  %5900 = vmatpush1.bf16.msra.mxu0 %v7559_v22  ;;  %v7645_v21 = vld [vmem:[#allocation14 + $0x6d4] ss:$28 sps:$4 sm:$0xff]   ;;  %v2786_v22 = vmul.f32 0.2, %v8610_v10 }
 0x3a1   :  { %5737 = vmatprep.subr.bf16.mxu1 %v7564_v23  ;;  %5901 = vmatprep.subr.bf16.mxu0 %v7567_v36  ;;  %v7640_v23 = vld [vmem:[#allocation14 + $0x6c8] ss:$28 sps:$4 sm:$0xff]   ;;  %v7643_v36 = vld [vmem:[#allocation14 + $0x6d0] ss:$28 sps:$4 sm:$0xff]  }
 0x3a4   :  { %5738 = vmatpush1.bf16.msra.mxu1 %v7562_v37  ;;  %5902 = vmatpush1.bf16.msra.mxu0 %v7565_v41  ;;  %v7648_v37 = vld [vmem:[#allocation14 + $0x704] ss:$28 sps:$4 sm:$0xff]   ;;  %v7651_v41 = vld [vmem:[#allocation14 + $0x70c] ss:$28 sps:$4 sm:$0xff]  }
 0x3a5   :  { %5739 = vmatprep.subr.bf16.mxu1 %v7570_v43  ;;  %5903 = vmatprep.subr.bf16.mxu0 %v7573_v44  ;;  %v2794_v43 = vsel %vm2778_vm9, %v8610_v10, %v2786_v22  ;;  %v7646_v44 = vld [vmem:[#allocation14 + $0x700] ss:$28 sps:$4 sm:$0xff]   ;;  %v7660_v10 = vld [vmem:[#allocation14 + $0x774] ss:$28 sps:$4 sm:$0xff]  }
 0x3a6   :  { %v7718_v22 = vld [vmem:[#allocation14 + $0x9a0] ss:$28 sps:$4 sm:$0xff]  }
 0x3a8   :  { %5740 = vmatpush1.bf16.msra.mxu1 %v7568_v45  ;;  %5904 = vmatpush1.bf16.msra.mxu0 %v7571_v46  ;;  %v7649_v45 = vld [vmem:[#allocation14 + $0x708] ss:$28 sps:$4 sm:$0xff]   ;;  %v8627_v46 = vpack.c.bf16 %v2794_v43, %v2794_v43 }
 0x3a9   :  { %5741 = vmatprep.subr.bf16.mxu1 %v7576_v47  ;;  %5905 = vmatprep.subr.bf16.mxu0 %v7579_v48  ;;  %v7654_v47 = vld [vmem:[#allocation14 + $0x73c] ss:$28 sps:$4 sm:$0xff]   ;;  %v7657_v48 = vld [vmem:[#allocation14 + $0x744] ss:$28 sps:$4 sm:$0xff]  }
 0x3ac   :  { %5742 = vmatpush1.bf16.msra.mxu1 %v7574_v49  ;;  %5906 = vmatpush1.bf16.msra.mxu0 %v7577_v50  ;;  %v7652_v49 = vld [vmem:[#allocation14 + $0x738] ss:$28 sps:$4 sm:$0xff]   ;;  %v7655_v50 = vld [vmem:[#allocation14 + $0x740] ss:$28 sps:$4 sm:$0xff]  }
 0x3ad   :  { %5743 = vmatprep.subr.bf16.mxu1 %v7582_v51  ;;  %5907 = vmatprep.subr.bf16.mxu0 %v7585_v54  ;;  %v7663_v51 = vld [vmem:[#allocation14 + $0x77c] ss:$28 sps:$4 sm:$0xff]   ;;  %v7658_v54 = vld [vmem:[#allocation14 + $0x770] ss:$28 sps:$4 sm:$0xff]  }
 0x3b0   :  { %5744 = vmatpush1.bf16.msra.mxu1 %v7580_v55  ;;  %5908 = vmatpush1.bf16.msra.mxu0 %v7583_v57  ;;  %v7661_v55 = vld [vmem:[#allocation14 + $0x778] ss:$28 sps:$4 sm:$0xff]   ;;  %v7666_v57 = vld [vmem:[#allocation14 + $0x7ac] ss:$28 sps:$4 sm:$0xff]  }
 0x3b1   :  { %5745 = vmatprep.subr.bf16.mxu1 %v7588_v58  ;;  %5909 = vmatprep.subr.bf16.mxu0 %v7591_v59  ;;  %v7669_v58 = vld [vmem:[#allocation14 + $0x7b4] ss:$28 sps:$4 sm:$0xff]   ;;  %v7664_v59 = vld [vmem:[#allocation14 + $0x7a8] ss:$28 sps:$4 sm:$0xff]  }
 0x3b4   :  { %5746 = vmatpush1.bf16.msra.mxu1 %v7586_v60  ;;  %5910 = vmatpush1.bf16.msra.mxu0 %v7589_v61  ;;  %v7667_v60 = vld [vmem:[#allocation14 + $0x7b0] ss:$28 sps:$4 sm:$0xff]   ;;  %v7672_v61 = vld [vmem:[#allocation14 + $0x7e4] ss:$28 sps:$4 sm:$0xff]  }
 0x3b5   :  { %5747 = vmatprep.subr.bf16.mxu1 %v7594_v62  ;;  %5911 = vmatprep.subr.bf16.mxu0 %v7597_v63  ;;  %v7675_v62 = vld [vmem:[#allocation14 + $0x7ec] ss:$28 sps:$4 sm:$0xff]   ;;  %v7670_v63 = vld [vmem:[#allocation14 + $0x7e0] ss:$28 sps:$4 sm:$0xff]  }
 0x3b8   :  { %5748 = vmatpush1.bf16.msra.mxu1 %v7592_v0  ;;  %5912 = vmatpush1.bf16.msra.mxu0 %v7595_v1  ;;  %v7673_v0 = vld [vmem:[#allocation14 + $0x7e8] ss:$28 sps:$4 sm:$0xff]   ;;  %v7678_v1 = vld [vmem:[#allocation14 + $0x81c] ss:$28 sps:$4 sm:$0xff]  }
 0x3b9   :  { %5749 = vmatprep.subr.bf16.mxu1 %v7600_v11  ;;  %5913 = vmatprep.subr.bf16.mxu0 %v7603_v2  ;;  %v7681_v11 = vld [vmem:[#allocation14 + $0x824] ss:$28 sps:$4 sm:$0xff]   ;;  %v7676_v2 = vld [vmem:[#allocation14 + $0x818] ss:$28 sps:$4 sm:$0xff]  }
 0x3bc   :  { %5750 = vmatpush1.bf16.msra.mxu1 %v7598_v3  ;;  %5914 = vmatpush1.bf16.msra.mxu0 %v7601_v4  ;;  %v7679_v3 = vld [vmem:[#allocation14 + $0x820] ss:$28 sps:$4 sm:$0xff]   ;;  %v7684_v4 = vld [vmem:[#allocation14 + $0x854] ss:$28 sps:$4 sm:$0xff]  }
 0x3bd   :  { %5751 = vmatprep.subr.bf16.mxu1 %v7606_v5  ;;  %5915 = vmatprep.subr.bf16.mxu0 %v7609_v6  ;;  %v7687_v5 = vld [vmem:[#allocation14 + $0x85c] ss:$28 sps:$4 sm:$0xff]   ;;  %v7682_v6 = vld [vmem:[#allocation14 + $0x850] ss:$28 sps:$4 sm:$0xff]  }
 0x3c0   :  { %5752 = vmatpush1.bf16.msra.mxu1 %v7604_v7  ;;  %5916 = vmatpush1.bf16.msra.mxu0 %v7607_v42  ;;  %v7685_v7 = vld [vmem:[#allocation14 + $0x858] ss:$28 sps:$4 sm:$0xff]   ;;  %v7690_v42 = vld [vmem:[#allocation14 + $0x88c] ss:$28 sps:$4 sm:$0xff]  }
 0x3c1   :  { %5753 = vmatprep.subr.bf16.mxu1 %v7612_v8  ;;  %5917 = vmatprep.subr.bf16.mxu0 %v7615_v9  ;;  %v7693_v8 = vld [vmem:[#allocation14 + $0x894] ss:$28 sps:$4 sm:$0xff]   ;;  %v7688_v9 = vld [vmem:[#allocation14 + $0x888] ss:$28 sps:$4 sm:$0xff]  }
 0x3c4   :  { %5754 = vmatpush1.bf16.msra.mxu1 %v7610_v12  ;;  %5918 = vmatpush1.bf16.msra.mxu0 %v7613_v56  ;;  %v7691_v12 = vld [vmem:[#allocation14 + $0x890] ss:$28 sps:$4 sm:$0xff]   ;;  %v7696_v56 = vld [vmem:[#allocation14 + $0x8c4] ss:$28 sps:$4 sm:$0xff]  }
 0x3c5   :  { %5755 = vmatprep.subr.bf16.mxu1 %v7618_v13  ;;  %5919 = vmatprep.subr.bf16.mxu0 %v7621_v14  ;;  %v7699_v13 = vld [vmem:[#allocation14 + $0x8cc] ss:$28 sps:$4 sm:$0xff]   ;;  %v7694_v14 = vld [vmem:[#allocation14 + $0x8c0] ss:$28 sps:$4 sm:$0xff]  }
 0x3c8   :  { %5756 = vmatpush1.bf16.msra.mxu1 %v7616_v18  ;;  %5920 = vmatpush1.bf16.msra.mxu0 %v7619_v19  ;;  %v7697_v18 = vld [vmem:[#allocation14 + $0x8c8] ss:$28 sps:$4 sm:$0xff]   ;;  %v7702_v19 = vld [vmem:[#allocation14 + $0x8fc] ss:$28 sps:$4 sm:$0xff]  }
 0x3c9   :  { %5757 = vmatprep.subr.bf16.mxu1 %v7624_v38  ;;  %5921 = vmatprep.subr.bf16.mxu0 %v7627_v20  ;;  %v7705_v38 = vld [vmem:[#allocation14 + $0x904] ss:$28 sps:$4 sm:$0xff]   ;;  %v7700_v20 = vld [vmem:[#allocation14 + $0x8f8] ss:$28 sps:$4 sm:$0xff]  }
 0x3cc   :  { %5758 = vmatpush1.bf16.msra.mxu1 %v7622_v24  ;;  %5922 = vmatpush1.bf16.msra.mxu0 %v7625_v25  ;;  %v7703_v24 = vld [vmem:[#allocation14 + $0x900] ss:$28 sps:$4 sm:$0xff]   ;;  %v7708_v25 = vld [vmem:[#allocation14 + $0x934] ss:$28 sps:$4 sm:$0xff]  }
 0x3cd   :  { %5759 = vmatprep.subr.bf16.mxu1 %v7630_v26  ;;  %5923 = vmatprep.subr.bf16.mxu0 %v7633_v27  ;;  %v7711_v26 = vld [vmem:[#allocation14 + $0x93c] ss:$28 sps:$4 sm:$0xff]   ;;  %v7706_v27 = vld [vmem:[#allocation14 + $0x930] ss:$28 sps:$4 sm:$0xff]  }
 0x3d0   :  { %5760 = vmatpush1.bf16.msra.mxu1 %v7628_v28  ;;  %5924 = vmatpush1.bf16.msra.mxu0 %v7631_v29  ;;  %v7709_v28 = vld [vmem:[#allocation14 + $0x938] ss:$28 sps:$4 sm:$0xff]   ;;  %v7714_v29 = vld [vmem:[#allocation14 + $0x96c] ss:$28 sps:$4 sm:$0xff]  }
 0x3d1   :  { %5761 = vmatprep.subr.bf16.mxu1 %v7636_v31  ;;  %5925 = vmatprep.subr.bf16.mxu0 %v7639_v32  ;;  %v7717_v31 = vld [vmem:[#allocation14 + $0x974] ss:$28 sps:$4 sm:$0xff]   ;;  %v7712_v32 = vld [vmem:[#allocation14 + $0x968] ss:$28 sps:$4 sm:$0xff]  }
 0x3d4   :  { %5762 = vmatpush1.bf16.msra.mxu1 %v7634_v34  ;;  %5926 = vmatpush1.bf16.msra.mxu0 %v7637_v15  ;;  %v7715_v34 = vld [vmem:[#allocation14 + $0x970] ss:$28 sps:$4 sm:$0xff]   ;;  %v7720_v15 = vld [vmem:[#allocation14 + $0x9a4] ss:$28 sps:$4 sm:$0xff]  }
 0x3d5   :  { %5763 = vmatprep.subr.bf16.mxu1 %v7642_v16  ;;  %5927 = vmatprep.subr.bf16.mxu0 %v7645_v21  ;;  %v7723_v16 = vld [vmem:[#allocation14 + $0x9ac] ss:$28 sps:$4 sm:$0xff]   ;;  %v1093_v21 = vunpack.c.h.bf16 %v8599_v33 }
 0x3d7   :  { %v1123_v43 = vrot.slane %v1093_v21, %v8572_v52  ;;  %v1127_v33 = vrot.slane %v1093_v21, %v8575_v53 }
 0x3d8   :  { %5764 = vmatpush1.bf16.msra.mxu1 %v7640_v23  ;;  %5928 = vmatpush1.bf16.msra.mxu0 %v7643_v36  ;;  %v7721_v23 = vld [vmem:[#allocation14 + $0x9a8] ss:$28 sps:$4 sm:$0xff]   ;;  %v7726_v36 = vld [vmem:[#allocation14 + $0x9dc] ss:$28 sps:$4 sm:$0xff]  }
 0x3d9   :  { %5774 = vmatprep.subr.bf16.mxu1 %v7648_v37  ;;  %5938 = vmatprep.subr.bf16.mxu0 %v7651_v41  ;;  %v7729_v37 = vld [vmem:[#allocation14 + $0x9e4] ss:$28 sps:$4 sm:$0xff]   ;;  %v1115_v41 = vrot.slane %v1093_v21, %v8520_v39 }
 0x3db   :  { %5766 = vmatmul.mubr.bf16.vlgmr.msra.gmra.mrb[8].mxu1 %v8627_v46  ;;  %5930 = vmatmul.mubr.bf16.vlgmr.msra.gmra.mrb[20].mxu0 %v8627_v46 }
 0x3dc   :  { %5775 = vmatpush1.bf16.msra.mxu1 %v7646_v44  ;;  %5939 = vmatpush1.bf16.msra.mxu0 %v7649_v45  ;;  %v1119_v44 = vrot.slane %v1093_v21, %v8523_v40  ;;  %v7724_v45 = vld [vmem:[#allocation14 + $0x9d8] ss:$28 sps:$4 sm:$0xff]   ;;  %v7762_v21 = vld [vmem:[#allocation14 + $0xb2c] ss:$28 sps:$4 sm:$0xff]  }
 0x3dd   :  { %5776 = vmatprep.subr.bf16.mxu1 %v7654_v47  ;;  %5940 = vmatprep.subr.bf16.mxu0 %v7657_v48  ;;  %v7727_v47 = vld [vmem:[#allocation14 + $0x9e0] ss:$28 sps:$4 sm:$0xff]   ;;  %v7732_v48 = vld [vmem:[#allocation14 + $0xa14] ss:$28 sps:$4 sm:$0xff]  }
 0x3e0   :  { %5777 = vmatpush1.bf16.msra.mxu1 %v7652_v49  ;;  %5941 = vmatpush1.bf16.msra.mxu0 %v7655_v50  ;;  %v7735_v49 = vld [vmem:[#allocation14 + $0xa1c] ss:$28 sps:$4 sm:$0xff]   ;;  %v1155_v50 = vrot.slane %v1115_v41, %v8520_v39  ;;  %v7771_v41 = vld [vmem:[#allocation14 + $0xb6c] ss:$28 sps:$4 sm:$0xff]  }
 0x3e1   :  { %5778 = vmatprep.subr.bf16.mxu1 %v7660_v10  ;;  %5942 = vmatprep.subr.bf16.mxu0 %v7663_v51  ;;  %v1163_v10 = vrot.slane %v1123_v43, %v8520_v39  ;;  %v1159_v51 = vrot.slane %v1119_v44, %v8520_v39  ;;  %v7766_v43 = vld [vmem:[#allocation14 + $0xb60] ss:$28 sps:$4 sm:$0xff]   ;;  %v7769_v44 = vld [vmem:[#allocation14 + $0xb68] ss:$28 sps:$4 sm:$0xff]  }
 0x3e4   :  { %5779 = vmatpush1.bf16.msra.mxu1 %v7658_v54  ;;  %5943 = vmatpush1.bf16.msra.mxu0 %v7661_v55  ;;  %v1167_v54 = vrot.slane %v1127_v33, %v8520_v39  ;;  %v7730_v55 = vld [vmem:[#allocation14 + $0xa10] ss:$28 sps:$4 sm:$0xff]   ;;  %v7772_v33 = vld [vmem:[#allocation14 + $0xb98] ss:$28 sps:$4 sm:$0xff]  }
 0x3e5   :  { %5780 = vmatprep.subr.bf16.mxu1 %v7666_v57  ;;  %5944 = vmatprep.subr.bf16.mxu0 %v7669_v58  ;;  %v7733_v57 = vld [vmem:[#allocation14 + $0xa18] ss:$28 sps:$4 sm:$0xff]  }
 0x3e8   :  { %5781 = vmatpush1.bf16.msra.mxu1 %v7664_v59  ;;  %5945 = vmatpush1.bf16.msra.mxu0 %v7667_v60  ;;  %v7738_v59 = vld [vmem:[#allocation14 + $0xa4c] ss:$28 sps:$4 sm:$0xff]   ;;  %v7741_v60 = vld [vmem:[#allocation14 + $0xa54] ss:$28 sps:$4 sm:$0xff]  }
 0x3e9   :  { %5782 = vmatprep.subr.bf16.mxu1 %v7672_v61  ;;  %5946 = vmatprep.subr.bf16.mxu0 %v7675_v62 }
 0x3ec   :  { %5783 = vmatpush1.bf16.msra.mxu1 %v7670_v63  ;;  %5947 = vmatpush1.bf16.msra.mxu0 %v7673_v0  ;;  %v7736_v0 = vld [vmem:[#allocation14 + $0xa48] ss:$28 sps:$4 sm:$0xff]  }
 0x3ed   :  { %5784 = vmatprep.subr.bf16.mxu1 %v7678_v1  ;;  %5948 = vmatprep.subr.bf16.mxu0 %v7681_v11 }
 0x3f0   :  { %5785 = vmatpush1.bf16.msra.mxu1 %v7676_v2  ;;  %5949 = vmatpush1.bf16.msra.mxu0 %v7679_v3 }
 0x3f1   :  { %5786 = vmatprep.subr.bf16.mxu1 %v7684_v4  ;;  %5950 = vmatprep.subr.bf16.mxu0 %v7687_v5  ;;  %v7739_v4 = vld [vmem:[#allocation14 + $0xa50] ss:$28 sps:$4 sm:$0xff]   ;;  %v7744_v5 = vld [vmem:[#allocation14 + $0xa84] ss:$28 sps:$4 sm:$0xff]  }
 0x3f4   :  { %5787 = vmatpush1.bf16.msra.mxu1 %v7682_v6  ;;  %5951 = vmatpush1.bf16.msra.mxu0 %v7685_v7 }
 0x3f5   :  { %5788 = vmatprep.subr.bf16.mxu1 %v7690_v42  ;;  %5952 = vmatprep.subr.bf16.mxu0 %v7693_v8 }
 0x3f8   :  { %5789 = vmatpush1.bf16.msra.mxu1 %v7688_v9  ;;  %5953 = vmatpush1.bf16.msra.mxu0 %v7691_v12  ;;  %v7747_v12 = vld [vmem:[#allocation14 + $0xa8c] ss:$28 sps:$4 sm:$0xff]  }
 0x3f9   :  { %5790 = vmatprep.subr.bf16.mxu1 %v7696_v56  ;;  %5954 = vmatprep.subr.bf16.mxu0 %v7699_v13 }
 0x3fc   :  { %5791 = vmatpush1.bf16.msra.mxu1 %v7694_v14  ;;  %5955 = vmatpush1.bf16.msra.mxu0 %v7697_v18 }
 0x3fd   :  { %5792 = vmatprep.subr.bf16.mxu1 %v7702_v19  ;;  %5956 = vmatprep.subr.bf16.mxu0 %v7705_v38 }
 0x400   :  { %5793 = vmatpush1.bf16.msra.mxu1 %v7700_v20  ;;  %5957 = vmatpush1.bf16.msra.mxu0 %v7703_v24  ;;  %v7742_v20 = vld [vmem:[#allocation14 + $0xa80] ss:$28 sps:$4 sm:$0xff]   ;;  %v7745_v24 = vld [vmem:[#allocation14 + $0xa88] ss:$28 sps:$4 sm:$0xff]  }
 0x401   :  { %5794 = vmatprep.subr.bf16.mxu1 %v7708_v25  ;;  %5958 = vmatprep.subr.bf16.mxu0 %v7711_v26  ;;  %v7750_v26 = vld [vmem:[#allocation14 + $0xabc] ss:$28 sps:$4 sm:$0xff]  }
 0x404   :  { %5795 = vmatpush1.bf16.msra.mxu1 %v7706_v27  ;;  %5959 = vmatpush1.bf16.msra.mxu0 %v7709_v28  ;;  %v7753_v27 = vld [vmem:[#allocation14 + $0xac4] ss:$28 sps:$4 sm:$0xff]  }
 0x405   :  { %5796 = vmatprep.subr.bf16.mxu1 %v7714_v29  ;;  %5960 = vmatprep.subr.bf16.mxu0 %v7717_v31  ;;  %v7748_v29 = vld [vmem:[#allocation14 + $0xab8] ss:$28 sps:$4 sm:$0xff]   ;;  %v7751_v31 = vld [vmem:[#allocation14 + $0xac0] ss:$28 sps:$4 sm:$0xff]  }
 0x408   :  { %5797 = vmatpush1.bf16.msra.mxu1 %v7712_v32  ;;  %5961 = vmatpush1.bf16.msra.mxu0 %v7715_v34  ;;  %v7756_v32 = vld [vmem:[#allocation14 + $0xaf4] ss:$28 sps:$4 sm:$0xff]   ;;  %v7759_v34 = vld [vmem:[#allocation14 + $0xafc] ss:$28 sps:$4 sm:$0xff]  }
 0x409   :  { %5798 = vmatprep.subr.bf16.mxu1 %v7720_v15  ;;  %5962 = vmatprep.subr.bf16.mxu0 %v7723_v16  ;;  %v7754_v15 = vld [vmem:[#allocation14 + $0xaf0] ss:$28 sps:$4 sm:$0xff]   ;;  %v7757_v16 = vld [vmem:[#allocation14 + $0xaf8] ss:$28 sps:$4 sm:$0xff]  }
 0x40c   :  { %5799 = vmatpush1.bf16.msra.mxu1 %v7718_v22  ;;  %5963 = vmatpush1.bf16.msra.mxu0 %v7721_v23  ;;  %v7765_v22 = vld [vmem:[#allocation14 + $0xb34] ss:$28 sps:$4 sm:$0xff]   ;;  %v7760_v23 = vld [vmem:[#allocation14 + $0xb28] ss:$28 sps:$4 sm:$0xff]  }
 0x40d   :  { %5800 = vmatprep.subr.bf16.mxu1 %v7726_v36  ;;  %5964 = vmatprep.subr.bf16.mxu0 %v7729_v37  ;;  %v7763_v36 = vld [vmem:[#allocation14 + $0xb30] ss:$28 sps:$4 sm:$0xff]   ;;  %v7768_v37 = vld [vmem:[#allocation14 + $0xb64] ss:$28 sps:$4 sm:$0xff]  }
 0x410   :  { %5801 = vmatpush1.bf16.msra.mxu1 %v7724_v45  ;;  %5965 = vmatpush1.bf16.msra.mxu0 %v7727_v47  ;;  %v7774_v45 = vld [vmem:[#allocation14 + $0xb9c] ss:$28 sps:$4 sm:$0xff]   ;;  %v7777_v47 = vld [vmem:[#allocation14 + $0xba4] ss:$28 sps:$4 sm:$0xff]  }
 0x411   :  { %v2687_v58 = vpop.f32.mrb[4].mxu1  ;;  %5802 = vmatprep.subr.bf16.mxu1 %v7732_v48  ;;  %5966 = vmatprep.subr.bf16.mxu0 %v7735_v49  ;;  %v7775_v48 = vld [vmem:[#allocation14 + $0xba0] ss:$28 sps:$4 sm:$0xff]   ;;  %v7780_v49 = vld [vmem:[#allocation14 + $0xbd4] ss:$28 sps:$4 sm:$0xff]  }
 0x412   :  { %v7253_v61 = vadd.f32 %v2687_v58, %v1155_v50  ;;  %v2769_v62 = vpop.f32.mrb[16].mxu0  ;;  %v2689_v63 = vpop.f32.mrb[5].mxu1  ;;  %v7783_v50 = vld [vmem:[#allocation14 + $0xbdc] ss:$28 sps:$4 sm:$0xff]   ;;  %v7787_v58 = vld [vmem:[#allocation14 + $0xc10] ss:$28 sps:$4 sm:$0xff]  }
 0x413   :  { %v8640_v1 = vadd.f32 %v2769_v62, %v1163_v10  ;;  %v7254_v11 = vadd.f32 %v2689_v63, %v1159_v51  ;;  %v2771_v2 = vpop.f32.mrb[17].mxu0  ;;  %v2691_v3 = vpop.f32.mrb[6].mxu1  ;;  %v7778_v10 = vld [vmem:[#allocation14 + $0xbd0] ss:$28 sps:$4 sm:$0xff]   ;;  %v7781_v51 = vld [vmem:[#allocation14 + $0xbd8] ss:$28 sps:$4 sm:$0xff]  }
 0x414   :  { %vm2780_vm10 = vcmp.gt.f32.partialorder %v7253_v61, 0.0  ;;  %v2788_v6 = vmul.f32 0.2, %v7253_v61  ;;  %v7256_v7 = vadd.f32 %v2771_v2, %v1167_v54  ;;  %v2773_v42 = vpop.f32.mrb[18].mxu0  ;;  %5803 = vmatpush1.bf16.msra.mxu1 %v7730_v55  ;;  %5967 = vmatpush1.bf16.msra.mxu0 %v7733_v57  ;;  %v2692_v8 = vpop.f32.mrb[7].mxu1 }
 0x415   :  { %vm2781_vm11 = vcmp.gt.f32.partialorder %v7254_v11, 0.0  ;;  %v2789_v9 = vmul.f32 0.2, %v7254_v11  ;;  %5804 = vmatprep.subr.bf16.mxu1 %v7738_v59  ;;  %5968 = vmatprep.subr.bf16.mxu0 %v7741_v60  ;;  %v2774_v14 = vpop.f32.mrb[19].mxu0  ;;  %v7786_v54 = vld [vmem:[#allocation14 + $0xc0c] ss:$28 sps:$4 sm:$0xff]  }
 0x416   :  { %v2796_v56 = vsel %vm2780_vm10, %v7253_v61, %v2788_v6  ;;  %vm2783_vm12 = vcmp.gt.f32.partialorder %v7256_v7, 0.0  ;;  %v2791_v13 = vmul.f32 0.2, %v7256_v7  ;;  %v7789_v55 = vld [vmem:[#allocation14 + $0xc14] ss:$28 sps:$4 sm:$0xff]   ;;  %vm2782_vm13 = vcmp.gt.f32.partialorder %v8640_v1, 0.0 }
 0x417   :  { %v2797_v18 = vsel %vm2781_vm11, %v7254_v11, %v2789_v9  ;;  %v8644_v25 = vpack.c.bf16 %v2796_v56, %v2796_v56  ;;  %v7784_v57 = vld [vmem:[#allocation14 + $0xc08] ss:$28 sps:$4 sm:$0xff]   ;;  %v7790_v61 = vld [vmem:[#allocation14 + $0xc40] ss:$28 sps:$4 sm:$0xff]   ;;  %v7796_v11 = vld [vmem:[#allocation14 + $0xc78] ss:$28 sps:$4 sm:$0xff]  }
 0x418   :  { %v8642_v19 = vpack.c.bf16 %v2797_v18, %v2797_v18  ;;  %v2799_v38 = vsel %vm2783_vm12, %v7256_v7, %v2791_v13  ;;  %5805 = vmatpush1.bf16.msra.mxu1 %v7736_v0  ;;  %5969 = vmatpush1.bf16.msra.mxu0 %v7739_v4  ;;  %v7792_v59 = vld [vmem:[#allocation14 + $0xc44] ss:$28 sps:$4 sm:$0xff]   ;;  %v7795_v60 = vld [vmem:[#allocation14 + $0xc4c] ss:$28 sps:$4 sm:$0xff]   ;;  %v7798_v63 = vld [vmem:[#allocation14 + $0xc7c] ss:$28 sps:$4 sm:$0xff]  }
 0x419   :  { %5815 = vmatprep.subr.bf16.mxu1 %v7744_v5  ;;  %5979 = vmatprep.subr.bf16.mxu0 %v7747_v12  ;;  %v8648_v28 = vpack.c.bf16 %v2799_v38, %v2799_v38  ;;  %v7793_v62 = vld [vmem:[#allocation14 + $0xc48] ss:$28 sps:$4 sm:$0xff]   ;;  %v7799_v2 = vld [vmem:[#allocation14 + $0xc80] ss:$28 sps:$4 sm:$0xff]   ;;  %v7804_v3 = vld [vmem:[#allocation14 + $0xcb4] ss:$28 sps:$4 sm:$0xff]  }
 0x41a   :  { %5806 = vmatprep.mubr.bf16.mxu1 %v8642_v19  ;;  %5970 = vmatprep.mubr.bf16.mxu0 %v8642_v19  ;;  %v7801_v0 = vld [vmem:[#allocation14 + $0xc84] ss:$28 sps:$4 sm:$0xff]   ;;  %v7807_v4 = vld [vmem:[#allocation14 + $0xcbc] ss:$28 sps:$4 sm:$0xff]   ;;  %v7802_v5 = vld [vmem:[#allocation14 + $0xcb0] ss:$28 sps:$4 sm:$0xff]  }
 0x41b   :  { %5807 = vmatmul.mubr.bf16.vlgmr.msra.gmra.mrb[8].mxu1 %v8644_v25  ;;  %5971 = vmatmul.mubr.bf16.vlgmr.msra.gmra.mrb[20].mxu0 %v8644_v25  ;;  %v7805_v6 = vld [vmem:[#allocation14 + $0xcb8] ss:$28 sps:$4 sm:$0xff]   ;;  %v7810_v7 = vld [vmem:[#allocation14 + $0xcec] ss:$28 sps:$4 sm:$0xff]   ;;  %v7816_v12 = vld [vmem:[#allocation14 + $0xd24] ss:$28 sps:$4 sm:$0xff]  }
 0x41c   :  { %5816 = vmatpush1.bf16.msra.mxu1 %v7742_v20  ;;  %5980 = vmatpush1.bf16.msra.mxu0 %v7745_v24  ;;  %v7813_v42 = vld [vmem:[#allocation14 + $0xcf4] ss:$28 sps:$4 sm:$0xff]   ;;  %v7808_v8 = vld [vmem:[#allocation14 + $0xce8] ss:$28 sps:$4 sm:$0xff]   ;;  %v7814_v13 = vld [vmem:[#allocation14 + $0xd20] ss:$28 sps:$4 sm:$0xff]  }
 0x41d   :  { %5847 = vmatprep.mubr.bf16.mxu1 %v8648_v28  ;;  %6011 = vmatprep.mubr.bf16.mxu0 %v8648_v28  ;;  %v7811_v9 = vld [vmem:[#allocation14 + $0xcf0] ss:$28 sps:$4 sm:$0xff]   ;;  %v7817_v14 = vld [vmem:[#allocation14 + $0xd28] ss:$28 sps:$4 sm:$0xff]   ;;  %v7822_v18 = vld [vmem:[#allocation14 + $0xd5c] ss:$28 sps:$4 sm:$0xff]  }
 0x41e   :  { %5817 = vmatprep.subr.bf16.mxu1 %v7750_v26  ;;  %5981 = vmatprep.subr.bf16.mxu0 %v7753_v27  ;;  %v7819_v56 = vld [vmem:[#allocation14 + $0xd2c] ss:$28 sps:$4 sm:$0xff]   ;;  %v7825_v38 = vld [vmem:[#allocation14 + $0xd64] ss:$28 sps:$4 sm:$0xff]   ;;  %v7820_v20 = vld [vmem:[#allocation14 + $0xd58] ss:$28 sps:$4 sm:$0xff]  }
 0x41f   :  { %v7823_v24 = vld [vmem:[#allocation14 + $0xd60] ss:$28 sps:$4 sm:$0xff]   ;;  %v7828_v26 = vld [vmem:[#allocation14 + $0xd94] ss:$28 sps:$4 sm:$0xff]  }
 0x420   :  { %5818 = vmatpush1.bf16.msra.mxu1 %v7748_v29  ;;  %5982 = vmatpush1.bf16.msra.mxu0 %v7751_v31  ;;  %v7831_v27 = vld [vmem:[#allocation14 + $0xd9c] ss:$28 sps:$4 sm:$0xff]   ;;  %v7826_v29 = vld [vmem:[#allocation14 + $0xd90] ss:$28 sps:$4 sm:$0xff]  }
 0x421   :  { %5819 = vmatprep.subr.bf16.mxu1 %v7756_v32  ;;  %5983 = vmatprep.subr.bf16.mxu0 %v7759_v34  ;;  %v7829_v31 = vld [vmem:[#allocation14 + $0xd98] ss:$28 sps:$4 sm:$0xff]   ;;  %v7834_v32 = vld [vmem:[#allocation14 + $0xdcc] ss:$28 sps:$4 sm:$0xff]  }
 0x422   :  { %v7837_v34 = vld [vmem:[#allocation14 + $0xdd4] ss:$28 sps:$4 sm:$0xff]  }
 0x424   :  { %5820 = vmatpush1.bf16.msra.mxu1 %v7754_v15  ;;  %5984 = vmatpush1.bf16.msra.mxu0 %v7757_v16  ;;  %v2790_v15 = vmul.f32 0.2, %v8640_v1  ;;  %v7832_v16 = vld [vmem:[#allocation14 + $0xdc8] ss:$28 sps:$4 sm:$0xff]  }
 0x425   :  { %5821 = vmatprep.subr.bf16.mxu1 %v7762_v21  ;;  %5985 = vmatprep.subr.bf16.mxu0 %v7765_v22  ;;  %v7835_v21 = vld [vmem:[#allocation14 + $0xdd0] ss:$28 sps:$4 sm:$0xff]  }
 0x426   :  { %v7840_v22 = vld [vmem:[#allocation14 + $0x14] ss:$28 sps:$4 sm:$0xff]  }
 0x428   :  { %5822 = vmatpush1.bf16.msra.mxu1 %v7760_v23  ;;  %5986 = vmatpush1.bf16.msra.mxu0 %v7763_v36  ;;  %v7841_v23 = vld [vmem:[#allocation14 + $0x1d8] ss:$28 sps:$4 sm:$0xff]   ;;  %v2798_v36 = vsel %vm2782_vm13, %v8640_v1, %v2790_v15  ;;  %v7847_v1 = vld [vmem:[#allocation14 + $0x50] ss:$28 sps:$4 sm:$0xff]  }
 0x429   :  { %5823 = vmatprep.subr.bf16.mxu1 %v7768_v37  ;;  %5987 = vmatprep.subr.bf16.mxu0 %v7771_v41  ;;  %v7838_v37 = vld [vmem:[#allocation14 + $0x10] ss:$28 sps:$4 sm:$0xff]   ;;  %v8657_v41 = vpack.c.bf16 %v2798_v36, %v2798_v36  ;;  %v7901_v15 = vld [vmem:[#allocation14 + $0x638] ss:$28 sps:$4 sm:$0xff]   ;;  %v7903_v36 = vld [vmem:[#allocation14 + $0x2e8] ss:$28 sps:$4 sm:$0xff]  }
 0x42c   :  { %5824 = vmatpush1.bf16.msra.mxu1 %v7766_v43  ;;  %5988 = vmatpush1.bf16.msra.mxu0 %v7769_v44  ;;  %v7842_v43 = vld [vmem:[#allocation14 + $0x18] ss:$28 sps:$4 sm:$0xff]   ;;  %v7845_v44 = vld [vmem:[#allocation14 + $0x4c] ss:$28 sps:$4 sm:$0xff]  }
 0x42d   :  { %5825 = vmatprep.subr.bf16.mxu1 %v7774_v45  ;;  %5989 = vmatprep.subr.bf16.mxu0 %v7777_v47  ;;  %v7846_v45 = vld [vmem:[#allocation14 + $0x210] ss:$28 sps:$4 sm:$0xff]   ;;  %v7843_v47 = vld [vmem:[#allocation14 + $0x48] ss:$28 sps:$4 sm:$0xff]  }
 0x430   :  { %5826 = vmatpush1.bf16.msra.mxu1 %v7772_v33  ;;  %5990 = vmatpush1.bf16.msra.mxu0 %v7775_v48  ;;  %v7850_v33 = vld [vmem:[#allocation14 + $0x84] ss:$28 sps:$4 sm:$0xff]  }
 0x431   :  { %5827 = vmatprep.subr.bf16.mxu1 %v7780_v49  ;;  %5991 = vmatprep.subr.bf16.mxu0 %v7783_v50  ;;  %v7851_v48 = vld [vmem:[#allocation14 + $0x248] ss:$28 sps:$4 sm:$0xff]   ;;  %v7848_v49 = vld [vmem:[#allocation14 + $0x80] ss:$28 sps:$4 sm:$0xff]  }
 0x432   :  { %v7852_v50 = vld [vmem:[#allocation14 + $0x88] ss:$28 sps:$4 sm:$0xff]  }
 0x434   :  { %5828 = vmatpush1.bf16.msra.mxu1 %v7778_v10  ;;  %5992 = vmatpush1.bf16.msra.mxu0 %v7781_v51  ;;  %v7855_v10 = vld [vmem:[#allocation14 + $0xbc] ss:$28 sps:$4 sm:$0xff]  }
 0x435   :  { %5829 = vmatprep.subr.bf16.mxu1 %v7786_v54  ;;  %5993 = vmatprep.subr.bf16.mxu0 %v7789_v55  ;;  %v7856_v51 = vld [vmem:[#allocation14 + $0x280] ss:$28 sps:$4 sm:$0xff]   ;;  %v7853_v54 = vld [vmem:[#allocation14 + $0xb8] ss:$28 sps:$4 sm:$0xff]  }
 0x436   :  { %v7857_v55 = vld [vmem:[#allocation14 + $0xc0] ss:$28 sps:$4 sm:$0xff]  }
 0x438   :  { %5830 = vmatpush1.bf16.msra.mxu1 %v7784_v57  ;;  %5994 = vmatpush1.bf16.msra.mxu0 %v7787_v58  ;;  %v7860_v57 = vld [vmem:[#allocation14 + $0xf4] ss:$28 sps:$4 sm:$0xff]  }
 0x439   :  { %5831 = vmatprep.subr.bf16.mxu1 %v7792_v59  ;;  %5995 = vmatprep.subr.bf16.mxu0 %v7795_v60  ;;  %v7858_v58 = vld [vmem:[#allocation14 + $0xf0] ss:$28 sps:$4 sm:$0xff]   ;;  %v7862_v59 = vld [vmem:[#allocation14 + $0xf8] ss:$28 sps:$4 sm:$0xff]  }
 0x43a   :  { %v7865_v60 = vld [vmem:[#allocation14 + $0x12c] ss:$28 sps:$4 sm:$0xff]  }
 0x43c   :  { %5832 = vmatpush1.bf16.msra.mxu1 %v7790_v61  ;;  %5996 = vmatpush1.bf16.msra.mxu0 %v7793_v62  ;;  %v7866_v61 = vld [vmem:[#allocation14 + $0x2f0] ss:$28 sps:$4 sm:$0xff]   ;;  %v7863_v62 = vld [vmem:[#allocation14 + $0x128] ss:$28 sps:$4 sm:$0xff]  }
 0x43d   :  { %5833 = vmatprep.subr.bf16.mxu1 %v7798_v63  ;;  %5997 = vmatprep.subr.bf16.mxu0 %v7801_v0  ;;  %v7867_v63 = vld [vmem:[#allocation14 + $0x130] ss:$28 sps:$4 sm:$0xff]   ;;  %v7870_v0 = vld [vmem:[#allocation14 + $0x164] ss:$28 sps:$4 sm:$0xff]  }
 0x440   :  { %5834 = vmatpush1.bf16.msra.mxu1 %v7796_v11  ;;  %5998 = vmatpush1.bf16.msra.mxu0 %v7799_v2  ;;  %v7871_v11 = vld [vmem:[#allocation14 + $0x328] ss:$28 sps:$4 sm:$0xff]   ;;  %v7868_v2 = vld [vmem:[#allocation14 + $0x160] ss:$28 sps:$4 sm:$0xff]  }
 0x441   :  { %5835 = vmatprep.subr.bf16.mxu1 %v7804_v3  ;;  %5999 = vmatprep.subr.bf16.mxu0 %v7807_v4  ;;  %v7872_v3 = vld [vmem:[#allocation14 + $0x168] ss:$28 sps:$4 sm:$0xff]   ;;  %v7875_v4 = vld [vmem:[#allocation14 + $0x19c] ss:$28 sps:$4 sm:$0xff]  }
 0x444   :  { %5836 = vmatpush1.bf16.msra.mxu1 %v7802_v5  ;;  %6000 = vmatpush1.bf16.msra.mxu0 %v7805_v6  ;;  %v7876_v5 = vld [vmem:[#allocation14 + $0x360] ss:$28 sps:$4 sm:$0xff]   ;;  %v7873_v6 = vld [vmem:[#allocation14 + $0x198] ss:$28 sps:$4 sm:$0xff]  }
 0x445   :  { %5837 = vmatprep.subr.bf16.mxu1 %v7810_v7  ;;  %6001 = vmatprep.subr.bf16.mxu0 %v7813_v42  ;;  %v7877_v7 = vld [vmem:[#allocation14 + $0x1a0] ss:$28 sps:$4 sm:$0xff]   ;;  %v7880_v42 = vld [vmem:[#allocation14 + $0x1d4] ss:$28 sps:$4 sm:$0xff]  }
 0x448   :  { %5838 = vmatpush1.bf16.msra.mxu1 %v7808_v8  ;;  %6002 = vmatpush1.bf16.msra.mxu0 %v7811_v9  ;;  %v7881_v8 = vld [vmem:[#allocation14 + $0x558] ss:$28 sps:$4 sm:$0xff]   ;;  %v7878_v9 = vld [vmem:[#allocation14 + $0x1d0] ss:$28 sps:$4 sm:$0xff]  }
 0x449   :  { %5839 = vmatprep.subr.bf16.mxu1 %v7816_v12  ;;  %6003 = vmatprep.subr.bf16.mxu0 %v7819_v56  ;;  %v7882_v12 = vld [vmem:[#allocation14 + $0x398] ss:$28 sps:$4 sm:$0xff]   ;;  %v7885_v56 = vld [vmem:[#allocation14 + $0x20c] ss:$28 sps:$4 sm:$0xff]  }
 0x44c   :  { %5840 = vmatpush1.bf16.msra.mxu1 %v7814_v13  ;;  %6004 = vmatpush1.bf16.msra.mxu0 %v7817_v14  ;;  %v7886_v13 = vld [vmem:[#allocation14 + $0x590] ss:$28 sps:$4 sm:$0xff]   ;;  %v7883_v14 = vld [vmem:[#allocation14 + $0x208] ss:$28 sps:$4 sm:$0xff]  }
 0x44d   :  { %5841 = vmatprep.subr.bf16.mxu1 %v7822_v18  ;;  %6005 = vmatprep.subr.bf16.mxu0 %v7825_v38  ;;  %v7887_v18 = vld [vmem:[#allocation14 + $0x3d0] ss:$28 sps:$4 sm:$0xff]   ;;  %v7890_v38 = vld [vmem:[#allocation14 + $0x244] ss:$28 sps:$4 sm:$0xff]  }
 0x450   :  { %5842 = vmatpush1.bf16.msra.mxu1 %v7820_v20  ;;  %6006 = vmatpush1.bf16.msra.mxu0 %v7823_v24  ;;  %v7891_v20 = vld [vmem:[#allocation14 + $0x5c8] ss:$28 sps:$4 sm:$0xff]   ;;  %v7888_v24 = vld [vmem:[#allocation14 + $0x240] ss:$28 sps:$4 sm:$0xff]  }
 0x451   :  { %5843 = vmatprep.subr.bf16.mxu1 %v7828_v26  ;;  %6007 = vmatprep.subr.bf16.mxu0 %v7831_v27  ;;  %v7892_v26 = vld [vmem:[#allocation14 + $0x408] ss:$28 sps:$4 sm:$0xff]   ;;  %v7895_v27 = vld [vmem:[#allocation14 + $0x27c] ss:$28 sps:$4 sm:$0xff]  }
 0x454   :  { %5844 = vmatpush1.bf16.msra.mxu1 %v7826_v29  ;;  %6008 = vmatpush1.bf16.msra.mxu0 %v7829_v31  ;;  %v7896_v29 = vld [vmem:[#allocation14 + $0x600] ss:$28 sps:$4 sm:$0xff]   ;;  %v7893_v31 = vld [vmem:[#allocation14 + $0x278] ss:$28 sps:$4 sm:$0xff]  }
 0x455   :  { %5845 = vmatprep.subr.bf16.mxu1 %v7834_v32  ;;  %6009 = vmatprep.subr.bf16.mxu0 %v7837_v34  ;;  %v7897_v32 = vld [vmem:[#allocation14 + $0x440] ss:$28 sps:$4 sm:$0xff]   ;;  %v7900_v34 = vld [vmem:[#allocation14 + $0x2b4] ss:$28 sps:$4 sm:$0xff]  }
 0x458   :  { %5846 = vmatpush1.bf16.msra.mxu1 %v7832_v16  ;;  %6010 = vmatpush1.bf16.msra.mxu0 %v7835_v21  ;;  %v7898_v16 = vld [vmem:[#allocation14 + $0x2b0] ss:$28 sps:$4 sm:$0xff]   ;;  %v7902_v21 = vld [vmem:[#allocation14 + $0x478] ss:$28 sps:$4 sm:$0xff]  }
 0x459   :  { %6020 = vmatprep.subr.bf16.mxu1 %v7840_v22  ;;  %7161 = vmatprep.subr.bf16.mxu0 %v7841_v23  ;;  %v7905_v22 = vld [vmem:[#allocation14 + $0x2ec] ss:$28 sps:$4 sm:$0xff]  }
 0x45a   :  { %v7906_v23 = vld [vmem:[#allocation14 + $0x670] ss:$28 sps:$4 sm:$0xff]  }
 0x45b   :  { %5848 = vmatmul.mubr.bf16.vlgmr.msra.gmra.mrb[8].mxu1 %v8657_v41  ;;  %6012 = vmatmul.mubr.bf16.vlgmr.msra.gmra.mrb[20].mxu0 %v8657_v41 }
 0x45c   :  { %6021 = vmatpush1.bf16.msra.mxu1 %v7838_v37  ;;  %6052 = vmatprep.mubr.bf16.mxu1 %v8612_v30  ;;  %v7907_v37 = vld [vmem:[#allocation14 + $0x4b0] ss:$28 sps:$4 sm:$0xff]  }
 0x45d   :  { %7162 = vmatpush3.bf16.msra.mxu0 %v7842_v43  ;;  %6216 = vmatprep.mubr.bf16.mxu0 %v8612_v30  ;;  %v7861_v30 = vld [vmem:[#allocation14 + $0x2b8] ss:$28 sps:$4 sm:$0xff]   ;;  %v7910_v43 = vld [vmem:[#allocation14 + $0x324] ss:$28 sps:$4 sm:$0xff]  }
 0x45e   :  { %6022 = vmatprep.subr.bf16.mxu1 %v7845_v44  ;;  %7163 = vmatprep.subr.bf16.mxu0 %v7846_v45  ;;  %v7911_v44 = vld [vmem:[#allocation14 + $0x6a8] ss:$28 sps:$4 sm:$0xff]   ;;  %v7908_v45 = vld [vmem:[#allocation14 + $0x320] ss:$28 sps:$4 sm:$0xff]  }
 0x460   :  { %6023 = vmatpush1.bf16.msra.mxu1 %v7843_v47  ;;  %v7912_v47 = vld [vmem:[#allocation14 + $0x4e8] ss:$28 sps:$4 sm:$0xff]  }
 0x461   :  { %7164 = vmatpush3.bf16.msra.mxu0 %v7847_v1  ;;  %6024 = vmatprep.subr.bf16.mxu1 %v7850_v33  ;;  %v7915_v1 = vld [vmem:[#allocation14 + $0x35c] ss:$28 sps:$4 sm:$0xff]  }
 0x462   :  { %7165 = vmatprep.subr.bf16.mxu0 %v7851_v48  ;;  %v7916_v33 = vld [vmem:[#allocation14 + $0x6e0] ss:$28 sps:$4 sm:$0xff]   ;;  %v7913_v48 = vld [vmem:[#allocation14 + $0x358] ss:$28 sps:$4 sm:$0xff]  }
 0x464   :  { %6025 = vmatpush1.bf16.msra.mxu1 %v7848_v49  ;;  %v7917_v49 = vld [vmem:[#allocation14 + $0x520] ss:$28 sps:$4 sm:$0xff]  }
 0x465   :  { %7166 = vmatpush3.bf16.msra.mxu0 %v7852_v50  ;;  %6026 = vmatprep.subr.bf16.mxu1 %v7855_v10  ;;  %v7920_v50 = vld [vmem:[#allocation14 + $0x394] ss:$28 sps:$4 sm:$0xff]  }
 0x466   :  { %7167 = vmatprep.subr.bf16.mxu0 %v7856_v51  ;;  %v7921_v10 = vld [vmem:[#allocation14 + $0x8d8] ss:$28 sps:$4 sm:$0xff]   ;;  %v7918_v51 = vld [vmem:[#allocation14 + $0x390] ss:$28 sps:$4 sm:$0xff]  }
 0x468   :  { %6027 = vmatpush1.bf16.msra.mxu1 %v7853_v54  ;;  %v7922_v54 = vld [vmem:[#allocation14 + $0x718] ss:$28 sps:$4 sm:$0xff]  }
 0x469   :  { %7168 = vmatpush3.bf16.msra.mxu0 %v7857_v55  ;;  %6028 = vmatprep.subr.bf16.mxu1 %v7860_v57  ;;  %v7925_v55 = vld [vmem:[#allocation14 + $0x3cc] ss:$28 sps:$4 sm:$0xff]  }
 0x46a   :  { %7169 = vmatprep.subr.bf16.mxu0 %v7861_v30  ;;  %v7926_v57 = vld [vmem:[#allocation14 + $0x910] ss:$28 sps:$4 sm:$0xff]   ;;  %v7923_v30 = vld [vmem:[#allocation14 + $0x3c8] ss:$28 sps:$4 sm:$0xff]  }
 0x46c   :  { %6029 = vmatpush1.bf16.msra.mxu1 %v7858_v58  ;;  %v7927_v58 = vld [vmem:[#allocation14 + $0x750] ss:$28 sps:$4 sm:$0xff]  }
 0x46d   :  { %7170 = vmatpush3.bf16.msra.mxu0 %v7862_v59  ;;  %6030 = vmatprep.subr.bf16.mxu1 %v7865_v60  ;;  %v7930_v59 = vld [vmem:[#allocation14 + $0x404] ss:$28 sps:$4 sm:$0xff]  }
 0x46e   :  { %7171 = vmatprep.subr.bf16.mxu0 %v7866_v61  ;;  %v7931_v60 = vld [vmem:[#allocation14 + $0x948] ss:$28 sps:$4 sm:$0xff]   ;;  %v7928_v61 = vld [vmem:[#allocation14 + $0x400] ss:$28 sps:$4 sm:$0xff]  }
 0x470   :  { %6031 = vmatpush1.bf16.msra.mxu1 %v7863_v62  ;;  %v7935_v62 = vld [vmem:[#allocation14 + $0x43c] ss:$28 sps:$4 sm:$0xff]  }
 0x471   :  { %7172 = vmatpush3.bf16.msra.mxu0 %v7867_v63  ;;  %6032 = vmatprep.subr.bf16.mxu1 %v7870_v0  ;;  %v7936_v63 = vld [vmem:[#allocation14 + $0x980] ss:$28 sps:$4 sm:$0xff]   ;;  %v7933_v0 = vld [vmem:[#allocation14 + $0x438] ss:$28 sps:$4 sm:$0xff]  }
 0x472   :  { %7173 = vmatprep.subr.bf16.mxu0 %v7871_v11  ;;  %v7940_v11 = vld [vmem:[#allocation14 + $0x474] ss:$28 sps:$4 sm:$0xff]  }
 0x474   :  { %6033 = vmatpush1.bf16.msra.mxu1 %v7868_v2  ;;  %v7941_v2 = vld [vmem:[#allocation14 + $0x9b8] ss:$28 sps:$4 sm:$0xff]  }
 0x475   :  { %7174 = vmatpush3.bf16.msra.mxu0 %v7872_v3  ;;  %6034 = vmatprep.subr.bf16.mxu1 %v7875_v4  ;;  %v7938_v3 = vld [vmem:[#allocation14 + $0x470] ss:$28 sps:$4 sm:$0xff]   ;;  %v7942_v4 = vld [vmem:[#allocation14 + $0x7f8] ss:$28 sps:$4 sm:$0xff]  }
 0x476   :  { %7175 = vmatprep.subr.bf16.mxu0 %v7876_v5  ;;  %v7945_v5 = vld [vmem:[#allocation14 + $0x4ac] ss:$28 sps:$4 sm:$0xff]  }
 0x478   :  { %6035 = vmatpush1.bf16.msra.mxu1 %v7873_v6  ;;  %v7946_v6 = vld [vmem:[#allocation14 + $0x9f0] ss:$28 sps:$4 sm:$0xff]  }
 0x479   :  { %7176 = vmatpush3.bf16.msra.mxu0 %v7877_v7  ;;  %6036 = vmatprep.subr.bf16.mxu1 %v7880_v42  ;;  %v7943_v7 = vld [vmem:[#allocation14 + $0x4a8] ss:$28 sps:$4 sm:$0xff]   ;;  %v7947_v42 = vld [vmem:[#allocation14 + $0x830] ss:$28 sps:$4 sm:$0xff]  }
 0x47a   :  { %7183 = vmatprep.subr.bf16.mxu0 %v7881_v8  ;;  %v7950_v8 = vld [vmem:[#allocation14 + $0x4e4] ss:$28 sps:$4 sm:$0xff]  }
 0x47c   :  { %6217 = vmatmul.mubr.bf16.vlgmr.msra.gmra.mrb[24].mxu0 %v8614_v35  ;;  %6037 = vmatpush1.bf16.msra.mxu1 %v7878_v9  ;;  %v7951_v9 = vld [vmem:[#allocation14 + $0xa28] ss:$28 sps:$4 sm:$0xff]  }
 0x47d   :  { %7184 = vmatpush3.bf16.msra.mxu0 %v7882_v12  ;;  %6256 = vmatprep.mubr.bf16.mxu0 %v8618_v17  ;;  %v7948_v12 = vld [vmem:[#allocation14 + $0x4e0] ss:$28 sps:$4 sm:$0xff]  }
 0x47e   :  { %6038 = vmatprep.subr.bf16.mxu1 %v7885_v56  ;;  %7185 = vmatprep.subr.bf16.mxu0 %v7886_v13  ;;  %v7952_v56 = vld [vmem:[#allocation14 + $0x868] ss:$28 sps:$4 sm:$0xff]   ;;  %v7955_v13 = vld [vmem:[#allocation14 + $0x51c] ss:$28 sps:$4 sm:$0xff]  }
 0x480   :  { %6039 = vmatpush1.bf16.msra.mxu1 %v7883_v14  ;;  %v7956_v14 = vld [vmem:[#allocation14 + $0xa60] ss:$28 sps:$4 sm:$0xff]  }
 0x481   :  { %7186 = vmatpush3.bf16.msra.mxu0 %v7887_v18  ;;  %6040 = vmatprep.subr.bf16.mxu1 %v7890_v38  ;;  %v7953_v18 = vld [vmem:[#allocation14 + $0x518] ss:$28 sps:$4 sm:$0xff]   ;;  %v7957_v38 = vld [vmem:[#allocation14 + $0x8a0] ss:$28 sps:$4 sm:$0xff]  }
 0x482   :  { %7187 = vmatprep.subr.bf16.mxu0 %v7891_v20  ;;  %v7960_v20 = vld [vmem:[#allocation14 + $0x554] ss:$28 sps:$4 sm:$0xff]  }
 0x484   :  { %6041 = vmatpush1.bf16.msra.mxu1 %v7888_v24  ;;  %v7961_v24 = vld [vmem:[#allocation14 + $0xc58] ss:$28 sps:$4 sm:$0xff]  }
 0x485   :  { %7188 = vmatpush3.bf16.msra.mxu0 %v7892_v26  ;;  %6042 = vmatprep.subr.bf16.mxu1 %v7895_v27  ;;  %v7958_v26 = vld [vmem:[#allocation14 + $0x550] ss:$28 sps:$4 sm:$0xff]   ;;  %v7962_v27 = vld [vmem:[#allocation14 + $0xa98] ss:$28 sps:$4 sm:$0xff]  }
 0x486   :  { %7189 = vmatprep.subr.bf16.mxu0 %v7896_v29  ;;  %v7965_v29 = vld [vmem:[#allocation14 + $0x58c] ss:$28 sps:$4 sm:$0xff]  }
 0x488   :  { %6043 = vmatpush1.bf16.msra.mxu1 %v7893_v31  ;;  %v7966_v31 = vld [vmem:[#allocation14 + $0xc90] ss:$28 sps:$4 sm:$0xff]  }
 0x489   :  { %7190 = vmatpush3.bf16.msra.mxu0 %v7897_v32  ;;  %6044 = vmatprep.subr.bf16.mxu1 %v7900_v34  ;;  %v7963_v32 = vld [vmem:[#allocation14 + $0x588] ss:$28 sps:$4 sm:$0xff]   ;;  %v7967_v34 = vld [vmem:[#allocation14 + $0xad0] ss:$28 sps:$4 sm:$0xff]  }
 0x48a   :  { %7191 = vmatprep.subr.bf16.mxu0 %v7901_v15  ;;  %v7970_v15 = vld [vmem:[#allocation14 + $0x5c4] ss:$28 sps:$4 sm:$0xff]  }
 0x48c   :  { %6045 = vmatpush1.bf16.msra.mxu1 %v7898_v16  ;;  %v7971_v16 = vld [vmem:[#allocation14 + $0xcc8] ss:$28 sps:$4 sm:$0xff]  }
 0x48d   :  { %7192 = vmatpush3.bf16.msra.mxu0 %v7902_v21  ;;  %6046 = vmatprep.subr.bf16.mxu1 %v7905_v22  ;;  %v7968_v21 = vld [vmem:[#allocation14 + $0x5c0] ss:$28 sps:$4 sm:$0xff]   ;;  %v7972_v22 = vld [vmem:[#allocation14 + $0xb08] ss:$28 sps:$4 sm:$0xff]  }
 0x48e   :  { %7193 = vmatprep.subr.bf16.mxu0 %v7906_v23  ;;  %v7975_v23 = vld [vmem:[#allocation14 + $0x5fc] ss:$28 sps:$4 sm:$0xff]  }
 0x490   :  { %6047 = vmatpush1.bf16.msra.mxu1 %v7903_v36  ;;  %v7976_v36 = vld [vmem:[#allocation14 + $0xd00] ss:$28 sps:$4 sm:$0xff]  }
 0x491   :  { %7194 = vmatpush3.bf16.msra.mxu0 %v7907_v37  ;;  %6048 = vmatprep.subr.bf16.mxu1 %v7910_v43  ;;  %v7973_v37 = vld [vmem:[#allocation14 + $0x5f8] ss:$28 sps:$4 sm:$0xff]   ;;  %v7977_v43 = vld [vmem:[#allocation14 + $0xb40] ss:$28 sps:$4 sm:$0xff]  }
 0x492   :  { %7195 = vmatprep.subr.bf16.mxu0 %v7911_v44  ;;  %v7980_v44 = vld [vmem:[#allocation14 + $0x634] ss:$28 sps:$4 sm:$0xff]  }
 0x494   :  { %6049 = vmatpush1.bf16.msra.mxu1 %v7908_v45  ;;  %v7981_v45 = vld [vmem:[#allocation14 + $0xd38] ss:$28 sps:$4 sm:$0xff]  }
 0x495   :  { %7196 = vmatpush3.bf16.msra.mxu0 %v7912_v47  ;;  %6050 = vmatprep.subr.bf16.mxu1 %v7915_v1  ;;  %v7978_v47 = vld [vmem:[#allocation14 + $0x630] ss:$28 sps:$4 sm:$0xff]   ;;  %v7982_v1 = vld [vmem:[#allocation14 + $0xb78] ss:$28 sps:$4 sm:$0xff]  }
 0x496   :  { %7197 = vmatprep.subr.bf16.mxu0 %v7916_v33  ;;  %v7985_v33 = vld [vmem:[#allocation14 + $0x66c] ss:$28 sps:$4 sm:$0xff]  }
 0x498   :  { %6051 = vmatpush1.bf16.msra.mxu1 %v7913_v48  ;;  %v7986_v48 = vld [vmem:[#allocation14 + $0xd70] ss:$28 sps:$4 sm:$0xff]  }
 0x499   :  { %7198 = vmatpush3.bf16.msra.mxu0 %v7917_v49  ;;  %6061 = vmatprep.subr.bf16.mxu1 %v7920_v50  ;;  %v7983_v49 = vld [vmem:[#allocation14 + $0x668] ss:$28 sps:$4 sm:$0xff]   ;;  %v7987_v50 = vld [vmem:[#allocation14 + $0xbb0] ss:$28 sps:$4 sm:$0xff]  }
 0x49a   :  { %7205 = vmatprep.subr.bf16.mxu0 %v7921_v10  ;;  %v7990_v10 = vld [vmem:[#allocation14 + $0x6a4] ss:$28 sps:$4 sm:$0xff]  }
 0x49b   :  { %6053 = vmatmul.mubr.bf16.vlgmr.msra.gmra.mrb[12].mxu1 %v8614_v35  ;;  %v7932_v35 = vld [vmem:[#allocation14 + $0x788] ss:$28 sps:$4 sm:$0xff]  }
 0x49c   :  { %6257 = vmatmul.mubr.bf16.vlgmr.msra.gmra.mrb[28].mxu0 %v8627_v46  ;;  %6062 = vmatpush1.bf16.msra.mxu1 %v7918_v51  ;;  %v7991_v51 = vld [vmem:[#allocation14 + $0xda8] ss:$28 sps:$4 sm:$0xff]  }
 0x49d   :  { %6093 = vmatprep.mubr.bf16.mxu1 %v8618_v17  ;;  %7206 = vmatpush3.bf16.msra.mxu0 %v7922_v54  ;;  %v7937_v17 = vld [vmem:[#allocation14 + $0x7c0] ss:$28 sps:$4 sm:$0xff]  }
 0x49e   :  { %6296 = vmatprep.mubr.bf16.mxu0 %v8642_v19  ;;  %6063 = vmatprep.subr.bf16.mxu1 %v7925_v55  ;;  %v7988_v54 = vld [vmem:[#allocation14 + $0x6a0] ss:$28 sps:$4 sm:$0xff]   ;;  %v7992_v55 = vld [vmem:[#allocation14 + $0xbe8] ss:$28 sps:$4 sm:$0xff]  }
 0x49f   :  { %7207 = vmatprep.subr.bf16.mxu0 %v7926_v57  ;;  %v7995_v57 = vld [vmem:[#allocation14 + $0x6dc] ss:$28 sps:$4 sm:$0xff]  }
 0x4a0   :  { %6064 = vmatpush1.bf16.msra.mxu1 %v7923_v30  ;;  %v7996_v30 = vld [vmem:[#allocation14 + $0xde0] ss:$28 sps:$4 sm:$0xff]  }
 0x4a1   :  { %7208 = vmatpush3.bf16.msra.mxu0 %v7927_v58  ;;  %6065 = vmatprep.subr.bf16.mxu1 %v7930_v59  ;;  %v7993_v58 = vld [vmem:[#allocation14 + $0x6d8] ss:$28 sps:$4 sm:$0xff]   ;;  %v7997_v59 = vld [vmem:[#allocation14 + $0xc20] ss:$28 sps:$4 sm:$0xff]  }
 0x4a2   :  { %7209 = vmatprep.subr.bf16.mxu0 %v7931_v60  ;;  %v8000_v60 = vld [vmem:[#allocation14 + $0x714] ss:$28 sps:$4 sm:$0xff]  }
 0x4a4   :  { %6066 = vmatpush1.bf16.msra.mxu1 %v7928_v61  ;;  %v7998_v61 = vld [vmem:[#allocation14 + $0x710] ss:$28 sps:$4 sm:$0xff]  }
 0x4a5   :  { %7210 = vmatpush3.bf16.msra.mxu0 %v7932_v35  ;;  %6067 = vmatprep.subr.bf16.mxu1 %v7935_v62  ;;  %v8003_v35 = vld [vmem:[#allocation14 + $0x74c] ss:$28 sps:$4 sm:$0xff]  }
 0x4a6   :  { %7211 = vmatprep.subr.bf16.mxu0 %v7936_v63  ;;  %v8001_v62 = vld [vmem:[#allocation14 + $0x748] ss:$28 sps:$4 sm:$0xff]  }
 0x4a7   :  { %v8006_v63 = vld [vmem:[#allocation14 + $0x784] ss:$28 sps:$4 sm:$0xff]  }
 0x4a8   :  { %6068 = vmatpush1.bf16.msra.mxu1 %v7933_v0  ;;  %v8004_v0 = vld [vmem:[#allocation14 + $0x780] ss:$28 sps:$4 sm:$0xff]  }
 0x4a9   :  { %7212 = vmatpush3.bf16.msra.mxu0 %v7937_v17  ;;  %6069 = vmatprep.subr.bf16.mxu1 %v7940_v11  ;;  %v8009_v17 = vld [vmem:[#allocation14 + $0x7bc] ss:$28 sps:$4 sm:$0xff]  }
 0x4aa   :  { %7213 = vmatprep.subr.bf16.mxu0 %v7941_v2  ;;  %v8007_v11 = vld [vmem:[#allocation14 + $0x7b8] ss:$28 sps:$4 sm:$0xff]  }
 0x4ab   :  { %v8012_v2 = vld [vmem:[#allocation14 + $0x7f4] ss:$28 sps:$4 sm:$0xff]  }
 0x4ac   :  { %6070 = vmatpush1.bf16.msra.mxu1 %v7938_v3  ;;  %v8010_v3 = vld [vmem:[#allocation14 + $0x7f0] ss:$28 sps:$4 sm:$0xff]  }
 0x4ad   :  { %7214 = vmatpush3.bf16.msra.mxu0 %v7942_v4  ;;  %6071 = vmatprep.subr.bf16.mxu1 %v7945_v5  ;;  %v8013_v4 = vld [vmem:[#allocation14 + $0x828] ss:$28 sps:$4 sm:$0xff]  }
 0x4ae   :  { %7215 = vmatprep.subr.bf16.mxu0 %v7946_v6  ;;  %v8018_v5 = vld [vmem:[#allocation14 + $0x864] ss:$28 sps:$4 sm:$0xff]   ;;  %v8021_v6 = vld [vmem:[#allocation14 + $0x89c] ss:$28 sps:$4 sm:$0xff]  }
 0x4b0   :  { %6072 = vmatpush1.bf16.msra.mxu1 %v7943_v7  ;;  %v8019_v7 = vld [vmem:[#allocation14 + $0x898] ss:$28 sps:$4 sm:$0xff]  }
 0x4b1   :  { %7216 = vmatpush3.bf16.msra.mxu0 %v7947_v42  ;;  %6073 = vmatprep.subr.bf16.mxu1 %v7950_v8  ;;  %v8024_v42 = vld [vmem:[#allocation14 + $0x8d4] ss:$28 sps:$4 sm:$0xff]  }
 0x4b2   :  { %7217 = vmatprep.subr.bf16.mxu0 %v7951_v9  ;;  %v8022_v8 = vld [vmem:[#allocation14 + $0x8d0] ss:$28 sps:$4 sm:$0xff]  }
 0x4b3   :  { %v8027_v9 = vld [vmem:[#allocation14 + $0x90c] ss:$28 sps:$4 sm:$0xff]  }
 0x4b4   :  { %6074 = vmatpush1.bf16.msra.mxu1 %v7948_v12  ;;  %v8025_v12 = vld [vmem:[#allocation14 + $0x908] ss:$28 sps:$4 sm:$0xff]  }
 0x4b5   :  { %7218 = vmatpush3.bf16.msra.mxu0 %v7952_v56  ;;  %6075 = vmatprep.subr.bf16.mxu1 %v7955_v13  ;;  %v8030_v56 = vld [vmem:[#allocation14 + $0x944] ss:$28 sps:$4 sm:$0xff]  }
 0x4b6   :  { %7219 = vmatprep.subr.bf16.mxu0 %v7956_v14  ;;  %v8028_v13 = vld [vmem:[#allocation14 + $0x940] ss:$28 sps:$4 sm:$0xff]  }
 0x4b7   :  { %v8033_v14 = vld [vmem:[#allocation14 + $0x97c] ss:$28 sps:$4 sm:$0xff]  }
 0x4b8   :  { %6076 = vmatpush1.bf16.msra.mxu1 %v7953_v18  ;;  %v8031_v18 = vld [vmem:[#allocation14 + $0x978] ss:$28 sps:$4 sm:$0xff]  }
 0x4b9   :  { %7220 = vmatpush3.bf16.msra.mxu0 %v7957_v38  ;;  %6077 = vmatprep.subr.bf16.mxu1 %v7960_v20  ;;  %v8036_v38 = vld [vmem:[#allocation14 + $0x9b4] ss:$28 sps:$4 sm:$0xff]  }
 0x4ba   :  { %7227 = vmatprep.subr.bf16.mxu0 %v7961_v24  ;;  %v8034_v20 = vld [vmem:[#allocation14 + $0x9b0] ss:$28 sps:$4 sm:$0xff]  }
 0x4bb   :  { %v8039_v24 = vld [vmem:[#allocation14 + $0x9ec] ss:$28 sps:$4 sm:$0xff]  }
 0x4bc   :  { %6297 = vmatmul.mubr.bf16.vlgmr.msra.gmra.mrb[32].mxu0 %v8644_v25  ;;  %6078 = vmatpush1.bf16.msra.mxu1 %v7958_v26  ;;  %v8037_v26 = vld [vmem:[#allocation14 + $0x9e8] ss:$28 sps:$4 sm:$0xff]  }
 0x4bd   :  { %7228 = vmatpush3.bf16.msra.mxu0 %v7962_v27  ;;  %6336 = vmatprep.mubr.bf16.mxu0 %v8648_v28  ;;  %v8042_v27 = vld [vmem:[#allocation14 + $0xa24] ss:$28 sps:$4 sm:$0xff]  }
 0x4be   :  { %6079 = vmatprep.subr.bf16.mxu1 %v7965_v29  ;;  %7229 = vmatprep.subr.bf16.mxu0 %v7966_v31  ;;  %v8040_v29 = vld [vmem:[#allocation14 + $0xa20] ss:$28 sps:$4 sm:$0xff]  }
 0x4bf   :  { %v8045_v31 = vld [vmem:[#allocation14 + $0xa5c] ss:$28 sps:$4 sm:$0xff]  }
 0x4c0   :  { %6080 = vmatpush1.bf16.msra.mxu1 %v7963_v32  ;;  %v8043_v32 = vld [vmem:[#allocation14 + $0xa58] ss:$28 sps:$4 sm:$0xff]  }
 0x4c1   :  { %7230 = vmatpush3.bf16.msra.mxu0 %v7967_v34  ;;  %6081 = vmatprep.subr.bf16.mxu1 %v7970_v15  ;;  %v8048_v34 = vld [vmem:[#allocation14 + $0xa94] ss:$28 sps:$4 sm:$0xff]  }
 0x4c2   :  { %7231 = vmatprep.subr.bf16.mxu0 %v7971_v16  ;;  %v8046_v15 = vld [vmem:[#allocation14 + $0xa90] ss:$28 sps:$4 sm:$0xff]  }
 0x4c3   :  { %v8051_v16 = vld [vmem:[#allocation14 + $0xacc] ss:$28 sps:$4 sm:$0xff]  }
 0x4c4   :  { %6082 = vmatpush1.bf16.msra.mxu1 %v7968_v21  ;;  %v8049_v21 = vld [vmem:[#allocation14 + $0xac8] ss:$28 sps:$4 sm:$0xff]  }
 0x4c5   :  { %7232 = vmatpush3.bf16.msra.mxu0 %v7972_v22  ;;  %6083 = vmatprep.subr.bf16.mxu1 %v7975_v23  ;;  %v8054_v22 = vld [vmem:[#allocation14 + $0xb04] ss:$28 sps:$4 sm:$0xff]  }
 0x4c6   :  { %7233 = vmatprep.subr.bf16.mxu0 %v7976_v36  ;;  %v8052_v23 = vld [vmem:[#allocation14 + $0xb00] ss:$28 sps:$4 sm:$0xff]  }
 0x4c7   :  { %v8676_v36 = vld [vmem:[#allocation16] sm:$0x7f] }
 0x4c8   :  { %6084 = vmatpush1.bf16.msra.mxu1 %v7973_v37  ;;  %v8057_v37 = vld [vmem:[#allocation14 + $0xb3c] ss:$28 sps:$4 sm:$0xff]  }
 0x4c9   :  { %7234 = vmatpush3.bf16.msra.mxu0 %v7977_v43  ;;  %6085 = vmatprep.subr.bf16.mxu1 %v7980_v44  ;;  %v3321_v43 = vunpack.c.l.bf16 %v8676_v36  ;;  %v8055_v44 = vld [vmem:[#allocation14 + $0xb38] ss:$28 sps:$4 sm:$0xff]  }
 0x4ca   :  { %7235 = vmatprep.subr.bf16.mxu0 %v7981_v45  ;;  %v8060_v45 = vld [vmem:[#allocation14 + $0xb74] ss:$28 sps:$4 sm:$0xff]  }
 0x4cc   :  { %6086 = vmatpush1.bf16.msra.mxu1 %v7978_v47  ;;  %v3336_v47 = vrot.slane %v3321_v43, %v8572_v52 }
 0x4cd   :  { %7236 = vmatpush3.bf16.msra.mxu0 %v7982_v1  ;;  %6087 = vmatprep.subr.bf16.mxu1 %v7985_v33  ;;  %v3332_v1 = vrot.slane %v3321_v43, %v8523_v40  ;;  %v3340_v33 = vrot.slane %v3321_v43, %v8575_v53 }
 0x4ce   :  { %7237 = vmatprep.subr.bf16.mxu0 %v7986_v48  ;;  %v8063_v48 = vld [vmem:[#allocation14 + $0xbac] ss:$28 sps:$4 sm:$0xff]  }
 0x4d0   :  { %6088 = vmatpush1.bf16.msra.mxu1 %v7983_v49 }
 0x4d1   :  { %7238 = vmatpush3.bf16.msra.mxu0 %v7987_v50  ;;  %6089 = vmatprep.subr.bf16.mxu1 %v7990_v10  ;;  %v3371_v50 = vrot.slane %v3336_v47, %v8520_v39  ;;  %v3367_v10 = vrot.slane %v3332_v1, %v8520_v39 }
 0x4d2   :  { %7239 = vmatprep.subr.bf16.mxu0 %v7991_v51  ;;  %v3375_v51 = vrot.slane %v3340_v33, %v8520_v39 }
 0x4d4   :  { %6090 = vmatpush1.bf16.msra.mxu1 %v7988_v54  ;;  %v8061_v54 = vld [vmem:[#allocation14 + $0xba8] ss:$28 sps:$4 sm:$0xff]  }
 0x4d5   :  { %7240 = vmatpush3.bf16.msra.mxu0 %v7992_v55  ;;  %6091 = vmatprep.subr.bf16.mxu1 %v7995_v57  ;;  %v8066_v55 = vld [vmem:[#allocation14 + $0xbe4] ss:$28 sps:$4 sm:$0xff]  }
 0x4d6   :  { %7241 = vmatprep.subr.bf16.mxu0 %v7996_v30 }
 0x4d8   :  { %6092 = vmatpush1.bf16.msra.mxu1 %v7993_v58 }
 0x4d9   :  { %7242 = vmatpush3.bf16.msra.mxu0 %v7997_v59  ;;  %6102 = vmatprep.subr.bf16.mxu1 %v8000_v60 }
 0x4db   :  { %6094 = vmatmul.mubr.bf16.vlgmr.msra.gmra.mrb[12].mxu1 %v8627_v46  ;;  %v8015_v46 = vld [vmem:[#allocation14 + $0x82c] ss:$28 sps:$4 sm:$0xff]  }
 0x4dc   :  { %6337 = vmatmul.mubr.bf16.vlgmr.msra.gmra.mrb[36].mxu0 %v8657_v41  ;;  %6103 = vmatpush1.bf16.msra.mxu1 %v7998_v61 }
 0x4dd   :  { %6134 = vmatprep.mubr.bf16.mxu1 %v8642_v19  ;;  %6104 = vmatprep.subr.bf16.mxu1 %v8003_v35  ;;  %v8016_v19 = vld [vmem:[#allocation14 + $0x860] ss:$28 sps:$4 sm:$0xff]  }
 0x4e0   :  { %6105 = vmatpush1.bf16.msra.mxu1 %v8001_v62 }
 0x4e1   :  { %6106 = vmatprep.subr.bf16.mxu1 %v8006_v63 }
 0x4e4   :  { %6107 = vmatpush1.bf16.msra.mxu1 %v8004_v0  ;;  %v8064_v0 = vld [vmem:[#allocation14 + $0xbe0] ss:$28 sps:$4 sm:$0xff]  }
 0x4e5   :  { %6108 = vmatprep.subr.bf16.mxu1 %v8009_v17 }
 0x4e8   :  { %6109 = vmatpush1.bf16.msra.mxu1 %v8007_v11 }
 0x4e9   :  { %6110 = vmatprep.subr.bf16.mxu1 %v8012_v2  ;;  %v8069_v2 = vld [vmem:[#allocation14 + $0xc1c] ss:$28 sps:$4 sm:$0xff]  }
 0x4ec   :  { %6111 = vmatpush1.bf16.msra.mxu1 %v8010_v3  ;;  %v8067_v3 = vld [vmem:[#allocation14 + $0xc18] ss:$28 sps:$4 sm:$0xff]  }
 0x4ed   :  { %6112 = vmatprep.subr.bf16.mxu1 %v8015_v46  ;;  %v8072_v46 = vld [vmem:[#allocation14 + $0xc54] ss:$28 sps:$4 sm:$0xff]  }
 0x4f0   :  { %6113 = vmatpush1.bf16.msra.mxu1 %v8013_v4  ;;  %v8070_v4 = vld [vmem:[#allocation14 + $0xc50] ss:$28 sps:$4 sm:$0xff]  }
 0x4f1   :  { %6114 = vmatprep.subr.bf16.mxu1 %v8018_v5  ;;  %v8075_v5 = vld [vmem:[#allocation14 + $0xc8c] ss:$28 sps:$4 sm:$0xff]  }
 0x4f4   :  { %6115 = vmatpush1.bf16.msra.mxu1 %v8016_v19 }
 0x4f5   :  { %6116 = vmatprep.subr.bf16.mxu1 %v8021_v6 }
 0x4f8   :  { %6117 = vmatpush1.bf16.msra.mxu1 %v8019_v7  ;;  %v8073_v7 = vld [vmem:[#allocation14 + $0xc88] ss:$28 sps:$4 sm:$0xff]  }
 0x4f9   :  { %6118 = vmatprep.subr.bf16.mxu1 %v8024_v42 }
 0x4fc   :  { %6119 = vmatpush1.bf16.msra.mxu1 %v8022_v8  ;;  %v8078_v8 = vld [vmem:[#allocation14 + $0xcc4] ss:$28 sps:$4 sm:$0xff]  }
 0x4fd   :  { %6120 = vmatprep.subr.bf16.mxu1 %v8027_v9 }
 0x500   :  { %6121 = vmatpush1.bf16.msra.mxu1 %v8025_v12  ;;  %v8076_v12 = vld [vmem:[#allocation14 + $0xcc0] ss:$28 sps:$4 sm:$0xff]  }
 0x501   :  { %6122 = vmatprep.subr.bf16.mxu1 %v8030_v56  ;;  %v8081_v56 = vld [vmem:[#allocation14 + $0xcfc] ss:$28 sps:$4 sm:$0xff]  }
 0x504   :  { %6123 = vmatpush1.bf16.msra.mxu1 %v8028_v13  ;;  %v8079_v13 = vld [vmem:[#allocation14 + $0xcf8] ss:$28 sps:$4 sm:$0xff]  }
 0x505   :  { %6124 = vmatprep.subr.bf16.mxu1 %v8033_v14  ;;  %v8084_v14 = vld [vmem:[#allocation14 + $0xd34] ss:$28 sps:$4 sm:$0xff]  }
 0x508   :  { %6125 = vmatpush1.bf16.msra.mxu1 %v8031_v18  ;;  %v8082_v18 = vld [vmem:[#allocation14 + $0xd30] ss:$28 sps:$4 sm:$0xff]  }
 0x509   :  { %6126 = vmatprep.subr.bf16.mxu1 %v8036_v38  ;;  %v8087_v38 = vld [vmem:[#allocation14 + $0xd6c] ss:$28 sps:$4 sm:$0xff]  }
 0x50c   :  { %6127 = vmatpush1.bf16.msra.mxu1 %v8034_v20  ;;  %v8085_v20 = vld [vmem:[#allocation14 + $0xd68] ss:$28 sps:$4 sm:$0xff]  }
 0x50d   :  { %6128 = vmatprep.subr.bf16.mxu1 %v8039_v24  ;;  %v8090_v24 = vld [vmem:[#allocation14 + $0xda4] ss:$28 sps:$4 sm:$0xff]  }
 0x510   :  { %6129 = vmatpush1.bf16.msra.mxu1 %v8037_v26 }
 0x511   :  { %6130 = vmatprep.subr.bf16.mxu1 %v8042_v27 }
 0x514   :  { %6131 = vmatpush1.bf16.msra.mxu1 %v8040_v29  ;;  %v8088_v29 = vld [vmem:[#allocation14 + $0xda0] ss:$28 sps:$4 sm:$0xff]  }
 0x515   :  { %6132 = vmatprep.subr.bf16.mxu1 %v8045_v31 }
 0x518   :  { %6133 = vmatpush1.bf16.msra.mxu1 %v8043_v32 }
 0x519   :  { %6143 = vmatprep.subr.bf16.mxu1 %v8048_v34  ;;  %v8093_v34 = vld [vmem:[#allocation14 + $0xddc] ss:$28 sps:$4 sm:$0xff]  }
 0x51b   :  { %6135 = vmatmul.mubr.bf16.vlgmr.msra.gmra.mrb[12].mxu1 %v8644_v25  ;;  %v3328_v25 = vrot.slane %v3321_v43, %v8520_v39 }
 0x51c   :  { %6144 = vmatpush1.bf16.msra.mxu1 %v8046_v15  ;;  %6175 = vmatprep.mubr.bf16.mxu1 %v8648_v28  ;;  %v8058_v28 = vld [vmem:[#allocation14 + $0xb70] ss:$28 sps:$4 sm:$0xff]  }
 0x51d   :  { %6145 = vmatprep.subr.bf16.mxu1 %v8051_v16  ;;  %v3363_v49 = vrot.slane %v3328_v25, %v8520_v39  ;;  %v8091_v16 = vld [vmem:[#allocation14 + $0xdd8] ss:$28 sps:$4 sm:$0xff]  }
 0x520   :  { %6146 = vmatpush1.bf16.msra.mxu1 %v8049_v21  ;;  %v3322_v21 = vunpack.c.h.bf16 %v8676_v36 }
 0x521   :  { %6147 = vmatprep.subr.bf16.mxu1 %v8054_v22 }
 0x522   :  { %v3352_v22 = vrot.slane %v3322_v21, %v8572_v52 }
 0x524   :  { %6148 = vmatpush1.bf16.msra.mxu1 %v8052_v23  ;;  %v3387_v23 = vrot.slane %v3352_v22, %v8520_v39 }
 0x525   :  { %6149 = vmatprep.subr.bf16.mxu1 %v8057_v37 }
 0x528   :  { %6150 = vmatpush1.bf16.msra.mxu1 %v8055_v44 }
 0x529   :  { %6151 = vmatprep.subr.bf16.mxu1 %v8060_v45 }
 0x52c   :  { %6152 = vmatpush1.bf16.msra.mxu1 %v8058_v28 }
 0x52d   :  { %6153 = vmatprep.subr.bf16.mxu1 %v8063_v48 }
 0x52e   :  { %v5849_v57 = vpop.f32.mrb[8].mxu1  ;;  %v6013_v30 = vpop.f32.mrb[20].mxu0 }
 0x52f   :  { %v7257_v58 = vadd.f32 %v5849_v57, %v3363_v49  ;;  %v7259_v59 = vadd.f32 %v6013_v30, %v3371_v50  ;;  %v5851_v60 = vpop.f32.mrb[9].mxu1  ;;  %v6015_v53 = vpop.f32.mrb[21].mxu0  ;;  %v3344_v30 = vrot.slane %v3322_v21, %v8520_v39 }
 0x530   :  { %v7258_v61 = vadd.f32 %v5851_v60, %v3367_v10  ;;  %v7260_v35 = vadd.f32 %v6015_v53, %v3375_v51  ;;  %v5853_v62 = vpop.f32.mrb[10].mxu1  ;;  %v6017_v63 = vpop.f32.mrb[22].mxu0  ;;  %6154 = vmatpush1.bf16.msra.mxu1 %v8061_v54 }
 0x531   :  { %8094 = vtanh.f32 %v7257_v58  ;;  %v5854_v17 = vpop.f32.mrb[11].mxu1  ;;  %v6018_v11 = vpop.f32.mrb[23].mxu0  ;;  %6155 = vmatprep.subr.bf16.mxu1 %v8066_v55  ;;  %v3348_v58 = vrot.slane %v3322_v21, %v8523_v40 }
 0x532   :  { %8096 = vtanh.f32 %v7259_v59  ;;  %v3379_v59 = vrot.slane %v3344_v30, %v8520_v39 }
 0x533   :  { %8098 = vtanh.f32 %v7258_v61  ;;  %v3383_v60 = vrot.slane %v3348_v58, %v8520_v39 }
 0x534   :  { %8100 = vtanh.f32 %v7260_v35  ;;  %6156 = vmatpush1.bf16.msra.mxu1 %v8064_v0 }
 0x535   :  { %6157 = vmatprep.subr.bf16.mxu1 %v8069_v2 }
 0x538   :  { %6158 = vmatpush1.bf16.msra.mxu1 %v8067_v3 }
 0x539   :  { %6159 = vmatprep.subr.bf16.mxu1 %v8072_v46 }
 0x53b   :  { %v8095_v19 = vpop.eup %8094 }
 0x53c   :  { %v8097_v6 = vpop.eup %8096  ;;  %6351 = vst [vmem:[#allocation17] sm:$0xff] %v8095_v19  ;;  %6160 = vmatpush1.bf16.msra.mxu1 %v8070_v4 }
 0x53d   :  { %v8099_v42 = vpop.eup %8098  ;;  %6353 = vst [vmem:[#allocation17 + $0x10] sm:$0xff] %v8097_v6  ;;  %6161 = vmatprep.subr.bf16.mxu1 %v8075_v5 }
 0x53e   :  { %v8101_v9 = vpop.eup %8100  ;;  %6352 = vst [vmem:[#allocation17 + $0x8] sm:$0xff] %v8099_v42 }
 0x53f   :  { %6354 = vst [vmem:[#allocation17 + $0x18] sm:$0xff] %v8101_v9 }
 0x540   :  { %6162 = vmatpush1.bf16.msra.mxu1 %v8073_v7 }
 0x541   :  { %6163 = vmatprep.subr.bf16.mxu1 %v8078_v8 }
 0x544   :  { %6164 = vmatpush1.bf16.msra.mxu1 %v8076_v12 }
 0x545   :  { %6165 = vmatprep.subr.bf16.mxu1 %v8081_v56 }
 0x548   :  { %6166 = vmatpush1.bf16.msra.mxu1 %v8079_v13 }
 0x549   :  { %6167 = vmatprep.subr.bf16.mxu1 %v8084_v14 }
 0x54c   :  { %6168 = vmatpush1.bf16.msra.mxu1 %v8082_v18 }
 0x54d   :  { %6169 = vmatprep.subr.bf16.mxu1 %v8087_v38 }
 0x54f   :  { %v7177_v26 = vpop.f32.mrb[24].mxu0 }
 0x550   :  { %v7178_v27 = vpop.f32.mrb[25].mxu0  ;;  %6170 = vmatpush1.bf16.msra.mxu1 %v8085_v20 }
 0x551   :  { %v7179_v31 = vadd.f32 %v7178_v27, %v7177_v26  ;;  %v7180_v32 = vpop.f32.mrb[26].mxu0  ;;  %6171 = vmatprep.subr.bf16.mxu1 %v8090_v24 }
 0x552   :  { %v7181_v15 = vpop.f32.mrb[27].mxu0 }
 0x553   :  { %v6219_v44 = vadd.f32 %v7179_v31, %v3387_v23 }
 0x554   :  { %6172 = vmatpush1.bf16.msra.mxu1 %v8088_v29 }
 0x555   :  { %6173 = vmatprep.subr.bf16.mxu1 %v8093_v34 }
 0x558   :  { %6174 = vmatpush1.bf16.msra.mxu1 %v8091_v16 }
 0x55b   :  { %6176 = vmatmul.mubr.bf16.vlgmr.msra.gmra.mrb[12].mxu1 %v8657_v41 }
 0x56f   :  { %v7199_v37 = vpop.f32.mrb[28].mxu0 }
 0x570   :  { %v7200_v43 = vpop.f32.mrb[29].mxu0 }
 0x571   :  { %v7201_v45 = vadd.f32 %v7200_v43, %v7199_v37  ;;  %v7202_v25 = vpop.f32.mrb[30].mxu0 }
 0x572   :  { %v7203_v47 = vpop.f32.mrb[31].mxu0 }
 0x573   :  { %v6259_v28 = vadd.f32 %v7201_v45, %v6219_v44 }
 0x58f   :  { %v7221_v1 = vpop.f32.mrb[32].mxu0 }
 0x590   :  { %v7222_v33 = vpop.f32.mrb[33].mxu0 }
 0x591   :  { %v7223_v48 = vadd.f32 %v7222_v33, %v7221_v1  ;;  %v7224_v49 = vpop.f32.mrb[34].mxu0 }
 0x592   :  { %v7225_v50 = vpop.f32.mrb[35].mxu0 }
 0x593   :  { %v6299_v10 = vadd.f32 %v7223_v48, %v6259_v28 }
 0x5af   :  { %v7243_v41 = vpop.f32.mrb[36].mxu0 }
 0x5b0   :  { %v7244_v51 = vpop.f32.mrb[37].mxu0 }
 0x5b1   :  { %v7245_v36 = vadd.f32 %v7244_v51, %v7243_v41  ;;  %v7246_v54 = vpop.f32.mrb[38].mxu0 }
 0x5b2   :  { %v7247_v52 = vpop.f32.mrb[39].mxu0 }
 0x5b3   :  { %v6339_v55 = vadd.f32 %v7245_v36, %v6299_v10 }
 0x5b5   :  { %8102 = vtanh.f32 %v6339_v55 }
 0x5bf   :  { %v8103_v57 = vpop.eup %8102 }
 0x5c0   :  { %6357 = vst [vmem:[#allocation17 + $0x30] sm:$0xff] %v8103_v57 }
 0x62e   :  { %v6177_v53 = vpop.f32.mrb[12].mxu1 }
 0x62f   :  { %v7261_v61 = vadd.f32 %v6177_v53, %v3379_v59  ;;  %v6179_v35 = vpop.f32.mrb[13].mxu1 }
 0x630   :  { %v7262_v62 = vadd.f32 %v6179_v35, %v3383_v60  ;;  %v6181_v63 = vpop.f32.mrb[14].mxu1 }
 0x631   :  { %8104 = vtanh.f32 %v7261_v61  ;;  %v6182_v0 = vpop.f32.mrb[15].mxu1 }
 0x632   :  { %8106 = vtanh.f32 %v7262_v62 }
 0x63b   :  { %v8105_v17 = vpop.eup %8104 }
 0x63c   :  { %v8107_v11 = vpop.eup %8106  ;;  %6355 = vst [vmem:[#allocation17 + $0x20] sm:$0xff] %v8105_v17 }
 0x63d   :  { %6356 = vst [vmem:[#allocation17 + $0x28] sm:$0xff] %v8107_v11 }
 0x63e   :  { %8317 = shalt.err (!%p8314_p6)
}
 0x63f   :  { %s8318_s22 = scalar_lea.hbm %s8716_s9, 896 }
 0x640   :  { %p8319_p7 = scmp.ne.s32.totalorder %s8716_s9, %s8318_s22  ;;  %p8322_p8 = scmp.lt.u32.totalorder %s8318_s22, %s8716_s9 }
 0x642   :  { %p8324_p9 = pnand %p8322_p8, %p8319_p7 }
 0x644   :  { %8327 = shalt.err (!%p8324_p9)
}
 0x645   :  { %6367 = dma.vmem_to_hbm [thread:$0]  %s6365_s24, 896, %s8716_s9, [#allocation4]  }
 0x646   :  { %8338 = dma.done.wait [#allocation4], 896  }
 0x647   :  { %8339 = vsyncadd [#allocation4], 4294966400 }
 0x648   :  { %6371 = vsyncpa [#allocation3], 1 }
 0x649   :  { %6372 = vsyncpa [#allocation6], 1 }
 0x64a   :  { %6373 = vsyncpa [#allocation9], 1 }
 0x64b   :  { %6374 = vsyncpa [#allocation12], 1 }
 0x64c   :  { %6375 = vsyncpa [#allocation15], 1 }
 0x64d   :  { %6376 = vsyncpa [#allocation4], 1 }

// kernel: tpu_custom_call.1
= control target key start
LH: loop header
LB: loop body
LE: loop exit
PB: predicated region body
PF: predicated region fallthrough
CT: control target
= control target key end

     0   :  { %14 = vsyncpa [#allocation3], 0  ;;  %s8707_s0 = inlined_call_operand.hbm [shape: f32[8,128], index: 0, kind: input, shape index: {}]   ;;  %s8708_s1 = inlined_call_operand.hbm [shape: bf16[128,256], index: 1, kind: input, shape index: {}]   ;;  %s8709_s2 = inlined_call_operand.hbm [shape: bf16[1,256], index: 2, kind: input, shape index: {}]   ;;  %s8710_s3 = inlined_call_operand.hbm [shape: bf16[256,512], index: 3, kind: input, shape index: {}]   ;;  %s8711_s4 = inlined_call_operand.hbm [shape: bf16[1,512], index: 4, kind: input, shape index: {}]   ;;  %s8712_s5 = inlined_call_operand.hbm [shape: bf16[512,1024], index: 5, kind: input, shape index: {}]   ;;  %s8713_s6 = inlined_call_operand.hbm [shape: bf16[1,1024], index: 6, kind: input, shape index: {}]   ;;  %s8714_s7 = inlined_call_operand.hbm [shape: bf16[1024,896], index: 7, kind: input, shape index: {}]   ;;  %s8715_s8 = inlined_call_operand.hbm [shape: bf16[1,896], index: 8, kind: input, shape index: {}]   ;;  %s8716_s9 = inlined_call_operand.hbm [shape: f32[8,896], index: 9, kind: output, shape index: {}]  }
   0x1   :  { %15 = vsyncpa [#allocation6], 0 }
   0x2   :  { %16 = vsyncpa [#allocation9], 0 }
   0x3   :  { %17 = vsyncpa [#allocation12], 0 }
   0x4   :  { %18 = vsyncpa [#allocation15], 0 }
   0x5   :  { %19 = vsyncpa [#allocation4], 0  ;;  %s8340_s30 = smov [#allocation5]   ;;  %s8108_s13 = scalar_lea.hbm %s8708_s1, 2048 }
   0x6   :  { %s35_s10 = sshll.u32 %s8340_s30, 4  ;;  %p8109_p0 = scmp.ne.s32.totalorder %s8708_s1, %s8108_s13  ;;  %s36_s10 = int_to_ptr.vmem [resolvable:$true] %s35_s10 }
   0x7   :  { %p8112_p1 = scmp.lt.u32.totalorder %s8108_s13, %s8708_s1 }
   0x9   :  { %p8114_p2 = pnand %p8112_p1, %p8109_p0 }
   0xb   :  { %8117 = shalt.err (!%p8114_p2)
}
   0xc   :  { %s8118_s18 = scalar_lea.vmem %s36_s10, 2048  ;;  %p8123_p4 = scmp.lt.s32.totalorder %s36_s10, %s36_s10 }
   0xd   :  { %p8119_p3 = scmp.ne.s32.totalorder %s36_s10, %s8118_s18  ;;  %p8124_p5 = scmp.lt.s32.totalorder %s8118_s18, %s8118_s18 }
   0xf   :  { %p8125_p6 = por %p8124_p5, %p8123_p4 }
  0x11   :  { %p8126_p7 = pnand %p8125_p6, %p8119_p3 }
  0x13   :  { %8129 = shalt.err (!%p8126_p7)
}
  0x14   :  { %s8341_s19 = smov 128   ;;  %s8342_s20 = smov 8  }
  0x15   :  { %41 = dma.hbm_to_vmem [thread:$0]  %s8708_s1, 2048, %s36_s10, [#allocation6], %s8341_s19, %s8341_s19, %s8342_s20  }
  0x16   :  { %s8343_s23 = smov [#allocation8]   ;;  %s8130_s27 = scalar_lea.hbm %s8710_s3, 8192 }
  0x17   :  { %s57_s24 = sshll.u32 %s8343_s23, 4  ;;  %p8131_p8 = scmp.ne.s32.totalorder %s8710_s3, %s8130_s27  ;;  %s58_s24 = int_to_ptr.vmem [resolvable:$true] %s57_s24 }
  0x18   :  { %p8134_p9 = scmp.lt.u32.totalorder %s8130_s27, %s8710_s3 }
  0x1a   :  { %p8136_p10 = pnand %p8134_p9, %p8131_p8 }
  0x1c   :  { %8139 = shalt.err (!%p8136_p10)
}
  0x1d   :  { %s8140_s12 = scalar_lea.vmem %s58_s24, 8192  ;;  %p8145_p12 = scmp.lt.s32.totalorder %s58_s24, %s58_s24 }
  0x1e   :  { %p8141_p11 = scmp.ne.s32.totalorder %s58_s24, %s8140_s12  ;;  %p8146_p13 = scmp.lt.s32.totalorder %s8140_s12, %s8140_s12 }
  0x20   :  { %p8147_p0 = por %p8146_p13, %p8145_p12 }
  0x22   :  { %p8148_p1 = pnand %p8147_p0, %p8141_p11 }
  0x24   :  { %8151 = shalt.err (!%p8148_p1)
}
  0x25   :  { %s8344_s1 = smov 256   ;;  %s8345_s10 = smov 16  }
  0x26   :  { %63 = dma.hbm_to_vmem [thread:$0]  %s8710_s3, 8192, %s58_s24, [#allocation9], %s8344_s1, %s8344_s1, %s8345_s10  }
  0x27   :  { %s8346_s15 = smov [#allocation11]   ;;  %s8152_s19 = scalar_lea.hbm %s8712_s5, 32768 }
  0x28   :  { %s79_s16 = sshll.u32 %s8346_s15, 4  ;;  %p8153_p2 = scmp.ne.s32.totalorder %s8712_s5, %s8152_s19  ;;  %s80_s16 = int_to_ptr.vmem [resolvable:$true] %s79_s16 }
  0x29   :  { %p8156_p3 = scmp.lt.u32.totalorder %s8152_s19, %s8712_s5 }
  0x2b   :  { %p8158_p4 = pnand %p8156_p3, %p8153_p2 }
  0x2d   :  { %8161 = shalt.err (!%p8158_p4)
}
  0x2e   :  { %s8162_s25 = scalar_lea.vmem %s80_s16, 32768  ;;  %p8167_p6 = scmp.lt.s32.totalorder %s80_s16, %s80_s16 }
  0x2f   :  { %p8163_p5 = scmp.ne.s32.totalorder %s80_s16, %s8162_s25  ;;  %p8168_p7 = scmp.lt.s32.totalorder %s8162_s25, %s8162_s25 }
  0x31   :  { %p8169_p8 = por %p8168_p7, %p8167_p6 }
  0x33   :  { %p8170_p9 = pnand %p8169_p8, %p8163_p5 }
  0x35   :  { %8173 = shalt.err (!%p8170_p9)
}
  0x36   :  { %s8347_s3 = smov 512   ;;  %s8348_s24 = smov 32  }
  0x37   :  { %85 = dma.hbm_to_vmem [thread:$0]  %s8712_s5, 32768, %s80_s16, [#allocation12], %s8347_s3, %s8347_s3, %s8348_s24  }
  0x38   :  { %s8349_s28 = smov [#allocation14]   ;;  %s8174_s12 = scalar_lea.hbm %s8714_s7, 57344 }
  0x39   :  { %s101_s29 = sshll.u32 %s8349_s28, 4  ;;  %p8175_p10 = scmp.ne.s32.totalorder %s8714_s7, %s8174_s12  ;;  %s102_s29 = int_to_ptr.vmem [resolvable:$true] %s101_s29 }
  0x3a   :  { %p8178_p11 = scmp.lt.u32.totalorder %s8174_s12, %s8714_s7 }
  0x3c   :  { %p8180_p12 = pnand %p8178_p11, %p8175_p10 }
  0x3e   :  { %8183 = shalt.err (!%p8180_p12)
}
  0x3f   :  { %s8184_s15 = scalar_lea.vmem %s102_s29, 57344  ;;  %p8189_p0 = scmp.lt.s32.totalorder %s102_s29, %s102_s29 }
  0x40   :  { %p8185_p13 = scmp.ne.s32.totalorder %s102_s29, %s8184_s15  ;;  %p8190_p1 = scmp.lt.s32.totalorder %s8184_s15, %s8184_s15 }
  0x42   :  { %p8191_p2 = por %p8190_p1, %p8189_p0 }
  0x44   :  { %p8192_p3 = pnand %p8191_p2, %p8185_p13 }
  0x46   :  { %8195 = shalt.err (!%p8192_p3)
}
  0x47   :  { %s8350_s5 = smov 448   ;;  %s8351_s16 = smov 28  }
  0x48   :  { %107 = dma.hbm_to_vmem [thread:$0]  %s8714_s7, 57344, %s102_s29, [#allocation15], %s8350_s5, %s8350_s5, %s8351_s16  }
  0x49   :  { %s8352_s19 = smov [#allocation2]   ;;  %s8353_s21 = smov [#allocation7]  }
  0x4a   :  { %s26_s20 = sshll.u32 %s8352_s19, 4  ;;  %s48_s22 = sshll.u32 %s8353_s21, 4  ;;  %s27_s20 = int_to_ptr.vmem [resolvable:$true] %s26_s20  ;;  %s49_s22 = int_to_ptr.vmem [resolvable:$true] %s48_s22 }
  0x4b   :  { %s8196_s3 = scalar_lea.hbm %s8707_s0, 128 }
  0x4c   :  { %p8197_p4 = scmp.ne.s32.totalorder %s8707_s0, %s8196_s3  ;;  %p8200_p5 = scmp.lt.u32.totalorder %s8196_s3, %s8707_s0 }
  0x4e   :  { %p8202_p6 = pnand %p8200_p5, %p8197_p4 }
  0x50   :  { %8205 = shalt.err (!%p8202_p6)
}
  0x51   :  { %s8206_s7 = scalar_lea.vmem %s27_s20, 128  ;;  %p8211_p8 = scmp.lt.s32.totalorder %s27_s20, %s27_s20 }
  0x52   :  { %p8207_p7 = scmp.ne.s32.totalorder %s27_s20, %s8206_s7  ;;  %p8212_p9 = scmp.lt.s32.totalorder %s8206_s7, %s8206_s7 }
  0x54   :  { %p8213_p10 = por %p8212_p9, %p8211_p8 }
  0x56   :  { %p8214_p11 = pnand %p8213_p10, %p8207_p7 }
  0x58   :  { %8217 = shalt.err (!%p8214_p11)
}
  0x59   :  { %29 = dma.hbm_to_vmem [thread:$0]  %s8707_s0, 128, %s27_s20, [#allocation3]  }
  0x5a   :  { %s8218_s1 = scalar_lea.hbm %s8709_s2, 32 }
  0x5b   :  { %p8219_p12 = scmp.ne.s32.totalorder %s8709_s2, %s8218_s1  ;;  %p8222_p13 = scmp.lt.u32.totalorder %s8218_s1, %s8709_s2 }
  0x5d   :  { %p8224_p0 = pnand %p8222_p13, %p8219_p12 }
  0x5f   :  { %8227 = shalt.err (!%p8224_p0)
}
  0x60   :  { %s8228_s5 = scalar_lea.vmem %s49_s22, 32  ;;  %p8233_p2 = scmp.lt.s32.totalorder %s49_s22, %s49_s22 }
  0x61   :  { %p8229_p1 = scmp.ne.s32.totalorder %s49_s22, %s8228_s5  ;;  %p8234_p3 = scmp.lt.s32.totalorder %s8228_s5, %s8228_s5 }
  0x63   :  { %p8235_p4 = por %p8234_p3, %p8233_p2 }
  0x65   :  { %p8236_p5 = pnand %p8235_p4, %p8229_p1 }
  0x67   :  { %8239 = shalt.err (!%p8236_p5)
}
  0x68   :  { %51 = dma.hbm_to_vmem [thread:$0]  %s8709_s2, 32, %s49_s22, [#allocation6]  }
  0x69   :  { %s8354_s17 = smov [#allocation10]   ;;  %s8355_s19 = smov [#allocation13]  }
  0x6a   :  { %s70_s18 = sshll.u32 %s8354_s17, 4  ;;  %s92_s20 = sshll.u32 %s8355_s19, 4  ;;  %s71_s18 = int_to_ptr.vmem [resolvable:$true] %s70_s18  ;;  %s93_s20 = int_to_ptr.vmem [resolvable:$true] %s92_s20 }
  0x6b   :  { %s8240_s25 = scalar_lea.hbm %s8711_s4, 64 }
  0x6c   :  { %p8241_p6 = scmp.ne.s32.totalorder %s8711_s4, %s8240_s25  ;;  %p8244_p7 = scmp.lt.u32.totalorder %s8240_s25, %s8711_s4 }
  0x6e   :  { %p8246_p8 = pnand %p8244_p7, %p8241_p6 }
  0x70   :  { %8249 = shalt.err (!%p8246_p8)
}
  0x71   :  { %s8250_s2 = scalar_lea.vmem %s71_s18, 64  ;;  %p8255_p10 = scmp.lt.s32.totalorder %s71_s18, %s71_s18 }
  0x72   :  { %p8251_p9 = scmp.ne.s32.totalorder %s71_s18, %s8250_s2  ;;  %p8256_p11 = scmp.lt.s32.totalorder %s8250_s2, %s8250_s2 }
  0x74   :  { %p8257_p12 = por %p8256_p11, %p8255_p10 }
  0x76   :  { %p8258_p13 = pnand %p8257_p12, %p8251_p9 }
  0x78   :  { %8261 = shalt.err (!%p8258_p13)
}
  0x79   :  { %73 = dma.hbm_to_vmem [thread:$0]  %s8711_s4, 64, %s71_s18, [#allocation9]  }
  0x7a   :  { %s8262_s30 = scalar_lea.hbm %s8713_s6, 128 }
  0x7b   :  { %p8263_p0 = scmp.ne.s32.totalorder %s8713_s6, %s8262_s30  ;;  %p8266_p1 = scmp.lt.u32.totalorder %s8262_s30, %s8713_s6 }
  0x7d   :  { %p8268_p2 = pnand %p8266_p1, %p8263_p0 }
  0x7f   :  { %8271 = shalt.err (!%p8268_p2)
}
  0x80   :  { %s8272_s13 = scalar_lea.vmem %s93_s20, 128  ;;  %p8277_p4 = scmp.lt.s32.totalorder %s93_s20, %s93_s20 }
  0x81   :  { %p8273_p3 = scmp.ne.s32.totalorder %s93_s20, %s8272_s13  ;;  %p8278_p5 = scmp.lt.s32.totalorder %s8272_s13, %s8272_s13 }
  0x83   :  { %p8279_p6 = por %p8278_p5, %p8277_p4 }
  0x85   :  { %p8280_p7 = pnand %p8279_p6, %p8273_p3 }
  0x87   :  { %8283 = shalt.err (!%p8280_p7)
}
  0x88   :  { %95 = dma.hbm_to_vmem [thread:$0]  %s8713_s6, 128, %s93_s20, [#allocation12]  }
  0x89   :  { %s8356_s15 = smov [#allocation16]   ;;  %s8284_s17 = scalar_lea.hbm %s8715_s8, 112 }
  0x8a   :  { %s114_s5 = sshll.u32 %s8356_s15, 4  ;;  %p8285_p8 = scmp.ne.s32.totalorder %s8715_s8, %s8284_s17  ;;  %s115_s5 = int_to_ptr.vmem [resolvable:$true] %s114_s5 }
  0x8b   :  { %p8288_p9 = scmp.lt.u32.totalorder %s8284_s17, %s8715_s8 }
  0x8d   :  { %p8290_p10 = pnand %p8288_p9, %p8285_p8 }
  0x8f   :  { %8293 = shalt.err (!%p8290_p10)
}
  0x90   :  { %s8294_s25 = scalar_lea.vmem %s115_s5, 112  ;;  %s8298_s6 = scalar_lea.vmem %s115_s5, 128 }
  0x91   :  { %p8295_p11 = scmp.ne.s32.totalorder %s115_s5, %s8294_s25  ;;  %p8299_p12 = scmp.lt.s32.totalorder %s115_s5, %s115_s5 }
  0x92   :  { %p8300_p13 = scmp.lt.s32.totalorder %s8298_s6, %s8294_s25 }
  0x94   :  { %p8301_p0 = por %p8300_p13, %p8299_p12 }
  0x96   :  { %p8302_p1 = pnand %p8301_p0, %p8295_p11 }
  0x98   :  { %8305 = shalt.err (!%p8302_p1)
}
  0x99   :  { %117 = dma.hbm_to_vmem [thread:$0]  %s8715_s8, 112, %s115_s5, [#allocation15]  }
  0x9a   :  { %8328 = dma.done.wait [#allocation3], 128  }
  0x9b   :  { %8329 = vsyncadd [#allocation3], 4294967168 }
  0x9c   :  { %8330 = dma.done.wait [#allocation6], 2080  }
  0x9d   :  { %8331 = vsyncadd [#allocation6], 4294965216 }
  0x9e   :  { %8332 = dma.done.wait [#allocation9], 8256  }
  0x9f   :  { %8333 = vsyncadd [#allocation9], 4294959040 }
  0xa0   :  { %8334 = dma.done.wait [#allocation12], 32896  }
  0xa1   :  { %8335 = vsyncadd [#allocation12], 4294934400 }
  0xa2   :  { %8336 = dma.done.wait [#allocation15], 57456  }
  0xa3   :  { %8337 = vsyncadd [#allocation15], 4294909840  ;;  %v8357_v0 = vmov 0   ;;  %v7334_v1 = vld [vmem:[#allocation5 + $0x4] ss:$8 sps:$4 sm:$0xff]   ;;  %v146_v17 = vld [vmem:[#allocation2] sm:$0xff] }
  0xa4   :  { %297 = vmatprep.mubr.bf16.mxu0 %v8357_v0  ;;  %v7336_v2 = vld [vmem:[#allocation5] ss:$8 sps:$4 sm:$0xff]   ;;  %265 = vmatprep.subr.bf16.mxu0 %v7334_v1  ;;  %v7337_v3 = vld [vmem:[#allocation5 + $0x14] ss:$8 sps:$4 sm:$0xff]   ;;  %v7339_v4 = vld [vmem:[#allocation5 + $0x10] ss:$8 sps:$4 sm:$0xff]   ;;  %v163_v20 = vpack.c.bf16 %v146_v17, %v146_v17 }
  0xa5   :  { %266 = vmatpush1.bf16.msra.mxu0 %v7336_v2  ;;  %v7340_v5 = vld [vmem:[#allocation5 + $0x24] ss:$8 sps:$4 sm:$0xff]   ;;  %v7342_v6 = vld [vmem:[#allocation5 + $0x20] ss:$8 sps:$4 sm:$0xff]   ;;  %v7343_v7 = vld [vmem:[#allocation5 + $0x34] ss:$8 sps:$4 sm:$0xff]  }
  0xa6   :  { %267 = vmatprep.subr.bf16.mxu0 %v7337_v3  ;;  %v7345_v8 = vld [vmem:[#allocation5 + $0x30] ss:$8 sps:$4 sm:$0xff]   ;;  %v7346_v9 = vld [vmem:[#allocation5 + $0x44] ss:$8 sps:$4 sm:$0xff]   ;;  %v7348_v10 = vld [vmem:[#allocation5 + $0x40] ss:$8 sps:$4 sm:$0xff]  }
  0xa7   :  { %v7349_v11 = vld [vmem:[#allocation5 + $0x54] ss:$8 sps:$4 sm:$0xff]   ;;  %v7351_v12 = vld [vmem:[#allocation5 + $0x50] ss:$8 sps:$4 sm:$0xff]   ;;  %v7352_v13 = vld [vmem:[#allocation5 + $0x64] ss:$8 sps:$4 sm:$0xff]  }
  0xa8   :  { %v7354_v14 = vld [vmem:[#allocation5 + $0x60] ss:$8 sps:$4 sm:$0xff]   ;;  %v7355_v15 = vld [vmem:[#allocation5 + $0x74] ss:$8 sps:$4 sm:$0xff]   ;;  %v7357_v16 = vld [vmem:[#allocation5 + $0x70] ss:$8 sps:$4 sm:$0xff]  }
  0xa9   :  { %268 = vmatpush1.bf16.msra.mxu0 %v7339_v4  ;;  %v7360_v18 = vld [vmem:[#allocation8 + $0x4] ss:$16 sps:$4 sm:$0xff]   ;;  %v7358_v19 = vld [vmem:[#allocation8] ss:$16 sps:$4 sm:$0xff]   ;;  %v7408_v51 = vld [vmem:[#allocation8 + $0xc] ss:$16 sps:$4 sm:$0xff]  }
  0xaa   :  { %269 = vmatprep.subr.bf16.mxu0 %v7340_v5  ;;  %v7363_v21 = vld [vmem:[#allocation8 + $0x24] ss:$16 sps:$4 sm:$0xff]   ;;  %v7361_v22 = vld [vmem:[#allocation8 + $0x20] ss:$16 sps:$4 sm:$0xff]   ;;  %s8358_s8 = smov [#allocation17]  }
  0xab   :  { %v7366_v23 = vld [vmem:[#allocation8 + $0x44] ss:$16 sps:$4 sm:$0xff]   ;;  %v7364_v24 = vld [vmem:[#allocation8 + $0x40] ss:$16 sps:$4 sm:$0xff]   ;;  %s6364_s24 = sshll.u32 %s8358_s8, 4  ;;  %s6365_s24 = int_to_ptr.vmem [resolvable:$true] %s6364_s24 }
  0xac   :  { %v7369_v25 = vld [vmem:[#allocation8 + $0x64] ss:$16 sps:$4 sm:$0xff]   ;;  %v7367_v26 = vld [vmem:[#allocation8 + $0x60] ss:$16 sps:$4 sm:$0xff]   ;;  %s8306_s26 = scalar_lea.vmem %s6365_s24, 896  ;;  %p8311_p3 = scmp.lt.s32.totalorder %s6365_s24, %s6365_s24 }
  0xad   :  { %270 = vmatpush1.bf16.msra.mxu0 %v7342_v6  ;;  %v7372_v27 = vld [vmem:[#allocation8 + $0x84] ss:$16 sps:$4 sm:$0xff]   ;;  %v7370_v28 = vld [vmem:[#allocation8 + $0x80] ss:$16 sps:$4 sm:$0xff]   ;;  %p8307_p2 = scmp.ne.s32.totalorder %s6365_s24, %s8306_s26  ;;  %p8312_p4 = scmp.lt.s32.totalorder %s8306_s26, %s8306_s26 }
  0xae   :  { %271 = vmatprep.subr.bf16.mxu0 %v7343_v7  ;;  %v7375_v29 = vld [vmem:[#allocation8 + $0xa4] ss:$16 sps:$4 sm:$0xff]   ;;  %v7373_v30 = vld [vmem:[#allocation8 + $0xa0] ss:$16 sps:$4 sm:$0xff]  }
  0xaf   :  { %v7378_v31 = vld [vmem:[#allocation8 + $0xc4] ss:$16 sps:$4 sm:$0xff]   ;;  %v7376_v32 = vld [vmem:[#allocation8 + $0xc0] ss:$16 sps:$4 sm:$0xff]   ;;  %p8313_p5 = por %p8312_p4, %p8311_p3 }
  0xb0   :  { %v7381_v33 = vld [vmem:[#allocation8 + $0xe4] ss:$16 sps:$4 sm:$0xff]   ;;  %v7379_v34 = vld [vmem:[#allocation8 + $0xe0] ss:$16 sps:$4 sm:$0xff]  }
  0xb1   :  { %272 = vmatpush1.bf16.msra.mxu0 %v7345_v8  ;;  %v7384_v35 = vld [vmem:[#allocation8 + $0x104] ss:$16 sps:$4 sm:$0xff]   ;;  %v7382_v36 = vld [vmem:[#allocation8 + $0x100] ss:$16 sps:$4 sm:$0xff]   ;;  %p8314_p6 = pnand %p8313_p5, %p8307_p2 }
  0xb2   :  { %273 = vmatprep.subr.bf16.mxu0 %v7346_v9  ;;  %v7387_v37 = vld [vmem:[#allocation8 + $0x124] ss:$16 sps:$4 sm:$0xff]   ;;  %v7385_v38 = vld [vmem:[#allocation8 + $0x120] ss:$16 sps:$4 sm:$0xff]  }
  0xb3   :  { %v7390_v39 = vld [vmem:[#allocation8 + $0x144] ss:$16 sps:$4 sm:$0xff]   ;;  %v7388_v40 = vld [vmem:[#allocation8 + $0x140] ss:$16 sps:$4 sm:$0xff]  }
  0xb4   :  { %v7393_v41 = vld [vmem:[#allocation8 + $0x164] ss:$16 sps:$4 sm:$0xff]   ;;  %v7391_v42 = vld [vmem:[#allocation8 + $0x160] ss:$16 sps:$4 sm:$0xff]  }
  0xb5   :  { %274 = vmatpush1.bf16.msra.mxu0 %v7348_v10  ;;  %v7396_v43 = vld [vmem:[#allocation8 + $0x184] ss:$16 sps:$4 sm:$0xff]   ;;  %v7394_v44 = vld [vmem:[#allocation8 + $0x180] ss:$16 sps:$4 sm:$0xff]  }
  0xb6   :  { %275 = vmatprep.subr.bf16.mxu0 %v7349_v11  ;;  %v7399_v45 = vld [vmem:[#allocation8 + $0x1a4] ss:$16 sps:$4 sm:$0xff]   ;;  %v7397_v46 = vld [vmem:[#allocation8 + $0x1a0] ss:$16 sps:$4 sm:$0xff]  }
  0xb7   :  { %v7402_v47 = vld [vmem:[#allocation8 + $0x1c4] ss:$16 sps:$4 sm:$0xff]   ;;  %v7400_v48 = vld [vmem:[#allocation8 + $0x1c0] ss:$16 sps:$4 sm:$0xff]  }
  0xb8   :  { %v7405_v49 = vld [vmem:[#allocation8 + $0x1e4] ss:$16 sps:$4 sm:$0xff]   ;;  %v7403_v50 = vld [vmem:[#allocation8 + $0x1e0] ss:$16 sps:$4 sm:$0xff]  }
  0xb9   :  { %276 = vmatpush1.bf16.msra.mxu0 %v7351_v12  ;;  %v831_v52 = vld [vmem:[#allocation11] sm:$0xff] }
  0xba   :  { %277 = vmatprep.subr.bf16.mxu0 %v7352_v13  ;;  %v835_v53 = vld [vmem:[#allocation11 + $0x20] sm:$0xff] }
  0xbb   :  { %v6458_v54 = vcombine.high %v831_v52, %v835_v53  ;;  %v6457_v55 = vcombine.low %v831_v52, %v835_v53  ;;  %v839_v56 = vld [vmem:[#allocation11 + $0x40] sm:$0xff] }
  0xbc   :  { %v843_v57 = vld [vmem:[#allocation11 + $0x60] sm:$0xff] }
  0xbd   :  { %278 = vmatpush1.bf16.msra.mxu0 %v7354_v14  ;;  %v6466_v58 = vcombine.high %v839_v56, %v843_v57  ;;  %2448 = vmatprep.subr.bf16.mxu1 %v6458_v54  ;;  %v6465_v59 = vcombine.low %v839_v56, %v843_v57  ;;  %v847_v60 = vld [vmem:[#allocation11 + $0x80] sm:$0xff] }
  0xbe   :  { %279 = vmatprep.subr.bf16.mxu0 %v7355_v15  ;;  %2449 = vmatpush1.bf16.msra.mxu1 %v6457_v55  ;;  %v851_v61 = vld [vmem:[#allocation11 + $0xa0] sm:$0xff] }
  0xbf   :  { %2450 = vmatprep.subr.bf16.mxu1 %v6466_v58  ;;  %v6474_v62 = vcombine.high %v847_v60, %v851_v61  ;;  %v6473_v63 = vcombine.low %v847_v60, %v851_v61  ;;  %v855_v0 = vld [vmem:[#allocation11 + $0xc0] sm:$0xff] }
  0xc0   :  { %v859_v1 = vld [vmem:[#allocation11 + $0xe0] sm:$0xff] }
  0xc1   :  { %280 = vmatpush1.bf16.msra.mxu0 %v7357_v16  ;;  %v6482_v2 = vcombine.high %v855_v0, %v859_v1  ;;  %v6481_v3 = vcombine.low %v855_v0, %v859_v1  ;;  %v863_v4 = vld [vmem:[#allocation11 + $0x100] sm:$0xff] }
  0xc2   :  { %737 = vmatprep.subr.bf16.mxu0 %v7360_v18  ;;  %2451 = vmatpush1.bf16.msra.mxu1 %v6465_v59  ;;  %v867_v5 = vld [vmem:[#allocation11 + $0x120] sm:$0xff] }
  0xc3   :  { %2452 = vmatprep.subr.bf16.mxu1 %v6474_v62  ;;  %v6490_v6 = vcombine.high %v863_v4, %v867_v5  ;;  %v6489_v7 = vcombine.low %v863_v4, %v867_v5  ;;  %v871_v8 = vld [vmem:[#allocation11 + $0x140] sm:$0xff]  ;;  %v7414_v5 = vld [vmem:[#allocation8 + $0x4c] ss:$16 sps:$4 sm:$0xff]  }
  0xc4   :  { %298 = vmatmul.mubr.bf16.vlgmr.msra.gmra.mrb[0].mxu0 %v163_v20  ;;  %v875_v9 = vld [vmem:[#allocation11 + $0x160] sm:$0xff] }
  0xc5   :  { %738 = vmatpush1.bf16.msra.mxu0 %v7358_v19  ;;  %v6498_v10 = vcombine.high %v871_v8, %v875_v9  ;;  %v6497_v11 = vcombine.low %v871_v8, %v875_v9  ;;  %v879_v12 = vld [vmem:[#allocation11 + $0x180] sm:$0xff]  ;;  %v7420_v9 = vld [vmem:[#allocation8 + $0x8c] ss:$16 sps:$4 sm:$0xff]  }
  0xc6   :  { %739 = vmatprep.subr.bf16.mxu0 %v7363_v21  ;;  %2453 = vmatpush1.bf16.msra.mxu1 %v6473_v63  ;;  %v883_v13 = vld [vmem:[#allocation11 + $0x1a0] sm:$0xff] }
  0xc7   :  { %2454 = vmatprep.subr.bf16.mxu1 %v6482_v2  ;;  %v6506_v14 = vcombine.high %v879_v12, %v883_v13  ;;  %v6505_v15 = vcombine.low %v879_v12, %v883_v13  ;;  %v887_v16 = vld [vmem:[#allocation11 + $0x1c0] sm:$0xff]  ;;  %v7426_v13 = vld [vmem:[#allocation8 + $0xcc] ss:$16 sps:$4 sm:$0xff]  }
  0xc8   :  { %v891_v17 = vld [vmem:[#allocation11 + $0x1e0] sm:$0xff] }
  0xc9   :  { %740 = vmatpush1.bf16.msra.mxu0 %v7361_v22  ;;  %v6514_v18 = vcombine.high %v887_v16, %v891_v17  ;;  %v6513_v19 = vcombine.low %v887_v16, %v891_v17  ;;  %v895_v20 = vld [vmem:[#allocation11 + $0x200] sm:$0xff]  ;;  %v7432_v17 = vld [vmem:[#allocation8 + $0x10c] ss:$16 sps:$4 sm:$0xff]  }
  0xca   :  { %741 = vmatprep.subr.bf16.mxu0 %v7366_v23  ;;  %2455 = vmatpush1.bf16.msra.mxu1 %v6481_v3  ;;  %v899_v21 = vld [vmem:[#allocation11 + $0x220] sm:$0xff]  ;;  %v7411_v3 = vld [vmem:[#allocation8 + $0x2c] ss:$16 sps:$4 sm:$0xff]  }
  0xcb   :  { %2456 = vmatprep.subr.bf16.mxu1 %v6490_v6  ;;  %v6522_v22 = vcombine.high %v895_v20, %v899_v21  ;;  %v6521_v23 = vcombine.low %v895_v20, %v899_v21  ;;  %v7406_v1 = vld [vmem:[#allocation8 + $0x8] ss:$16 sps:$4 sm:$0xff]   ;;  %v7438_v21 = vld [vmem:[#allocation8 + $0x14c] ss:$16 sps:$4 sm:$0xff]  }
  0xcc   :  { %v7409_v4 = vld [vmem:[#allocation8 + $0x28] ss:$16 sps:$4 sm:$0xff]  }
  0xcd   :  { %742 = vmatpush1.bf16.msra.mxu0 %v7364_v24  ;;  %v903_v24 = vld [vmem:[#allocation11 + $0x240] sm:$0xff] }
  0xce   :  { %743 = vmatprep.subr.bf16.mxu0 %v7369_v25  ;;  %2457 = vmatpush1.bf16.msra.mxu1 %v6489_v7  ;;  %v907_v25 = vld [vmem:[#allocation11 + $0x260] sm:$0xff]  ;;  %v7417_v7 = vld [vmem:[#allocation8 + $0x6c] ss:$16 sps:$4 sm:$0xff]  }
  0xcf   :  { %2458 = vmatprep.subr.bf16.mxu1 %v6498_v10  ;;  %v7412_v6 = vld [vmem:[#allocation8 + $0x48] ss:$16 sps:$4 sm:$0xff]  }
  0xd0   :  { %v7415_v8 = vld [vmem:[#allocation8 + $0x68] ss:$16 sps:$4 sm:$0xff]  }
  0xd1   :  { %744 = vmatpush1.bf16.msra.mxu0 %v7367_v26  ;;  %v6530_v26 = vcombine.high %v903_v24, %v907_v25  ;;  %v7418_v10 = vld [vmem:[#allocation8 + $0x88] ss:$16 sps:$4 sm:$0xff]  }
  0xd2   :  { %745 = vmatprep.subr.bf16.mxu0 %v7372_v27  ;;  %2459 = vmatpush1.bf16.msra.mxu1 %v6497_v11  ;;  %v167_v27 = vlaneseq  ;;  %v7423_v11 = vld [vmem:[#allocation8 + $0xac] ss:$16 sps:$4 sm:$0xff]   ;;  %v7421_v12 = vld [vmem:[#allocation8 + $0xa8] ss:$16 sps:$4 sm:$0xff]  }
  0xd3   :  { %2460 = vmatprep.subr.bf16.mxu1 %v6506_v14  ;;  %v7424_v14 = vld [vmem:[#allocation8 + $0xc8] ss:$16 sps:$4 sm:$0xff]  }
  0xd4   :  { %v7427_v16 = vld [vmem:[#allocation8 + $0xe8] ss:$16 sps:$4 sm:$0xff]  }
  0xd5   :  { %746 = vmatpush1.bf16.msra.mxu0 %v7370_v28  ;;  %v6529_v28 = vcombine.low %v903_v24, %v907_v25  ;;  %v7433_v20 = vld [vmem:[#allocation8 + $0x128] ss:$16 sps:$4 sm:$0xff]   ;;  %v7444_v25 = vld [vmem:[#allocation8 + $0x18c] ss:$16 sps:$4 sm:$0xff]  }
  0xd6   :  { %747 = vmatprep.subr.bf16.mxu0 %v7375_v29  ;;  %2461 = vmatpush1.bf16.msra.mxu1 %v6505_v15  ;;  %v911_v29 = vld [vmem:[#allocation11 + $0x280] sm:$0xff]  ;;  %v7429_v15 = vld [vmem:[#allocation8 + $0xec] ss:$16 sps:$4 sm:$0xff]  }
  0xd7   :  { %2462 = vmatprep.subr.bf16.mxu1 %v6514_v18  ;;  %v7430_v18 = vld [vmem:[#allocation8 + $0x108] ss:$16 sps:$4 sm:$0xff]  }
  0xd8   :  { %v7439_v24 = vld [vmem:[#allocation8 + $0x168] ss:$16 sps:$4 sm:$0xff]  }
  0xd9   :  { %748 = vmatpush1.bf16.msra.mxu0 %v7373_v30  ;;  %v915_v30 = vld [vmem:[#allocation11 + $0x2a0] sm:$0xff] }
  0xda   :  { %749 = vmatprep.subr.bf16.mxu0 %v7378_v31  ;;  %2463 = vmatpush1.bf16.msra.mxu1 %v6513_v19  ;;  %v164_v31 = vld [vmem:[#allocation7] sm:$0x3] }
  0xdb   :  { %2464 = vmatprep.subr.bf16.mxu1 %v6522_v22  ;;  %v7435_v19 = vld [vmem:[#allocation8 + $0x12c] ss:$16 sps:$4 sm:$0xff]   ;;  %v7436_v22 = vld [vmem:[#allocation8 + $0x148] ss:$16 sps:$4 sm:$0xff]  }
  0xdd   :  { %750 = vmatpush1.bf16.msra.mxu0 %v7376_v32  ;;  %v6538_v32 = vcombine.high %v911_v29, %v915_v30 }
  0xde   :  { %751 = vmatprep.subr.bf16.mxu0 %v7381_v33  ;;  %2465 = vmatpush1.bf16.msra.mxu1 %v6521_v23  ;;  %v8517_v33 = vshrl.u32 %v167_v27, 7  ;;  %v7441_v23 = vld [vmem:[#allocation8 + $0x16c] ss:$16 sps:$4 sm:$0xff]  }
  0xdf   :  { %2466 = vmatprep.subr.bf16.mxu1 %v6530_v26  ;;  %v7442_v26 = vld [vmem:[#allocation8 + $0x188] ss:$16 sps:$4 sm:$0xff]   ;;  %v7447_v27 = vld [vmem:[#allocation8 + $0x1ac] ss:$16 sps:$4 sm:$0xff]  }
  0xe1   :  { %752 = vmatpush1.bf16.msra.mxu0 %v7379_v34  ;;  %v6537_v34 = vcombine.low %v911_v29, %v915_v30  ;;  %v7450_v29 = vld [vmem:[#allocation8 + $0x1cc] ss:$16 sps:$4 sm:$0xff]   ;;  %v7448_v30 = vld [vmem:[#allocation8 + $0x1c8] ss:$16 sps:$4 sm:$0xff]  }
  0xe2   :  { %753 = vmatprep.subr.bf16.mxu0 %v7384_v35  ;;  %2467 = vmatpush1.bf16.msra.mxu1 %v6529_v28  ;;  %v919_v35 = vld [vmem:[#allocation11 + $0x2c0] sm:$0xff] }
  0xe3   :  { %2468 = vmatprep.subr.bf16.mxu1 %v6538_v32  ;;  %v7445_v28 = vld [vmem:[#allocation8 + $0x1a8] ss:$16 sps:$4 sm:$0xff]   ;;  %v832_v32 = vld [vmem:[#allocation11 + $0x8] sm:$0xff] }
  0xe5   :  { %754 = vmatpush1.bf16.msra.mxu0 %v7382_v36  ;;  %v923_v36 = vld [vmem:[#allocation11 + $0x2e0] sm:$0xff] }
  0xe6   :  { %755 = vmatprep.subr.bf16.mxu0 %v7387_v37  ;;  %v6546_v37 = vcombine.high %v919_v35, %v923_v36  ;;  %2469 = vmatpush1.bf16.msra.mxu1 %v6537_v34  ;;  %v836_v34 = vld [vmem:[#allocation11 + $0x28] sm:$0xff] }
  0xe8   :  { %2470 = vmatprep.subr.bf16.mxu1 %v6546_v37  ;;  %v840_v37 = vld [vmem:[#allocation11 + $0x48] sm:$0xff] }
  0xe9   :  { %756 = vmatpush1.bf16.msra.mxu0 %v7385_v38  ;;  %v165_v38 = vunpack.c.l.bf16 %v164_v31  ;;  %v7453_v31 = vld [vmem:[#allocation8 + $0x1ec] ss:$16 sps:$4 sm:$0xff]  }
  0xea   :  { %757 = vmatprep.subr.bf16.mxu0 %v7390_v39  ;;  %v8520_v39 = vsub.s32 0, %v8517_v33 }
  0xed   :  { %758 = vmatpush1.bf16.msra.mxu0 %v7388_v40  ;;  %v8523_v40 = vsub.s32 2, %v8517_v33 }
  0xee   :  { %759 = vmatprep.subr.bf16.mxu0 %v7393_v41  ;;  %v6545_v41 = vcombine.low %v919_v35, %v923_v36  ;;  %v7451_v35 = vld [vmem:[#allocation8 + $0x1e8] ss:$16 sps:$4 sm:$0xff]   ;;  %v6460_v36 = vcombine.high %v832_v32, %v836_v34 }
  0xf0   :  { %2471 = vmatpush1.bf16.msra.mxu1 %v6545_v41  ;;  %v6459_v41 = vcombine.low %v832_v32, %v836_v34 }
  0xf1   :  { %760 = vmatpush1.bf16.msra.mxu0 %v7391_v42  ;;  %v927_v42 = vld [vmem:[#allocation11 + $0x300] sm:$0xff] }
  0xf2   :  { %761 = vmatprep.subr.bf16.mxu0 %v7396_v43  ;;  %v931_v43 = vld [vmem:[#allocation11 + $0x320] sm:$0xff] }
  0xf5   :  { %762 = vmatpush1.bf16.msra.mxu0 %v7394_v44  ;;  %v6554_v44 = vcombine.high %v927_v42, %v931_v43 }
  0xf6   :  { %763 = vmatprep.subr.bf16.mxu0 %v7399_v45  ;;  %v170_v45 = vrot.slane %v165_v38, %v8520_v39 }
  0xf7   :  { %2472 = vmatprep.subr.bf16.mxu1 %v6554_v44  ;;  %v852_v44 = vld [vmem:[#allocation11 + $0xa8] sm:$0xff] }
  0xf9   :  { %764 = vmatpush1.bf16.msra.mxu0 %v7397_v46  ;;  %v174_v46 = vrot.slane %v165_v38, %v8523_v40  ;;  %v844_v38 = vld [vmem:[#allocation11 + $0x68] sm:$0xff] }
  0xfa   :  { %765 = vmatprep.subr.bf16.mxu0 %v7402_v47  ;;  %v6553_v47 = vcombine.low %v927_v42, %v931_v43  ;;  %v6468_v42 = vcombine.high %v840_v37, %v844_v38  ;;  %v848_v43 = vld [vmem:[#allocation11 + $0x88] sm:$0xff] }
  0xfb   :  { %v184_v52 = vrot.slane %v174_v46, %v8520_v39  ;;  %v6476_v46 = vcombine.high %v848_v43, %v852_v44 }
  0xfc   :  { %2473 = vmatpush1.bf16.msra.mxu1 %v6553_v47  ;;  %v856_v47 = vld [vmem:[#allocation11 + $0xc8] sm:$0xff] }
  0xfd   :  { %766 = vmatpush1.bf16.msra.mxu0 %v7400_v48  ;;  %v935_v48 = vld [vmem:[#allocation11 + $0x340] sm:$0xff] }
  0xfe   :  { %767 = vmatprep.subr.bf16.mxu0 %v7405_v49  ;;  %v939_v49 = vld [vmem:[#allocation11 + $0x360] sm:$0xff] }
  0xff   :  { %v6561_v53 = vcombine.low %v935_v48, %v939_v49 }
 0x101   :  { %768 = vmatpush1.bf16.msra.mxu0 %v7403_v50  ;;  %v6562_v50 = vcombine.high %v935_v48, %v939_v49  ;;  %v860_v48 = vld [vmem:[#allocation11 + $0xe8] sm:$0xff]  ;;  %v6475_v49 = vcombine.low %v848_v43, %v852_v44 }
 0x102   :  { %778 = vmatprep.subr.bf16.mxu0 %v7408_v51  ;;  %v180_v51 = vrot.slane %v170_v45, %v8520_v39  ;;  %v6467_v45 = vcombine.low %v840_v37, %v844_v38 }
 0x103   :  { %2474 = vmatprep.subr.bf16.mxu1 %v6562_v50  ;;  %v6484_v50 = vcombine.high %v856_v47, %v860_v48 }
 0x104   :  { %2475 = vmatpush1.bf16.msra.mxu1 %v6561_v53  ;;  %v6483_v53 = vcombine.low %v856_v47, %v860_v48 }
 0x197   :  { %v299_v54 = vpop.f32.mrb[0].mxu0 }
 0x198   :  { %v300_v55 = vadd.f32 %v299_v54, %v180_v51  ;;  %v301_v56 = vpop.f32.mrb[1].mxu0  ;;  %v864_v51 = vld [vmem:[#allocation11 + $0x108] sm:$0xff] }
 0x199   :  { %v302_v57 = vadd.f32 %v301_v56, %v184_v52  ;;  %v303_v58 = vpop.f32.mrb[2].mxu0  ;;  %v868_v52 = vld [vmem:[#allocation11 + $0x128] sm:$0xff] }
 0x19a   :  { %vm306_vm0 = vcmp.gt.f32.partialorder %v300_v55, 0.0  ;;  %v308_v59 = vmul.f32 0.2, %v300_v55  ;;  %v304_v60 = vpop.f32.mrb[3].mxu0  ;;  %v6492_v54 = vcombine.high %v864_v51, %v868_v52  ;;  %v876_v56 = vld [vmem:[#allocation11 + $0x168] sm:$0xff] }
 0x19b   :  { %vm307_vm1 = vcmp.gt.f32.partialorder %v302_v57, 0.0  ;;  %v309_v61 = vmul.f32 0.2, %v302_v57  ;;  %v884_v60 = vld [vmem:[#allocation11 + $0x1a8] sm:$0xff] }
 0x19c   :  { %v310_v62 = vsel %vm306_vm0, %v300_v55, %v308_v59  ;;  %v872_v55 = vld [vmem:[#allocation11 + $0x148] sm:$0xff] }
 0x19d   :  { %v311_v63 = vsel %vm307_vm1, %v302_v57, %v309_v61  ;;  %v8529_v2 = vpack.c.bf16 %v310_v62, %v310_v62  ;;  %v6491_v57 = vcombine.low %v864_v51, %v868_v52  ;;  %v6500_v58 = vcombine.high %v872_v55, %v876_v56  ;;  %v880_v59 = vld [vmem:[#allocation11 + $0x188] sm:$0xff] }
 0x19e   :  { %v377_v0 = vpack.c.bf16 %v311_v63, %v311_v63  ;;  %v6499_v61 = vcombine.low %v872_v55, %v876_v56  ;;  %v6508_v62 = vcombine.high %v880_v59, %v884_v60  ;;  %v943_v63 = vld [vmem:[#allocation11 + $0x380] sm:$0xff]  ;;  %v378_v55 = vld [vmem:[#allocation10] sm:$0xf] }
 0x19f   :  { %v8549_v56 = vunpack.c.l.bf16 %v378_v55 }
 0x1a0   :  { %769 = vmatprep.mubr.bf16.mxu0 %v377_v0 }
 0x1a1   :  { %770 = vmatmul.mubr.bf16.vlgmr.msra.gmra.mrb[4].mxu0 %v8529_v2 }
 0x1a2   :  { %779 = vmatpush1.bf16.msra.mxu0 %v7406_v1  ;;  %810 = vmatprep.mubr.bf16.mxu0 %v377_v0  ;;  %v947_v0 = vld [vmem:[#allocation11 + $0x3a0] sm:$0xff]  ;;  %v888_v1 = vld [vmem:[#allocation11 + $0x1c8] sm:$0xff] }
 0x1a3   :  { %780 = vmatprep.subr.bf16.mxu0 %v7411_v3  ;;  %v6570_v3 = vcombine.high %v943_v63, %v947_v0 }
 0x1a5   :  { %2476 = vmatprep.subr.bf16.mxu1 %v6570_v3 }
 0x1a6   :  { %781 = vmatpush1.bf16.msra.mxu0 %v7409_v4  ;;  %v6569_v4 = vcombine.low %v943_v63, %v947_v0 }
 0x1a7   :  { %782 = vmatprep.subr.bf16.mxu0 %v7414_v5  ;;  %v6507_v5 = vcombine.low %v880_v59, %v884_v60 }
 0x1a8   :  { %2477 = vmatpush1.bf16.msra.mxu1 %v6569_v4 }
 0x1aa   :  { %783 = vmatpush1.bf16.msra.mxu0 %v7412_v6 }
 0x1ab   :  { %784 = vmatprep.subr.bf16.mxu0 %v7417_v7  ;;  %v951_v7 = vld [vmem:[#allocation11 + $0x3c0] sm:$0xff] }
 0x1ae   :  { %785 = vmatpush1.bf16.msra.mxu0 %v7415_v8  ;;  %v955_v8 = vld [vmem:[#allocation11 + $0x3e0] sm:$0xff] }
 0x1af   :  { %786 = vmatprep.subr.bf16.mxu0 %v7420_v9  ;;  %v896_v9 = vld [vmem:[#allocation11 + $0x208] sm:$0xff] }
 0x1b2   :  { %787 = vmatpush1.bf16.msra.mxu0 %v7418_v10  ;;  %v900_v10 = vld [vmem:[#allocation11 + $0x228] sm:$0xff] }
 0x1b3   :  { %788 = vmatprep.subr.bf16.mxu0 %v7423_v11  ;;  %v6578_v11 = vcombine.high %v951_v7, %v955_v8 }
 0x1b5   :  { %2478 = vmatprep.subr.bf16.mxu1 %v6578_v11 }
 0x1b6   :  { %789 = vmatpush1.bf16.msra.mxu0 %v7421_v12  ;;  %v6577_v12 = vcombine.low %v951_v7, %v955_v8  ;;  %v971_v7 = vld [vmem:[#allocation11 + $0x460] sm:$0xff]  ;;  %v968_v8 = vld [vmem:[#allocation11 + $0x448] sm:$0xff] }
 0x1b7   :  { %790 = vmatprep.subr.bf16.mxu0 %v7426_v13 }
 0x1b8   :  { %2479 = vmatpush1.bf16.msra.mxu1 %v6577_v12 }
 0x1ba   :  { %791 = vmatpush1.bf16.msra.mxu0 %v7424_v14  ;;  %v6524_v14 = vcombine.high %v896_v9, %v900_v10 }
 0x1bb   :  { %792 = vmatprep.subr.bf16.mxu0 %v7429_v15  ;;  %v8533_v15 = vld [vmem:[#allocation11 + $0x400] sm:$0xff] }
 0x1be   :  { %793 = vmatpush1.bf16.msra.mxu0 %v7427_v16  ;;  %v8535_v16 = vld [vmem:[#allocation11 + $0x420] sm:$0xff] }
 0x1bf   :  { %794 = vmatprep.subr.bf16.mxu0 %v7432_v17  ;;  %v8537_v17 = vld [vmem:[#allocation11 + $0x408] sm:$0xff] }
 0x1c2   :  { %795 = vmatpush1.bf16.msra.mxu0 %v7430_v18  ;;  %v904_v18 = vld [vmem:[#allocation11 + $0x248] sm:$0xff] }
 0x1c3   :  { %796 = vmatprep.subr.bf16.mxu0 %v7435_v19  ;;  %v908_v19 = vld [vmem:[#allocation11 + $0x268] sm:$0xff] }
 0x1c6   :  { %797 = vmatpush1.bf16.msra.mxu0 %v7433_v20  ;;  %v6586_v20 = vcombine.high %v8533_v15, %v8535_v16 }
 0x1c7   :  { %798 = vmatprep.subr.bf16.mxu0 %v7438_v21  ;;  %v8541_v21 = vld [vmem:[#allocation11 + $0x428] sm:$0xff] }
 0x1c8   :  { %2489 = vmatprep.subr.bf16.mxu1 %v6586_v20  ;;  %v976_v20 = vld [vmem:[#allocation11 + $0x488] sm:$0xff] }
 0x1ca   :  { %799 = vmatpush1.bf16.msra.mxu0 %v7436_v22  ;;  %v6585_v22 = vcombine.low %v8533_v15, %v8535_v16 }
 0x1cb   :  { %800 = vmatprep.subr.bf16.mxu0 %v7441_v23  ;;  %v6587_v23 = vcombine.low %v8537_v17, %v8541_v21 }
 0x1ce   :  { %801 = vmatpush1.bf16.msra.mxu0 %v7439_v24  ;;  %v6523_v24 = vcombine.low %v896_v9, %v900_v10  ;;  %v972_v9 = vld [vmem:[#allocation11 + $0x468] sm:$0xff] }
 0x1cf   :  { %802 = vmatprep.subr.bf16.mxu0 %v7444_v25  ;;  %v6532_v25 = vcombine.high %v904_v18, %v908_v19 }
 0x1d2   :  { %803 = vmatpush1.bf16.msra.mxu0 %v7442_v26  ;;  %v912_v26 = vld [vmem:[#allocation11 + $0x288] sm:$0xff] }
 0x1d3   :  { %804 = vmatprep.subr.bf16.mxu0 %v7447_v27  ;;  %v916_v27 = vld [vmem:[#allocation11 + $0x2a8] sm:$0xff] }
 0x1d4   :  { %v6539_v32 = vcombine.low %v912_v26, %v916_v27 }
 0x1d6   :  { %805 = vmatpush1.bf16.msra.mxu0 %v7445_v28  ;;  %v6531_v28 = vcombine.low %v904_v18, %v908_v19  ;;  %v975_v18 = vld [vmem:[#allocation11 + $0x480] sm:$0xff] }
 0x1d7   :  { %806 = vmatprep.subr.bf16.mxu0 %v7450_v29  ;;  %v6540_v29 = vcombine.high %v912_v26, %v916_v27  ;;  %v979_v19 = vld [vmem:[#allocation11 + $0x4a0] sm:$0xff]  ;;  %v6595_v26 = vcombine.low %v968_v8, %v972_v9 }
 0x1d8   :  { %v6602_v27 = vcombine.high %v975_v18, %v979_v19 }
 0x1da   :  { %807 = vmatpush1.bf16.msra.mxu0 %v7448_v30  ;;  %v920_v30 = vld [vmem:[#allocation11 + $0x2c8] sm:$0xff] }
 0x1db   :  { %808 = vmatprep.subr.bf16.mxu0 %v7453_v31  ;;  %v924_v31 = vld [vmem:[#allocation11 + $0x2e8] sm:$0xff] }
 0x1dc   :  { %v6548_v34 = vcombine.high %v920_v30, %v924_v31  ;;  %v6547_v37 = vcombine.low %v920_v30, %v924_v31  ;;  %v987_v30 = vld [vmem:[#allocation11 + $0x4e0] sm:$0xff]  ;;  %v984_v31 = vld [vmem:[#allocation11 + $0x4c8] sm:$0xff] }
 0x1de   :  { %809 = vmatpush1.bf16.msra.mxu0 %v7451_v35  ;;  %v928_v35 = vld [vmem:[#allocation11 + $0x308] sm:$0xff] }
 0x1df   :  { %2530 = vmatprep.subr.bf16.mxu0 %v6460_v36  ;;  %v932_v36 = vld [vmem:[#allocation11 + $0x328] sm:$0xff] }
 0x1e0   :  { %v6556_v38 = vcombine.high %v928_v35, %v932_v36  ;;  %v6555_v43 = vcombine.low %v928_v35, %v932_v36 }
 0x1e1   :  { %811 = vmatmul.mubr.bf16.vlgmr.msra.gmra.mrb[8].mxu0 %v8529_v2  ;;  %v892_v2 = vld [vmem:[#allocation11 + $0x1e8] sm:$0xff] }
 0x1e2   :  { %2531 = vmatpush1.bf16.msra.mxu0 %v6459_v41  ;;  %v6516_v6 = vcombine.high %v888_v1, %v892_v2  ;;  %v6515_v13 = vcombine.low %v888_v1, %v892_v2  ;;  %v936_v41 = vld [vmem:[#allocation11 + $0x348] sm:$0xff] }
 0x1e3   :  { %2532 = vmatprep.subr.bf16.mxu0 %v6468_v42  ;;  %v940_v42 = vld [vmem:[#allocation11 + $0x368] sm:$0xff] }
 0x1e4   :  { %v6564_v44 = vcombine.high %v936_v41, %v940_v42  ;;  %v6563_v47 = vcombine.low %v936_v41, %v940_v42  ;;  %v999_v42 = vld [vmem:[#allocation11 + $0x540] sm:$0xff] }
 0x1e6   :  { %2533 = vmatpush1.bf16.msra.mxu0 %v6467_v45  ;;  %v944_v45 = vld [vmem:[#allocation11 + $0x388] sm:$0xff] }
 0x1e7   :  { %2534 = vmatprep.subr.bf16.mxu0 %v6476_v46  ;;  %v948_v46 = vld [vmem:[#allocation11 + $0x3a8] sm:$0xff] }
 0x1e8   :  { %v6572_v48 = vcombine.high %v944_v45, %v948_v46  ;;  %v6571_v51 = vcombine.low %v944_v45, %v948_v46  ;;  %v1004_v45 = vld [vmem:[#allocation11 + $0x568] sm:$0xff] }
 0x1ea   :  { %2535 = vmatpush1.bf16.msra.mxu0 %v6475_v49  ;;  %v952_v49 = vld [vmem:[#allocation11 + $0x3c8] sm:$0xff] }
 0x1eb   :  { %2536 = vmatprep.subr.bf16.mxu0 %v6484_v50  ;;  %v956_v50 = vld [vmem:[#allocation11 + $0x3e8] sm:$0xff] }
 0x1ec   :  { %v6580_v52 = vcombine.high %v952_v49, %v956_v50 }
 0x1ee   :  { %2537 = vmatpush1.bf16.msra.mxu0 %v6483_v53  ;;  %v6579_v53 = vcombine.low %v952_v49, %v956_v50  ;;  %v1007_v50 = vld [vmem:[#allocation11 + $0x580] sm:$0xff] }
 0x1ef   :  { %2538 = vmatprep.subr.bf16.mxu0 %v6492_v54  ;;  %v6588_v54 = vcombine.high %v8537_v17, %v8541_v21  ;;  %v991_v17 = vld [vmem:[#allocation11 + $0x500] sm:$0xff] }
 0x1f0   :  { %v995_v21 = vld [vmem:[#allocation11 + $0x520] sm:$0xff] }
 0x1f1   :  { %v6617_v46 = vcombine.low %v991_v17, %v995_v21 }
 0x1f2   :  { %2539 = vmatpush1.bf16.msra.mxu0 %v6491_v57  ;;  %v384_v57 = vrot.slane %v8549_v56, %v8520_v39 }
 0x1f3   :  { %2540 = vmatprep.subr.bf16.mxu0 %v6500_v58  ;;  %v388_v58 = vrot.slane %v8549_v56, %v8523_v40 }
 0x1f4   :  { %v404_v59 = vrot.slane %v384_v57, %v8520_v39 }
 0x1f5   :  { %v408_v60 = vrot.slane %v388_v58, %v8520_v39 }
 0x1f6   :  { %2541 = vmatpush1.bf16.msra.mxu0 %v6499_v61 }
 0x1f7   :  { %2542 = vmatprep.subr.bf16.mxu0 %v6508_v62 }
 0x1fa   :  { %2543 = vmatpush1.bf16.msra.mxu0 %v6507_v5  ;;  %v967_v5 = vld [vmem:[#allocation11 + $0x440] sm:$0xff] }
 0x1fb   :  { %2544 = vmatprep.subr.bf16.mxu0 %v6516_v6 }
 0x1fe   :  { %2545 = vmatpush1.bf16.msra.mxu0 %v6515_v13  ;;  %v6594_v13 = vcombine.high %v967_v5, %v971_v7 }
 0x1ff   :  { %2546 = vmatprep.subr.bf16.mxu0 %v6524_v14  ;;  %v6596_v14 = vcombine.high %v968_v8, %v972_v9 }
 0x202   :  { %2547 = vmatpush1.bf16.msra.mxu0 %v6523_v24  ;;  %v980_v24 = vld [vmem:[#allocation11 + $0x4a8] sm:$0xff] }
 0x203   :  { %2548 = vmatprep.subr.bf16.mxu0 %v6532_v25  ;;  %v6593_v25 = vcombine.low %v967_v5, %v971_v7  ;;  %v6603_v35 = vcombine.low %v976_v20, %v980_v24  ;;  %v1024_v5 = vld [vmem:[#allocation11 + $0x608] sm:$0xff] }
 0x206   :  { %2549 = vmatpush1.bf16.msra.mxu0 %v6531_v28  ;;  %v6604_v28 = vcombine.high %v976_v20, %v980_v24 }
 0x207   :  { %2550 = vmatprep.subr.bf16.mxu0 %v6540_v29  ;;  %v983_v29 = vld [vmem:[#allocation11 + $0x4c0] sm:$0xff] }
 0x208   :  { %v6610_v15 = vcombine.high %v983_v29, %v987_v30  ;;  %v6609_v36 = vcombine.low %v983_v29, %v987_v30  ;;  %v1040_v29 = vld [vmem:[#allocation11 + $0x688] sm:$0xff] }
 0x209   :  { %v1044_v30 = vld [vmem:[#allocation11 + $0x6a8] sm:$0xff] }
 0x20a   :  { %2551 = vmatpush1.bf16.msra.mxu0 %v6539_v32  ;;  %v988_v32 = vld [vmem:[#allocation11 + $0x4e8] sm:$0xff] }
 0x20b   :  { %2552 = vmatprep.subr.bf16.mxu0 %v6548_v34  ;;  %v6601_v34 = vcombine.low %v975_v18, %v979_v19  ;;  %v6612_v16 = vcombine.high %v984_v31, %v988_v32  ;;  %v1032_v18 = vld [vmem:[#allocation11 + $0x648] sm:$0xff] }
 0x20c   :  { %v1036_v19 = vld [vmem:[#allocation11 + $0x668] sm:$0xff] }
 0x20e   :  { %2553 = vmatpush1.bf16.msra.mxu0 %v6547_v37  ;;  %v6611_v37 = vcombine.low %v984_v31, %v988_v32  ;;  %v6659_v32 = vcombine.low %v1032_v18, %v1036_v19 }
 0x20f   :  { %2554 = vmatprep.subr.bf16.mxu0 %v6556_v38  ;;  %v6618_v38 = vcombine.high %v991_v17, %v995_v21  ;;  %v1048_v17 = vld [vmem:[#allocation11 + $0x6c8] sm:$0xff] }
 0x210   :  { %v1052_v21 = vld [vmem:[#allocation11 + $0x6e8] sm:$0xff] }
 0x212   :  { %2555 = vmatpush1.bf16.msra.mxu0 %v6555_v43  ;;  %v1003_v43 = vld [vmem:[#allocation11 + $0x560] sm:$0xff] }
 0x213   :  { %2556 = vmatprep.subr.bf16.mxu0 %v6564_v44  ;;  %v1000_v44 = vld [vmem:[#allocation11 + $0x548] sm:$0xff] }
 0x214   :  { %v6628_v49 = vcombine.high %v1000_v44, %v1004_v45  ;;  %v6627_v55 = vcombine.low %v1000_v44, %v1004_v45  ;;  %v6675_v45 = vcombine.low %v1048_v17, %v1052_v21 }
 0x216   :  { %2557 = vmatpush1.bf16.msra.mxu0 %v6563_v47 }
 0x217   :  { %2558 = vmatprep.subr.bf16.mxu0 %v6572_v48  ;;  %v6626_v48 = vcombine.high %v999_v42, %v1003_v43 }
 0x21a   :  { %2559 = vmatpush1.bf16.msra.mxu0 %v6571_v51  ;;  %v1011_v51 = vld [vmem:[#allocation11 + $0x5a0] sm:$0xff] }
 0x21b   :  { %2560 = vmatprep.subr.bf16.mxu0 %v6580_v52  ;;  %v1008_v52 = vld [vmem:[#allocation11 + $0x588] sm:$0xff]  ;;  %v6634_v57 = vcombine.high %v1007_v50, %v1011_v51 }
 0x21e   :  { %2561 = vmatpush1.bf16.msra.mxu0 %v6579_v53  ;;  %v1012_v53 = vld [vmem:[#allocation11 + $0x5a8] sm:$0xff] }
 0x21f   :  { %2571 = vmatprep.subr.bf16.mxu0 %v6588_v54  ;;  %v6625_v54 = vcombine.low %v999_v42, %v1003_v43  ;;  %v6636_v58 = vcombine.high %v1008_v52, %v1012_v53  ;;  %v1056_v42 = vld [vmem:[#allocation11 + $0x708] sm:$0xff] }
 0x220   :  { %v1060_v43 = vld [vmem:[#allocation11 + $0x728] sm:$0xff] }
 0x274   :  { %v771_v61 = vpop.f32.mrb[4].mxu0 }
 0x275   :  { %v772_v62 = vadd.f32 %v771_v61, %v404_v59  ;;  %v773_v63 = vpop.f32.mrb[5].mxu0  ;;  %v1015_v59 = vld [vmem:[#allocation11 + $0x5c0] sm:$0xff]  ;;  %v1016_v61 = vld [vmem:[#allocation11 + $0x5c8] sm:$0xff] }
 0x276   :  { %v774_v0 = vadd.f32 %v773_v63, %v408_v60  ;;  %v775_v1 = vpop.f32.mrb[6].mxu0  ;;  %v1019_v60 = vld [vmem:[#allocation11 + $0x5e0] sm:$0xff]  ;;  %v6633_v63 = vcombine.low %v1007_v50, %v1011_v51  ;;  %v1064_v50 = vld [vmem:[#allocation11 + $0x748] sm:$0xff] }
 0x277   :  { %vm819_vm2 = vcmp.gt.f32.partialorder %v772_v62, 0.0  ;;  %v823_v2 = vmul.f32 0.2, %v772_v62  ;;  %v776_v3 = vpop.f32.mrb[7].mxu0  ;;  %v6642_v1 = vcombine.high %v1015_v59, %v1019_v60  ;;  %v6641_v7 = vcombine.low %v1015_v59, %v1019_v60  ;;  %v1068_v51 = vld [vmem:[#allocation11 + $0x768] sm:$0xff]  ;;  %v1071_v59 = vld [vmem:[#allocation11 + $0x780] sm:$0xff] }
 0x278   :  { %vm820_vm3 = vcmp.gt.f32.partialorder %v774_v0, 0.0  ;;  %v824_v4 = vmul.f32 0.2, %v774_v0  ;;  %v1023_v3 = vld [vmem:[#allocation11 + $0x600] sm:$0xff] }
 0x279   :  { %v827_v6 = vsel %vm819_vm2, %v772_v62, %v823_v2  ;;  %v1020_v62 = vld [vmem:[#allocation11 + $0x5e8] sm:$0xff] }
 0x27a   :  { %v828_v10 = vsel %vm820_vm3, %v774_v0, %v824_v4  ;;  %v8559_v12 = vpack.c.bf16 %v827_v6, %v827_v6  ;;  %v6635_v0 = vcombine.low %v1008_v52, %v1012_v53  ;;  %v6644_v2 = vcombine.high %v1016_v61, %v1020_v62  ;;  %v1027_v4 = vld [vmem:[#allocation11 + $0x620] sm:$0xff]  ;;  %v1028_v6 = vld [vmem:[#allocation11 + $0x628] sm:$0xff] }
 0x27b   :  { %v8557_v11 = vpack.c.bf16 %v828_v10, %v828_v10  ;;  %v6643_v8 = vcombine.low %v1016_v61, %v1020_v62  ;;  %v6650_v9 = vcombine.high %v1023_v3, %v1027_v4  ;;  %v6652_v10 = vcombine.high %v1024_v5, %v1028_v6  ;;  %v1075_v61 = vld [vmem:[#allocation11 + $0x7a0] sm:$0xff]  ;;  %v1072_v62 = vld [vmem:[#allocation11 + $0x788] sm:$0xff] }
 0x27c   :  { %v6649_v20 = vcombine.low %v1023_v3, %v1027_v4  ;;  %v6651_v24 = vcombine.low %v1024_v5, %v1028_v6  ;;  %v8572_v52 = vsub.s32 4, %v8517_v33  ;;  %v8575_v53 = vsub.s32 6, %v8517_v33  ;;  %v1079_v4 = vld [vmem:[#allocation11 + $0x7c0] sm:$0xff] }
 0x27d   :  { %2480 = vmatprep.mubr.bf16.mxu1 %v8557_v11  ;;  %2562 = vmatprep.mubr.bf16.mxu0 %v8557_v11  ;;  %v1083_v6 = vld [vmem:[#allocation11 + $0x7e0] sm:$0xff] }
 0x27e   :  { %2481 = vmatmul.mubr.bf16.vlgmr.msra.gmra.mrb[0].mxu1 %v8559_v12  ;;  %2563 = vmatmul.mubr.bf16.vlgmr.msra.gmra.mrb[12].mxu0 %v8559_v12  ;;  %v392_v60 = vrot.slane %v8549_v56, %v8572_v52 }
 0x27f   :  { %2490 = vmatpush1.bf16.msra.mxu1 %v6585_v22  ;;  %2572 = vmatpush1.bf16.msra.mxu0 %v6587_v23  ;;  %v992_v22 = vld [vmem:[#allocation11 + $0x508] sm:$0xff] }
 0x280   :  { %2491 = vmatprep.subr.bf16.mxu1 %v6594_v13  ;;  %2573 = vmatprep.subr.bf16.mxu0 %v6596_v14  ;;  %v996_v23 = vld [vmem:[#allocation11 + $0x528] sm:$0xff]  ;;  %v1031_v13 = vld [vmem:[#allocation11 + $0x640] sm:$0xff]  ;;  %v412_v5 = vrot.slane %v392_v60, %v8520_v39  ;;  %v862_v60 = vld [vmem:[#allocation11 + $0xf8] sm:$0xff] }
 0x281   :  { %v6620_v41 = vcombine.high %v992_v22, %v996_v23  ;;  %v6619_v47 = vcombine.low %v992_v22, %v996_v23  ;;  %v1035_v14 = vld [vmem:[#allocation11 + $0x660] sm:$0xff]  ;;  %v6667_v23 = vcombine.low %v1040_v29, %v1044_v30 }
 0x282   :  { %v6657_v31 = vcombine.low %v1031_v13, %v1035_v14 }
 0x283   :  { %2492 = vmatpush1.bf16.msra.mxu1 %v6593_v25  ;;  %2574 = vmatpush1.bf16.msra.mxu0 %v6595_v26  ;;  %v6658_v25 = vcombine.high %v1031_v13, %v1035_v14  ;;  %v6660_v26 = vcombine.high %v1032_v18, %v1036_v19  ;;  %v6706_v14 = vcombine.high %v1079_v4, %v1083_v6  ;;  %v833_v19 = vld [vmem:[#allocation11 + $0x10] sm:$0xff] }
 0x284   :  { %2493 = vmatprep.subr.bf16.mxu1 %v6602_v27  ;;  %2575 = vmatprep.subr.bf16.mxu0 %v6604_v28  ;;  %v1039_v27 = vld [vmem:[#allocation11 + $0x680] sm:$0xff] }
 0x285   :  { %v1043_v28 = vld [vmem:[#allocation11 + $0x6a0] sm:$0xff] }
 0x286   :  { %v6665_v22 = vcombine.low %v1039_v27, %v1043_v28 }
 0x287   :  { %2494 = vmatpush1.bf16.msra.mxu1 %v6601_v34  ;;  %2576 = vmatpush1.bf16.msra.mxu0 %v6603_v35  ;;  %v6666_v34 = vcombine.high %v1039_v27, %v1043_v28  ;;  %v6668_v35 = vcombine.high %v1040_v29, %v1044_v30  ;;  %v838_v27 = vld [vmem:[#allocation11 + $0x38] sm:$0xff] }
 0x288   :  { %2495 = vmatprep.subr.bf16.mxu1 %v6610_v15  ;;  %2577 = vmatprep.subr.bf16.mxu0 %v6612_v16  ;;  %v1047_v15 = vld [vmem:[#allocation11 + $0x6c0] sm:$0xff] }
 0x289   :  { %v1051_v16 = vld [vmem:[#allocation11 + $0x6e0] sm:$0xff] }
 0x28a   :  { %v6673_v44 = vcombine.low %v1047_v15, %v1051_v16 }
 0x28b   :  { %2496 = vmatpush1.bf16.msra.mxu1 %v6609_v36  ;;  %2578 = vmatpush1.bf16.msra.mxu0 %v6611_v37  ;;  %v6674_v36 = vcombine.high %v1047_v15, %v1051_v16  ;;  %v6676_v37 = vcombine.high %v1048_v17, %v1052_v21  ;;  %v841_v21 = vld [vmem:[#allocation11 + $0x50] sm:$0xff] }
 0x28c   :  { %2497 = vmatprep.subr.bf16.mxu1 %v6618_v38  ;;  %2579 = vmatprep.subr.bf16.mxu0 %v6620_v41  ;;  %v1055_v38 = vld [vmem:[#allocation11 + $0x700] sm:$0xff] }
 0x28d   :  { %v1059_v41 = vld [vmem:[#allocation11 + $0x720] sm:$0xff] }
 0x28f   :  { %2498 = vmatpush1.bf16.msra.mxu1 %v6617_v46  ;;  %2580 = vmatpush1.bf16.msra.mxu0 %v6619_v47  ;;  %v6682_v46 = vcombine.high %v1055_v38, %v1059_v41  ;;  %v6684_v47 = vcombine.high %v1056_v42, %v1060_v43 }
 0x290   :  { %2499 = vmatprep.subr.bf16.mxu1 %v6626_v48  ;;  %2581 = vmatprep.subr.bf16.mxu0 %v6628_v49  ;;  %v1063_v48 = vld [vmem:[#allocation11 + $0x740] sm:$0xff] }
 0x291   :  { %v1067_v49 = vld [vmem:[#allocation11 + $0x760] sm:$0xff] }
 0x292   :  { %v6689_v33 = vcombine.low %v1063_v48, %v1067_v49 }
 0x293   :  { %2500 = vmatpush1.bf16.msra.mxu1 %v6625_v54  ;;  %2582 = vmatpush1.bf16.msra.mxu0 %v6627_v55  ;;  %v6681_v54 = vcombine.low %v1055_v38, %v1059_v41  ;;  %v6683_v55 = vcombine.low %v1056_v42, %v1060_v43 }
 0x294   :  { %2501 = vmatprep.subr.bf16.mxu1 %v6634_v57  ;;  %2583 = vmatprep.subr.bf16.mxu0 %v6636_v58  ;;  %v6690_v57 = vcombine.high %v1063_v48, %v1067_v49  ;;  %v6692_v58 = vcombine.high %v1064_v50, %v1068_v51  ;;  %v850_v48 = vld [vmem:[#allocation11 + $0x98] sm:$0xff] }
 0x295   :  { %v854_v49 = vld [vmem:[#allocation11 + $0xb8] sm:$0xff] }
 0x297   :  { %2502 = vmatpush1.bf16.msra.mxu1 %v6633_v63  ;;  %2584 = vmatpush1.bf16.msra.mxu0 %v6635_v0  ;;  %v1076_v63 = vld [vmem:[#allocation11 + $0x7a8] sm:$0xff]  ;;  %v396_v0 = vrot.slane %v8549_v56, %v8575_v53 }
 0x298   :  { %2503 = vmatprep.subr.bf16.mxu1 %v6642_v1  ;;  %2585 = vmatprep.subr.bf16.mxu0 %v6644_v2  ;;  %v6691_v1 = vcombine.low %v1064_v50, %v1068_v51  ;;  %v6698_v2 = vcombine.high %v1071_v59, %v1075_v61  ;;  %v6700_v3 = vcombine.high %v1072_v62, %v1076_v63 }
 0x299   :  { %v6699_v56 = vcombine.low %v1072_v62, %v1076_v63  ;;  %v6479_v62 = vcombine.low %v850_v48, %v854_v49 }
 0x29b   :  { %2504 = vmatpush1.bf16.msra.mxu1 %v6641_v7  ;;  %2586 = vmatpush1.bf16.msra.mxu0 %v6643_v8  ;;  %v1080_v7 = vld [vmem:[#allocation11 + $0x7c8] sm:$0xff] }
 0x29c   :  { %2505 = vmatprep.subr.bf16.mxu1 %v6650_v9  ;;  %2587 = vmatprep.subr.bf16.mxu0 %v6652_v10  ;;  %v1084_v8 = vld [vmem:[#allocation11 + $0x7e8] sm:$0xff]  ;;  %v416_v9 = vrot.slane %v396_v0, %v8520_v39  ;;  %v6697_v10 = vcombine.low %v1071_v59, %v1075_v61  ;;  %v858_v59 = vld [vmem:[#allocation11 + $0xd8] sm:$0xff] }
 0x29d   :  { %v6708_v18 = vcombine.high %v1080_v7, %v1084_v8  ;;  %v6488_v0 = vcombine.high %v858_v59, %v862_v60 }
 0x29f   :  { %2506 = vmatpush1.bf16.msra.mxu1 %v6649_v20  ;;  %2588 = vmatpush1.bf16.msra.mxu0 %v6651_v24 }
 0x2a0   :  { %2507 = vmatprep.subr.bf16.mxu1 %v6658_v25  ;;  %2589 = vmatprep.subr.bf16.mxu0 %v6660_v26  ;;  %v837_v25 = vld [vmem:[#allocation11 + $0x30] sm:$0xff]  ;;  %v834_v26 = vld [vmem:[#allocation11 + $0x18] sm:$0xff] }
 0x2a1   :  { %v6462_v15 = vcombine.high %v833_v19, %v837_v25  ;;  %v6464_v16 = vcombine.high %v834_v26, %v838_v27  ;;  %v6461_v41 = vcombine.low %v833_v19, %v837_v25  ;;  %v6463_v43 = vcombine.low %v834_v26, %v838_v27  ;;  %v881_v19 = vld [vmem:[#allocation11 + $0x190] sm:$0xff]  ;;  %v886_v25 = vld [vmem:[#allocation11 + $0x1b8] sm:$0xff] }
 0x2a3   :  { %2508 = vmatpush1.bf16.msra.mxu1 %v6657_v31  ;;  %2590 = vmatpush1.bf16.msra.mxu0 %v6659_v32  ;;  %v6705_v32 = vcombine.low %v1079_v4, %v1083_v6  ;;  %v6487_v4 = vcombine.low %v858_v59, %v862_v60  ;;  %v918_v59 = vld [vmem:[#allocation11 + $0x2b8] sm:$0xff] }
 0x2a4   :  { %2509 = vmatprep.subr.bf16.mxu1 %v6666_v34  ;;  %2591 = vmatprep.subr.bf16.mxu0 %v6668_v35  ;;  %v6707_v34 = vcombine.low %v1080_v7, %v1084_v8  ;;  %v873_v7 = vld [vmem:[#allocation11 + $0x150] sm:$0xff] }
 0x2a5   :  { %v877_v8 = vld [vmem:[#allocation11 + $0x170] sm:$0xff] }
 0x2a6   :  { %v6501_v26 = vcombine.low %v873_v7, %v877_v8 }
 0x2a7   :  { %2510 = vmatpush1.bf16.msra.mxu1 %v6665_v22  ;;  %2592 = vmatpush1.bf16.msra.mxu0 %v6667_v23  ;;  %v845_v23 = vld [vmem:[#allocation11 + $0x70] sm:$0xff] }
 0x2a8   :  { %2511 = vmatprep.subr.bf16.mxu1 %v6674_v36  ;;  %2593 = vmatprep.subr.bf16.mxu0 %v6676_v37  ;;  %v842_v36 = vld [vmem:[#allocation11 + $0x58] sm:$0xff]  ;;  %v6469_v50 = vcombine.low %v841_v21, %v845_v23 }
 0x2a9   :  { %v846_v37 = vld [vmem:[#allocation11 + $0x78] sm:$0xff] }
 0x2aa   :  { %v6471_v51 = vcombine.low %v842_v36, %v846_v37 }
 0x2ab   :  { %2512 = vmatpush1.bf16.msra.mxu1 %v6673_v44  ;;  %2594 = vmatpush1.bf16.msra.mxu0 %v6675_v45  ;;  %v6470_v44 = vcombine.high %v841_v21, %v845_v23  ;;  %v6472_v45 = vcombine.high %v842_v36, %v846_v37  ;;  %v897_v21 = vld [vmem:[#allocation11 + $0x210] sm:$0xff]  ;;  %v898_v23 = vld [vmem:[#allocation11 + $0x218] sm:$0xff] }
 0x2ac   :  { %2513 = vmatprep.subr.bf16.mxu1 %v6682_v46  ;;  %2595 = vmatprep.subr.bf16.mxu0 %v6684_v47  ;;  %v849_v46 = vld [vmem:[#allocation11 + $0x90] sm:$0xff]  ;;  %v902_v36 = vld [vmem:[#allocation11 + $0x238] sm:$0xff] }
 0x2ad   :  { %v853_v47 = vld [vmem:[#allocation11 + $0xb0] sm:$0xff] }
 0x2ae   :  { %v6477_v61 = vcombine.low %v849_v46, %v853_v47 }
 0x2af   :  { %2514 = vmatpush1.bf16.msra.mxu1 %v6681_v54  ;;  %2596 = vmatpush1.bf16.msra.mxu0 %v6683_v55  ;;  %v6478_v54 = vcombine.high %v849_v46, %v853_v47  ;;  %v6480_v55 = vcombine.high %v850_v48, %v854_v49  ;;  %v909_v46 = vld [vmem:[#allocation11 + $0x270] sm:$0xff]  ;;  %v906_v47 = vld [vmem:[#allocation11 + $0x258] sm:$0xff] }
 0x2b0   :  { %2515 = vmatprep.subr.bf16.mxu1 %v6690_v57  ;;  %2597 = vmatprep.subr.bf16.mxu0 %v6692_v58  ;;  %v857_v57 = vld [vmem:[#allocation11 + $0xd0] sm:$0xff]  ;;  %v910_v48 = vld [vmem:[#allocation11 + $0x278] sm:$0xff] }
 0x2b1   :  { %v861_v58 = vld [vmem:[#allocation11 + $0xf0] sm:$0xff] }
 0x2b2   :  { %v6486_v63 = vcombine.high %v857_v57, %v861_v58 }
 0x2b3   :  { %2516 = vmatpush1.bf16.msra.mxu1 %v6689_v33  ;;  %2598 = vmatpush1.bf16.msra.mxu0 %v6691_v1  ;;  %v865_v33 = vld [vmem:[#allocation11 + $0x110] sm:$0xff] }
 0x2b4   :  { %v812_v13 = vpop.f32.mrb[8].mxu0  ;;  %2517 = vmatprep.subr.bf16.mxu1 %v6698_v2  ;;  %2599 = vmatprep.subr.bf16.mxu0 %v6700_v3  ;;  %v869_v1 = vld [vmem:[#allocation11 + $0x130] sm:$0xff]  ;;  %v870_v2 = vld [vmem:[#allocation11 + $0x138] sm:$0xff]  ;;  %v6485_v3 = vcombine.low %v857_v57, %v861_v58 }
 0x2b5   :  { %v813_v20 = vadd.f32 %v812_v13, %v412_v5  ;;  %v814_v24 = vpop.f32.mrb[9].mxu0  ;;  %v6494_v5 = vcombine.high %v865_v33, %v869_v1  ;;  %v917_v57 = vld [vmem:[#allocation11 + $0x2b0] sm:$0xff]  ;;  %v914_v58 = vld [vmem:[#allocation11 + $0x298] sm:$0xff] }
 0x2b6   :  { %v815_v28 = vadd.f32 %v814_v24, %v416_v9  ;;  %v816_v29 = vpop.f32.mrb[10].mxu0  ;;  %v874_v9 = vld [vmem:[#allocation11 + $0x158] sm:$0xff] }
 0x2b7   :  { %vm821_vm4 = vcmp.gt.f32.partialorder %v813_v20, 0.0  ;;  %v825_v30 = vmul.f32 0.2, %v813_v20  ;;  %v817_v31 = vpop.f32.mrb[11].mxu0  ;;  %2518 = vmatpush1.bf16.msra.mxu1 %v6697_v10  ;;  %2600 = vmatpush1.bf16.msra.mxu0 %v6699_v56  ;;  %v878_v10 = vld [vmem:[#allocation11 + $0x178] sm:$0xff]  ;;  %v6493_v56 = vcombine.low %v865_v33, %v869_v1  ;;  %v925_v33 = vld [vmem:[#allocation11 + $0x2f0] sm:$0xff] }
 0x2b8   :  { %vm822_vm5 = vcmp.gt.f32.partialorder %v815_v28, 0.0  ;;  %v826_v35 = vmul.f32 0.2, %v815_v28  ;;  %2519 = vmatprep.subr.bf16.mxu1 %v6706_v14  ;;  %2601 = vmatprep.subr.bf16.mxu0 %v6708_v18  ;;  %v6502_v14 = vcombine.high %v873_v7, %v877_v8  ;;  %v6504_v18 = vcombine.high %v874_v9, %v878_v10  ;;  %v882_v24 = vld [vmem:[#allocation11 + $0x198] sm:$0xff]  ;;  %v893_v31 = vld [vmem:[#allocation11 + $0x1f0] sm:$0xff] }
 0x2b9   :  { %v829_v17 = vsel %vm821_vm4, %v813_v20, %v825_v30  ;;  %v885_v20 = vld [vmem:[#allocation11 + $0x1b0] sm:$0xff]  ;;  %v6503_v27 = vcombine.low %v874_v9, %v878_v10  ;;  %v6512_v29 = vcombine.high %v882_v24, %v886_v25  ;;  %v922_v1 = vld [vmem:[#allocation11 + $0x2d8] sm:$0xff] }
 0x2ba   :  { %v830_v22 = vsel %vm822_vm5, %v815_v28, %v826_v35  ;;  %v8585_v42 = vpack.c.bf16 %v829_v17, %v829_v17  ;;  %v6510_v28 = vcombine.high %v881_v19, %v885_v20  ;;  %v889_v30 = vld [vmem:[#allocation11 + $0x1d0] sm:$0xff]  ;;  %v6509_v35 = vcombine.low %v881_v19, %v885_v20  ;;  %v930_v8 = vld [vmem:[#allocation11 + $0x318] sm:$0xff] }
 0x2bb   :  { %v8583_v38 = vpack.c.bf16 %v830_v22, %v830_v22  ;;  %2520 = vmatpush1.bf16.msra.mxu1 %v6705_v32  ;;  %2602 = vmatpush1.bf16.msra.mxu0 %v6707_v34  ;;  %v890_v32 = vld [vmem:[#allocation11 + $0x1d8] sm:$0xff]  ;;  %v901_v22 = vld [vmem:[#allocation11 + $0x230] sm:$0xff]  ;;  %v6517_v37 = vcombine.low %v889_v30, %v893_v31 }
 0x2bc   :  { %2612 = vmatprep.subr.bf16.mxu1 %v6462_v15  ;;  %2694 = vmatprep.subr.bf16.mxu0 %v6464_v16  ;;  %v894_v34 = vld [vmem:[#allocation11 + $0x1f8] sm:$0xff]  ;;  %v6511_v15 = vcombine.low %v882_v24, %v886_v25  ;;  %v6518_v16 = vcombine.high %v889_v30, %v893_v31  ;;  %v6525_v49 = vcombine.low %v897_v21, %v901_v22  ;;  %v933_v7 = vld [vmem:[#allocation11 + $0x330] sm:$0xff] }
 0x2bd   :  { %2521 = vmatprep.mubr.bf16.mxu1 %v8583_v38  ;;  %2603 = vmatprep.mubr.bf16.mxu0 %v8583_v38  ;;  %v6520_v17 = vcombine.high %v890_v32, %v894_v34  ;;  %v934_v9 = vld [vmem:[#allocation11 + $0x338] sm:$0xff]  ;;  %v941_v19 = vld [vmem:[#allocation11 + $0x370] sm:$0xff] }
 0x2be   :  { %2522 = vmatmul.mubr.bf16.vlgmr.msra.gmra.mrb[0].mxu1 %v8585_v42  ;;  %2604 = vmatmul.mubr.bf16.vlgmr.msra.gmra.mrb[12].mxu0 %v8585_v42  ;;  %v938_v20 = vld [vmem:[#allocation11 + $0x358] sm:$0xff]  ;;  %v949_v30 = vld [vmem:[#allocation11 + $0x3b0] sm:$0xff] }
 0x2bf   :  { %2613 = vmatpush1.bf16.msra.mxu1 %v6461_v41  ;;  %2644 = vmatprep.mubr.bf16.mxu1 %v8557_v11  ;;  %v6519_v41 = vcombine.low %v890_v32, %v894_v34  ;;  %v942_v24 = vld [vmem:[#allocation11 + $0x378] sm:$0xff] }
 0x2c0   :  { %2695 = vmatpush1.bf16.msra.mxu0 %v6463_v43  ;;  %2726 = vmatprep.mubr.bf16.mxu0 %v8557_v11  ;;  %v866_v11 = vld [vmem:[#allocation11 + $0x118] sm:$0xff]  ;;  %v6526_v43 = vcombine.high %v897_v21, %v901_v22  ;;  %v957_v21 = vld [vmem:[#allocation11 + $0x3f0] sm:$0xff] }
 0x2c1   :  { %2614 = vmatprep.subr.bf16.mxu1 %v6470_v44  ;;  %2696 = vmatprep.subr.bf16.mxu0 %v6472_v45  ;;  %v6496_v6 = vcombine.high %v866_v11, %v870_v2  ;;  %v6495_v13 = vcombine.low %v866_v11, %v870_v2  ;;  %v6528_v44 = vcombine.high %v898_v23, %v902_v36  ;;  %v905_v45 = vld [vmem:[#allocation11 + $0x250] sm:$0xff]  ;;  %v926_v11 = vld [vmem:[#allocation11 + $0x2f8] sm:$0xff] }
 0x2c2   :  { %v6533_v60 = vcombine.low %v905_v45, %v909_v46  ;;  %v946_v31 = vld [vmem:[#allocation11 + $0x398] sm:$0xff] }
 0x2c3   :  { %2615 = vmatpush1.bf16.msra.mxu1 %v6469_v50  ;;  %v6527_v50 = vcombine.low %v898_v23, %v902_v36  ;;  %v950_v32 = vld [vmem:[#allocation11 + $0x3b8] sm:$0xff] }
 0x2c4   :  { %2697 = vmatpush1.bf16.msra.mxu0 %v6471_v51  ;;  %2616 = vmatprep.subr.bf16.mxu1 %v6478_v54  ;;  %v6534_v51 = vcombine.high %v905_v45, %v909_v46  ;;  %v6536_v54 = vcombine.high %v906_v47, %v910_v48  ;;  %v954_v22 = vld [vmem:[#allocation11 + $0x3d8] sm:$0xff]  ;;  %v965_v45 = vld [vmem:[#allocation11 + $0x430] sm:$0xff] }
 0x2c5   :  { %2698 = vmatprep.subr.bf16.mxu0 %v6480_v55  ;;  %v913_v55 = vld [vmem:[#allocation11 + $0x290] sm:$0xff]  ;;  %v958_v23 = vld [vmem:[#allocation11 + $0x3f8] sm:$0xff] }
 0x2c6   :  { %v6541_v2 = vcombine.low %v913_v55, %v917_v57  ;;  %v962_v46 = vld [vmem:[#allocation11 + $0x418] sm:$0xff] }
 0x2c7   :  { %2617 = vmatpush1.bf16.msra.mxu1 %v6477_v61  ;;  %v6535_v61 = vcombine.low %v906_v47, %v910_v48  ;;  %v966_v47 = vld [vmem:[#allocation11 + $0x438] sm:$0xff] }
 0x2c8   :  { %2699 = vmatpush1.bf16.msra.mxu0 %v6479_v62  ;;  %2618 = vmatprep.subr.bf16.mxu1 %v6486_v63  ;;  %v6542_v62 = vcombine.high %v913_v55, %v917_v57  ;;  %v6544_v63 = vcombine.high %v914_v58, %v918_v59  ;;  %v973_v55 = vld [vmem:[#allocation11 + $0x470] sm:$0xff] }
 0x2c9   :  { %2700 = vmatprep.subr.bf16.mxu0 %v6488_v0  ;;  %v921_v0 = vld [vmem:[#allocation11 + $0x2d0] sm:$0xff] }
 0x2ca   :  { %v6549_v10 = vcombine.low %v921_v0, %v925_v33 }
 0x2cb   :  { %2619 = vmatpush1.bf16.msra.mxu1 %v6485_v3  ;;  %v6543_v3 = vcombine.low %v914_v58, %v918_v59  ;;  %v970_v58 = vld [vmem:[#allocation11 + $0x458] sm:$0xff] }
 0x2cc   :  { %2701 = vmatpush1.bf16.msra.mxu0 %v6487_v4  ;;  %2620 = vmatprep.subr.bf16.mxu1 %v6494_v5  ;;  %v6550_v4 = vcombine.high %v921_v0, %v925_v33  ;;  %v6552_v5 = vcombine.high %v922_v1, %v926_v11  ;;  %v974_v59 = vld [vmem:[#allocation11 + $0x478] sm:$0xff] }
 0x2cd   :  { %2702 = vmatprep.subr.bf16.mxu0 %v6496_v6  ;;  %v929_v6 = vld [vmem:[#allocation11 + $0x310] sm:$0xff]  ;;  %v6600_v0 = vcombine.high %v970_v58, %v974_v59  ;;  %v978_v33 = vld [vmem:[#allocation11 + $0x498] sm:$0xff] }
 0x2ce   :  { %v6557_v25 = vcombine.low %v929_v6, %v933_v7 }
 0x2cf   :  { %2621 = vmatpush1.bf16.msra.mxu1 %v6493_v56  ;;  %v6551_v56 = vcombine.low %v922_v1, %v926_v11  ;;  %v982_v1 = vld [vmem:[#allocation11 + $0x4b8] sm:$0xff] }
 0x2d0   :  { %2703 = vmatpush1.bf16.msra.mxu0 %v6495_v13  ;;  %2622 = vmatprep.subr.bf16.mxu1 %v6502_v14  ;;  %v6558_v13 = vcombine.high %v929_v6, %v933_v7  ;;  %v6560_v14 = vcombine.high %v930_v8, %v934_v9  ;;  %v989_v6 = vld [vmem:[#allocation11 + $0x4f0] sm:$0xff]  ;;  %v986_v7 = vld [vmem:[#allocation11 + $0x4d8] sm:$0xff] }
 0x2d1   :  { %2704 = vmatprep.subr.bf16.mxu0 %v6504_v18  ;;  %v937_v18 = vld [vmem:[#allocation11 + $0x350] sm:$0xff] }
 0x2d2   :  { %v6565_v34 = vcombine.low %v937_v18, %v941_v19 }
 0x2d3   :  { %2623 = vmatpush1.bf16.msra.mxu1 %v6501_v26  ;;  %v6559_v26 = vcombine.low %v930_v8, %v934_v9  ;;  %v990_v8 = vld [vmem:[#allocation11 + $0x4f8] sm:$0xff] }
 0x2d4   :  { %2705 = vmatpush1.bf16.msra.mxu0 %v6503_v27  ;;  %2624 = vmatprep.subr.bf16.mxu1 %v6510_v28  ;;  %v6566_v27 = vcombine.high %v937_v18, %v941_v19  ;;  %v6568_v28 = vcombine.high %v938_v20, %v942_v24  ;;  %v994_v18 = vld [vmem:[#allocation11 + $0x518] sm:$0xff] }
 0x2d5   :  { %2706 = vmatprep.subr.bf16.mxu0 %v6512_v29  ;;  %v945_v29 = vld [vmem:[#allocation11 + $0x390] sm:$0xff]  ;;  %v998_v19 = vld [vmem:[#allocation11 + $0x538] sm:$0xff] }
 0x2d6   :  { %v6573_v36 = vcombine.low %v945_v29, %v949_v30 }
 0x2d7   :  { %2625 = vmatpush1.bf16.msra.mxu1 %v6509_v35  ;;  %v6567_v35 = vcombine.low %v938_v20, %v942_v24  ;;  %v6615_v20 = vcombine.low %v986_v7, %v990_v8 }
 0x2d8   :  { %2707 = vmatpush1.bf16.msra.mxu0 %v6511_v15  ;;  %2626 = vmatprep.subr.bf16.mxu1 %v6518_v16  ;;  %v6574_v15 = vcombine.high %v945_v29, %v949_v30  ;;  %v6576_v16 = vcombine.high %v946_v31, %v950_v32  ;;  %v1006_v29 = vld [vmem:[#allocation11 + $0x578] sm:$0xff] }
 0x2d9   :  { %2708 = vmatprep.subr.bf16.mxu0 %v6520_v17  ;;  %v953_v17 = vld [vmem:[#allocation11 + $0x3d0] sm:$0xff] }
 0x2da   :  { %v6581_v48 = vcombine.low %v953_v17, %v957_v21 }
 0x2db   :  { %2627 = vmatpush1.bf16.msra.mxu1 %v6517_v37  ;;  %v6575_v37 = vcombine.low %v946_v31, %v950_v32  ;;  %v6623_v31 = vcombine.low %v994_v18, %v998_v19 }
 0x2dc   :  { %2709 = vmatpush1.bf16.msra.mxu0 %v6519_v41  ;;  %2628 = vmatprep.subr.bf16.mxu1 %v6526_v43  ;;  %v6582_v41 = vcombine.high %v953_v17, %v957_v21  ;;  %v6584_v43 = vcombine.high %v954_v22, %v958_v23  ;;  %v1014_v17 = vld [vmem:[#allocation11 + $0x5b8] sm:$0xff] }
 0x2dd   :  { %2710 = vmatprep.subr.bf16.mxu0 %v6528_v44  ;;  %v961_v44 = vld [vmem:[#allocation11 + $0x410] sm:$0xff] }
 0x2de   :  { %v6589_v57 = vcombine.low %v961_v44, %v965_v45 }
 0x2df   :  { %2629 = vmatpush1.bf16.msra.mxu1 %v6525_v49  ;;  %v6583_v49 = vcombine.low %v954_v22, %v958_v23 }
 0x2e0   :  { %2711 = vmatpush1.bf16.msra.mxu0 %v6527_v50  ;;  %2630 = vmatprep.subr.bf16.mxu1 %v6534_v51  ;;  %v6590_v50 = vcombine.high %v961_v44, %v965_v45  ;;  %v6592_v51 = vcombine.high %v962_v46, %v966_v47  ;;  %v1022_v44 = vld [vmem:[#allocation11 + $0x5f8] sm:$0xff] }
 0x2e1   :  { %2712 = vmatprep.subr.bf16.mxu0 %v6536_v54  ;;  %v969_v54 = vld [vmem:[#allocation11 + $0x450] sm:$0xff] }
 0x2e2   :  { %v6597_v11 = vcombine.low %v969_v54, %v973_v55 }
 0x2e3   :  { %2631 = vmatpush1.bf16.msra.mxu1 %v6533_v60  ;;  %v6591_v60 = vcombine.low %v962_v46, %v966_v47 }
 0x2e4   :  { %2713 = vmatpush1.bf16.msra.mxu0 %v6535_v61  ;;  %2632 = vmatprep.subr.bf16.mxu1 %v6542_v62  ;;  %v6598_v61 = vcombine.high %v969_v54, %v973_v55  ;;  %v977_v62 = vld [vmem:[#allocation11 + $0x490] sm:$0xff]  ;;  %v1030_v54 = vld [vmem:[#allocation11 + $0x638] sm:$0xff] }
 0x2e5   :  { %2714 = vmatprep.subr.bf16.mxu0 %v6544_v63  ;;  %v981_v63 = vld [vmem:[#allocation11 + $0x4b0] sm:$0xff] }
 0x2e6   :  { %v6605_v9 = vcombine.low %v977_v62, %v981_v63 }
 0x2e7   :  { %2633 = vmatpush1.bf16.msra.mxu1 %v6541_v2  ;;  %v6599_v2 = vcombine.low %v970_v58, %v974_v59 }
 0x2e8   :  { %2715 = vmatpush1.bf16.msra.mxu0 %v6543_v3  ;;  %2634 = vmatprep.subr.bf16.mxu1 %v6550_v4  ;;  %v6606_v3 = vcombine.high %v977_v62, %v981_v63  ;;  %v6608_v4 = vcombine.high %v978_v33, %v982_v1  ;;  %v1034_v62 = vld [vmem:[#allocation11 + $0x658] sm:$0xff] }
 0x2e9   :  { %2716 = vmatprep.subr.bf16.mxu0 %v6552_v5  ;;  %v985_v5 = vld [vmem:[#allocation11 + $0x4d0] sm:$0xff]  ;;  %v1038_v63 = vld [vmem:[#allocation11 + $0x678] sm:$0xff] }
 0x2eb   :  { %2635 = vmatpush1.bf16.msra.mxu1 %v6549_v10  ;;  %v6614_v10 = vcombine.high %v985_v5, %v989_v6 }
 0x2ec   :  { %2717 = vmatpush1.bf16.msra.mxu0 %v6551_v56  ;;  %2636 = vmatprep.subr.bf16.mxu1 %v6558_v13  ;;  %v6616_v56 = vcombine.high %v986_v7, %v990_v8  ;;  %v993_v13 = vld [vmem:[#allocation11 + $0x510] sm:$0xff]  ;;  %v6663_v7 = vcombine.low %v1034_v62, %v1038_v63 }
 0x2ed   :  { %2718 = vmatprep.subr.bf16.mxu0 %v6560_v14  ;;  %v997_v14 = vld [vmem:[#allocation11 + $0x530] sm:$0xff] }
 0x2ee   :  { %v6622_v24 = vcombine.high %v993_v13, %v997_v14  ;;  %v6621_v30 = vcombine.low %v993_v13, %v997_v14  ;;  %v1054_v13 = vld [vmem:[#allocation11 + $0x6f8] sm:$0xff] }
 0x2ef   :  { %2637 = vmatpush1.bf16.msra.mxu1 %v6557_v25  ;;  %v6624_v25 = vcombine.high %v994_v18, %v998_v19 }
 0x2f0   :  { %2719 = vmatpush1.bf16.msra.mxu0 %v6559_v26  ;;  %2638 = vmatprep.subr.bf16.mxu1 %v6566_v27  ;;  %v1001_v26 = vld [vmem:[#allocation11 + $0x550] sm:$0xff] }
 0x2f1   :  { %2720 = vmatprep.subr.bf16.mxu0 %v6568_v28  ;;  %v1005_v27 = vld [vmem:[#allocation11 + $0x570] sm:$0xff]  ;;  %v1002_v28 = vld [vmem:[#allocation11 + $0x558] sm:$0xff] }
 0x2f2   :  { %v6630_v32 = vcombine.high %v1001_v26, %v1005_v27  ;;  %v6629_v21 = vcombine.low %v1001_v26, %v1005_v27  ;;  %v6631_v22 = vcombine.low %v1002_v28, %v1006_v29  ;;  %v1062_v26 = vld [vmem:[#allocation11 + $0x738] sm:$0xff] }
 0x2f3   :  { %2639 = vmatpush1.bf16.msra.mxu1 %v6565_v34  ;;  %v6632_v34 = vcombine.high %v1002_v28, %v1006_v29 }
 0x2f4   :  { %2721 = vmatpush1.bf16.msra.mxu0 %v6567_v35  ;;  %2640 = vmatprep.subr.bf16.mxu1 %v6574_v15  ;;  %v1009_v35 = vld [vmem:[#allocation11 + $0x590] sm:$0xff] }
 0x2f5   :  { %2722 = vmatprep.subr.bf16.mxu0 %v6576_v16  ;;  %v1013_v15 = vld [vmem:[#allocation11 + $0x5b0] sm:$0xff]  ;;  %v1010_v16 = vld [vmem:[#allocation11 + $0x598] sm:$0xff] }
 0x2f6   :  { %v6638_v23 = vcombine.high %v1009_v35, %v1013_v15  ;;  %v6637_v45 = vcombine.low %v1009_v35, %v1013_v15  ;;  %v6639_v46 = vcombine.low %v1010_v16, %v1014_v17  ;;  %v1070_v35 = vld [vmem:[#allocation11 + $0x778] sm:$0xff] }
 0x2f7   :  { %2641 = vmatpush1.bf16.msra.mxu1 %v6573_v36  ;;  %v6640_v36 = vcombine.high %v1010_v16, %v1014_v17 }
 0x2f8   :  { %2723 = vmatpush1.bf16.msra.mxu0 %v6575_v37  ;;  %2642 = vmatprep.subr.bf16.mxu1 %v6582_v41  ;;  %v1017_v37 = vld [vmem:[#allocation11 + $0x5d0] sm:$0xff] }
 0x2f9   :  { %2724 = vmatprep.subr.bf16.mxu0 %v6584_v43  ;;  %v1021_v41 = vld [vmem:[#allocation11 + $0x5f0] sm:$0xff]  ;;  %v1018_v43 = vld [vmem:[#allocation11 + $0x5d8] sm:$0xff] }
 0x2fa   :  { %v6646_v47 = vcombine.high %v1017_v37, %v1021_v41  ;;  %v6645_v55 = vcombine.low %v1017_v37, %v1021_v41  ;;  %v1078_v37 = vld [vmem:[#allocation11 + $0x7b8] sm:$0xff] }
 0x2fb   :  { %2643 = vmatpush1.bf16.msra.mxu1 %v6581_v48  ;;  %v6648_v48 = vcombine.high %v1018_v43, %v1022_v44 }
 0x2fc   :  { %2725 = vmatpush1.bf16.msra.mxu0 %v6583_v49  ;;  %2653 = vmatprep.subr.bf16.mxu1 %v6590_v50  ;;  %v1025_v49 = vld [vmem:[#allocation11 + $0x610] sm:$0xff] }
 0x2fd   :  { %2735 = vmatprep.subr.bf16.mxu0 %v6592_v51  ;;  %v1029_v50 = vld [vmem:[#allocation11 + $0x630] sm:$0xff]  ;;  %v1026_v51 = vld [vmem:[#allocation11 + $0x618] sm:$0xff] }
 0x2fe   :  { %2645 = vmatmul.mubr.bf16.vlgmr.msra.gmra.mrb[4].mxu1 %v8559_v12  ;;  %v6654_v58 = vcombine.high %v1025_v49, %v1029_v50  ;;  %v6656_v59 = vcombine.high %v1026_v51, %v1030_v54 }
 0x2ff   :  { %2727 = vmatmul.mubr.bf16.vlgmr.msra.gmra.mrb[16].mxu0 %v8559_v12  ;;  %2654 = vmatpush1.bf16.msra.mxu1 %v6589_v57  ;;  %v6607_v12 = vcombine.low %v978_v33, %v982_v1  ;;  %v6647_v57 = vcombine.low %v1018_v43, %v1022_v44  ;;  %v6655_v33 = vcombine.low %v1026_v51, %v1030_v54 }
 0x300   :  { %2685 = vmatprep.mubr.bf16.mxu1 %v8583_v38  ;;  %2736 = vmatpush1.bf16.msra.mxu0 %v6591_v60  ;;  %v1033_v60 = vld [vmem:[#allocation11 + $0x650] sm:$0xff] }
 0x301   :  { %2767 = vmatprep.mubr.bf16.mxu0 %v8583_v38  ;;  %2655 = vmatprep.subr.bf16.mxu1 %v6598_v61  ;;  %v6613_v38 = vcombine.low %v985_v5, %v989_v6  ;;  %v1037_v61 = vld [vmem:[#allocation11 + $0x670] sm:$0xff]  ;;  %v1046_v5 = vld [vmem:[#allocation11 + $0x6b8] sm:$0xff] }
 0x302   :  { %2737 = vmatprep.subr.bf16.mxu0 %v6600_v0  ;;  %v6653_v0 = vcombine.low %v1025_v49, %v1029_v50  ;;  %v6662_v1 = vcombine.high %v1033_v60, %v1037_v61  ;;  %v6661_v6 = vcombine.low %v1033_v60, %v1037_v61  ;;  %v1086_v49 = vld [vmem:[#allocation11 + $0x7f8] sm:$0xff]  ;;  %v7459_v60 = vld [vmem:[#allocation14 + $0xc] ss:$28 sps:$4 sm:$0xff]   ;;  %v7454_v61 = vld [vmem:[#allocation14] ss:$28 sps:$4 sm:$0xff]  }
 0x303   :  { %2656 = vmatpush1.bf16.msra.mxu1 %v6597_v11  ;;  %v6664_v11 = vcombine.high %v1034_v62, %v1038_v63  ;;  %v7457_v62 = vld [vmem:[#allocation14 + $0x8] ss:$28 sps:$4 sm:$0xff]   ;;  %v7462_v63 = vld [vmem:[#allocation14 + $0x3c] ss:$28 sps:$4 sm:$0xff]  }
 0x304   :  { %2738 = vmatpush1.bf16.msra.mxu0 %v6599_v2  ;;  %2657 = vmatprep.subr.bf16.mxu1 %v6606_v3  ;;  %v1041_v2 = vld [vmem:[#allocation11 + $0x690] sm:$0xff] }
 0x305   :  { %2739 = vmatprep.subr.bf16.mxu0 %v6608_v4  ;;  %v1045_v3 = vld [vmem:[#allocation11 + $0x6b0] sm:$0xff]  ;;  %v1042_v4 = vld [vmem:[#allocation11 + $0x698] sm:$0xff] }
 0x306   :  { %v6670_v8 = vcombine.high %v1041_v2, %v1045_v3  ;;  %v6669_v14 = vcombine.low %v1041_v2, %v1045_v3  ;;  %v6671_v18 = vcombine.low %v1042_v4, %v1046_v5  ;;  %v7471_v2 = vld [vmem:[#allocation14 + $0x7c] ss:$28 sps:$4 sm:$0xff]   ;;  %v7466_v3 = vld [vmem:[#allocation14 + $0x70] ss:$28 sps:$4 sm:$0xff]  }
 0x307   :  { %2658 = vmatpush1.bf16.msra.mxu1 %v6605_v9  ;;  %v6672_v9 = vcombine.high %v1042_v4, %v1046_v5  ;;  %v7469_v4 = vld [vmem:[#allocation14 + $0x78] ss:$28 sps:$4 sm:$0xff]   ;;  %v7474_v5 = vld [vmem:[#allocation14 + $0xac] ss:$28 sps:$4 sm:$0xff]  }
 0x308   :  { %2740 = vmatpush1.bf16.msra.mxu0 %v6607_v12  ;;  %2659 = vmatprep.subr.bf16.mxu1 %v6614_v10  ;;  %v1049_v12 = vld [vmem:[#allocation11 + $0x6d0] sm:$0xff] }
 0x309   :  { %2741 = vmatprep.subr.bf16.mxu0 %v6616_v56  ;;  %v1053_v10 = vld [vmem:[#allocation11 + $0x6f0] sm:$0xff]  ;;  %v1050_v56 = vld [vmem:[#allocation11 + $0x6d8] sm:$0xff] }
 0x30a   :  { %v6678_v19 = vcombine.high %v1049_v12, %v1053_v10  ;;  %v6677_v27 = vcombine.low %v1049_v12, %v1053_v10  ;;  %v6679_v28 = vcombine.low %v1050_v56, %v1054_v13  ;;  %v7478_v12 = vld [vmem:[#allocation14 + $0xe0] ss:$28 sps:$4 sm:$0xff]   ;;  %v7481_v10 = vld [vmem:[#allocation14 + $0xe8] ss:$28 sps:$4 sm:$0xff]  }
 0x30b   :  { %2660 = vmatpush1.bf16.msra.mxu1 %v6613_v38  ;;  %v6680_v38 = vcombine.high %v1050_v56, %v1054_v13  ;;  %v7486_v56 = vld [vmem:[#allocation14 + $0x11c] ss:$28 sps:$4 sm:$0xff]   ;;  %v7489_v13 = vld [vmem:[#allocation14 + $0x124] ss:$28 sps:$4 sm:$0xff]  }
 0x30c   :  { %2742 = vmatpush1.bf16.msra.mxu0 %v6615_v20  ;;  %2661 = vmatprep.subr.bf16.mxu1 %v6622_v24  ;;  %v1057_v20 = vld [vmem:[#allocation11 + $0x710] sm:$0xff] }
 0x30d   :  { %2743 = vmatprep.subr.bf16.mxu0 %v6624_v25  ;;  %v1061_v24 = vld [vmem:[#allocation11 + $0x730] sm:$0xff]  ;;  %v1058_v25 = vld [vmem:[#allocation11 + $0x718] sm:$0xff] }
 0x30e   :  { %v6686_v29 = vcombine.high %v1057_v20, %v1061_v24  ;;  %v6685_v15 = vcombine.low %v1057_v20, %v1061_v24  ;;  %v6687_v16 = vcombine.low %v1058_v25, %v1062_v26  ;;  %v7490_v20 = vld [vmem:[#allocation14 + $0x150] ss:$28 sps:$4 sm:$0xff]   ;;  %v7493_v24 = vld [vmem:[#allocation14 + $0x158] ss:$28 sps:$4 sm:$0xff]  }
 0x30f   :  { %2662 = vmatpush1.bf16.msra.mxu1 %v6621_v30  ;;  %v6688_v30 = vcombine.high %v1058_v25, %v1062_v26  ;;  %v7498_v25 = vld [vmem:[#allocation14 + $0x18c] ss:$28 sps:$4 sm:$0xff]   ;;  %v7501_v26 = vld [vmem:[#allocation14 + $0x194] ss:$28 sps:$4 sm:$0xff]  }
 0x310   :  { %2744 = vmatpush1.bf16.msra.mxu0 %v6623_v31  ;;  %2663 = vmatprep.subr.bf16.mxu1 %v6630_v32  ;;  %v1065_v31 = vld [vmem:[#allocation11 + $0x750] sm:$0xff] }
 0x311   :  { %2745 = vmatprep.subr.bf16.mxu0 %v6632_v34  ;;  %v1069_v32 = vld [vmem:[#allocation11 + $0x770] sm:$0xff]  ;;  %v1066_v34 = vld [vmem:[#allocation11 + $0x758] sm:$0xff] }
 0x312   :  { %v6694_v17 = vcombine.high %v1065_v31, %v1069_v32  ;;  %v6693_v41 = vcombine.low %v1065_v31, %v1069_v32  ;;  %v6695_v43 = vcombine.low %v1066_v34, %v1070_v35  ;;  %v7502_v31 = vld [vmem:[#allocation14 + $0x1c0] ss:$28 sps:$4 sm:$0xff]   ;;  %v7505_v32 = vld [vmem:[#allocation14 + $0x1c8] ss:$28 sps:$4 sm:$0xff]  }
 0x313   :  { %2664 = vmatpush1.bf16.msra.mxu1 %v6629_v21  ;;  %v6696_v21 = vcombine.high %v1066_v34, %v1070_v35  ;;  %v7510_v34 = vld [vmem:[#allocation14 + $0x1fc] ss:$28 sps:$4 sm:$0xff]   ;;  %v7513_v35 = vld [vmem:[#allocation14 + $0x204] ss:$28 sps:$4 sm:$0xff]  }
 0x314   :  { %2746 = vmatpush1.bf16.msra.mxu0 %v6631_v22  ;;  %2665 = vmatprep.subr.bf16.mxu1 %v6638_v23  ;;  %v1073_v22 = vld [vmem:[#allocation11 + $0x790] sm:$0xff] }
 0x315   :  { %2747 = vmatprep.subr.bf16.mxu0 %v6640_v36  ;;  %v1077_v23 = vld [vmem:[#allocation11 + $0x7b0] sm:$0xff]  ;;  %v1074_v36 = vld [vmem:[#allocation11 + $0x798] sm:$0xff] }
 0x316   :  { %v6702_v44 = vcombine.high %v1073_v22, %v1077_v23  ;;  %v6701_v50 = vcombine.low %v1073_v22, %v1077_v23  ;;  %v6703_v51 = vcombine.low %v1074_v36, %v1078_v37  ;;  %v7514_v22 = vld [vmem:[#allocation14 + $0x230] ss:$28 sps:$4 sm:$0xff]   ;;  %v7517_v23 = vld [vmem:[#allocation14 + $0x238] ss:$28 sps:$4 sm:$0xff]  }
 0x317   :  { %2666 = vmatpush1.bf16.msra.mxu1 %v6637_v45  ;;  %v6704_v45 = vcombine.high %v1074_v36, %v1078_v37  ;;  %v7522_v36 = vld [vmem:[#allocation14 + $0x26c] ss:$28 sps:$4 sm:$0xff]   ;;  %v7525_v37 = vld [vmem:[#allocation14 + $0x274] ss:$28 sps:$4 sm:$0xff]  }
 0x318   :  { %2748 = vmatpush1.bf16.msra.mxu0 %v6639_v46  ;;  %2667 = vmatprep.subr.bf16.mxu1 %v6646_v47  ;;  %v1081_v46 = vld [vmem:[#allocation11 + $0x7d0] sm:$0xff] }
 0x319   :  { %2749 = vmatprep.subr.bf16.mxu0 %v6648_v48  ;;  %v1085_v47 = vld [vmem:[#allocation11 + $0x7f0] sm:$0xff]  ;;  %v1082_v48 = vld [vmem:[#allocation11 + $0x7d8] sm:$0xff] }
 0x31a   :  { %v6710_v54 = vcombine.high %v1081_v46, %v1085_v47 }
 0x31b   :  { %2668 = vmatpush1.bf16.msra.mxu1 %v6645_v55  ;;  %v6712_v55 = vcombine.high %v1082_v48, %v1086_v49 }
 0x31c   :  { %2750 = vmatpush1.bf16.msra.mxu0 %v6647_v57  ;;  %2669 = vmatprep.subr.bf16.mxu1 %v6654_v58  ;;  %v6709_v57 = vcombine.low %v1081_v46, %v1085_v47  ;;  %v6711_v58 = vcombine.low %v1082_v48, %v1086_v49  ;;  %v7526_v46 = vld [vmem:[#allocation14 + $0x2a0] ss:$28 sps:$4 sm:$0xff]   ;;  %v7529_v47 = vld [vmem:[#allocation14 + $0x2a8] ss:$28 sps:$4 sm:$0xff]  }
 0x31d   :  { %2751 = vmatprep.subr.bf16.mxu0 %v6656_v59  ;;  %v7456_v59 = vld [vmem:[#allocation14 + $0x4] ss:$28 sps:$4 sm:$0xff]   ;;  %v7534_v48 = vld [vmem:[#allocation14 + $0x2dc] ss:$28 sps:$4 sm:$0xff]  }
 0x31e   :  { %v7537_v49 = vld [vmem:[#allocation14 + $0x2e4] ss:$28 sps:$4 sm:$0xff]  }
 0x31f   :  { %2670 = vmatpush1.bf16.msra.mxu1 %v6653_v0  ;;  %v7465_v0 = vld [vmem:[#allocation14 + $0x44] ss:$28 sps:$4 sm:$0xff]  }
 0x320   :  { %2752 = vmatpush1.bf16.msra.mxu0 %v6655_v33  ;;  %2671 = vmatprep.subr.bf16.mxu1 %v6662_v1  ;;  %v7460_v33 = vld [vmem:[#allocation14 + $0x38] ss:$28 sps:$4 sm:$0xff]   ;;  %v7463_v1 = vld [vmem:[#allocation14 + $0x40] ss:$28 sps:$4 sm:$0xff]  }
 0x321   :  { %2753 = vmatprep.subr.bf16.mxu0 %v6664_v11  ;;  %v7468_v11 = vld [vmem:[#allocation14 + $0x74] ss:$28 sps:$4 sm:$0xff]  }
 0x323   :  { %2672 = vmatpush1.bf16.msra.mxu1 %v6661_v6  ;;  %v7477_v6 = vld [vmem:[#allocation14 + $0xb4] ss:$28 sps:$4 sm:$0xff]  }
 0x324   :  { %2754 = vmatpush1.bf16.msra.mxu0 %v6663_v7  ;;  %2673 = vmatprep.subr.bf16.mxu1 %v6670_v8  ;;  %v7472_v7 = vld [vmem:[#allocation14 + $0xa8] ss:$28 sps:$4 sm:$0xff]  }
 0x325   :  { %2755 = vmatprep.subr.bf16.mxu0 %v6672_v9  ;;  %v7480_v8 = vld [vmem:[#allocation14 + $0xe4] ss:$28 sps:$4 sm:$0xff]   ;;  %v7483_v9 = vld [vmem:[#allocation14 + $0xec] ss:$28 sps:$4 sm:$0xff]  }
 0x327   :  { %2674 = vmatpush1.bf16.msra.mxu1 %v6669_v14  ;;  %v7484_v14 = vld [vmem:[#allocation14 + $0x118] ss:$28 sps:$4 sm:$0xff]  }
 0x328   :  { %2756 = vmatpush1.bf16.msra.mxu0 %v6671_v18  ;;  %2675 = vmatprep.subr.bf16.mxu1 %v6678_v19  ;;  %v7487_v18 = vld [vmem:[#allocation14 + $0x120] ss:$28 sps:$4 sm:$0xff]   ;;  %v7492_v19 = vld [vmem:[#allocation14 + $0x154] ss:$28 sps:$4 sm:$0xff]  }
 0x329   :  { %2757 = vmatprep.subr.bf16.mxu0 %v6680_v38  ;;  %v7495_v38 = vld [vmem:[#allocation14 + $0x15c] ss:$28 sps:$4 sm:$0xff]  }
 0x32b   :  { %2676 = vmatpush1.bf16.msra.mxu1 %v6677_v27  ;;  %v7496_v27 = vld [vmem:[#allocation14 + $0x188] ss:$28 sps:$4 sm:$0xff]  }
 0x32c   :  { %2758 = vmatpush1.bf16.msra.mxu0 %v6679_v28  ;;  %2677 = vmatprep.subr.bf16.mxu1 %v6686_v29  ;;  %v7499_v28 = vld [vmem:[#allocation14 + $0x190] ss:$28 sps:$4 sm:$0xff]   ;;  %v7504_v29 = vld [vmem:[#allocation14 + $0x1c4] ss:$28 sps:$4 sm:$0xff]  }
 0x32d   :  { %2759 = vmatprep.subr.bf16.mxu0 %v6688_v30  ;;  %v7507_v30 = vld [vmem:[#allocation14 + $0x1cc] ss:$28 sps:$4 sm:$0xff]  }
 0x32f   :  { %2678 = vmatpush1.bf16.msra.mxu1 %v6685_v15  ;;  %v7508_v15 = vld [vmem:[#allocation14 + $0x1f8] ss:$28 sps:$4 sm:$0xff]  }
 0x330   :  { %2760 = vmatpush1.bf16.msra.mxu0 %v6687_v16  ;;  %2679 = vmatprep.subr.bf16.mxu1 %v6694_v17  ;;  %v7511_v16 = vld [vmem:[#allocation14 + $0x200] ss:$28 sps:$4 sm:$0xff]   ;;  %v7516_v17 = vld [vmem:[#allocation14 + $0x234] ss:$28 sps:$4 sm:$0xff]  }
 0x331   :  { %2761 = vmatprep.subr.bf16.mxu0 %v6696_v21  ;;  %v7519_v21 = vld [vmem:[#allocation14 + $0x23c] ss:$28 sps:$4 sm:$0xff]  }
 0x333   :  { %2680 = vmatpush1.bf16.msra.mxu1 %v6693_v41  ;;  %v7520_v41 = vld [vmem:[#allocation14 + $0x268] ss:$28 sps:$4 sm:$0xff]  }
 0x334   :  { %2762 = vmatpush1.bf16.msra.mxu0 %v6695_v43  ;;  %2681 = vmatprep.subr.bf16.mxu1 %v6702_v44  ;;  %v7523_v43 = vld [vmem:[#allocation14 + $0x270] ss:$28 sps:$4 sm:$0xff]   ;;  %v7528_v44 = vld [vmem:[#allocation14 + $0x2a4] ss:$28 sps:$4 sm:$0xff]  }
 0x335   :  { %2763 = vmatprep.subr.bf16.mxu0 %v6704_v45  ;;  %v7531_v45 = vld [vmem:[#allocation14 + $0x2ac] ss:$28 sps:$4 sm:$0xff]  }
 0x337   :  { %2682 = vmatpush1.bf16.msra.mxu1 %v6701_v50  ;;  %v7532_v50 = vld [vmem:[#allocation14 + $0x2d8] ss:$28 sps:$4 sm:$0xff]  }
 0x338   :  { %2764 = vmatpush1.bf16.msra.mxu0 %v6703_v51  ;;  %2683 = vmatprep.subr.bf16.mxu1 %v6710_v54  ;;  %v7535_v51 = vld [vmem:[#allocation14 + $0x2e0] ss:$28 sps:$4 sm:$0xff]   ;;  %v7540_v54 = vld [vmem:[#allocation14 + $0x314] ss:$28 sps:$4 sm:$0xff]  }
 0x339   :  { %2765 = vmatprep.subr.bf16.mxu0 %v6712_v55  ;;  %v7543_v55 = vld [vmem:[#allocation14 + $0x31c] ss:$28 sps:$4 sm:$0xff]  }
 0x33b   :  { %2684 = vmatpush1.bf16.msra.mxu1 %v6709_v57  ;;  %v7538_v57 = vld [vmem:[#allocation14 + $0x310] ss:$28 sps:$4 sm:$0xff]  }
 0x33c   :  { %2766 = vmatpush1.bf16.msra.mxu0 %v6711_v58  ;;  %5692 = vmatprep.subr.bf16.mxu1 %v7456_v59  ;;  %v7541_v58 = vld [vmem:[#allocation14 + $0x318] ss:$28 sps:$4 sm:$0xff]   ;;  %v7546_v59 = vld [vmem:[#allocation14 + $0x34c] ss:$28 sps:$4 sm:$0xff]  }
 0x33d   :  { %5856 = vmatprep.subr.bf16.mxu0 %v7459_v60  ;;  %v7549_v60 = vld [vmem:[#allocation14 + $0x354] ss:$28 sps:$4 sm:$0xff]  }
 0x33e   :  { %2686 = vmatmul.mubr.bf16.vlgmr.msra.gmra.mrb[4].mxu1 %v8585_v42 }
 0x33f   :  { %2768 = vmatmul.mubr.bf16.vlgmr.msra.gmra.mrb[16].mxu0 %v8585_v42  ;;  %5693 = vmatpush1.bf16.msra.mxu1 %v7454_v61  ;;  %v7475_v42 = vld [vmem:[#allocation14 + $0xb0] ss:$28 sps:$4 sm:$0xff]   ;;  %v7544_v61 = vld [vmem:[#allocation14 + $0x348] ss:$28 sps:$4 sm:$0xff]  }
 0x340   :  { %5857 = vmatpush1.bf16.msra.mxu0 %v7457_v62  ;;  %5694 = vmatprep.subr.bf16.mxu1 %v7462_v63  ;;  %v7547_v62 = vld [vmem:[#allocation14 + $0x350] ss:$28 sps:$4 sm:$0xff]   ;;  %v7552_v63 = vld [vmem:[#allocation14 + $0x384] ss:$28 sps:$4 sm:$0xff]  }
 0x341   :  { %5858 = vmatprep.subr.bf16.mxu0 %v7465_v0  ;;  %v7555_v0 = vld [vmem:[#allocation14 + $0x38c] ss:$28 sps:$4 sm:$0xff]  }
 0x343   :  { %5695 = vmatpush1.bf16.msra.mxu1 %v7460_v33  ;;  %v8599_v33 = vld [vmem:[#allocation13] sm:$0xff] }
 0x344   :  { %5859 = vmatpush1.bf16.msra.mxu0 %v7463_v1  ;;  %5696 = vmatprep.subr.bf16.mxu1 %v7468_v11  ;;  %v1092_v1 = vunpack.c.l.bf16 %v8599_v33 }
 0x345   :  { %5860 = vmatprep.subr.bf16.mxu0 %v7471_v2 }
 0x346   :  { %v1099_v11 = vrot.slane %v1092_v1, %v8520_v39  ;;  %v1107_v2 = vrot.slane %v1092_v1, %v8572_v52 }
 0x347   :  { %5697 = vmatpush1.bf16.msra.mxu1 %v7466_v3  ;;  %v1103_v3 = vrot.slane %v1092_v1, %v8523_v40 }
 0x348   :  { %5861 = vmatpush1.bf16.msra.mxu0 %v7469_v4  ;;  %5698 = vmatprep.subr.bf16.mxu1 %v7474_v5  ;;  %v1111_v4 = vrot.slane %v1092_v1, %v8575_v53  ;;  %v1139_v5 = vrot.slane %v1099_v11, %v8520_v39  ;;  %v7595_v1 = vld [vmem:[#allocation14 + $0x510] ss:$28 sps:$4 sm:$0xff]   ;;  %v7600_v11 = vld [vmem:[#allocation14 + $0x544] ss:$28 sps:$4 sm:$0xff]  }
 0x349   :  { %5862 = vmatprep.subr.bf16.mxu0 %v7477_v6  ;;  %v1147_v6 = vrot.slane %v1107_v2, %v8520_v39  ;;  %v7603_v2 = vld [vmem:[#allocation14 + $0x54c] ss:$28 sps:$4 sm:$0xff]  }
 0x34b   :  { %5699 = vmatpush1.bf16.msra.mxu1 %v7472_v7  ;;  %v1143_v7 = vrot.slane %v1103_v3, %v8520_v39  ;;  %v7598_v3 = vld [vmem:[#allocation14 + $0x540] ss:$28 sps:$4 sm:$0xff]  }
 0x34c   :  { %5863 = vmatpush1.bf16.msra.mxu0 %v7475_v42  ;;  %5700 = vmatprep.subr.bf16.mxu1 %v7480_v8  ;;  %v1151_v42 = vrot.slane %v1111_v4, %v8520_v39  ;;  %v7601_v4 = vld [vmem:[#allocation14 + $0x548] ss:$28 sps:$4 sm:$0xff]  }
 0x34d   :  { %5864 = vmatprep.subr.bf16.mxu0 %v7483_v9 }
 0x34f   :  { %5701 = vmatpush1.bf16.msra.mxu1 %v7478_v12 }
 0x350   :  { %5865 = vmatpush1.bf16.msra.mxu0 %v7481_v10  ;;  %5702 = vmatprep.subr.bf16.mxu1 %v7486_v56 }
 0x351   :  { %5866 = vmatprep.subr.bf16.mxu0 %v7489_v13 }
 0x353   :  { %5703 = vmatpush1.bf16.msra.mxu1 %v7484_v14 }
 0x354   :  { %5867 = vmatpush1.bf16.msra.mxu0 %v7487_v18  ;;  %5704 = vmatprep.subr.bf16.mxu1 %v7492_v19 }
 0x355   :  { %5868 = vmatprep.subr.bf16.mxu0 %v7495_v38 }
 0x357   :  { %5705 = vmatpush1.bf16.msra.mxu1 %v7490_v20 }
 0x358   :  { %5869 = vmatpush1.bf16.msra.mxu0 %v7493_v24  ;;  %5706 = vmatprep.subr.bf16.mxu1 %v7498_v25 }
 0x359   :  { %5870 = vmatprep.subr.bf16.mxu0 %v7501_v26 }
 0x35b   :  { %5707 = vmatpush1.bf16.msra.mxu1 %v7496_v27 }
 0x35c   :  { %5871 = vmatpush1.bf16.msra.mxu0 %v7499_v28  ;;  %5708 = vmatprep.subr.bf16.mxu1 %v7504_v29 }
 0x35d   :  { %5872 = vmatprep.subr.bf16.mxu0 %v7507_v30 }
 0x35f   :  { %5709 = vmatpush1.bf16.msra.mxu1 %v7502_v31 }
 0x360   :  { %5873 = vmatpush1.bf16.msra.mxu0 %v7505_v32  ;;  %5710 = vmatprep.subr.bf16.mxu1 %v7510_v34  ;;  %v7550_v32 = vld [vmem:[#allocation14 + $0x380] ss:$28 sps:$4 sm:$0xff]   ;;  %v7553_v34 = vld [vmem:[#allocation14 + $0x388] ss:$28 sps:$4 sm:$0xff]  }
 0x361   :  { %5874 = vmatprep.subr.bf16.mxu0 %v7513_v35 }
 0x363   :  { %5711 = vmatpush1.bf16.msra.mxu1 %v7508_v15  ;;  %v7558_v15 = vld [vmem:[#allocation14 + $0x3bc] ss:$28 sps:$4 sm:$0xff]  }
 0x364   :  { %5875 = vmatpush1.bf16.msra.mxu0 %v7511_v16  ;;  %5712 = vmatprep.subr.bf16.mxu1 %v7516_v17  ;;  %v7561_v16 = vld [vmem:[#allocation14 + $0x3c4] ss:$28 sps:$4 sm:$0xff]  }
 0x365   :  { %5876 = vmatprep.subr.bf16.mxu0 %v7519_v21  ;;  %v7556_v21 = vld [vmem:[#allocation14 + $0x3b8] ss:$28 sps:$4 sm:$0xff]  }
 0x367   :  { %5713 = vmatpush1.bf16.msra.mxu1 %v7514_v22  ;;  %v7559_v22 = vld [vmem:[#allocation14 + $0x3c0] ss:$28 sps:$4 sm:$0xff]  }
 0x368   :  { %5877 = vmatpush1.bf16.msra.mxu0 %v7517_v23  ;;  %5714 = vmatprep.subr.bf16.mxu1 %v7522_v36  ;;  %v7564_v23 = vld [vmem:[#allocation14 + $0x3f4] ss:$28 sps:$4 sm:$0xff]   ;;  %v7567_v36 = vld [vmem:[#allocation14 + $0x3fc] ss:$28 sps:$4 sm:$0xff]  }
 0x369   :  { %5878 = vmatprep.subr.bf16.mxu0 %v7525_v37  ;;  %v7562_v37 = vld [vmem:[#allocation14 + $0x3f0] ss:$28 sps:$4 sm:$0xff]  }
 0x36b   :  { %5715 = vmatpush1.bf16.msra.mxu1 %v7520_v41  ;;  %v7565_v41 = vld [vmem:[#allocation14 + $0x3f8] ss:$28 sps:$4 sm:$0xff]  }
 0x36c   :  { %5879 = vmatpush1.bf16.msra.mxu0 %v7523_v43  ;;  %5716 = vmatprep.subr.bf16.mxu1 %v7528_v44  ;;  %v7570_v43 = vld [vmem:[#allocation14 + $0x42c] ss:$28 sps:$4 sm:$0xff]   ;;  %v7573_v44 = vld [vmem:[#allocation14 + $0x434] ss:$28 sps:$4 sm:$0xff]  }
 0x36d   :  { %5880 = vmatprep.subr.bf16.mxu0 %v7531_v45  ;;  %v7568_v45 = vld [vmem:[#allocation14 + $0x428] ss:$28 sps:$4 sm:$0xff]  }
 0x36f   :  { %5717 = vmatpush1.bf16.msra.mxu1 %v7526_v46  ;;  %v7571_v46 = vld [vmem:[#allocation14 + $0x430] ss:$28 sps:$4 sm:$0xff]  }
 0x370   :  { %5881 = vmatpush1.bf16.msra.mxu0 %v7529_v47  ;;  %5718 = vmatprep.subr.bf16.mxu1 %v7534_v48  ;;  %v7576_v47 = vld [vmem:[#allocation14 + $0x464] ss:$28 sps:$4 sm:$0xff]   ;;  %v7579_v48 = vld [vmem:[#allocation14 + $0x46c] ss:$28 sps:$4 sm:$0xff]  }
 0x371   :  { %5882 = vmatprep.subr.bf16.mxu0 %v7537_v49  ;;  %v7574_v49 = vld [vmem:[#allocation14 + $0x460] ss:$28 sps:$4 sm:$0xff]  }
 0x373   :  { %5719 = vmatpush1.bf16.msra.mxu1 %v7532_v50  ;;  %v7577_v50 = vld [vmem:[#allocation14 + $0x468] ss:$28 sps:$4 sm:$0xff]  }
 0x374   :  { %5883 = vmatpush1.bf16.msra.mxu0 %v7535_v51  ;;  %5720 = vmatprep.subr.bf16.mxu1 %v7540_v54  ;;  %v7582_v51 = vld [vmem:[#allocation14 + $0x49c] ss:$28 sps:$4 sm:$0xff]   ;;  %v7585_v54 = vld [vmem:[#allocation14 + $0x4a4] ss:$28 sps:$4 sm:$0xff]  }
 0x375   :  { %5884 = vmatprep.subr.bf16.mxu0 %v7543_v55  ;;  %v7580_v55 = vld [vmem:[#allocation14 + $0x498] ss:$28 sps:$4 sm:$0xff]  }
 0x377   :  { %5721 = vmatpush1.bf16.msra.mxu1 %v7538_v57  ;;  %v7583_v57 = vld [vmem:[#allocation14 + $0x4a0] ss:$28 sps:$4 sm:$0xff]  }
 0x378   :  { %5885 = vmatpush1.bf16.msra.mxu0 %v7541_v58  ;;  %5722 = vmatprep.subr.bf16.mxu1 %v7546_v59  ;;  %v7588_v58 = vld [vmem:[#allocation14 + $0x4d4] ss:$28 sps:$4 sm:$0xff]   ;;  %v7591_v59 = vld [vmem:[#allocation14 + $0x4dc] ss:$28 sps:$4 sm:$0xff]  }
 0x379   :  { %5886 = vmatprep.subr.bf16.mxu0 %v7549_v60  ;;  %v7586_v60 = vld [vmem:[#allocation14 + $0x4d0] ss:$28 sps:$4 sm:$0xff]  }
 0x37b   :  { %5723 = vmatpush1.bf16.msra.mxu1 %v7544_v61  ;;  %v7589_v61 = vld [vmem:[#allocation14 + $0x4d8] ss:$28 sps:$4 sm:$0xff]  }
 0x37c   :  { %5887 = vmatpush1.bf16.msra.mxu0 %v7547_v62  ;;  %5733 = vmatprep.subr.bf16.mxu1 %v7552_v63  ;;  %v7594_v62 = vld [vmem:[#allocation14 + $0x50c] ss:$28 sps:$4 sm:$0xff]   ;;  %v7597_v63 = vld [vmem:[#allocation14 + $0x514] ss:$28 sps:$4 sm:$0xff]  }
 0x37d   :  { %5897 = vmatprep.subr.bf16.mxu0 %v7555_v0  ;;  %v7592_v0 = vld [vmem:[#allocation14 + $0x508] ss:$28 sps:$4 sm:$0xff]  }
 0x391   :  { %v2523_v8 = vpop.f32.mrb[0].mxu1  ;;  %v2605_v9 = vpop.f32.mrb[12].mxu0 }
 0x392   :  { %v7249_v12 = vadd.f32 %v2523_v8, %v1139_v5  ;;  %v8610_v10 = vadd.f32 %v2605_v9, %v1147_v6  ;;  %v2525_v56 = vpop.f32.mrb[1].mxu1  ;;  %v2607_v13 = vpop.f32.mrb[13].mxu0  ;;  %v7606_v5 = vld [vmem:[#allocation14 + $0x57c] ss:$28 sps:$4 sm:$0xff]   ;;  %v7609_v6 = vld [vmem:[#allocation14 + $0x584] ss:$28 sps:$4 sm:$0xff]  }
 0x393   :  { %v7250_v14 = vadd.f32 %v2525_v56, %v1143_v7  ;;  %v7252_v18 = vadd.f32 %v2607_v13, %v1151_v42  ;;  %v2527_v19 = vpop.f32.mrb[2].mxu1  ;;  %v2609_v38 = vpop.f32.mrb[14].mxu0  ;;  %v7604_v7 = vld [vmem:[#allocation14 + $0x578] ss:$28 sps:$4 sm:$0xff]   ;;  %v7607_v42 = vld [vmem:[#allocation14 + $0x580] ss:$28 sps:$4 sm:$0xff]  }
 0x394   :  { %vm2776_vm6 = vcmp.gt.f32.partialorder %v7249_v12, 0.0  ;;  %v2784_v20 = vmul.f32 0.2, %v7249_v12  ;;  %v2528_v27 = vpop.f32.mrb[3].mxu1  ;;  %v2610_v28 = vpop.f32.mrb[15].mxu0  ;;  %vm2778_vm9 = vcmp.gt.f32.partialorder %v8610_v10, 0.0 }
 0x395   :  { %vm2777_vm7 = vcmp.gt.f32.partialorder %v7250_v14, 0.0  ;;  %v2785_v24 = vmul.f32 0.2, %v7250_v14  ;;  %vm2779_vm8 = vcmp.gt.f32.partialorder %v7252_v18, 0.0  ;;  %v2787_v25 = vmul.f32 0.2, %v7252_v18 }
 0x396   :  { %v2792_v26 = vsel %vm2776_vm6, %v7249_v12, %v2784_v20  ;;  %v7612_v8 = vld [vmem:[#allocation14 + $0x5b4] ss:$28 sps:$4 sm:$0xff]   ;;  %v7615_v9 = vld [vmem:[#allocation14 + $0x5bc] ss:$28 sps:$4 sm:$0xff]   ;;  %v7618_v13 = vld [vmem:[#allocation14 + $0x5ec] ss:$28 sps:$4 sm:$0xff]  }
 0x397   :  { %v2793_v29 = vsel %vm2777_vm7, %v7250_v14, %v2785_v24  ;;  %v2795_v31 = vsel %vm2779_vm8, %v7252_v18, %v2787_v25  ;;  %v8614_v35 = vpack.c.bf16 %v2792_v26, %v2792_v26  ;;  %v7610_v12 = vld [vmem:[#allocation14 + $0x5b0] ss:$28 sps:$4 sm:$0xff]   ;;  %v7613_v56 = vld [vmem:[#allocation14 + $0x5b8] ss:$28 sps:$4 sm:$0xff]   ;;  %v7616_v18 = vld [vmem:[#allocation14 + $0x5e8] ss:$28 sps:$4 sm:$0xff]  }
 0x398   :  { %v8612_v30 = vpack.c.bf16 %v2793_v29, %v2793_v29  ;;  %v8618_v17 = vpack.c.bf16 %v2795_v31, %v2795_v31  ;;  %v7621_v14 = vld [vmem:[#allocation14 + $0x5f4] ss:$28 sps:$4 sm:$0xff]   ;;  %v7624_v38 = vld [vmem:[#allocation14 + $0x624] ss:$28 sps:$4 sm:$0xff]   ;;  %v7627_v20 = vld [vmem:[#allocation14 + $0x62c] ss:$28 sps:$4 sm:$0xff]  }
 0x399   :  { %v7619_v19 = vld [vmem:[#allocation14 + $0x5f0] ss:$28 sps:$4 sm:$0xff]   ;;  %v7622_v24 = vld [vmem:[#allocation14 + $0x620] ss:$28 sps:$4 sm:$0xff]   ;;  %v7625_v25 = vld [vmem:[#allocation14 + $0x628] ss:$28 sps:$4 sm:$0xff]  }
 0x39a   :  { %5724 = vmatprep.mubr.bf16.mxu1 %v8612_v30  ;;  %5888 = vmatprep.mubr.bf16.mxu0 %v8612_v30  ;;  %v7630_v26 = vld [vmem:[#allocation14 + $0x65c] ss:$28 sps:$4 sm:$0xff]   ;;  %v7633_v27 = vld [vmem:[#allocation14 + $0x664] ss:$28 sps:$4 sm:$0xff]   ;;  %v7636_v31 = vld [vmem:[#allocation14 + $0x694] ss:$28 sps:$4 sm:$0xff]  }
 0x39b   :  { %5725 = vmatmul.mubr.bf16.vlgmr.msra.gmra.mrb[8].mxu1 %v8614_v35  ;;  %5889 = vmatmul.mubr.bf16.vlgmr.msra.gmra.mrb[20].mxu0 %v8614_v35  ;;  %v7628_v28 = vld [vmem:[#allocation14 + $0x658] ss:$28 sps:$4 sm:$0xff]   ;;  %v7631_v29 = vld [vmem:[#allocation14 + $0x660] ss:$28 sps:$4 sm:$0xff]  }
 0x39c   :  { %5734 = vmatpush1.bf16.msra.mxu1 %v7550_v32  ;;  %5898 = vmatpush1.bf16.msra.mxu0 %v7553_v34  ;;  %v7639_v32 = vld [vmem:[#allocation14 + $0x69c] ss:$28 sps:$4 sm:$0xff]   ;;  %v7634_v34 = vld [vmem:[#allocation14 + $0x690] ss:$28 sps:$4 sm:$0xff]  }
 0x39d   :  { %5765 = vmatprep.mubr.bf16.mxu1 %v8618_v17  ;;  %5929 = vmatprep.mubr.bf16.mxu0 %v8618_v17 }
 0x39e   :  { %5735 = vmatprep.subr.bf16.mxu1 %v7558_v15  ;;  %5899 = vmatprep.subr.bf16.mxu0 %v7561_v16  ;;  %v7637_v15 = vld [vmem:[#allocation14 + $0x698] ss:$28 sps:$4 sm:$0xff]   ;;  %v7642_v16 = vld [vmem:[#allocation14 + $0x6cc] ss:$28 sps:$4 sm:$0xff]  }
 0x3a0   :  { %5736 = vmatpush1.bf16.msra.mxu1 %v7556_v21  ;;  %5900 = vmatpush1.bf16.msra.mxu0 %v7559_v22  ;;  %v7645_v21 = vld [vmem:[#allocation14 + $0x6d4] ss:$28 sps:$4 sm:$0xff]   ;;  %v2786_v22 = vmul.f32 0.2, %v8610_v10 }
 0x3a1   :  { %5737 = vmatprep.subr.bf16.mxu1 %v7564_v23  ;;  %5901 = vmatprep.subr.bf16.mxu0 %v7567_v36  ;;  %v7640_v23 = vld [vmem:[#allocation14 + $0x6c8] ss:$28 sps:$4 sm:$0xff]   ;;  %v7643_v36 = vld [vmem:[#allocation14 + $0x6d0] ss:$28 sps:$4 sm:$0xff]  }
 0x3a4   :  { %5738 = vmatpush1.bf16.msra.mxu1 %v7562_v37  ;;  %5902 = vmatpush1.bf16.msra.mxu0 %v7565_v41  ;;  %v7648_v37 = vld [vmem:[#allocation14 + $0x704] ss:$28 sps:$4 sm:$0xff]   ;;  %v7651_v41 = vld [vmem:[#allocation14 + $0x70c] ss:$28 sps:$4 sm:$0xff]  }
 0x3a5   :  { %5739 = vmatprep.subr.bf16.mxu1 %v7570_v43  ;;  %5903 = vmatprep.subr.bf16.mxu0 %v7573_v44  ;;  %v2794_v43 = vsel %vm2778_vm9, %v8610_v10, %v2786_v22  ;;  %v7646_v44 = vld [vmem:[#allocation14 + $0x700] ss:$28 sps:$4 sm:$0xff]   ;;  %v7660_v10 = vld [vmem:[#allocation14 + $0x774] ss:$28 sps:$4 sm:$0xff]  }
 0x3a6   :  { %v7718_v22 = vld [vmem:[#allocation14 + $0x9a0] ss:$28 sps:$4 sm:$0xff]  }
 0x3a8   :  { %5740 = vmatpush1.bf16.msra.mxu1 %v7568_v45  ;;  %5904 = vmatpush1.bf16.msra.mxu0 %v7571_v46  ;;  %v7649_v45 = vld [vmem:[#allocation14 + $0x708] ss:$28 sps:$4 sm:$0xff]   ;;  %v8627_v46 = vpack.c.bf16 %v2794_v43, %v2794_v43 }
 0x3a9   :  { %5741 = vmatprep.subr.bf16.mxu1 %v7576_v47  ;;  %5905 = vmatprep.subr.bf16.mxu0 %v7579_v48  ;;  %v7654_v47 = vld [vmem:[#allocation14 + $0x73c] ss:$28 sps:$4 sm:$0xff]   ;;  %v7657_v48 = vld [vmem:[#allocation14 + $0x744] ss:$28 sps:$4 sm:$0xff]  }
 0x3ac   :  { %5742 = vmatpush1.bf16.msra.mxu1 %v7574_v49  ;;  %5906 = vmatpush1.bf16.msra.mxu0 %v7577_v50  ;;  %v7652_v49 = vld [vmem:[#allocation14 + $0x738] ss:$28 sps:$4 sm:$0xff]   ;;  %v7655_v50 = vld [vmem:[#allocation14 + $0x740] ss:$28 sps:$4 sm:$0xff]  }
 0x3ad   :  { %5743 = vmatprep.subr.bf16.mxu1 %v7582_v51  ;;  %5907 = vmatprep.subr.bf16.mxu0 %v7585_v54  ;;  %v7663_v51 = vld [vmem:[#allocation14 + $0x77c] ss:$28 sps:$4 sm:$0xff]   ;;  %v7658_v54 = vld [vmem:[#allocation14 + $0x770] ss:$28 sps:$4 sm:$0xff]  }
 0x3b0   :  { %5744 = vmatpush1.bf16.msra.mxu1 %v7580_v55  ;;  %5908 = vmatpush1.bf16.msra.mxu0 %v7583_v57  ;;  %v7661_v55 = vld [vmem:[#allocation14 + $0x778] ss:$28 sps:$4 sm:$0xff]   ;;  %v7666_v57 = vld [vmem:[#allocation14 + $0x7ac] ss:$28 sps:$4 sm:$0xff]  }
 0x3b1   :  { %5745 = vmatprep.subr.bf16.mxu1 %v7588_v58  ;;  %5909 = vmatprep.subr.bf16.mxu0 %v7591_v59  ;;  %v7669_v58 = vld [vmem:[#allocation14 + $0x7b4] ss:$28 sps:$4 sm:$0xff]   ;;  %v7664_v59 = vld [vmem:[#allocation14 + $0x7a8] ss:$28 sps:$4 sm:$0xff]  }
 0x3b4   :  { %5746 = vmatpush1.bf16.msra.mxu1 %v7586_v60  ;;  %5910 = vmatpush1.bf16.msra.mxu0 %v7589_v61  ;;  %v7667_v60 = vld [vmem:[#allocation14 + $0x7b0] ss:$28 sps:$4 sm:$0xff]   ;;  %v7672_v61 = vld [vmem:[#allocation14 + $0x7e4] ss:$28 sps:$4 sm:$0xff]  }
 0x3b5   :  { %5747 = vmatprep.subr.bf16.mxu1 %v7594_v62  ;;  %5911 = vmatprep.subr.bf16.mxu0 %v7597_v63  ;;  %v7675_v62 = vld [vmem:[#allocation14 + $0x7ec] ss:$28 sps:$4 sm:$0xff]   ;;  %v7670_v63 = vld [vmem:[#allocation14 + $0x7e0] ss:$28 sps:$4 sm:$0xff]  }
 0x3b8   :  { %5748 = vmatpush1.bf16.msra.mxu1 %v7592_v0  ;;  %5912 = vmatpush1.bf16.msra.mxu0 %v7595_v1  ;;  %v7673_v0 = vld [vmem:[#allocation14 + $0x7e8] ss:$28 sps:$4 sm:$0xff]   ;;  %v7678_v1 = vld [vmem:[#allocation14 + $0x81c] ss:$28 sps:$4 sm:$0xff]  }
 0x3b9   :  { %5749 = vmatprep.subr.bf16.mxu1 %v7600_v11  ;;  %5913 = vmatprep.subr.bf16.mxu0 %v7603_v2  ;;  %v7681_v11 = vld [vmem:[#allocation14 + $0x824] ss:$28 sps:$4 sm:$0xff]   ;;  %v7676_v2 = vld [vmem:[#allocation14 + $0x818] ss:$28 sps:$4 sm:$0xff]  }
 0x3bc   :  { %5750 = vmatpush1.bf16.msra.mxu1 %v7598_v3  ;;  %5914 = vmatpush1.bf16.msra.mxu0 %v7601_v4  ;;  %v7679_v3 = vld [vmem:[#allocation14 + $0x820] ss:$28 sps:$4 sm:$0xff]   ;;  %v7684_v4 = vld [vmem:[#allocation14 + $0x854] ss:$28 sps:$4 sm:$0xff]  }
 0x3bd   :  { %5751 = vmatprep.subr.bf16.mxu1 %v7606_v5  ;;  %5915 = vmatprep.subr.bf16.mxu0 %v7609_v6  ;;  %v7687_v5 = vld [vmem:[#allocation14 + $0x85c] ss:$28 sps:$4 sm:$0xff]   ;;  %v7682_v6 = vld [vmem:[#allocation14 + $0x850] ss:$28 sps:$4 sm:$0xff]  }
 0x3c0   :  { %5752 = vmatpush1.bf16.msra.mxu1 %v7604_v7  ;;  %5916 = vmatpush1.bf16.msra.mxu0 %v7607_v42  ;;  %v7685_v7 = vld [vmem:[#allocation14 + $0x858] ss:$28 sps:$4 sm:$0xff]   ;;  %v7690_v42 = vld [vmem:[#allocation14 + $0x88c] ss:$28 sps:$4 sm:$0xff]  }
 0x3c1   :  { %5753 = vmatprep.subr.bf16.mxu1 %v7612_v8  ;;  %5917 = vmatprep.subr.bf16.mxu0 %v7615_v9  ;;  %v7693_v8 = vld [vmem:[#allocation14 + $0x894] ss:$28 sps:$4 sm:$0xff]   ;;  %v7688_v9 = vld [vmem:[#allocation14 + $0x888] ss:$28 sps:$4 sm:$0xff]  }
 0x3c4   :  { %5754 = vmatpush1.bf16.msra.mxu1 %v7610_v12  ;;  %5918 = vmatpush1.bf16.msra.mxu0 %v7613_v56  ;;  %v7691_v12 = vld [vmem:[#allocation14 + $0x890] ss:$28 sps:$4 sm:$0xff]   ;;  %v7696_v56 = vld [vmem:[#allocation14 + $0x8c4] ss:$28 sps:$4 sm:$0xff]  }
 0x3c5   :  { %5755 = vmatprep.subr.bf16.mxu1 %v7618_v13  ;;  %5919 = vmatprep.subr.bf16.mxu0 %v7621_v14  ;;  %v7699_v13 = vld [vmem:[#allocation14 + $0x8cc] ss:$28 sps:$4 sm:$0xff]   ;;  %v7694_v14 = vld [vmem:[#allocation14 + $0x8c0] ss:$28 sps:$4 sm:$0xff]  }
 0x3c8   :  { %5756 = vmatpush1.bf16.msra.mxu1 %v7616_v18  ;;  %5920 = vmatpush1.bf16.msra.mxu0 %v7619_v19  ;;  %v7697_v18 = vld [vmem:[#allocation14 + $0x8c8] ss:$28 sps:$4 sm:$0xff]   ;;  %v7702_v19 = vld [vmem:[#allocation14 + $0x8fc] ss:$28 sps:$4 sm:$0xff]  }
 0x3c9   :  { %5757 = vmatprep.subr.bf16.mxu1 %v7624_v38  ;;  %5921 = vmatprep.subr.bf16.mxu0 %v7627_v20  ;;  %v7705_v38 = vld [vmem:[#allocation14 + $0x904] ss:$28 sps:$4 sm:$0xff]   ;;  %v7700_v20 = vld [vmem:[#allocation14 + $0x8f8] ss:$28 sps:$4 sm:$0xff]  }
 0x3cc   :  { %5758 = vmatpush1.bf16.msra.mxu1 %v7622_v24  ;;  %5922 = vmatpush1.bf16.msra.mxu0 %v7625_v25  ;;  %v7703_v24 = vld [vmem:[#allocation14 + $0x900] ss:$28 sps:$4 sm:$0xff]   ;;  %v7708_v25 = vld [vmem:[#allocation14 + $0x934] ss:$28 sps:$4 sm:$0xff]  }
 0x3cd   :  { %5759 = vmatprep.subr.bf16.mxu1 %v7630_v26  ;;  %5923 = vmatprep.subr.bf16.mxu0 %v7633_v27  ;;  %v7711_v26 = vld [vmem:[#allocation14 + $0x93c] ss:$28 sps:$4 sm:$0xff]   ;;  %v7706_v27 = vld [vmem:[#allocation14 + $0x930] ss:$28 sps:$4 sm:$0xff]  }
 0x3d0   :  { %5760 = vmatpush1.bf16.msra.mxu1 %v7628_v28  ;;  %5924 = vmatpush1.bf16.msra.mxu0 %v7631_v29  ;;  %v7709_v28 = vld [vmem:[#allocation14 + $0x938] ss:$28 sps:$4 sm:$0xff]   ;;  %v7714_v29 = vld [vmem:[#allocation14 + $0x96c] ss:$28 sps:$4 sm:$0xff]  }
 0x3d1   :  { %5761 = vmatprep.subr.bf16.mxu1 %v7636_v31  ;;  %5925 = vmatprep.subr.bf16.mxu0 %v7639_v32  ;;  %v7717_v31 = vld [vmem:[#allocation14 + $0x974] ss:$28 sps:$4 sm:$0xff]   ;;  %v7712_v32 = vld [vmem:[#allocation14 + $0x968] ss:$28 sps:$4 sm:$0xff]  }
 0x3d4   :  { %5762 = vmatpush1.bf16.msra.mxu1 %v7634_v34  ;;  %5926 = vmatpush1.bf16.msra.mxu0 %v7637_v15  ;;  %v7715_v34 = vld [vmem:[#allocation14 + $0x970] ss:$28 sps:$4 sm:$0xff]   ;;  %v7720_v15 = vld [vmem:[#allocation14 + $0x9a4] ss:$28 sps:$4 sm:$0xff]  }
 0x3d5   :  { %5763 = vmatprep.subr.bf16.mxu1 %v7642_v16  ;;  %5927 = vmatprep.subr.bf16.mxu0 %v7645_v21  ;;  %v7723_v16 = vld [vmem:[#allocation14 + $0x9ac] ss:$28 sps:$4 sm:$0xff]   ;;  %v1093_v21 = vunpack.c.h.bf16 %v8599_v33 }
 0x3d7   :  { %v1123_v43 = vrot.slane %v1093_v21, %v8572_v52  ;;  %v1127_v33 = vrot.slane %v1093_v21, %v8575_v53 }
 0x3d8   :  { %5764 = vmatpush1.bf16.msra.mxu1 %v7640_v23  ;;  %5928 = vmatpush1.bf16.msra.mxu0 %v7643_v36  ;;  %v7721_v23 = vld [vmem:[#allocation14 + $0x9a8] ss:$28 sps:$4 sm:$0xff]   ;;  %v7726_v36 = vld [vmem:[#allocation14 + $0x9dc] ss:$28 sps:$4 sm:$0xff]  }
 0x3d9   :  { %5774 = vmatprep.subr.bf16.mxu1 %v7648_v37  ;;  %5938 = vmatprep.subr.bf16.mxu0 %v7651_v41  ;;  %v7729_v37 = vld [vmem:[#allocation14 + $0x9e4] ss:$28 sps:$4 sm:$0xff]   ;;  %v1115_v41 = vrot.slane %v1093_v21, %v8520_v39 }
 0x3db   :  { %5766 = vmatmul.mubr.bf16.vlgmr.msra.gmra.mrb[8].mxu1 %v8627_v46  ;;  %5930 = vmatmul.mubr.bf16.vlgmr.msra.gmra.mrb[20].mxu0 %v8627_v46 }
 0x3dc   :  { %5775 = vmatpush1.bf16.msra.mxu1 %v7646_v44  ;;  %5939 = vmatpush1.bf16.msra.mxu0 %v7649_v45  ;;  %v1119_v44 = vrot.slane %v1093_v21, %v8523_v40  ;;  %v7724_v45 = vld [vmem:[#allocation14 + $0x9d8] ss:$28 sps:$4 sm:$0xff]   ;;  %v7762_v21 = vld [vmem:[#allocation14 + $0xb2c] ss:$28 sps:$4 sm:$0xff]  }
 0x3dd   :  { %5776 = vmatprep.subr.bf16.mxu1 %v7654_v47  ;;  %5940 = vmatprep.subr.bf16.mxu0 %v7657_v48  ;;  %v7727_v47 = vld [vmem:[#allocation14 + $0x9e0] ss:$28 sps:$4 sm:$0xff]   ;;  %v7732_v48 = vld [vmem:[#allocation14 + $0xa14] ss:$28 sps:$4 sm:$0xff]  }
 0x3e0   :  { %5777 = vmatpush1.bf16.msra.mxu1 %v7652_v49  ;;  %5941 = vmatpush1.bf16.msra.mxu0 %v7655_v50  ;;  %v7735_v49 = vld [vmem:[#allocation14 + $0xa1c] ss:$28 sps:$4 sm:$0xff]   ;;  %v1155_v50 = vrot.slane %v1115_v41, %v8520_v39  ;;  %v7771_v41 = vld [vmem:[#allocation14 + $0xb6c] ss:$28 sps:$4 sm:$0xff]  }
 0x3e1   :  { %5778 = vmatprep.subr.bf16.mxu1 %v7660_v10  ;;  %5942 = vmatprep.subr.bf16.mxu0 %v7663_v51  ;;  %v1163_v10 = vrot.slane %v1123_v43, %v8520_v39  ;;  %v1159_v51 = vrot.slane %v1119_v44, %v8520_v39  ;;  %v7766_v43 = vld [vmem:[#allocation14 + $0xb60] ss:$28 sps:$4 sm:$0xff]   ;;  %v7769_v44 = vld [vmem:[#allocation14 + $0xb68] ss:$28 sps:$4 sm:$0xff]  }
 0x3e4   :  { %5779 = vmatpush1.bf16.msra.mxu1 %v7658_v54  ;;  %5943 = vmatpush1.bf16.msra.mxu0 %v7661_v55  ;;  %v1167_v54 = vrot.slane %v1127_v33, %v8520_v39  ;;  %v7730_v55 = vld [vmem:[#allocation14 + $0xa10] ss:$28 sps:$4 sm:$0xff]   ;;  %v7772_v33 = vld [vmem:[#allocation14 + $0xb98] ss:$28 sps:$4 sm:$0xff]  }
 0x3e5   :  { %5780 = vmatprep.subr.bf16.mxu1 %v7666_v57  ;;  %5944 = vmatprep.subr.bf16.mxu0 %v7669_v58  ;;  %v7733_v57 = vld [vmem:[#allocation14 + $0xa18] ss:$28 sps:$4 sm:$0xff]  }
 0x3e8   :  { %5781 = vmatpush1.bf16.msra.mxu1 %v7664_v59  ;;  %5945 = vmatpush1.bf16.msra.mxu0 %v7667_v60  ;;  %v7738_v59 = vld [vmem:[#allocation14 + $0xa4c] ss:$28 sps:$4 sm:$0xff]   ;;  %v7741_v60 = vld [vmem:[#allocation14 + $0xa54] ss:$28 sps:$4 sm:$0xff]  }
 0x3e9   :  { %5782 = vmatprep.subr.bf16.mxu1 %v7672_v61  ;;  %5946 = vmatprep.subr.bf16.mxu0 %v7675_v62 }
 0x3ec   :  { %5783 = vmatpush1.bf16.msra.mxu1 %v7670_v63  ;;  %5947 = vmatpush1.bf16.msra.mxu0 %v7673_v0  ;;  %v7736_v0 = vld [vmem:[#allocation14 + $0xa48] ss:$28 sps:$4 sm:$0xff]  }
 0x3ed   :  { %5784 = vmatprep.subr.bf16.mxu1 %v7678_v1  ;;  %5948 = vmatprep.subr.bf16.mxu0 %v7681_v11 }
 0x3f0   :  { %5785 = vmatpush1.bf16.msra.mxu1 %v7676_v2  ;;  %5949 = vmatpush1.bf16.msra.mxu0 %v7679_v3 }
 0x3f1   :  { %5786 = vmatprep.subr.bf16.mxu1 %v7684_v4  ;;  %5950 = vmatprep.subr.bf16.mxu0 %v7687_v5  ;;  %v7739_v4 = vld [vmem:[#allocation14 + $0xa50] ss:$28 sps:$4 sm:$0xff]   ;;  %v7744_v5 = vld [vmem:[#allocation14 + $0xa84] ss:$28 sps:$4 sm:$0xff]  }
 0x3f4   :  { %5787 = vmatpush1.bf16.msra.mxu1 %v7682_v6  ;;  %5951 = vmatpush1.bf16.msra.mxu0 %v7685_v7 }
 0x3f5   :  { %5788 = vmatprep.subr.bf16.mxu1 %v7690_v42  ;;  %5952 = vmatprep.subr.bf16.mxu0 %v7693_v8 }
 0x3f8   :  { %5789 = vmatpush1.bf16.msra.mxu1 %v7688_v9  ;;  %5953 = vmatpush1.bf16.msra.mxu0 %v7691_v12  ;;  %v7747_v12 = vld [vmem:[#allocation14 + $0xa8c] ss:$28 sps:$4 sm:$0xff]  }
 0x3f9   :  { %5790 = vmatprep.subr.bf16.mxu1 %v7696_v56  ;;  %5954 = vmatprep.subr.bf16.mxu0 %v7699_v13 }
 0x3fc   :  { %5791 = vmatpush1.bf16.msra.mxu1 %v7694_v14  ;;  %5955 = vmatpush1.bf16.msra.mxu0 %v7697_v18 }
 0x3fd   :  { %5792 = vmatprep.subr.bf16.mxu1 %v7702_v19  ;;  %5956 = vmatprep.subr.bf16.mxu0 %v7705_v38 }
 0x400   :  { %5793 = vmatpush1.bf16.msra.mxu1 %v7700_v20  ;;  %5957 = vmatpush1.bf16.msra.mxu0 %v7703_v24  ;;  %v7742_v20 = vld [vmem:[#allocation14 + $0xa80] ss:$28 sps:$4 sm:$0xff]   ;;  %v7745_v24 = vld [vmem:[#allocation14 + $0xa88] ss:$28 sps:$4 sm:$0xff]  }
 0x401   :  { %5794 = vmatprep.subr.bf16.mxu1 %v7708_v25  ;;  %5958 = vmatprep.subr.bf16.mxu0 %v7711_v26  ;;  %v7750_v26 = vld [vmem:[#allocation14 + $0xabc] ss:$28 sps:$4 sm:$0xff]  }
 0x404   :  { %5795 = vmatpush1.bf16.msra.mxu1 %v7706_v27  ;;  %5959 = vmatpush1.bf16.msra.mxu0 %v7709_v28  ;;  %v7753_v27 = vld [vmem:[#allocation14 + $0xac4] ss:$28 sps:$4 sm:$0xff]  }
 0x405   :  { %5796 = vmatprep.subr.bf16.mxu1 %v7714_v29  ;;  %5960 = vmatprep.subr.bf16.mxu0 %v7717_v31  ;;  %v7748_v29 = vld [vmem:[#allocation14 + $0xab8] ss:$28 sps:$4 sm:$0xff]   ;;  %v7751_v31 = vld [vmem:[#allocation14 + $0xac0] ss:$28 sps:$4 sm:$0xff]  }
 0x408   :  { %5797 = vmatpush1.bf16.msra.mxu1 %v7712_v32  ;;  %5961 = vmatpush1.bf16.msra.mxu0 %v7715_v34  ;;  %v7756_v32 = vld [vmem:[#allocation14 + $0xaf4] ss:$28 sps:$4 sm:$0xff]   ;;  %v7759_v34 = vld [vmem:[#allocation14 + $0xafc] ss:$28 sps:$4 sm:$0xff]  }
 0x409   :  { %5798 = vmatprep.subr.bf16.mxu1 %v7720_v15  ;;  %5962 = vmatprep.subr.bf16.mxu0 %v7723_v16  ;;  %v7754_v15 = vld [vmem:[#allocation14 + $0xaf0] ss:$28 sps:$4 sm:$0xff]   ;;  %v7757_v16 = vld [vmem:[#allocation14 + $0xaf8] ss:$28 sps:$4 sm:$0xff]  }
 0x40c   :  { %5799 = vmatpush1.bf16.msra.mxu1 %v7718_v22  ;;  %5963 = vmatpush1.bf16.msra.mxu0 %v7721_v23  ;;  %v7765_v22 = vld [vmem:[#allocation14 + $0xb34] ss:$28 sps:$4 sm:$0xff]   ;;  %v7760_v23 = vld [vmem:[#allocation14 + $0xb28] ss:$28 sps:$4 sm:$0xff]  }
 0x40d   :  { %5800 = vmatprep.subr.bf16.mxu1 %v7726_v36  ;;  %5964 = vmatprep.subr.bf16.mxu0 %v7729_v37  ;;  %v7763_v36 = vld [vmem:[#allocation14 + $0xb30] ss:$28 sps:$4 sm:$0xff]   ;;  %v7768_v37 = vld [vmem:[#allocation14 + $0xb64] ss:$28 sps:$4 sm:$0xff]  }
 0x410   :  { %5801 = vmatpush1.bf16.msra.mxu1 %v7724_v45  ;;  %5965 = vmatpush1.bf16.msra.mxu0 %v7727_v47  ;;  %v7774_v45 = vld [vmem:[#allocation14 + $0xb9c] ss:$28 sps:$4 sm:$0xff]   ;;  %v7777_v47 = vld [vmem:[#allocation14 + $0xba4] ss:$28 sps:$4 sm:$0xff]  }
 0x411   :  { %v2687_v58 = vpop.f32.mrb[4].mxu1  ;;  %5802 = vmatprep.subr.bf16.mxu1 %v7732_v48  ;;  %5966 = vmatprep.subr.bf16.mxu0 %v7735_v49  ;;  %v7775_v48 = vld [vmem:[#allocation14 + $0xba0] ss:$28 sps:$4 sm:$0xff]   ;;  %v7780_v49 = vld [vmem:[#allocation14 + $0xbd4] ss:$28 sps:$4 sm:$0xff]  }
 0x412   :  { %v7253_v61 = vadd.f32 %v2687_v58, %v1155_v50  ;;  %v2769_v62 = vpop.f32.mrb[16].mxu0  ;;  %v2689_v63 = vpop.f32.mrb[5].mxu1  ;;  %v7783_v50 = vld [vmem:[#allocation14 + $0xbdc] ss:$28 sps:$4 sm:$0xff]   ;;  %v7787_v58 = vld [vmem:[#allocation14 + $0xc10] ss:$28 sps:$4 sm:$0xff]  }
 0x413   :  { %v8640_v1 = vadd.f32 %v2769_v62, %v1163_v10  ;;  %v7254_v11 = vadd.f32 %v2689_v63, %v1159_v51  ;;  %v2771_v2 = vpop.f32.mrb[17].mxu0  ;;  %v2691_v3 = vpop.f32.mrb[6].mxu1  ;;  %v7778_v10 = vld [vmem:[#allocation14 + $0xbd0] ss:$28 sps:$4 sm:$0xff]   ;;  %v7781_v51 = vld [vmem:[#allocation14 + $0xbd8] ss:$28 sps:$4 sm:$0xff]  }
 0x414   :  { %vm2780_vm10 = vcmp.gt.f32.partialorder %v7253_v61, 0.0  ;;  %v2788_v6 = vmul.f32 0.2, %v7253_v61  ;;  %v7256_v7 = vadd.f32 %v2771_v2, %v1167_v54  ;;  %v2773_v42 = vpop.f32.mrb[18].mxu0  ;;  %5803 = vmatpush1.bf16.msra.mxu1 %v7730_v55  ;;  %5967 = vmatpush1.bf16.msra.mxu0 %v7733_v57  ;;  %v2692_v8 = vpop.f32.mrb[7].mxu1 }
 0x415   :  { %vm2781_vm11 = vcmp.gt.f32.partialorder %v7254_v11, 0.0  ;;  %v2789_v9 = vmul.f32 0.2, %v7254_v11  ;;  %5804 = vmatprep.subr.bf16.mxu1 %v7738_v59  ;;  %5968 = vmatprep.subr.bf16.mxu0 %v7741_v60  ;;  %v2774_v14 = vpop.f32.mrb[19].mxu0  ;;  %v7786_v54 = vld [vmem:[#allocation14 + $0xc0c] ss:$28 sps:$4 sm:$0xff]  }
 0x416   :  { %v2796_v56 = vsel %vm2780_vm10, %v7253_v61, %v2788_v6  ;;  %vm2783_vm12 = vcmp.gt.f32.partialorder %v7256_v7, 0.0  ;;  %v2791_v13 = vmul.f32 0.2, %v7256_v7  ;;  %v7789_v55 = vld [vmem:[#allocation14 + $0xc14] ss:$28 sps:$4 sm:$0xff]   ;;  %vm2782_vm13 = vcmp.gt.f32.partialorder %v8640_v1, 0.0 }
 0x417   :  { %v2797_v18 = vsel %vm2781_vm11, %v7254_v11, %v2789_v9  ;;  %v8644_v25 = vpack.c.bf16 %v2796_v56, %v2796_v56  ;;  %v7784_v57 = vld [vmem:[#allocation14 + $0xc08] ss:$28 sps:$4 sm:$0xff]   ;;  %v7790_v61 = vld [vmem:[#allocation14 + $0xc40] ss:$28 sps:$4 sm:$0xff]   ;;  %v7796_v11 = vld [vmem:[#allocation14 + $0xc78] ss:$28 sps:$4 sm:$0xff]  }
 0x418   :  { %v8642_v19 = vpack.c.bf16 %v2797_v18, %v2797_v18  ;;  %v2799_v38 = vsel %vm2783_vm12, %v7256_v7, %v2791_v13  ;;  %5805 = vmatpush1.bf16.msra.mxu1 %v7736_v0  ;;  %5969 = vmatpush1.bf16.msra.mxu0 %v7739_v4  ;;  %v7792_v59 = vld [vmem:[#allocation14 + $0xc44] ss:$28 sps:$4 sm:$0xff]   ;;  %v7795_v60 = vld [vmem:[#allocation14 + $0xc4c] ss:$28 sps:$4 sm:$0xff]   ;;  %v7798_v63 = vld [vmem:[#allocation14 + $0xc7c] ss:$28 sps:$4 sm:$0xff]  }
 0x419   :  { %5815 = vmatprep.subr.bf16.mxu1 %v7744_v5  ;;  %5979 = vmatprep.subr.bf16.mxu0 %v7747_v12  ;;  %v8648_v28 = vpack.c.bf16 %v2799_v38, %v2799_v38  ;;  %v7793_v62 = vld [vmem:[#allocation14 + $0xc48] ss:$28 sps:$4 sm:$0xff]   ;;  %v7799_v2 = vld [vmem:[#allocation14 + $0xc80] ss:$28 sps:$4 sm:$0xff]   ;;  %v7804_v3 = vld [vmem:[#allocation14 + $0xcb4] ss:$28 sps:$4 sm:$0xff]  }
 0x41a   :  { %5806 = vmatprep.mubr.bf16.mxu1 %v8642_v19  ;;  %5970 = vmatprep.mubr.bf16.mxu0 %v8642_v19  ;;  %v7801_v0 = vld [vmem:[#allocation14 + $0xc84] ss:$28 sps:$4 sm:$0xff]   ;;  %v7807_v4 = vld [vmem:[#allocation14 + $0xcbc] ss:$28 sps:$4 sm:$0xff]   ;;  %v7802_v5 = vld [vmem:[#allocation14 + $0xcb0] ss:$28 sps:$4 sm:$0xff]  }
 0x41b   :  { %5807 = vmatmul.mubr.bf16.vlgmr.msra.gmra.mrb[8].mxu1 %v8644_v25  ;;  %5971 = vmatmul.mubr.bf16.vlgmr.msra.gmra.mrb[20].mxu0 %v8644_v25  ;;  %v7805_v6 = vld [vmem:[#allocation14 + $0xcb8] ss:$28 sps:$4 sm:$0xff]   ;;  %v7810_v7 = vld [vmem:[#allocation14 + $0xcec] ss:$28 sps:$4 sm:$0xff]   ;;  %v7816_v12 = vld [vmem:[#allocation14 + $0xd24] ss:$28 sps:$4 sm:$0xff]  }
 0x41c   :  { %5816 = vmatpush1.bf16.msra.mxu1 %v7742_v20  ;;  %5980 = vmatpush1.bf16.msra.mxu0 %v7745_v24  ;;  %v7813_v42 = vld [vmem:[#allocation14 + $0xcf4] ss:$28 sps:$4 sm:$0xff]   ;;  %v7808_v8 = vld [vmem:[#allocation14 + $0xce8] ss:$28 sps:$4 sm:$0xff]   ;;  %v7814_v13 = vld [vmem:[#allocation14 + $0xd20] ss:$28 sps:$4 sm:$0xff]  }
 0x41d   :  { %5847 = vmatprep.mubr.bf16.mxu1 %v8648_v28  ;;  %6011 = vmatprep.mubr.bf16.mxu0 %v8648_v28  ;;  %v7811_v9 = vld [vmem:[#allocation14 + $0xcf0] ss:$28 sps:$4 sm:$0xff]   ;;  %v7817_v14 = vld [vmem:[#allocation14 + $0xd28] ss:$28 sps:$4 sm:$0xff]   ;;  %v7822_v18 = vld [vmem:[#allocation14 + $0xd5c] ss:$28 sps:$4 sm:$0xff]  }
 0x41e   :  { %5817 = vmatprep.subr.bf16.mxu1 %v7750_v26  ;;  %5981 = vmatprep.subr.bf16.mxu0 %v7753_v27  ;;  %v7819_v56 = vld [vmem:[#allocation14 + $0xd2c] ss:$28 sps:$4 sm:$0xff]   ;;  %v7825_v38 = vld [vmem:[#allocation14 + $0xd64] ss:$28 sps:$4 sm:$0xff]   ;;  %v7820_v20 = vld [vmem:[#allocation14 + $0xd58] ss:$28 sps:$4 sm:$0xff]  }
 0x41f   :  { %v7823_v24 = vld [vmem:[#allocation14 + $0xd60] ss:$28 sps:$4 sm:$0xff]   ;;  %v7828_v26 = vld [vmem:[#allocation14 + $0xd94] ss:$28 sps:$4 sm:$0xff]  }
 0x420   :  { %5818 = vmatpush1.bf16.msra.mxu1 %v7748_v29  ;;  %5982 = vmatpush1.bf16.msra.mxu0 %v7751_v31  ;;  %v7831_v27 = vld [vmem:[#allocation14 + $0xd9c] ss:$28 sps:$4 sm:$0xff]   ;;  %v7826_v29 = vld [vmem:[#allocation14 + $0xd90] ss:$28 sps:$4 sm:$0xff]  }
 0x421   :  { %5819 = vmatprep.subr.bf16.mxu1 %v7756_v32  ;;  %5983 = vmatprep.subr.bf16.mxu0 %v7759_v34  ;;  %v7829_v31 = vld [vmem:[#allocation14 + $0xd98] ss:$28 sps:$4 sm:$0xff]   ;;  %v7834_v32 = vld [vmem:[#allocation14 + $0xdcc] ss:$28 sps:$4 sm:$0xff]  }
 0x422   :  { %v7837_v34 = vld [vmem:[#allocation14 + $0xdd4] ss:$28 sps:$4 sm:$0xff]  }
 0x424   :  { %5820 = vmatpush1.bf16.msra.mxu1 %v7754_v15  ;;  %5984 = vmatpush1.bf16.msra.mxu0 %v7757_v16  ;;  %v2790_v15 = vmul.f32 0.2, %v8640_v1  ;;  %v7832_v16 = vld [vmem:[#allocation14 + $0xdc8] ss:$28 sps:$4 sm:$0xff]  }
 0x425   :  { %5821 = vmatprep.subr.bf16.mxu1 %v7762_v21  ;;  %5985 = vmatprep.subr.bf16.mxu0 %v7765_v22  ;;  %v7835_v21 = vld [vmem:[#allocation14 + $0xdd0] ss:$28 sps:$4 sm:$0xff]  }
 0x426   :  { %v7840_v22 = vld [vmem:[#allocation14 + $0x14] ss:$28 sps:$4 sm:$0xff]  }
 0x428   :  { %5822 = vmatpush1.bf16.msra.mxu1 %v7760_v23  ;;  %5986 = vmatpush1.bf16.msra.mxu0 %v7763_v36  ;;  %v7841_v23 = vld [vmem:[#allocation14 + $0x1d8] ss:$28 sps:$4 sm:$0xff]   ;;  %v2798_v36 = vsel %vm2782_vm13, %v8640_v1, %v2790_v15  ;;  %v7847_v1 = vld [vmem:[#allocation14 + $0x50] ss:$28 sps:$4 sm:$0xff]  }
 0x429   :  { %5823 = vmatprep.subr.bf16.mxu1 %v7768_v37  ;;  %5987 = vmatprep.subr.bf16.mxu0 %v7771_v41  ;;  %v7838_v37 = vld [vmem:[#allocation14 + $0x10] ss:$28 sps:$4 sm:$0xff]   ;;  %v8657_v41 = vpack.c.bf16 %v2798_v36, %v2798_v36  ;;  %v7901_v15 = vld [vmem:[#allocation14 + $0x638] ss:$28 sps:$4 sm:$0xff]   ;;  %v7903_v36 = vld [vmem:[#allocation14 + $0x2e8] ss:$28 sps:$4 sm:$0xff]  }
 0x42c   :  { %5824 = vmatpush1.bf16.msra.mxu1 %v7766_v43  ;;  %5988 = vmatpush1.bf16.msra.mxu0 %v7769_v44  ;;  %v7842_v43 = vld [vmem:[#allocation14 + $0x18] ss:$28 sps:$4 sm:$0xff]   ;;  %v7845_v44 = vld [vmem:[#allocation14 + $0x4c] ss:$28 sps:$4 sm:$0xff]  }
 0x42d   :  { %5825 = vmatprep.subr.bf16.mxu1 %v7774_v45  ;;  %5989 = vmatprep.subr.bf16.mxu0 %v7777_v47  ;;  %v7846_v45 = vld [vmem:[#allocation14 + $0x210] ss:$28 sps:$4 sm:$0xff]   ;;  %v7843_v47 = vld [vmem:[#allocation14 + $0x48] ss:$28 sps:$4 sm:$0xff]  }
 0x430   :  { %5826 = vmatpush1.bf16.msra.mxu1 %v7772_v33  ;;  %5990 = vmatpush1.bf16.msra.mxu0 %v7775_v48  ;;  %v7850_v33 = vld [vmem:[#allocation14 + $0x84] ss:$28 sps:$4 sm:$0xff]  }
 0x431   :  { %5827 = vmatprep.subr.bf16.mxu1 %v7780_v49  ;;  %5991 = vmatprep.subr.bf16.mxu0 %v7783_v50  ;;  %v7851_v48 = vld [vmem:[#allocation14 + $0x248] ss:$28 sps:$4 sm:$0xff]   ;;  %v7848_v49 = vld [vmem:[#allocation14 + $0x80] ss:$28 sps:$4 sm:$0xff]  }
 0x432   :  { %v7852_v50 = vld [vmem:[#allocation14 + $0x88] ss:$28 sps:$4 sm:$0xff]  }
 0x434   :  { %5828 = vmatpush1.bf16.msra.mxu1 %v7778_v10  ;;  %5992 = vmatpush1.bf16.msra.mxu0 %v7781_v51  ;;  %v7855_v10 = vld [vmem:[#allocation14 + $0xbc] ss:$28 sps:$4 sm:$0xff]  }
 0x435   :  { %5829 = vmatprep.subr.bf16.mxu1 %v7786_v54  ;;  %5993 = vmatprep.subr.bf16.mxu0 %v7789_v55  ;;  %v7856_v51 = vld [vmem:[#allocation14 + $0x280] ss:$28 sps:$4 sm:$0xff]   ;;  %v7853_v54 = vld [vmem:[#allocation14 + $0xb8] ss:$28 sps:$4 sm:$0xff]  }
 0x436   :  { %v7857_v55 = vld [vmem:[#allocation14 + $0xc0] ss:$28 sps:$4 sm:$0xff]  }
 0x438   :  { %5830 = vmatpush1.bf16.msra.mxu1 %v7784_v57  ;;  %5994 = vmatpush1.bf16.msra.mxu0 %v7787_v58  ;;  %v7860_v57 = vld [vmem:[#allocation14 + $0xf4] ss:$28 sps:$4 sm:$0xff]  }
 0x439   :  { %5831 = vmatprep.subr.bf16.mxu1 %v7792_v59  ;;  %5995 = vmatprep.subr.bf16.mxu0 %v7795_v60  ;;  %v7858_v58 = vld [vmem:[#allocation14 + $0xf0] ss:$28 sps:$4 sm:$0xff]   ;;  %v7862_v59 = vld [vmem:[#allocation14 + $0xf8] ss:$28 sps:$4 sm:$0xff]  }
 0x43a   :  { %v7865_v60 = vld [vmem:[#allocation14 + $0x12c] ss:$28 sps:$4 sm:$0xff]  }
 0x43c   :  { %5832 = vmatpush1.bf16.msra.mxu1 %v7790_v61  ;;  %5996 = vmatpush1.bf16.msra.mxu0 %v7793_v62  ;;  %v7866_v61 = vld [vmem:[#allocation14 + $0x2f0] ss:$28 sps:$4 sm:$0xff]   ;;  %v7863_v62 = vld [vmem:[#allocation14 + $0x128] ss:$28 sps:$4 sm:$0xff]  }
 0x43d   :  { %5833 = vmatprep.subr.bf16.mxu1 %v7798_v63  ;;  %5997 = vmatprep.subr.bf16.mxu0 %v7801_v0  ;;  %v7867_v63 = vld [vmem:[#allocation14 + $0x130] ss:$28 sps:$4 sm:$0xff]   ;;  %v7870_v0 = vld [vmem:[#allocation14 + $0x164] ss:$28 sps:$4 sm:$0xff]  }
 0x440   :  { %5834 = vmatpush1.bf16.msra.mxu1 %v7796_v11  ;;  %5998 = vmatpush1.bf16.msra.mxu0 %v7799_v2  ;;  %v7871_v11 = vld [vmem:[#allocation14 + $0x328] ss:$28 sps:$4 sm:$0xff]   ;;  %v7868_v2 = vld [vmem:[#allocation14 + $0x160] ss:$28 sps:$4 sm:$0xff]  }
 0x441   :  { %5835 = vmatprep.subr.bf16.mxu1 %v7804_v3  ;;  %5999 = vmatprep.subr.bf16.mxu0 %v7807_v4  ;;  %v7872_v3 = vld [vmem:[#allocation14 + $0x168] ss:$28 sps:$4 sm:$0xff]   ;;  %v7875_v4 = vld [vmem:[#allocation14 + $0x19c] ss:$28 sps:$4 sm:$0xff]  }
 0x444   :  { %5836 = vmatpush1.bf16.msra.mxu1 %v7802_v5  ;;  %6000 = vmatpush1.bf16.msra.mxu0 %v7805_v6  ;;  %v7876_v5 = vld [vmem:[#allocation14 + $0x360] ss:$28 sps:$4 sm:$0xff]   ;;  %v7873_v6 = vld [vmem:[#allocation14 + $0x198] ss:$28 sps:$4 sm:$0xff]  }
 0x445   :  { %5837 = vmatprep.subr.bf16.mxu1 %v7810_v7  ;;  %6001 = vmatprep.subr.bf16.mxu0 %v7813_v42  ;;  %v7877_v7 = vld [vmem:[#allocation14 + $0x1a0] ss:$28 sps:$4 sm:$0xff]   ;;  %v7880_v42 = vld [vmem:[#allocation14 + $0x1d4] ss:$28 sps:$4 sm:$0xff]  }
 0x448   :  { %5838 = vmatpush1.bf16.msra.mxu1 %v7808_v8  ;;  %6002 = vmatpush1.bf16.msra.mxu0 %v7811_v9  ;;  %v7881_v8 = vld [vmem:[#allocation14 + $0x558] ss:$28 sps:$4 sm:$0xff]   ;;  %v7878_v9 = vld [vmem:[#allocation14 + $0x1d0] ss:$28 sps:$4 sm:$0xff]  }
 0x449   :  { %5839 = vmatprep.subr.bf16.mxu1 %v7816_v12  ;;  %6003 = vmatprep.subr.bf16.mxu0 %v7819_v56  ;;  %v7882_v12 = vld [vmem:[#allocation14 + $0x398] ss:$28 sps:$4 sm:$0xff]   ;;  %v7885_v56 = vld [vmem:[#allocation14 + $0x20c] ss:$28 sps:$4 sm:$0xff]  }
 0x44c   :  { %5840 = vmatpush1.bf16.msra.mxu1 %v7814_v13  ;;  %6004 = vmatpush1.bf16.msra.mxu0 %v7817_v14  ;;  %v7886_v13 = vld [vmem:[#allocation14 + $0x590] ss:$28 sps:$4 sm:$0xff]   ;;  %v7883_v14 = vld [vmem:[#allocation14 + $0x208] ss:$28 sps:$4 sm:$0xff]  }
 0x44d   :  { %5841 = vmatprep.subr.bf16.mxu1 %v7822_v18  ;;  %6005 = vmatprep.subr.bf16.mxu0 %v7825_v38  ;;  %v7887_v18 = vld [vmem:[#allocation14 + $0x3d0] ss:$28 sps:$4 sm:$0xff]   ;;  %v7890_v38 = vld [vmem:[#allocation14 + $0x244] ss:$28 sps:$4 sm:$0xff]  }
 0x450   :  { %5842 = vmatpush1.bf16.msra.mxu1 %v7820_v20  ;;  %6006 = vmatpush1.bf16.msra.mxu0 %v7823_v24  ;;  %v7891_v20 = vld [vmem:[#allocation14 + $0x5c8] ss:$28 sps:$4 sm:$0xff]   ;;  %v7888_v24 = vld [vmem:[#allocation14 + $0x240] ss:$28 sps:$4 sm:$0xff]  }
 0x451   :  { %5843 = vmatprep.subr.bf16.mxu1 %v7828_v26  ;;  %6007 = vmatprep.subr.bf16.mxu0 %v7831_v27  ;;  %v7892_v26 = vld [vmem:[#allocation14 + $0x408] ss:$28 sps:$4 sm:$0xff]   ;;  %v7895_v27 = vld [vmem:[#allocation14 + $0x27c] ss:$28 sps:$4 sm:$0xff]  }
 0x454   :  { %5844 = vmatpush1.bf16.msra.mxu1 %v7826_v29  ;;  %6008 = vmatpush1.bf16.msra.mxu0 %v7829_v31  ;;  %v7896_v29 = vld [vmem:[#allocation14 + $0x600] ss:$28 sps:$4 sm:$0xff]   ;;  %v7893_v31 = vld [vmem:[#allocation14 + $0x278] ss:$28 sps:$4 sm:$0xff]  }
 0x455   :  { %5845 = vmatprep.subr.bf16.mxu1 %v7834_v32  ;;  %6009 = vmatprep.subr.bf16.mxu0 %v7837_v34  ;;  %v7897_v32 = vld [vmem:[#allocation14 + $0x440] ss:$28 sps:$4 sm:$0xff]   ;;  %v7900_v34 = vld [vmem:[#allocation14 + $0x2b4] ss:$28 sps:$4 sm:$0xff]  }
 0x458   :  { %5846 = vmatpush1.bf16.msra.mxu1 %v7832_v16  ;;  %6010 = vmatpush1.bf16.msra.mxu0 %v7835_v21  ;;  %v7898_v16 = vld [vmem:[#allocation14 + $0x2b0] ss:$28 sps:$4 sm:$0xff]   ;;  %v7902_v21 = vld [vmem:[#allocation14 + $0x478] ss:$28 sps:$4 sm:$0xff]  }
 0x459   :  { %6020 = vmatprep.subr.bf16.mxu1 %v7840_v22  ;;  %7161 = vmatprep.subr.bf16.mxu0 %v7841_v23  ;;  %v7905_v22 = vld [vmem:[#allocation14 + $0x2ec] ss:$28 sps:$4 sm:$0xff]  }
 0x45a   :  { %v7906_v23 = vld [vmem:[#allocation14 + $0x670] ss:$28 sps:$4 sm:$0xff]  }
 0x45b   :  { %5848 = vmatmul.mubr.bf16.vlgmr.msra.gmra.mrb[8].mxu1 %v8657_v41  ;;  %6012 = vmatmul.mubr.bf16.vlgmr.msra.gmra.mrb[20].mxu0 %v8657_v41 }
 0x45c   :  { %6021 = vmatpush1.bf16.msra.mxu1 %v7838_v37  ;;  %6052 = vmatprep.mubr.bf16.mxu1 %v8612_v30  ;;  %v7907_v37 = vld [vmem:[#allocation14 + $0x4b0] ss:$28 sps:$4 sm:$0xff]  }
 0x45d   :  { %7162 = vmatpush3.bf16.msra.mxu0 %v7842_v43  ;;  %6216 = vmatprep.mubr.bf16.mxu0 %v8612_v30  ;;  %v7861_v30 = vld [vmem:[#allocation14 + $0x2b8] ss:$28 sps:$4 sm:$0xff]   ;;  %v7910_v43 = vld [vmem:[#allocation14 + $0x324] ss:$28 sps:$4 sm:$0xff]  }
 0x45e   :  { %6022 = vmatprep.subr.bf16.mxu1 %v7845_v44  ;;  %7163 = vmatprep.subr.bf16.mxu0 %v7846_v45  ;;  %v7911_v44 = vld [vmem:[#allocation14 + $0x6a8] ss:$28 sps:$4 sm:$0xff]   ;;  %v7908_v45 = vld [vmem:[#allocation14 + $0x320] ss:$28 sps:$4 sm:$0xff]  }
 0x460   :  { %6023 = vmatpush1.bf16.msra.mxu1 %v7843_v47  ;;  %v7912_v47 = vld [vmem:[#allocation14 + $0x4e8] ss:$28 sps:$4 sm:$0xff]  }
 0x461   :  { %7164 = vmatpush3.bf16.msra.mxu0 %v7847_v1  ;;  %6024 = vmatprep.subr.bf16.mxu1 %v7850_v33  ;;  %v7915_v1 = vld [vmem:[#allocation14 + $0x35c] ss:$28 sps:$4 sm:$0xff]  }
 0x462   :  { %7165 = vmatprep.subr.bf16.mxu0 %v7851_v48  ;;  %v7916_v33 = vld [vmem:[#allocation14 + $0x6e0] ss:$28 sps:$4 sm:$0xff]   ;;  %v7913_v48 = vld [vmem:[#allocation14 + $0x358] ss:$28 sps:$4 sm:$0xff]  }
 0x464   :  { %6025 = vmatpush1.bf16.msra.mxu1 %v7848_v49  ;;  %v7917_v49 = vld [vmem:[#allocation14 + $0x520] ss:$28 sps:$4 sm:$0xff]  }
 0x465   :  { %7166 = vmatpush3.bf16.msra.mxu0 %v7852_v50  ;;  %6026 = vmatprep.subr.bf16.mxu1 %v7855_v10  ;;  %v7920_v50 = vld [vmem:[#allocation14 + $0x394] ss:$28 sps:$4 sm:$0xff]  }
 0x466   :  { %7167 = vmatprep.subr.bf16.mxu0 %v7856_v51  ;;  %v7921_v10 = vld [vmem:[#allocation14 + $0x8d8] ss:$28 sps:$4 sm:$0xff]   ;;  %v7918_v51 = vld [vmem:[#allocation14 + $0x390] ss:$28 sps:$4 sm:$0xff]  }
 0x468   :  { %6027 = vmatpush1.bf16.msra.mxu1 %v7853_v54  ;;  %v7922_v54 = vld [vmem:[#allocation14 + $0x718] ss:$28 sps:$4 sm:$0xff]  }
 0x469   :  { %7168 = vmatpush3.bf16.msra.mxu0 %v7857_v55  ;;  %6028 = vmatprep.subr.bf16.mxu1 %v7860_v57  ;;  %v7925_v55 = vld [vmem:[#allocation14 + $0x3cc] ss:$28 sps:$4 sm:$0xff]  }
 0x46a   :  { %7169 = vmatprep.subr.bf16.mxu0 %v7861_v30  ;;  %v7926_v57 = vld [vmem:[#allocation14 + $0x910] ss:$28 sps:$4 sm:$0xff]   ;;  %v7923_v30 = vld [vmem:[#allocation14 + $0x3c8] ss:$28 sps:$4 sm:$0xff]  }
 0x46c   :  { %6029 = vmatpush1.bf16.msra.mxu1 %v7858_v58  ;;  %v7927_v58 = vld [vmem:[#allocation14 + $0x750] ss:$28 sps:$4 sm:$0xff]  }
 0x46d   :  { %7170 = vmatpush3.bf16.msra.mxu0 %v7862_v59  ;;  %6030 = vmatprep.subr.bf16.mxu1 %v7865_v60  ;;  %v7930_v59 = vld [vmem:[#allocation14 + $0x404] ss:$28 sps:$4 sm:$0xff]  }
 0x46e   :  { %7171 = vmatprep.subr.bf16.mxu0 %v7866_v61  ;;  %v7931_v60 = vld [vmem:[#allocation14 + $0x948] ss:$28 sps:$4 sm:$0xff]   ;;  %v7928_v61 = vld [vmem:[#allocation14 + $0x400] ss:$28 sps:$4 sm:$0xff]  }
 0x470   :  { %6031 = vmatpush1.bf16.msra.mxu1 %v7863_v62  ;;  %v7935_v62 = vld [vmem:[#allocation14 + $0x43c] ss:$28 sps:$4 sm:$0xff]  }
 0x471   :  { %7172 = vmatpush3.bf16.msra.mxu0 %v7867_v63  ;;  %6032 = vmatprep.subr.bf16.mxu1 %v7870_v0  ;;  %v7936_v63 = vld [vmem:[#allocation14 + $0x980] ss:$28 sps:$4 sm:$0xff]   ;;  %v7933_v0 = vld [vmem:[#allocation14 + $0x438] ss:$28 sps:$4 sm:$0xff]  }
 0x472   :  { %7173 = vmatprep.subr.bf16.mxu0 %v7871_v11  ;;  %v7940_v11 = vld [vmem:[#allocation14 + $0x474] ss:$28 sps:$4 sm:$0xff]  }
 0x474   :  { %6033 = vmatpush1.bf16.msra.mxu1 %v7868_v2  ;;  %v7941_v2 = vld [vmem:[#allocation14 + $0x9b8] ss:$28 sps:$4 sm:$0xff]  }
 0x475   :  { %7174 = vmatpush3.bf16.msra.mxu0 %v7872_v3  ;;  %6034 = vmatprep.subr.bf16.mxu1 %v7875_v4  ;;  %v7938_v3 = vld [vmem:[#allocation14 + $0x470] ss:$28 sps:$4 sm:$0xff]   ;;  %v7942_v4 = vld [vmem:[#allocation14 + $0x7f8] ss:$28 sps:$4 sm:$0xff]  }
 0x476   :  { %7175 = vmatprep.subr.bf16.mxu0 %v7876_v5  ;;  %v7945_v5 = vld [vmem:[#allocation14 + $0x4ac] ss:$28 sps:$4 sm:$0xff]  }
 0x478   :  { %6035 = vmatpush1.bf16.msra.mxu1 %v7873_v6  ;;  %v7946_v6 = vld [vmem:[#allocation14 + $0x9f0] ss:$28 sps:$4 sm:$0xff]  }
 0x479   :  { %7176 = vmatpush3.bf16.msra.mxu0 %v7877_v7  ;;  %6036 = vmatprep.subr.bf16.mxu1 %v7880_v42  ;;  %v7943_v7 = vld [vmem:[#allocation14 + $0x4a8] ss:$28 sps:$4 sm:$0xff]   ;;  %v7947_v42 = vld [vmem:[#allocation14 + $0x830] ss:$28 sps:$4 sm:$0xff]  }
 0x47a   :  { %7183 = vmatprep.subr.bf16.mxu0 %v7881_v8  ;;  %v7950_v8 = vld [vmem:[#allocation14 + $0x4e4] ss:$28 sps:$4 sm:$0xff]  }
 0x47c   :  { %6217 = vmatmul.mubr.bf16.vlgmr.msra.gmra.mrb[24].mxu0 %v8614_v35  ;;  %6037 = vmatpush1.bf16.msra.mxu1 %v7878_v9  ;;  %v7951_v9 = vld [vmem:[#allocation14 + $0xa28] ss:$28 sps:$4 sm:$0xff]  }
 0x47d   :  { %7184 = vmatpush3.bf16.msra.mxu0 %v7882_v12  ;;  %6256 = vmatprep.mubr.bf16.mxu0 %v8618_v17  ;;  %v7948_v12 = vld [vmem:[#allocation14 + $0x4e0] ss:$28 sps:$4 sm:$0xff]  }
 0x47e   :  { %6038 = vmatprep.subr.bf16.mxu1 %v7885_v56  ;;  %7185 = vmatprep.subr.bf16.mxu0 %v7886_v13  ;;  %v7952_v56 = vld [vmem:[#allocation14 + $0x868] ss:$28 sps:$4 sm:$0xff]   ;;  %v7955_v13 = vld [vmem:[#allocation14 + $0x51c] ss:$28 sps:$4 sm:$0xff]  }
 0x480   :  { %6039 = vmatpush1.bf16.msra.mxu1 %v7883_v14  ;;  %v7956_v14 = vld [vmem:[#allocation14 + $0xa60] ss:$28 sps:$4 sm:$0xff]  }
 0x481   :  { %7186 = vmatpush3.bf16.msra.mxu0 %v7887_v18  ;;  %6040 = vmatprep.subr.bf16.mxu1 %v7890_v38  ;;  %v7953_v18 = vld [vmem:[#allocation14 + $0x518] ss:$28 sps:$4 sm:$0xff]   ;;  %v7957_v38 = vld [vmem:[#allocation14 + $0x8a0] ss:$28 sps:$4 sm:$0xff]  }
 0x482   :  { %7187 = vmatprep.subr.bf16.mxu0 %v7891_v20  ;;  %v7960_v20 = vld [vmem:[#allocation14 + $0x554] ss:$28 sps:$4 sm:$0xff]  }
 0x484   :  { %6041 = vmatpush1.bf16.msra.mxu1 %v7888_v24  ;;  %v7961_v24 = vld [vmem:[#allocation14 + $0xc58] ss:$28 sps:$4 sm:$0xff]  }
 0x485   :  { %7188 = vmatpush3.bf16.msra.mxu0 %v7892_v26  ;;  %6042 = vmatprep.subr.bf16.mxu1 %v7895_v27  ;;  %v7958_v26 = vld [vmem:[#allocation14 + $0x550] ss:$28 sps:$4 sm:$0xff]   ;;  %v7962_v27 = vld [vmem:[#allocation14 + $0xa98] ss:$28 sps:$4 sm:$0xff]  }
 0x486   :  { %7189 = vmatprep.subr.bf16.mxu0 %v7896_v29  ;;  %v7965_v29 = vld [vmem:[#allocation14 + $0x58c] ss:$28 sps:$4 sm:$0xff]  }
 0x488   :  { %6043 = vmatpush1.bf16.msra.mxu1 %v7893_v31  ;;  %v7966_v31 = vld [vmem:[#allocation14 + $0xc90] ss:$28 sps:$4 sm:$0xff]  }
 0x489   :  { %7190 = vmatpush3.bf16.msra.mxu0 %v7897_v32  ;;  %6044 = vmatprep.subr.bf16.mxu1 %v7900_v34  ;;  %v7963_v32 = vld [vmem:[#allocation14 + $0x588] ss:$28 sps:$4 sm:$0xff]   ;;  %v7967_v34 = vld [vmem:[#allocation14 + $0xad0] ss:$28 sps:$4 sm:$0xff]  }
 0x48a   :  { %7191 = vmatprep.subr.bf16.mxu0 %v7901_v15  ;;  %v7970_v15 = vld [vmem:[#allocation14 + $0x5c4] ss:$28 sps:$4 sm:$0xff]  }
 0x48c   :  { %6045 = vmatpush1.bf16.msra.mxu1 %v7898_v16  ;;  %v7971_v16 = vld [vmem:[#allocation14 + $0xcc8] ss:$28 sps:$4 sm:$0xff]  }
 0x48d   :  { %7192 = vmatpush3.bf16.msra.mxu0 %v7902_v21  ;;  %6046 = vmatprep.subr.bf16.mxu1 %v7905_v22  ;;  %v7968_v21 = vld [vmem:[#allocation14 + $0x5c0] ss:$28 sps:$4 sm:$0xff]   ;;  %v7972_v22 = vld [vmem:[#allocation14 + $0xb08] ss:$28 sps:$4 sm:$0xff]  }
 0x48e   :  { %7193 = vmatprep.subr.bf16.mxu0 %v7906_v23  ;;  %v7975_v23 = vld [vmem:[#allocation14 + $0x5fc] ss:$28 sps:$4 sm:$0xff]  }
 0x490   :  { %6047 = vmatpush1.bf16.msra.mxu1 %v7903_v36  ;;  %v7976_v36 = vld [vmem:[#allocation14 + $0xd00] ss:$28 sps:$4 sm:$0xff]  }
 0x491   :  { %7194 = vmatpush3.bf16.msra.mxu0 %v7907_v37  ;;  %6048 = vmatprep.subr.bf16.mxu1 %v7910_v43  ;;  %v7973_v37 = vld [vmem:[#allocation14 + $0x5f8] ss:$28 sps:$4 sm:$0xff]   ;;  %v7977_v43 = vld [vmem:[#allocation14 + $0xb40] ss:$28 sps:$4 sm:$0xff]  }
 0x492   :  { %7195 = vmatprep.subr.bf16.mxu0 %v7911_v44  ;;  %v7980_v44 = vld [vmem:[#allocation14 + $0x634] ss:$28 sps:$4 sm:$0xff]  }
 0x494   :  { %6049 = vmatpush1.bf16.msra.mxu1 %v7908_v45  ;;  %v7981_v45 = vld [vmem:[#allocation14 + $0xd38] ss:$28 sps:$4 sm:$0xff]  }
 0x495   :  { %7196 = vmatpush3.bf16.msra.mxu0 %v7912_v47  ;;  %6050 = vmatprep.subr.bf16.mxu1 %v7915_v1  ;;  %v7978_v47 = vld [vmem:[#allocation14 + $0x630] ss:$28 sps:$4 sm:$0xff]   ;;  %v7982_v1 = vld [vmem:[#allocation14 + $0xb78] ss:$28 sps:$4 sm:$0xff]  }
 0x496   :  { %7197 = vmatprep.subr.bf16.mxu0 %v7916_v33  ;;  %v7985_v33 = vld [vmem:[#allocation14 + $0x66c] ss:$28 sps:$4 sm:$0xff]  }
 0x498   :  { %6051 = vmatpush1.bf16.msra.mxu1 %v7913_v48  ;;  %v7986_v48 = vld [vmem:[#allocation14 + $0xd70] ss:$28 sps:$4 sm:$0xff]  }
 0x499   :  { %7198 = vmatpush3.bf16.msra.mxu0 %v7917_v49  ;;  %6061 = vmatprep.subr.bf16.mxu1 %v7920_v50  ;;  %v7983_v49 = vld [vmem:[#allocation14 + $0x668] ss:$28 sps:$4 sm:$0xff]   ;;  %v7987_v50 = vld [vmem:[#allocation14 + $0xbb0] ss:$28 sps:$4 sm:$0xff]  }
 0x49a   :  { %7205 = vmatprep.subr.bf16.mxu0 %v7921_v10  ;;  %v7990_v10 = vld [vmem:[#allocation14 + $0x6a4] ss:$28 sps:$4 sm:$0xff]  }
 0x49b   :  { %6053 = vmatmul.mubr.bf16.vlgmr.msra.gmra.mrb[12].mxu1 %v8614_v35  ;;  %v7932_v35 = vld [vmem:[#allocation14 + $0x788] ss:$28 sps:$4 sm:$0xff]  }
 0x49c   :  { %6257 = vmatmul.mubr.bf16.vlgmr.msra.gmra.mrb[28].mxu0 %v8627_v46  ;;  %6062 = vmatpush1.bf16.msra.mxu1 %v7918_v51  ;;  %v7991_v51 = vld [vmem:[#allocation14 + $0xda8] ss:$28 sps:$4 sm:$0xff]  }
 0x49d   :  { %6093 = vmatprep.mubr.bf16.mxu1 %v8618_v17  ;;  %7206 = vmatpush3.bf16.msra.mxu0 %v7922_v54  ;;  %v7937_v17 = vld [vmem:[#allocation14 + $0x7c0] ss:$28 sps:$4 sm:$0xff]  }
 0x49e   :  { %6296 = vmatprep.mubr.bf16.mxu0 %v8642_v19  ;;  %6063 = vmatprep.subr.bf16.mxu1 %v7925_v55  ;;  %v7988_v54 = vld [vmem:[#allocation14 + $0x6a0] ss:$28 sps:$4 sm:$0xff]   ;;  %v7992_v55 = vld [vmem:[#allocation14 + $0xbe8] ss:$28 sps:$4 sm:$0xff]  }
 0x49f   :  { %7207 = vmatprep.subr.bf16.mxu0 %v7926_v57  ;;  %v7995_v57 = vld [vmem:[#allocation14 + $0x6dc] ss:$28 sps:$4 sm:$0xff]  }
 0x4a0   :  { %6064 = vmatpush1.bf16.msra.mxu1 %v7923_v30  ;;  %v7996_v30 = vld [vmem:[#allocation14 + $0xde0] ss:$28 sps:$4 sm:$0xff]  }
 0x4a1   :  { %7208 = vmatpush3.bf16.msra.mxu0 %v7927_v58  ;;  %6065 = vmatprep.subr.bf16.mxu1 %v7930_v59  ;;  %v7993_v58 = vld [vmem:[#allocation14 + $0x6d8] ss:$28 sps:$4 sm:$0xff]   ;;  %v7997_v59 = vld [vmem:[#allocation14 + $0xc20] ss:$28 sps:$4 sm:$0xff]  }
 0x4a2   :  { %7209 = vmatprep.subr.bf16.mxu0 %v7931_v60  ;;  %v8000_v60 = vld [vmem:[#allocation14 + $0x714] ss:$28 sps:$4 sm:$0xff]  }
 0x4a4   :  { %6066 = vmatpush1.bf16.msra.mxu1 %v7928_v61  ;;  %v7998_v61 = vld [vmem:[#allocation14 + $0x710] ss:$28 sps:$4 sm:$0xff]  }
 0x4a5   :  { %7210 = vmatpush3.bf16.msra.mxu0 %v7932_v35  ;;  %6067 = vmatprep.subr.bf16.mxu1 %v7935_v62  ;;  %v8003_v35 = vld [vmem:[#allocation14 + $0x74c] ss:$28 sps:$4 sm:$0xff]  }
 0x4a6   :  { %7211 = vmatprep.subr.bf16.mxu0 %v7936_v63  ;;  %v8001_v62 = vld [vmem:[#allocation14 + $0x748] ss:$28 sps:$4 sm:$0xff]  }
 0x4a7   :  { %v8006_v63 = vld [vmem:[#allocation14 + $0x784] ss:$28 sps:$4 sm:$0xff]  }
 0x4a8   :  { %6068 = vmatpush1.bf16.msra.mxu1 %v7933_v0  ;;  %v8004_v0 = vld [vmem:[#allocation14 + $0x780] ss:$28 sps:$4 sm:$0xff]  }
 0x4a9   :  { %7212 = vmatpush3.bf16.msra.mxu0 %v7937_v17  ;;  %6069 = vmatprep.subr.bf16.mxu1 %v7940_v11  ;;  %v8009_v17 = vld [vmem:[#allocation14 + $0x7bc] ss:$28 sps:$4 sm:$0xff]  }
 0x4aa   :  { %7213 = vmatprep.subr.bf16.mxu0 %v7941_v2  ;;  %v8007_v11 = vld [vmem:[#allocation14 + $0x7b8] ss:$28 sps:$4 sm:$0xff]  }
 0x4ab   :  { %v8012_v2 = vld [vmem:[#allocation14 + $0x7f4] ss:$28 sps:$4 sm:$0xff]  }
 0x4ac   :  { %6070 = vmatpush1.bf16.msra.mxu1 %v7938_v3  ;;  %v8010_v3 = vld [vmem:[#allocation14 + $0x7f0] ss:$28 sps:$4 sm:$0xff]  }
 0x4ad   :  { %7214 = vmatpush3.bf16.msra.mxu0 %v7942_v4  ;;  %6071 = vmatprep.subr.bf16.mxu1 %v7945_v5  ;;  %v8013_v4 = vld [vmem:[#allocation14 + $0x828] ss:$28 sps:$4 sm:$0xff]  }
 0x4ae   :  { %7215 = vmatprep.subr.bf16.mxu0 %v7946_v6  ;;  %v8018_v5 = vld [vmem:[#allocation14 + $0x864] ss:$28 sps:$4 sm:$0xff]   ;;  %v8021_v6 = vld [vmem:[#allocation14 + $0x89c] ss:$28 sps:$4 sm:$0xff]  }
 0x4b0   :  { %6072 = vmatpush1.bf16.msra.mxu1 %v7943_v7  ;;  %v8019_v7 = vld [vmem:[#allocation14 + $0x898] ss:$28 sps:$4 sm:$0xff]  }
 0x4b1   :  { %7216 = vmatpush3.bf16.msra.mxu0 %v7947_v42  ;;  %6073 = vmatprep.subr.bf16.mxu1 %v7950_v8  ;;  %v8024_v42 = vld [vmem:[#allocation14 + $0x8d4] ss:$28 sps:$4 sm:$0xff]  }
 0x4b2   :  { %7217 = vmatprep.subr.bf16.mxu0 %v7951_v9  ;;  %v8022_v8 = vld [vmem:[#allocation14 + $0x8d0] ss:$28 sps:$4 sm:$0xff]  }
 0x4b3   :  { %v8027_v9 = vld [vmem:[#allocation14 + $0x90c] ss:$28 sps:$4 sm:$0xff]  }
 0x4b4   :  { %6074 = vmatpush1.bf16.msra.mxu1 %v7948_v12  ;;  %v8025_v12 = vld [vmem:[#allocation14 + $0x908] ss:$28 sps:$4 sm:$0xff]  }
 0x4b5   :  { %7218 = vmatpush3.bf16.msra.mxu0 %v7952_v56  ;;  %6075 = vmatprep.subr.bf16.mxu1 %v7955_v13  ;;  %v8030_v56 = vld [vmem:[#allocation14 + $0x944] ss:$28 sps:$4 sm:$0xff]  }
 0x4b6   :  { %7219 = vmatprep.subr.bf16.mxu0 %v7956_v14  ;;  %v8028_v13 = vld [vmem:[#allocation14 + $0x940] ss:$28 sps:$4 sm:$0xff]  }
 0x4b7   :  { %v8033_v14 = vld [vmem:[#allocation14 + $0x97c] ss:$28 sps:$4 sm:$0xff]  }
 0x4b8   :  { %6076 = vmatpush1.bf16.msra.mxu1 %v7953_v18  ;;  %v8031_v18 = vld [vmem:[#allocation14 + $0x978] ss:$28 sps:$4 sm:$0xff]  }
 0x4b9   :  { %7220 = vmatpush3.bf16.msra.mxu0 %v7957_v38  ;;  %6077 = vmatprep.subr.bf16.mxu1 %v7960_v20  ;;  %v8036_v38 = vld [vmem:[#allocation14 + $0x9b4] ss:$28 sps:$4 sm:$0xff]  }
 0x4ba   :  { %7227 = vmatprep.subr.bf16.mxu0 %v7961_v24  ;;  %v8034_v20 = vld [vmem:[#allocation14 + $0x9b0] ss:$28 sps:$4 sm:$0xff]  }
 0x4bb   :  { %v8039_v24 = vld [vmem:[#allocation14 + $0x9ec] ss:$28 sps:$4 sm:$0xff]  }
 0x4bc   :  { %6297 = vmatmul.mubr.bf16.vlgmr.msra.gmra.mrb[32].mxu0 %v8644_v25  ;;  %6078 = vmatpush1.bf16.msra.mxu1 %v7958_v26  ;;  %v8037_v26 = vld [vmem:[#allocation14 + $0x9e8] ss:$28 sps:$4 sm:$0xff]  }
 0x4bd   :  { %7228 = vmatpush3.bf16.msra.mxu0 %v7962_v27  ;;  %6336 = vmatprep.mubr.bf16.mxu0 %v8648_v28  ;;  %v8042_v27 = vld [vmem:[#allocation14 + $0xa24] ss:$28 sps:$4 sm:$0xff]  }
 0x4be   :  { %6079 = vmatprep.subr.bf16.mxu1 %v7965_v29  ;;  %7229 = vmatprep.subr.bf16.mxu0 %v7966_v31  ;;  %v8040_v29 = vld [vmem:[#allocation14 + $0xa20] ss:$28 sps:$4 sm:$0xff]  }
 0x4bf   :  { %v8045_v31 = vld [vmem:[#allocation14 + $0xa5c] ss:$28 sps:$4 sm:$0xff]  }
 0x4c0   :  { %6080 = vmatpush1.bf16.msra.mxu1 %v7963_v32  ;;  %v8043_v32 = vld [vmem:[#allocation14 + $0xa58] ss:$28 sps:$4 sm:$0xff]  }
 0x4c1   :  { %7230 = vmatpush3.bf16.msra.mxu0 %v7967_v34  ;;  %6081 = vmatprep.subr.bf16.mxu1 %v7970_v15  ;;  %v8048_v34 = vld [vmem:[#allocation14 + $0xa94] ss:$28 sps:$4 sm:$0xff]  }
 0x4c2   :  { %7231 = vmatprep.subr.bf16.mxu0 %v7971_v16  ;;  %v8046_v15 = vld [vmem:[#allocation14 + $0xa90] ss:$28 sps:$4 sm:$0xff]  }
 0x4c3   :  { %v8051_v16 = vld [vmem:[#allocation14 + $0xacc] ss:$28 sps:$4 sm:$0xff]  }
 0x4c4   :  { %6082 = vmatpush1.bf16.msra.mxu1 %v7968_v21  ;;  %v8049_v21 = vld [vmem:[#allocation14 + $0xac8] ss:$28 sps:$4 sm:$0xff]  }
 0x4c5   :  { %7232 = vmatpush3.bf16.msra.mxu0 %v7972_v22  ;;  %6083 = vmatprep.subr.bf16.mxu1 %v7975_v23  ;;  %v8054_v22 = vld [vmem:[#allocation14 + $0xb04] ss:$28 sps:$4 sm:$0xff]  }
 0x4c6   :  { %7233 = vmatprep.subr.bf16.mxu0 %v7976_v36  ;;  %v8052_v23 = vld [vmem:[#allocation14 + $0xb00] ss:$28 sps:$4 sm:$0xff]  }
 0x4c7   :  { %v8676_v36 = vld [vmem:[#allocation16] sm:$0x7f] }
 0x4c8   :  { %6084 = vmatpush1.bf16.msra.mxu1 %v7973_v37  ;;  %v8057_v37 = vld [vmem:[#allocation14 + $0xb3c] ss:$28 sps:$4 sm:$0xff]  }
 0x4c9   :  { %7234 = vmatpush3.bf16.msra.mxu0 %v7977_v43  ;;  %6085 = vmatprep.subr.bf16.mxu1 %v7980_v44  ;;  %v3321_v43 = vunpack.c.l.bf16 %v8676_v36  ;;  %v8055_v44 = vld [vmem:[#allocation14 + $0xb38] ss:$28 sps:$4 sm:$0xff]  }
 0x4ca   :  { %7235 = vmatprep.subr.bf16.mxu0 %v7981_v45  ;;  %v8060_v45 = vld [vmem:[#allocation14 + $0xb74] ss:$28 sps:$4 sm:$0xff]  }
 0x4cc   :  { %6086 = vmatpush1.bf16.msra.mxu1 %v7978_v47  ;;  %v3336_v47 = vrot.slane %v3321_v43, %v8572_v52 }
 0x4cd   :  { %7236 = vmatpush3.bf16.msra.mxu0 %v7982_v1  ;;  %6087 = vmatprep.subr.bf16.mxu1 %v7985_v33  ;;  %v3332_v1 = vrot.slane %v3321_v43, %v8523_v40  ;;  %v3340_v33 = vrot.slane %v3321_v43, %v8575_v53 }
 0x4ce   :  { %7237 = vmatprep.subr.bf16.mxu0 %v7986_v48  ;;  %v8063_v48 = vld [vmem:[#allocation14 + $0xbac] ss:$28 sps:$4 sm:$0xff]  }
 0x4d0   :  { %6088 = vmatpush1.bf16.msra.mxu1 %v7983_v49 }
 0x4d1   :  { %7238 = vmatpush3.bf16.msra.mxu0 %v7987_v50  ;;  %6089 = vmatprep.subr.bf16.mxu1 %v7990_v10  ;;  %v3371_v50 = vrot.slane %v3336_v47, %v8520_v39  ;;  %v3367_v10 = vrot.slane %v3332_v1, %v8520_v39 }
 0x4d2   :  { %7239 = vmatprep.subr.bf16.mxu0 %v7991_v51  ;;  %v3375_v51 = vrot.slane %v3340_v33, %v8520_v39 }
 0x4d4   :  { %6090 = vmatpush1.bf16.msra.mxu1 %v7988_v54  ;;  %v8061_v54 = vld [vmem:[#allocation14 + $0xba8] ss:$28 sps:$4 sm:$0xff]  }
 0x4d5   :  { %7240 = vmatpush3.bf16.msra.mxu0 %v7992_v55  ;;  %6091 = vmatprep.subr.bf16.mxu1 %v7995_v57  ;;  %v8066_v55 = vld [vmem:[#allocation14 + $0xbe4] ss:$28 sps:$4 sm:$0xff]  }
 0x4d6   :  { %7241 = vmatprep.subr.bf16.mxu0 %v7996_v30 }
 0x4d8   :  { %6092 = vmatpush1.bf16.msra.mxu1 %v7993_v58 }
 0x4d9   :  { %7242 = vmatpush3.bf16.msra.mxu0 %v7997_v59  ;;  %6102 = vmatprep.subr.bf16.mxu1 %v8000_v60 }
 0x4db   :  { %6094 = vmatmul.mubr.bf16.vlgmr.msra.gmra.mrb[12].mxu1 %v8627_v46  ;;  %v8015_v46 = vld [vmem:[#allocation14 + $0x82c] ss:$28 sps:$4 sm:$0xff]  }
 0x4dc   :  { %6337 = vmatmul.mubr.bf16.vlgmr.msra.gmra.mrb[36].mxu0 %v8657_v41  ;;  %6103 = vmatpush1.bf16.msra.mxu1 %v7998_v61 }
 0x4dd   :  { %6134 = vmatprep.mubr.bf16.mxu1 %v8642_v19  ;;  %6104 = vmatprep.subr.bf16.mxu1 %v8003_v35  ;;  %v8016_v19 = vld [vmem:[#allocation14 + $0x860] ss:$28 sps:$4 sm:$0xff]  }
 0x4e0   :  { %6105 = vmatpush1.bf16.msra.mxu1 %v8001_v62 }
 0x4e1   :  { %6106 = vmatprep.subr.bf16.mxu1 %v8006_v63 }
 0x4e4   :  { %6107 = vmatpush1.bf16.msra.mxu1 %v8004_v0  ;;  %v8064_v0 = vld [vmem:[#allocation14 + $0xbe0] ss:$28 sps:$4 sm:$0xff]  }
 0x4e5   :  { %6108 = vmatprep.subr.bf16.mxu1 %v8009_v17 }
 0x4e8   :  { %6109 = vmatpush1.bf16.msra.mxu1 %v8007_v11 }
 0x4e9   :  { %6110 = vmatprep.subr.bf16.mxu1 %v8012_v2  ;;  %v8069_v2 = vld [vmem:[#allocation14 + $0xc1c] ss:$28 sps:$4 sm:$0xff]  }
 0x4ec   :  { %6111 = vmatpush1.bf16.msra.mxu1 %v8010_v3  ;;  %v8067_v3 = vld [vmem:[#allocation14 + $0xc18] ss:$28 sps:$4 sm:$0xff]  }
 0x4ed   :  { %6112 = vmatprep.subr.bf16.mxu1 %v8015_v46  ;;  %v8072_v46 = vld [vmem:[#allocation14 + $0xc54] ss:$28 sps:$4 sm:$0xff]  }
 0x4f0   :  { %6113 = vmatpush1.bf16.msra.mxu1 %v8013_v4  ;;  %v8070_v4 = vld [vmem:[#allocation14 + $0xc50] ss:$28 sps:$4 sm:$0xff]  }
 0x4f1   :  { %6114 = vmatprep.subr.bf16.mxu1 %v8018_v5  ;;  %v8075_v5 = vld [vmem:[#allocation14 + $0xc8c] ss:$28 sps:$4 sm:$0xff]  }
 0x4f4   :  { %6115 = vmatpush1.bf16.msra.mxu1 %v8016_v19 }
 0x4f5   :  { %6116 = vmatprep.subr.bf16.mxu1 %v8021_v6 }
 0x4f8   :  { %6117 = vmatpush1.bf16.msra.mxu1 %v8019_v7  ;;  %v8073_v7 = vld [vmem:[#allocation14 + $0xc88] ss:$28 sps:$4 sm:$0xff]  }
 0x4f9   :  { %6118 = vmatprep.subr.bf16.mxu1 %v8024_v42 }
 0x4fc   :  { %6119 = vmatpush1.bf16.msra.mxu1 %v8022_v8  ;;  %v8078_v8 = vld [vmem:[#allocation14 + $0xcc4] ss:$28 sps:$4 sm:$0xff]  }
 0x4fd   :  { %6120 = vmatprep.subr.bf16.mxu1 %v8027_v9 }
 0x500   :  { %6121 = vmatpush1.bf16.msra.mxu1 %v8025_v12  ;;  %v8076_v12 = vld [vmem:[#allocation14 + $0xcc0] ss:$28 sps:$4 sm:$0xff]  }
 0x501   :  { %6122 = vmatprep.subr.bf16.mxu1 %v8030_v56  ;;  %v8081_v56 = vld [vmem:[#allocation14 + $0xcfc] ss:$28 sps:$4 sm:$0xff]  }
 0x504   :  { %6123 = vmatpush1.bf16.msra.mxu1 %v8028_v13  ;;  %v8079_v13 = vld [vmem:[#allocation14 + $0xcf8] ss:$28 sps:$4 sm:$0xff]  }
 0x505   :  { %6124 = vmatprep.subr.bf16.mxu1 %v8033_v14  ;;  %v8084_v14 = vld [vmem:[#allocation14 + $0xd34] ss:$28 sps:$4 sm:$0xff]  }
 0x508   :  { %6125 = vmatpush1.bf16.msra.mxu1 %v8031_v18  ;;  %v8082_v18 = vld [vmem:[#allocation14 + $0xd30] ss:$28 sps:$4 sm:$0xff]  }
 0x509   :  { %6126 = vmatprep.subr.bf16.mxu1 %v8036_v38  ;;  %v8087_v38 = vld [vmem:[#allocation14 + $0xd6c] ss:$28 sps:$4 sm:$0xff]  }
 0x50c   :  { %6127 = vmatpush1.bf16.msra.mxu1 %v8034_v20  ;;  %v8085_v20 = vld [vmem:[#allocation14 + $0xd68] ss:$28 sps:$4 sm:$0xff]  }
 0x50d   :  { %6128 = vmatprep.subr.bf16.mxu1 %v8039_v24  ;;  %v8090_v24 = vld [vmem:[#allocation14 + $0xda4] ss:$28 sps:$4 sm:$0xff]  }
 0x510   :  { %6129 = vmatpush1.bf16.msra.mxu1 %v8037_v26 }
 0x511   :  { %6130 = vmatprep.subr.bf16.mxu1 %v8042_v27 }
 0x514   :  { %6131 = vmatpush1.bf16.msra.mxu1 %v8040_v29  ;;  %v8088_v29 = vld [vmem:[#allocation14 + $0xda0] ss:$28 sps:$4 sm:$0xff]  }
 0x515   :  { %6132 = vmatprep.subr.bf16.mxu1 %v8045_v31 }
 0x518   :  { %6133 = vmatpush1.bf16.msra.mxu1 %v8043_v32 }
 0x519   :  { %6143 = vmatprep.subr.bf16.mxu1 %v8048_v34  ;;  %v8093_v34 = vld [vmem:[#allocation14 + $0xddc] ss:$28 sps:$4 sm:$0xff]  }
 0x51b   :  { %6135 = vmatmul.mubr.bf16.vlgmr.msra.gmra.mrb[12].mxu1 %v8644_v25  ;;  %v3328_v25 = vrot.slane %v3321_v43, %v8520_v39 }
 0x51c   :  { %6144 = vmatpush1.bf16.msra.mxu1 %v8046_v15  ;;  %6175 = vmatprep.mubr.bf16.mxu1 %v8648_v28  ;;  %v8058_v28 = vld [vmem:[#allocation14 + $0xb70] ss:$28 sps:$4 sm:$0xff]  }
 0x51d   :  { %6145 = vmatprep.subr.bf16.mxu1 %v8051_v16  ;;  %v3363_v49 = vrot.slane %v3328_v25, %v8520_v39  ;;  %v8091_v16 = vld [vmem:[#allocation14 + $0xdd8] ss:$28 sps:$4 sm:$0xff]  }
 0x520   :  { %6146 = vmatpush1.bf16.msra.mxu1 %v8049_v21  ;;  %v3322_v21 = vunpack.c.h.bf16 %v8676_v36 }
 0x521   :  { %6147 = vmatprep.subr.bf16.mxu1 %v8054_v22 }
 0x522   :  { %v3352_v22 = vrot.slane %v3322_v21, %v8572_v52 }
 0x524   :  { %6148 = vmatpush1.bf16.msra.mxu1 %v8052_v23  ;;  %v3387_v23 = vrot.slane %v3352_v22, %v8520_v39 }
 0x525   :  { %6149 = vmatprep.subr.bf16.mxu1 %v8057_v37 }
 0x528   :  { %6150 = vmatpush1.bf16.msra.mxu1 %v8055_v44 }
 0x529   :  { %6151 = vmatprep.subr.bf16.mxu1 %v8060_v45 }
 0x52c   :  { %6152 = vmatpush1.bf16.msra.mxu1 %v8058_v28 }
 0x52d   :  { %6153 = vmatprep.subr.bf16.mxu1 %v8063_v48 }
 0x52e   :  { %v5849_v57 = vpop.f32.mrb[8].mxu1  ;;  %v6013_v30 = vpop.f32.mrb[20].mxu0 }
 0x52f   :  { %v7257_v58 = vadd.f32 %v5849_v57, %v3363_v49  ;;  %v7259_v59 = vadd.f32 %v6013_v30, %v3371_v50  ;;  %v5851_v60 = vpop.f32.mrb[9].mxu1  ;;  %v6015_v53 = vpop.f32.mrb[21].mxu0  ;;  %v3344_v30 = vrot.slane %v3322_v21, %v8520_v39 }
 0x530   :  { %v7258_v61 = vadd.f32 %v5851_v60, %v3367_v10  ;;  %v7260_v35 = vadd.f32 %v6015_v53, %v3375_v51  ;;  %v5853_v62 = vpop.f32.mrb[10].mxu1  ;;  %v6017_v63 = vpop.f32.mrb[22].mxu0  ;;  %6154 = vmatpush1.bf16.msra.mxu1 %v8061_v54 }
 0x531   :  { %8094 = vtanh.f32 %v7257_v58  ;;  %v5854_v17 = vpop.f32.mrb[11].mxu1  ;;  %v6018_v11 = vpop.f32.mrb[23].mxu0  ;;  %6155 = vmatprep.subr.bf16.mxu1 %v8066_v55  ;;  %v3348_v58 = vrot.slane %v3322_v21, %v8523_v40 }
 0x532   :  { %8096 = vtanh.f32 %v7259_v59  ;;  %v3379_v59 = vrot.slane %v3344_v30, %v8520_v39 }
 0x533   :  { %8098 = vtanh.f32 %v7258_v61  ;;  %v3383_v60 = vrot.slane %v3348_v58, %v8520_v39 }
 0x534   :  { %8100 = vtanh.f32 %v7260_v35  ;;  %6156 = vmatpush1.bf16.msra.mxu1 %v8064_v0 }
 0x535   :  { %6157 = vmatprep.subr.bf16.mxu1 %v8069_v2 }
 0x538   :  { %6158 = vmatpush1.bf16.msra.mxu1 %v8067_v3 }
 0x539   :  { %6159 = vmatprep.subr.bf16.mxu1 %v8072_v46 }
 0x53b   :  { %v8095_v19 = vpop.eup %8094 }
 0x53c   :  { %v8097_v6 = vpop.eup %8096  ;;  %6351 = vst [vmem:[#allocation17] sm:$0xff] %v8095_v19  ;;  %6160 = vmatpush1.bf16.msra.mxu1 %v8070_v4 }
 0x53d   :  { %v8099_v42 = vpop.eup %8098  ;;  %6353 = vst [vmem:[#allocation17 + $0x10] sm:$0xff] %v8097_v6  ;;  %6161 = vmatprep.subr.bf16.mxu1 %v8075_v5 }
 0x53e   :  { %v8101_v9 = vpop.eup %8100  ;;  %6352 = vst [vmem:[#allocation17 + $0x8] sm:$0xff] %v8099_v42 }
 0x53f   :  { %6354 = vst [vmem:[#allocation17 + $0x18] sm:$0xff] %v8101_v9 }
 0x540   :  { %6162 = vmatpush1.bf16.msra.mxu1 %v8073_v7 }
 0x541   :  { %6163 = vmatprep.subr.bf16.mxu1 %v8078_v8 }
 0x544   :  { %6164 = vmatpush1.bf16.msra.mxu1 %v8076_v12 }
 0x545   :  { %6165 = vmatprep.subr.bf16.mxu1 %v8081_v56 }
 0x548   :  { %6166 = vmatpush1.bf16.msra.mxu1 %v8079_v13 }
 0x549   :  { %6167 = vmatprep.subr.bf16.mxu1 %v8084_v14 }
 0x54c   :  { %6168 = vmatpush1.bf16.msra.mxu1 %v8082_v18 }
 0x54d   :  { %6169 = vmatprep.subr.bf16.mxu1 %v8087_v38 }
 0x54f   :  { %v7177_v26 = vpop.f32.mrb[24].mxu0 }
 0x550   :  { %v7178_v27 = vpop.f32.mrb[25].mxu0  ;;  %6170 = vmatpush1.bf16.msra.mxu1 %v8085_v20 }
 0x551   :  { %v7179_v31 = vadd.f32 %v7178_v27, %v7177_v26  ;;  %v7180_v32 = vpop.f32.mrb[26].mxu0  ;;  %6171 = vmatprep.subr.bf16.mxu1 %v8090_v24 }
 0x552   :  { %v7181_v15 = vpop.f32.mrb[27].mxu0 }
 0x553   :  { %v6219_v44 = vadd.f32 %v7179_v31, %v3387_v23 }
 0x554   :  { %6172 = vmatpush1.bf16.msra.mxu1 %v8088_v29 }
 0x555   :  { %6173 = vmatprep.subr.bf16.mxu1 %v8093_v34 }
 0x558   :  { %6174 = vmatpush1.bf16.msra.mxu1 %v8091_v16 }
 0x55b   :  { %6176 = vmatmul.mubr.bf16.vlgmr.msra.gmra.mrb[12].mxu1 %v8657_v41 }
 0x56f   :  { %v7199_v37 = vpop.f32.mrb[28].mxu0 }
 0x570   :  { %v7200_v43 = vpop.f32.mrb[29].mxu0 }
 0x571   :  { %v7201_v45 = vadd.f32 %v7200_v43, %v7199_v37  ;;  %v7202_v25 = vpop.f32.mrb[30].mxu0 }
 0x572   :  { %v7203_v47 = vpop.f32.mrb[31].mxu0 }
 0x573   :  { %v6259_v28 = vadd.f32 %v7201_v45, %v6219_v44 }
 0x58f   :  { %v7221_v1 = vpop.f32.mrb[32].mxu0 }
 0x590   :  { %v7222_v33 = vpop.f32.mrb[33].mxu0 }
 0x591   :  { %v7223_v48 = vadd.f32 %v7222_v33, %v7221_v1  ;;  %v7224_v49 = vpop.f32.mrb[34].mxu0 }
 0x592   :  { %v7225_v50 = vpop.f32.mrb[35].mxu0 }
 0x593   :  { %v6299_v10 = vadd.f32 %v7223_v48, %v6259_v28 }
 0x5af   :  { %v7243_v41 = vpop.f32.mrb[36].mxu0 }
 0x5b0   :  { %v7244_v51 = vpop.f32.mrb[37].mxu0 }
 0x5b1   :  { %v7245_v36 = vadd.f32 %v7244_v51, %v7243_v41  ;;  %v7246_v54 = vpop.f32.mrb[38].mxu0 }
 0x5b2   :  { %v7247_v52 = vpop.f32.mrb[39].mxu0 }
 0x5b3   :  { %v6339_v55 = vadd.f32 %v7245_v36, %v6299_v10 }
 0x5b5   :  { %8102 = vtanh.f32 %v6339_v55 }
 0x5bf   :  { %v8103_v57 = vpop.eup %8102 }
 0x5c0   :  { %6357 = vst [vmem:[#allocation17 + $0x30] sm:$0xff] %v8103_v57 }
 0x62e   :  { %v6177_v53 = vpop.f32.mrb[12].mxu1 }
 0x62f   :  { %v7261_v61 = vadd.f32 %v6177_v53, %v3379_v59  ;;  %v6179_v35 = vpop.f32.mrb[13].mxu1 }
 0x630   :  { %v7262_v62 = vadd.f32 %v6179_v35, %v3383_v60  ;;  %v6181_v63 = vpop.f32.mrb[14].mxu1 }
 0x631   :  { %8104 = vtanh.f32 %v7261_v61  ;;  %v6182_v0 = vpop.f32.mrb[15].mxu1 }
 0x632   :  { %8106 = vtanh.f32 %v7262_v62 }
 0x63b   :  { %v8105_v17 = vpop.eup %8104 }
 0x63c   :  { %v8107_v11 = vpop.eup %8106  ;;  %6355 = vst [vmem:[#allocation17 + $0x20] sm:$0xff] %v8105_v17 }
 0x63d   :  { %6356 = vst [vmem:[#allocation17 + $0x28] sm:$0xff] %v8107_v11 }
 0x63e   :  { %8317 = shalt.err (!%p8314_p6)
}
 0x63f   :  { %s8318_s22 = scalar_lea.hbm %s8716_s9, 896 }
 0x640   :  { %p8319_p7 = scmp.ne.s32.totalorder %s8716_s9, %s8318_s22  ;;  %p8322_p8 = scmp.lt.u32.totalorder %s8318_s22, %s8716_s9 }
 0x642   :  { %p8324_p9 = pnand %p8322_p8, %p8319_p7 }
 0x644   :  { %8327 = shalt.err (!%p8324_p9)
}
 0x645   :  { %6367 = dma.vmem_to_hbm [thread:$0]  %s6365_s24, 896, %s8716_s9, [#allocation4]  }
 0x646   :  { %8338 = dma.done.wait [#allocation4], 896  }
 0x647   :  { %8339 = vsyncadd [#allocation4], 4294966400 }
 0x648   :  { %6371 = vsyncpa [#allocation3], 1 }
 0x649   :  { %6372 = vsyncpa [#allocation6], 1 }
 0x64a   :  { %6373 = vsyncpa [#allocation9], 1 }
 0x64b   :  { %6374 = vsyncpa [#allocation12], 1 }
 0x64c   :  { %6375 = vsyncpa [#allocation15], 1 }
 0x64d   :  { %6376 = vsyncpa [#allocation4], 1 }

</bundles_post_ra>
